<compile_context>
chip_gen: v5e
topology: v5e:2x2
jax: 0.10.0
libtpu: 0.0.40
codegen_flags: <defaults>
</compile_context>

<pallas_src>
import functools

import jax
import jax.numpy as jnp
from jax import lax
from jax.experimental import pallas as pl
from jax.experimental.pallas import tpu as pltpu


LRELU_SLOPE = 0.2                 # nn.LeakyReLU(negative_slope=0.2)
IN_EPS = 1e-5                     # nn.InstanceNorm2d default eps
LANE = 128                        # lane-dense channel padding
VMEM_LIMIT = 32 * 1024 * 1024     # explicit scoped-VMEM budget (safe on v5e/v6e/v7x)


def _round_up(x, m):
    return (x + m - 1) // m * m


# ----------------------------------------------------------------------------
# Pallas kernels
# ----------------------------------------------------------------------------
def _in_lrelu_kernel(x_ref, o_ref):
    """InstanceNorm2d(affine=False) + LeakyReLU(0.2) for one sample.

    x_ref: (1, H*W, Cp) f32 -> o_ref: (1, H*W, Cp) bf16 (lane-dense, Cp=128).
    Two-pass mean/variance in f32 (avoids E[x^2]-E[x]^2 cancellation).
    Zero-padded channels stay exactly 0 (mean 0, var 0 -> 0 * rsqrt(eps) = 0).
    """
    x = x_ref[0]
    mean = jnp.mean(x, axis=0, keepdims=True)
    cen = x - mean
    var = jnp.mean(cen * cen, axis=0, keepdims=True)
    y = cen * lax.rsqrt(var + IN_EPS)
    y = jnp.where(y >= 0, y, LRELU_SLOPE * y)
    o_ref[0] = y.astype(o_ref.dtype)


def _make_conv3x3_kernel(H, W, fuse_in_lrelu):
    """3x3 conv for one reflect-padded sample as 9 shifted MXU matmuls (no im2col in HBM).

    x_ref: (1, H+2, W+2, Cp) bf16, w_ref: (9, Cp, Coutp) bf16, o_ref: (1, H*W, Coutp).
    When fuse_in_lrelu, InstanceNorm + LeakyReLU run on the f32 accumulator (conv1 path),
    removing the separate IN pass and its HBM round trip.
    """
    def kernel(x_ref, w_ref, o_ref):
        cin_p = x_ref.shape[3]
        cout_p = w_ref.shape[2]
        acc = jnp.zeros((H * W, cout_p), jnp.float32)
        for di in range(3):
            for dj in range(3):
                patch = x_ref[0, di:di + H, dj:dj + W, :].reshape(H * W, cin_p)
                acc = acc + jnp.dot(patch, w_ref[di * 3 + dj],
                                    preferred_element_type=jnp.float32)
        if fuse_in_lrelu:
            mean = jnp.mean(acc, axis=0, keepdims=True)
            cen = acc - mean
            var = jnp.mean(cen * cen, axis=0, keepdims=True)
            acc = cen * lax.rsqrt(var + IN_EPS)
            acc = jnp.where(acc >= 0, acc, LRELU_SLOPE * acc)
        o_ref[0] = acc.astype(o_ref.dtype)

    return kernel


def _shortcut_residual_kernel(y_ref, x_ref, w_ref, b_ref, o_ref):
    """Fused residual tail: o = y + (xs @ w + b)  (shortcut 1x1 SN-conv + bias + add).

    xs is cast to bf16 in-kernel (VPU cast rides under the MXU); accumulate in f32.
    """
    sc = jnp.dot(x_ref[0].astype(jnp.bfloat16), w_ref[...],
                 preferred_element_type=jnp.float32)
    o_ref[0] = y_ref[0] + sc + b_ref[...]


# ----------------------------------------------------------------------------
# Pallas wrappers
# ----------------------------------------------------------------------------
def pallas_in_lrelu(x_nhwc_f32):
    """Leading IN + LReLU, gridded over N ('parallel'), lane-dense bf16 output."""
    N, H, W, Cp = x_nhwc_f32.shape
    x3 = x_nhwc_f32.reshape(N, H * W, Cp)     # bitcast, no HBM pass
    out = pl.pallas_call(
        _in_lrelu_kernel,
        out_shape=jax.ShapeDtypeStruct((N, H * W, Cp), jnp.bfloat16),
        grid=(N,),
        in_specs=[pl.BlockSpec((1, H * W, Cp), lambda n: (n, 0, 0))],
        out_specs=pl.BlockSpec((1, H * W, Cp), lambda n: (n, 0, 0)),
        compiler_params=pltpu.CompilerParams(
            dimension_semantics=("parallel",), vmem_limit_bytes=VMEM_LIMIT),
    )(x3)
    return out.reshape(N, H, W, Cp)


def pallas_conv3x3(h_bf16, w_pack, *, fuse_in_lrelu, out_dtype):
    """ReflectionPad2d(1) + SN-conv3x3 (+ optional fused IN+LReLU epilogue).

    h_bf16: (N, H, W, Cp) bf16 lane-padded; w_pack: (9, Cp, Coutp) bf16.
    TODO(synk): at large H*W a whole sample no longer fits one block; switch to halo
    row-tiles (index_map overlap or manual make_async_copy) and re-derive tile sizes
    for v7x's 64 MiB VMEM.
    """
    N, H, W, Cp = h_bf16.shape
    Coutp = w_pack.shape[2]
    hp = jnp.pad(h_bf16, ((0, 0), (1, 1), (1, 1), (0, 0)), mode="reflect")
    out = pl.pallas_call(
        _make_conv3x3_kernel(H, W, fuse_in_lrelu),
        out_shape=jax.ShapeDtypeStruct((N, H * W, Coutp), out_dtype),
        grid=(N,),
        in_specs=[pl.BlockSpec((1, H + 2, W + 2, Cp), lambda n: (n, 0, 0, 0)),
                  pl.BlockSpec((9, Cp, Coutp), lambda n: (0, 0, 0))],
        out_specs=pl.BlockSpec((1, H * W, Coutp), lambda n: (n, 0, 0)),
        compiler_params=pltpu.CompilerParams(
            dimension_semantics=("parallel",), vmem_limit_bytes=VMEM_LIMIT),
        cost_estimate=pl.CostEstimate(
            flops=2 * N * H * W * 9 * Cp * Coutp,
            transcendentals=N * Coutp if fuse_in_lrelu else 0,
            bytes_accessed=int(hp.size) * 2 + int(w_pack.size) * 2
            + N * H * W * Coutp * jnp.dtype(out_dtype).itemsize),
    )(hp, w_pack)
    return out.reshape(N, H, W, Coutp)


def pallas_shortcut_residual(y, xs, w_pack, b_pack):
    """y + (xs @ w + b), y aliased to the output. y: (N, M, Coutp) f32, xs: (N, M, Cp) f32."""
    N, M, Coutp = y.shape
    Cp = xs.shape[2]
    out = pl.pallas_call(
        _shortcut_residual_kernel,
        out_shape=jax.ShapeDtypeStruct((N, M, Coutp), jnp.float32),
        grid=(N,),
        in_specs=[pl.BlockSpec((1, M, Coutp), lambda n: (n, 0, 0)),
                  pl.BlockSpec((1, M, Cp), lambda n: (n, 0, 0)),
                  pl.BlockSpec((Cp, Coutp), lambda n: (0, 0)),
                  pl.BlockSpec((1, Coutp), lambda n: (0, 0))],
        out_specs=pl.BlockSpec((1, M, Coutp), lambda n: (n, 0, 0)),
        input_output_aliases={0: 0},
        compiler_params=pltpu.CompilerParams(
            dimension_semantics=("parallel",), vmem_limit_bytes=VMEM_LIMIT),
        cost_estimate=pl.CostEstimate(
            flops=2 * N * M * Cp * Coutp, transcendentals=0,
            bytes_accessed=int(y.size) * 8 + int(xs.size) * 4
            + int(w_pack.size) * 2 + int(b_pack.size) * 4),
    )(y, xs, w_pack, b_pack)
    return out


# ----------------------------------------------------------------------------
# Glue ops (plain JAX, tiny at these shapes) + parameter prep
# ----------------------------------------------------------------------------
def avgpool2(x):
    """AvgPool2d(kernel=2, stride=2) with PyTorch floor behavior for odd H/W."""
    N, H, W, C = x.shape
    H2, W2 = H // 2, W // 2
    x = x[:, :H2 * 2, :W2 * 2, :]
    return x.reshape(N, H2, 2, W2, 2, C).mean(axis=(2, 4))


def spectral_normalize(w, n_iter=5):
    # TODO(synk): deterministic stand-in for torch spectral_norm's persistent random-u
    # power-iteration buffer (applied once at parameter setup, not updated per forward).
    cout = w.shape[0]
    wm = w.reshape(cout, -1)
    u = jnp.ones((cout,), jnp.float32) / jnp.sqrt(jnp.float32(cout))
    v = None
    for _ in range(n_iter):
        v = wm.T @ u
        v = v / (jnp.linalg.norm(v) + 1e-12)
        u = wm @ v
        u = u / (jnp.linalg.norm(u) + 1e-12)
    sigma = u @ (wm @ v)
    return w / sigma


def prep_conv3x3(w_oihw, cin_p, cout_p):
    """OIHW (Cout, Cin, 3, 3) -> (9, cin_p, cout_p) bf16 with zero-padded channel lanes."""
    Cout, Cin, kh, kw = w_oihw.shape
    w = jnp.transpose(w_oihw, (2, 3, 1, 0)).reshape(kh * kw, Cin, Cout)
    w = jnp.pad(w, ((0, 0), (0, cin_p - Cin), (0, cout_p - Cout)))
    # NOTE: once Cin/Cout reach 256+, present 256-wide real K/N tiles to fill the
    # v6e/v7x 256x256 MXU instead of 128-zero-padding; at these channel counts the
    # block is memory-bound and the zero padding is inert.
    return w.astype(jnp.bfloat16)


def prep_conv1x1(w_oihw, bias, cin_p, cout_p):
    Cout, Cin = w_oihw.shape[0], w_oihw.shape[1]
    w = w_oihw.reshape(Cout, Cin).T                                   # (Cin, Cout)
    w = jnp.pad(w, ((0, cin_p - Cin), (0, cout_p - Cout))).astype(jnp.bfloat16)
    b = jnp.pad(bias, (0, cout_p - Cout)).astype(jnp.float32).reshape(1, cout_p)
    return w, b


def init_params(key, in_dim=8, out_dim=16):
    k1, k2, k3, k4 = jax.random.split(key, 4)
    cin_p = _round_up(in_dim, LANE)
    cout_p = _round_up(out_dim, LANE)

    def nrm(k, shape, scale=0.1):
        return scale * jax.random.normal(k, shape, jnp.float32)

    return {
        "cin_p": cin_p,
        "cout_p": cout_p,
        "cout": out_dim,
        # conv3x3(in_dim, in_dim, norm, nl): SN conv, bias=False (IN+LReLU fused in-kernel)
        "conv1": prep_conv3x3(spectral_normalize(nrm(k1, (in_dim, in_dim, 3, 3))),
                              cin_p, cin_p),
        # conv3x3(in_dim, out_dim): SN conv, bias=False
        "conv2": prep_conv3x3(spectral_normalize(nrm(k2, (out_dim, in_dim, 3, 3))),
                              cin_p, cout_p),
        # shortcut Conv2dBlock(in_dim, out_dim, k=1, bias=True): SN conv + bias
        "shortcut": prep_conv1x1(spectral_normalize(nrm(k3, (out_dim, in_dim, 1, 1))),
                                 nrm(k4, (out_dim,)), cin_p, cout_p),
    }


# ----------------------------------------------------------------------------
# Forward
# ----------------------------------------------------------------------------
def down_residual_block(params, x_nchw):
    N, Cin, H, W = x_nchw.shape
    cin_p, cout_p, cout = params["cin_p"], params["cout_p"], params["cout"]

    # NCHW -> NHWC, channels zero-padded to 128 lanes once; everything downstream stays
    # lane-dense (padded channels remain exactly 0 through IN/LReLU/conv/avgpool).
    x = jnp.transpose(x_nchw, (0, 2, 3, 1)).astype(jnp.float32)
    x = jnp.pad(x, ((0, 0), (0, 0), (0, 0), (0, cin_p - Cin)))

    # encode: IN -> LReLU (gridded over N)
    h = pallas_in_lrelu(x)                                            # bf16 (N,H,W,cin_p)
    # conv3x3(in,in): reflpad1 + SN-conv(no bias) with fused IN + LReLU epilogue
    h = pallas_conv3x3(h, params["conv1"], fuse_in_lrelu=True,
                       out_dtype=jnp.bfloat16)                        # bf16 (N,H,W,cin_p)
    # conv3x3(in,out): reflpad1 + SN-conv(no bias); f32 out feeds the pooled residual tail
    h = pallas_conv3x3(h, params["conv2"], fuse_in_lrelu=False,
                       out_dtype=jnp.float32)                         # f32 (N,H,W,cout_p)

    # AvgPool2d(2,2) on both paths.
    # TODO(synk): fold both pools into the conv2/residual kernels (in-kernel strided loads)
    # to remove two more HBM passes at realistic H*W; negligible at these shapes.
    y = avgpool2(h)                                                   # f32 (N,H2,W2,cout_p)
    xs = avgpool2(x)                                                  # f32 (N,H2,W2,cin_p)

    N_, H2, W2, _ = y.shape
    out = pallas_shortcut_residual(y.reshape(N_, H2 * W2, cout_p),
                                   xs.reshape(N_, H2 * W2, cin_p),
                                   params["shortcut"][0], params["shortcut"][1])
    out = out.reshape(N_, H2, W2, cout_p)[:, :, :, :cout]             # slice once, at the end
    return jnp.transpose(out, (0, 3, 1, 2))                           # NHWC -> NCHW


# ----------------------------------------------------------------------------
# Demo
# ----------------------------------------------------------------------------
if __name__ == "__main__":
    key = jax.random.PRNGKey(0)
    k_param, k_x = jax.random.split(key, 2)

    in_dim, out_dim = 8, 16
    N, H, W = 2, 16, 16

    params = init_params(k_param, in_dim=in_dim, out_dim=out_dim)
    x = jax.random.normal(k_x, (N, in_dim, H, W), jnp.float32)        # NCHW like PyTorch

    fwd = jax.jit(functools.partial(down_residual_block, params))
    out = jax.block_until_ready(fwd(x))

    expected = (N, out_dim, H // 2, W // 2)
    assert out.shape == expected, (out.shape, expected)
    assert bool(jnp.all(jnp.isfinite(out)))
    print("KERNEL_OK")
</pallas_src>

<mosaic_0001>
module attributes {stable_mosaic.version = 11 : i64} {
  func.func @_in_lrelu_kernel(%arg0: i32, %arg1: memref<1x256x128xf32, #tpu.memory_space<vmem>>, %arg2: memref<1x256x128xbf16, #tpu.memory_space<vmem>>) attributes {dimension_semantics = [#tpu.dimension_semantics<parallel>], iteration_bounds = array<i64: 2>, scalar_prefetch = 0 : i64, scratch_operands = 0 : i64, tpu.core_type = #tpu.core_type<tc>, window_params = [{transform_indices = @transform_0, window_bounds = array<i64: 1, 256, 128>}, {transform_indices = @transform_1, window_bounds = array<i64: 1, 256, 128>}]} {
    %c0 = arith.constant 0 : index
    %c0_0 = arith.constant 0 : index
    %c0_1 = arith.constant 0 : index
    %0 = vector.load %arg1[%c0, %c0_0, %c0_1] : memref<1x256x128xf32, #tpu.memory_space<vmem>>, vector<1x256x128xf32>
    %1 = vector.shape_cast %0 : vector<1x256x128xf32> to vector<256x128xf32>
    %cst = arith.constant dense<0.000000e+00> : vector<128xf32>
    %2 = vector.multi_reduction <add>, %1, %cst [0] : vector<256x128xf32> to vector<128xf32>
    %3 = vector.shape_cast %2 : vector<128xf32> to vector<1x128xf32>
    %cst_2 = arith.constant 2.560000e+02 : f32
    %4 = vector.broadcast %cst_2 : f32 to vector<1x128xf32>
    %5 = arith.divf %3, %4 : vector<1x128xf32>
    %6 = vector.broadcast %5 : vector<1x128xf32> to vector<256x128xf32>
    %7 = arith.subf %1, %6 : vector<256x128xf32>
    %8 = arith.mulf %7, %7 : vector<256x128xf32>
    %cst_3 = arith.constant dense<0.000000e+00> : vector<128xf32>
    %9 = vector.multi_reduction <add>, %8, %cst_3 [0] : vector<256x128xf32> to vector<128xf32>
    %10 = vector.shape_cast %9 : vector<128xf32> to vector<1x128xf32>
    %cst_4 = arith.constant 2.560000e+02 : f32
    %11 = vector.broadcast %cst_4 : f32 to vector<1x128xf32>
    %12 = arith.divf %10, %11 : vector<1x128xf32>
    %cst_5 = arith.constant 9.99999974E-6 : f32
    %13 = vector.broadcast %cst_5 : f32 to vector<1x128xf32>
    %14 = arith.addf %12, %13 : vector<1x128xf32>
    %15 = math.rsqrt %14 : vector<1x128xf32>
    %16 = vector.broadcast %15 : vector<1x128xf32> to vector<256x128xf32>
    %17 = arith.mulf %7, %16 : vector<256x128xf32>
    %cst_6 = arith.constant 0.000000e+00 : f32
    %18 = vector.broadcast %cst_6 : f32 to vector<256x128xf32>
    %19 = arith.cmpf oge, %17, %18 : vector<256x128xf32>
    %cst_7 = arith.constant 2.000000e-01 : f32
    %20 = vector.broadcast %cst_7 : f32 to vector<256x128xf32>
    %21 = arith.mulf %20, %17 : vector<256x128xf32>
    %22 = arith.select %19, %17, %21 : vector<256x128xi1>, vector<256x128xf32>
    %23 = arith.truncf %22 : vector<256x128xf32> to vector<256x128xbf16>
    %c0_8 = arith.constant 0 : index
    %c0_9 = arith.constant 0 : index
    %c0_10 = arith.constant 0 : index
    %24 = vector.load %arg2[%c0_8, %c0_9, %c0_10] : memref<1x256x128xbf16, #tpu.memory_space<vmem>>, vector<1x256x128xbf16>
    %25 = vector.shape_cast %24 : vector<1x256x128xbf16> to vector<256x128xbf16>
    %26 = vector.shape_cast %23 : vector<256x128xbf16> to vector<1x256x128xbf16>
    tpu.vector_store %arg2[%c0_8, %c0_9, %c0_10], %26 {strides = array<i32>} : memref<1x256x128xbf16, #tpu.memory_space<vmem>>, vector<1x256x128xbf16>,
    return
  }
  func.func @transform_0(%arg0: i32) -> (i32, i32, i32) {
    %c0_i32 = arith.constant 0 : i32
    %c0_i32_0 = arith.constant 0 : i32
    %c0_i32_1 = arith.constant 0 : i32
    return %arg0, %c0_i32, %c0_i32_0 : i32, i32, i32
  }
  func.func @transform_1(%arg0: i32) -> (i32, i32, i32) {
    %c0_i32 = arith.constant 0 : i32
    %c0_i32_0 = arith.constant 0 : i32
    %c0_i32_1 = arith.constant 0 : i32
    return %arg0, %c0_i32, %c0_i32_0 : i32, i32, i32
  }
}

module attributes {stable_mosaic.version = 11 : i64} {
  func.func @kernel(%arg0: i32, %arg1: memref<1x18x18x128xbf16, #tpu.memory_space<vmem>>, %arg2: memref<9x128x128xbf16, #tpu.memory_space<vmem>>, %arg3: memref<1x256x128xbf16, #tpu.memory_space<vmem>>) attributes {dimension_semantics = [#tpu.dimension_semantics<parallel>], iteration_bounds = array<i64: 2>, scalar_prefetch = 0 : i64, scratch_operands = 0 : i64, tpu.core_type = #tpu.core_type<tc>, window_params = [{transform_indices = @transform_0, window_bounds = array<i64: 1, 18, 18, 128>}, {pipeline_mode = #tpu.pipeline_mode<synchronous>, transform_indices = @transform_1, window_bounds = array<i64: 9, 128, 128>}, {transform_indices = @transform_2, window_bounds = array<i64: 1, 256, 128>}]} {
    %cst = arith.constant 0.000000e+00 : f32
    %0 = vector.broadcast %cst : f32 to vector<256x128xf32>
    %c0 = arith.constant 0 : index
    %c0_0 = arith.constant 0 : index
    %c0_1 = arith.constant 0 : index
    %c0_2 = arith.constant 0 : index
    %1 = vector.load %arg1[%c0, %c0_0, %c0_1, %c0_2] : memref<1x18x18x128xbf16, #tpu.memory_space<vmem>>, vector<1x16x16x128xbf16>
    %2 = vector.shape_cast %1 : vector<1x16x16x128xbf16> to vector<16x16x128xbf16>
    %3 = vector.shape_cast %2 : vector<16x16x128xbf16> to vector<256x128xbf16>
    %c0_3 = arith.constant 0 : index
    %c0_4 = arith.constant 0 : index
    %c0_5 = arith.constant 0 : index
    %4 = vector.load %arg2[%c0_3, %c0_4, %c0_5] : memref<9x128x128xbf16, #tpu.memory_space<vmem>>, vector<1x128x128xbf16>
    %5 = vector.shape_cast %4 : vector<1x128x128xbf16> to vector<128x128xbf16>
    %cst_6 = arith.constant dense<0.000000e+00> : vector<256x128xf32>
    %6 = tpu.matmul %3, %5, %cst_6 {dimension_numbers = #tpu.dot_dimension_numbers<[1], [0], [0], [1], [0, 0, 1, 1], [], []>} : vector<256x128xbf16>, vector<128x128xbf16>, vector<256x128xf32> -> vector<256x128xf32>
    %7 = arith.addf %0, %6 : vector<256x128xf32>
    %c0_7 = arith.constant 0 : index
    %c0_8 = arith.constant 0 : index
    %c1 = arith.constant 1 : index
    %c0_9 = arith.constant 0 : index
    %8 = vector.load %arg1[%c0_7, %c0_8, %c1, %c0_9] : memref<1x18x18x128xbf16, #tpu.memory_space<vmem>>, vector<1x16x16x128xbf16>
    %9 = vector.shape_cast %8 : vector<1x16x16x128xbf16> to vector<16x16x128xbf16>
    %10 = vector.shape_cast %9 : vector<16x16x128xbf16> to vector<256x128xbf16>
    %c1_10 = arith.constant 1 : index
    %c0_11 = arith.constant 0 : index
    %c0_12 = arith.constant 0 : index
    %11 = vector.load %arg2[%c1_10, %c0_11, %c0_12] : memref<9x128x128xbf16, #tpu.memory_space<vmem>>, vector<1x128x128xbf16>
    %12 = vector.shape_cast %11 : vector<1x128x128xbf16> to vector<128x128xbf16>
    %cst_13 = arith.constant dense<0.000000e+00> : vector<256x128xf32>
    %13 = tpu.matmul %10, %12, %cst_13 {dimension_numbers = #tpu.dot_dimension_numbers<[1], [0], [0], [1], [0, 0, 1, 1], [], []>} : vector<256x128xbf16>, vector<128x128xbf16>, vector<256x128xf32> -> vector<256x128xf32>
    %14 = arith.addf %7, %13 : vector<256x128xf32>
    %c0_14 = arith.constant 0 : index
    %c0_15 = arith.constant 0 : index
    %c2 = arith.constant 2 : index
    %c0_16 = arith.constant 0 : index
    %15 = vector.load %arg1[%c0_14, %c0_15, %c2, %c0_16] : memref<1x18x18x128xbf16, #tpu.memory_space<vmem>>, vector<1x16x16x128xbf16>
    %16 = vector.shape_cast %15 : vector<1x16x16x128xbf16> to vector<16x16x128xbf16>
    %17 = vector.shape_cast %16 : vector<16x16x128xbf16> to vector<256x128xbf16>
    %c2_17 = arith.constant 2 : index
    %c0_18 = arith.constant 0 : index
    %c0_19 = arith.constant 0 : index
    %18 = vector.load %arg2[%c2_17, %c0_18, %c0_19] : memref<9x128x128xbf16, #tpu.memory_space<vmem>>, vector<1x128x128xbf16>
    %19 = vector.shape_cast %18 : vector<1x128x128xbf16> to vector<128x128xbf16>
    %cst_20 = arith.constant dense<0.000000e+00> : vector<256x128xf32>
    %20 = tpu.matmul %17, %19, %cst_20 {dimension_numbers = #tpu.dot_dimension_numbers<[1], [0], [0], [1], [0, 0, 1, 1], [], []>} : vector<256x128xbf16>, vector<128x128xbf16>, vector<256x128xf32> -> vector<256x128xf32>
    %21 = arith.addf %14, %20 : vector<256x128xf32>
    %c0_21 = arith.constant 0 : index
    %c1_22 = arith.constant 1 : index
    %c0_23 = arith.constant 0 : index
    %c0_24 = arith.constant 0 : index
    %22 = vector.load %arg1[%c0_21, %c1_22, %c0_23, %c0_24] : memref<1x18x18x128xbf16, #tpu.memory_space<vmem>>, vector<1x16x16x128xbf16>
    %23 = vector.shape_cast %22 : vector<1x16x16x128xbf16> to vector<16x16x128xbf16>
    %24 = vector.shape_cast %23 : vector<16x16x128xbf16> to vector<256x128xbf16>
    %c3 = arith.constant 3 : index
    %c0_25 = arith.constant 0 : index
    %c0_26 = arith.constant 0 : index
    %25 = vector.load %arg2[%c3, %c0_25, %c0_26] : memref<9x128x128xbf16, #tpu.memory_space<vmem>>, vector<1x128x128xbf16>
    %26 = vector.shape_cast %25 : vector<1x128x128xbf16> to vector<128x128xbf16>
    %cst_27 = arith.constant dense<0.000000e+00> : vector<256x128xf32>
    %27 = tpu.matmul %24, %26, %cst_27 {dimension_numbers = #tpu.dot_dimension_numbers<[1], [0], [0], [1], [0, 0, 1, 1], [], []>} : vector<256x128xbf16>, vector<128x128xbf16>, vector<256x128xf32> -> vector<256x128xf32>
    %28 = arith.addf %21, %27 : vector<256x128xf32>
    %c0_28 = arith.constant 0 : index
    %c1_29 = arith.constant 1 : index
    %c1_30 = arith.constant 1 : index
    %c0_31 = arith.constant 0 : index
    %29 = vector.load %arg1[%c0_28, %c1_29, %c1_30, %c0_31] : memref<1x18x18x128xbf16, #tpu.memory_space<vmem>>, vector<1x16x16x128xbf16>
    %30 = vector.shape_cast %29 : vector<1x16x16x128xbf16> to vector<16x16x128xbf16>
    %31 = vector.shape_cast %30 : vector<16x16x128xbf16> to vector<256x128xbf16>
    %c4 = arith.constant 4 : index
    %c0_32 = arith.constant 0 : index
    %c0_33 = arith.constant 0 : index
    %32 = vector.load %arg2[%c4, %c0_32, %c0_33] : memref<9x128x128xbf16, #tpu.memory_space<vmem>>, vector<1x128x128xbf16>
    %33 = vector.shape_cast %32 : vector<1x128x128xbf16> to vector<128x128xbf16>
    %cst_34 = arith.constant dense<0.000000e+00> : vector<256x128xf32>
    %34 = tpu.matmul %31, %33, %cst_34 {dimension_numbers = #tpu.dot_dimension_numbers<[1], [0], [0], [1], [0, 0, 1, 1], [], []>} : vector<256x128xbf16>, vector<128x128xbf16>, vector<256x128xf32> -> vector<256x128xf32>
    %35 = arith.addf %28, %34 : vector<256x128xf32>
    %c0_35 = arith.constant 0 : index
    %c1_36 = arith.constant 1 : index
    %c2_37 = arith.constant 2 : index
    %c0_38 = arith.constant 0 : index
    %36 = vector.load %arg1[%c0_35, %c1_36, %c2_37, %c0_38] : memref<1x18x18x128xbf16, #tpu.memory_space<vmem>>, vector<1x16x16x128xbf16>
    %37 = vector.shape_cast %36 : vector<1x16x16x128xbf16> to vector<16x16x128xbf16>
    %38 = vector.shape_cast %37 : vector<16x16x128xbf16> to vector<256x128xbf16>
    %c5 = arith.constant 5 : index
    %c0_39 = arith.constant 0 : index
    %c0_40 = arith.constant 0 : index
    %39 = vector.load %arg2[%c5, %c0_39, %c0_40] : memref<9x128x128xbf16, #tpu.memory_space<vmem>>, vector<1x128x128xbf16>
    %40 = vector.shape_cast %39 : vector<1x128x128xbf16> to vector<128x128xbf16>
    %cst_41 = arith.constant dense<0.000000e+00> : vector<256x128xf32>
    %41 = tpu.matmul %38, %40, %cst_41 {dimension_numbers = #tpu.dot_dimension_numbers<[1], [0], [0], [1], [0, 0, 1, 1], [], []>} : vector<256x128xbf16>, vector<128x128xbf16>, vector<256x128xf32> -> vector<256x128xf32>
    %42 = arith.addf %35, %41 : vector<256x128xf32>
    %c0_42 = arith.constant 0 : index
    %c2_43 = arith.constant 2 : index
    %c0_44 = arith.constant 0 : index
    %c0_45 = arith.constant 0 : index
    %43 = vector.load %arg1[%c0_42, %c2_43, %c0_44, %c0_45] : memref<1x18x18x128xbf16, #tpu.memory_space<vmem>>, vector<1x16x16x128xbf16>
    %44 = vector.shape_cast %43 : vector<1x16x16x128xbf16> to vector<16x16x128xbf16>
    %45 = vector.shape_cast %44 : vector<16x16x128xbf16> to vector<256x128xbf16>
    %c6 = arith.constant 6 : index
    %c0_46 = arith.constant 0 : index
    %c0_47 = arith.constant 0 : index
    %46 = vector.load %arg2[%c6, %c0_46, %c0_47] : memref<9x128x128xbf16, #tpu.memory_space<vmem>>, vector<1x128x128xbf16>
    %47 = vector.shape_cast %46 : vector<1x128x128xbf16> to vector<128x128xbf16>
    %cst_48 = arith.constant dense<0.000000e+00> : vector<256x128xf32>
    %48 = tpu.matmul %45, %47, %cst_48 {dimension_numbers = #tpu.dot_dimension_numbers<[1], [0], [0], [1], [0, 0, 1, 1], [], []>} : vector<256x128xbf16>, vector<128x128xbf16>, vector<256x128xf32> -> vector<256x128xf32>
    %49 = arith.addf %42, %48 : vector<256x128xf32>
    %c0_49 = arith.constant 0 : index
    %c2_50 = arith.constant 2 : index
    %c1_51 = arith.constant 1 : index
    %c0_52 = arith.constant 0 : index
    %50 = vector.load %arg1[%c0_49, %c2_50, %c1_51, %c0_52] : memref<1x18x18x128xbf16, #tpu.memory_space<vmem>>, vector<1x16x16x128xbf16>
    %51 = vector.shape_cast %50 : vector<1x16x16x128xbf16> to vector<16x16x128xbf16>
    %52 = vector.shape_cast %51 : vector<16x16x128xbf16> to vector<256x128xbf16>
    %c7 = arith.constant 7 : index
    %c0_53 = arith.constant 0 : index
    %c0_54 = arith.constant 0 : index
    %53 = vector.load %arg2[%c7, %c0_53, %c0_54] : memref<9x128x128xbf16, #tpu.memory_space<vmem>>, vector<1x128x128xbf16>
    %54 = vector.shape_cast %53 : vector<1x128x128xbf16> to vector<128x128xbf16>
    %cst_55 = arith.constant dense<0.000000e+00> : vector<256x128xf32>
    %55 = tpu.matmul %52, %54, %cst_55 {dimension_numbers = #tpu.dot_dimension_numbers<[1], [0], [0], [1], [0, 0, 1, 1], [], []>} : vector<256x128xbf16>, vector<128x128xbf16>, vector<256x128xf32> -> vector<256x128xf32>
    %56 = arith.addf %49, %55 : vector<256x128xf32>
    %c0_56 = arith.constant 0 : index
    %c2_57 = arith.constant 2 : index
    %c2_58 = arith.constant 2 : index
    %c0_59 = arith.constant 0 : index
    %57 = vector.load %arg1[%c0_56, %c2_57, %c2_58, %c0_59] : memref<1x18x18x128xbf16, #tpu.memory_space<vmem>>, vector<1x16x16x128xbf16>
    %58 = vector.shape_cast %57 : vector<1x16x16x128xbf16> to vector<16x16x128xbf16>
    %59 = vector.shape_cast %58 : vector<16x16x128xbf16> to vector<256x128xbf16>
    %c8 = arith.constant 8 : index
    %c0_60 = arith.constant 0 : index
    %c0_61 = arith.constant 0 : index
    %60 = vector.load %arg2[%c8, %c0_60, %c0_61] : memref<9x128x128xbf16, #tpu.memory_space<vmem>>, vector<1x128x128xbf16>
    %61 = vector.shape_cast %60 : vector<1x128x128xbf16> to vector<128x128xbf16>
    %cst_62 = arith.constant dense<0.000000e+00> : vector<256x128xf32>
    %62 = tpu.matmul %59, %61, %cst_62 {dimension_numbers = #tpu.dot_dimension_numbers<[1], [0], [0], [1], [0, 0, 1, 1], [], []>} : vector<256x128xbf16>, vector<128x128xbf16>, vector<256x128xf32> -> vector<256x128xf32>
    %63 = arith.addf %56, %62 : vector<256x128xf32>
    %cst_63 = arith.constant dense<0.000000e+00> : vector<128xf32>
    %64 = vector.multi_reduction <add>, %63, %cst_63 [0] : vector<256x128xf32> to vector<128xf32>
    %65 = vector.shape_cast %64 : vector<128xf32> to vector<1x128xf32>
    %cst_64 = arith.constant 2.560000e+02 : f32
    %66 = vector.broadcast %cst_64 : f32 to vector<1x128xf32>
    %67 = arith.divf %65, %66 : vector<1x128xf32>
    %68 = vector.broadcast %67 : vector<1x128xf32> to vector<256x128xf32>
    %69 = arith.subf %63, %68 : vector<256x128xf32>
    %70 = arith.mulf %69, %69 : vector<256x128xf32>
    %cst_65 = arith.constant dense<0.000000e+00> : vector<128xf32>
    %71 = vector.multi_reduction <add>, %70, %cst_65 [0] : vector<256x128xf32> to vector<128xf32>
    %72 = vector.shape_cast %71 : vector<128xf32> to vector<1x128xf32>
    %cst_66 = arith.constant 2.560000e+02 : f32
    %73 = vector.broadcast %cst_66 : f32 to vector<1x128xf32>
    %74 = arith.divf %72, %73 : vector<1x128xf32>
    %cst_67 = arith.constant 9.99999974E-6 : f32
    %75 = vector.broadcast %cst_67 : f32 to vector<1x128xf32>
    %76 = arith.addf %74, %75 : vector<1x128xf32>
    %77 = math.rsqrt %76 : vector<1x128xf32>
    %78 = vector.broadcast %77 : vector<1x128xf32> to vector<256x128xf32>
    %79 = arith.mulf %69, %78 : vector<256x128xf32>
    %cst_68 = arith.constant 0.000000e+00 : f32
    %80 = vector.broadcast %cst_68 : f32 to vector<256x128xf32>
    %81 = arith.cmpf oge, %79, %80 : vector<256x128xf32>
    %cst_69 = arith.constant 2.000000e-01 : f32
    %82 = vector.broadcast %cst_69 : f32 to vector<256x128xf32>
    %83 = arith.mulf %82, %79 : vector<256x128xf32>
    %84 = arith.select %81, %79, %83 : vector<256x128xi1>, vector<256x128xf32>
    %85 = arith.truncf %84 : vector<256x128xf32> to vector<256x128xbf16>
    %c0_70 = arith.constant 0 : index
    %c0_71 = arith.constant 0 : index
    %c0_72 = arith.constant 0 : index
    %86 = vector.load %arg3[%c0_70, %c0_71, %c0_72] : memref<1x256x128xbf16, #tpu.memory_space<vmem>>, vector<1x256x128xbf16>
    %87 = vector.shape_cast %86 : vector<1x256x128xbf16> to vector<256x128xbf16>
    %88 = vector.shape_cast %85 : vector<256x128xbf16> to vector<1x256x128xbf16>
    tpu.vector_store %arg3[%c0_70, %c0_71, %c0_72], %88 {strides = array<i32>} : memref<1x256x128xbf16, #tpu.memory_space<vmem>>, vector<1x256x128xbf16>,
    return
  }
  func.func @transform_0(%arg0: i32) -> (i32, i32, i32, i32) {
    %c0_i32 = arith.constant 0 : i32
    %c0_i32_0 = arith.constant 0 : i32
    %c0_i32_1 = arith.constant 0 : i32
    %c0_i32_2 = arith.constant 0 : i32
    return %arg0, %c0_i32, %c0_i32_0, %c0_i32_1 : i32, i32, i32, i32
  }
  func.func @transform_1(%arg0: i32) -> (i32, i32, i32) {
    %c0_i32 = arith.constant 0 : i32
    %c0_i32_0 = arith.constant 0 : i32
    %c0_i32_1 = arith.constant 0 : i32
    %c0_i32_2 = arith.constant 0 : i32
    return %c0_i32, %c0_i32_0, %c0_i32_1 : i32, i32, i32
  }
  func.func @transform_2(%arg0: i32) -> (i32, i32, i32) {
    %c0_i32 = arith.constant 0 : i32
    %c0_i32_0 = arith.constant 0 : i32
    %c0_i32_1 = arith.constant 0 : i32
    return %arg0, %c0_i32, %c0_i32_0 : i32, i32, i32
  }
}

module attributes {stable_mosaic.version = 11 : i64} {
  func.func @_shortcut_residual_kernel(%arg0: i32, %arg1: memref<1x64x128xf32, #tpu.memory_space<vmem>>, %arg2: memref<1x64x128xf32, #tpu.memory_space<vmem>>, %arg3: memref<128x128xbf16, #tpu.memory_space<vmem>>, %arg4: memref<1x128xf32, #tpu.memory_space<vmem>>, %arg5: memref<1x64x128xf32, #tpu.memory_space<vmem>>) attributes {dimension_semantics = [#tpu.dimension_semantics<parallel>], iteration_bounds = array<i64: 2>, scalar_prefetch = 0 : i64, scratch_operands = 0 : i64, tpu.core_type = #tpu.core_type<tc>, window_params = [{transform_indices = @transform_0, window_bounds = array<i64: 1, 64, 128>}, {transform_indices = @transform_1, window_bounds = array<i64: 1, 64, 128>}, {pipeline_mode = #tpu.pipeline_mode<synchronous>, transform_indices = @transform_2, window_bounds = array<i64: 128, 128>}, {pipeline_mode = #tpu.pipeline_mode<synchronous>, transform_indices = @transform_3, window_bounds = array<i64: 1, 128>}, {transform_indices = @transform_4, window_bounds = array<i64: 1, 64, 128>}]} {
    %c0 = arith.constant 0 : index
    %c0_0 = arith.constant 0 : index
    %c0_1 = arith.constant 0 : index
    %0 = vector.load %arg2[%c0, %c0_0, %c0_1] : memref<1x64x128xf32, #tpu.memory_space<vmem>>, vector<1x64x128xf32>
    %1 = vector.shape_cast %0 : vector<1x64x128xf32> to vector<64x128xf32>
    %2 = arith.truncf %1 : vector<64x128xf32> to vector<64x128xbf16>
    %c0_2 = arith.constant 0 : index
    %c0_3 = arith.constant 0 : index
    %3 = vector.load %arg3[%c0_2, %c0_3] : memref<128x128xbf16, #tpu.memory_space<vmem>>, vector<128x128xbf16>
    %cst = arith.constant dense<0.000000e+00> : vector<64x128xf32>
    %4 = tpu.matmul %2, %3, %cst {dimension_numbers = #tpu.dot_dimension_numbers<[1], [0], [0], [1], [0, 0, 1, 1], [], []>} : vector<64x128xbf16>, vector<128x128xbf16>, vector<64x128xf32> -> vector<64x128xf32>
    %c0_4 = arith.constant 0 : index
    %c0_5 = arith.constant 0 : index
    %c0_6 = arith.constant 0 : index
    %5 = vector.load %arg1[%c0_4, %c0_5, %c0_6] : memref<1x64x128xf32, #tpu.memory_space<vmem>>, vector<1x64x128xf32>
    %6 = vector.shape_cast %5 : vector<1x64x128xf32> to vector<64x128xf32>
    %7 = arith.addf %6, %4 : vector<64x128xf32>
    %c0_7 = arith.constant 0 : index
    %c0_8 = arith.constant 0 : index
    %8 = vector.load %arg4[%c0_7, %c0_8] : memref<1x128xf32, #tpu.memory_space<vmem>>, vector<1x128xf32>
    %9 = vector.broadcast %8 : vector<1x128xf32> to vector<64x128xf32>
    %10 = arith.addf %7, %9 : vector<64x128xf32>
    %c0_9 = arith.constant 0 : index
    %c0_10 = arith.constant 0 : index
    %c0_11 = arith.constant 0 : index
    %11 = vector.load %arg5[%c0_9, %c0_10, %c0_11] : memref<1x64x128xf32, #tpu.memory_space<vmem>>, vector<1x64x128xf32>
    %12 = vector.shape_cast %11 : vector<1x64x128xf32> to vector<64x128xf32>
    %13 = vector.shape_cast %10 : vector<64x128xf32> to vector<1x64x128xf32>
    tpu.vector_store %arg5[%c0_9, %c0_10, %c0_11], %13 {strides = array<i32>} : memref<1x64x128xf32, #tpu.memory_space<vmem>>, vector<1x64x128xf32>,
    return
  }
  func.func @transform_0(%arg0: i32) -> (i32, i32, i32) {
    %c0_i32 = arith.constant 0 : i32
    %c0_i32_0 = arith.constant 0 : i32
    %c0_i32_1 = arith.constant 0 : i32
    return %arg0, %c0_i32, %c0_i32_0 : i32, i32, i32
  }
  func.func @transform_1(%arg0: i32) -> (i32, i32, i32) {
    %c0_i32 = arith.constant 0 : i32
    %c0_i32_0 = arith.constant 0 : i32
    %c0_i32_1 = arith.constant 0 : i32
    return %arg0, %c0_i32, %c0_i32_0 : i32, i32, i32
  }
  func.func @transform_2(%arg0: i32) -> (i32, i32) {
    %c0_i32 = arith.constant 0 : i32
    %c0_i32_0 = arith.constant 0 : i32
    %c0_i32_1 = arith.constant 0 : i32
    return %c0_i32, %c0_i32_0 : i32, i32
  }
  func.func @transform_3(%arg0: i32) -> (i32, i32) {
    %c0_i32 = arith.constant 0 : i32
    %c0_i32_0 = arith.constant 0 : i32
    %c0_i32_1 = arith.constant 0 : i32
    return %c0_i32, %c0_i32_0 : i32, i32
  }
  func.func @transform_4(%arg0: i32) -> (i32, i32, i32) {
    %c0_i32 = arith.constant 0 : i32
    %c0_i32_0 = arith.constant 0 : i32
    %c0_i32_1 = arith.constant 0 : i32
    return %arg0, %c0_i32, %c0_i32_0 : i32, i32, i32
  }
}

module attributes {stable_mosaic.version = 11 : i64} {
  func.func @kernel(%arg0: i32, %arg1: memref<1x18x18x128xbf16, #tpu.memory_space<vmem>>, %arg2: memref<9x128x128xbf16, #tpu.memory_space<vmem>>, %arg3: memref<1x256x128xf32, #tpu.memory_space<vmem>>) attributes {dimension_semantics = [#tpu.dimension_semantics<parallel>], iteration_bounds = array<i64: 2>, scalar_prefetch = 0 : i64, scratch_operands = 0 : i64, tpu.core_type = #tpu.core_type<tc>, window_params = [{transform_indices = @transform_0, window_bounds = array<i64: 1, 18, 18, 128>}, {pipeline_mode = #tpu.pipeline_mode<synchronous>, transform_indices = @transform_1, window_bounds = array<i64: 9, 128, 128>}, {transform_indices = @transform_2, window_bounds = array<i64: 1, 256, 128>}]} {
    %cst = arith.constant 0.000000e+00 : f32
    %0 = vector.broadcast %cst : f32 to vector<256x128xf32>
    %c0 = arith.constant 0 : index
    %c0_0 = arith.constant 0 : index
    %c0_1 = arith.constant 0 : index
    %c0_2 = arith.constant 0 : index
    %1 = vector.load %arg1[%c0, %c0_0, %c0_1, %c0_2] : memref<1x18x18x128xbf16, #tpu.memory_space<vmem>>, vector<1x16x16x128xbf16>
    %2 = vector.shape_cast %1 : vector<1x16x16x128xbf16> to vector<16x16x128xbf16>
    %3 = vector.shape_cast %2 : vector<16x16x128xbf16> to vector<256x128xbf16>
    %c0_3 = arith.constant 0 : index
    %c0_4 = arith.constant 0 : index
    %c0_5 = arith.constant 0 : index
    %4 = vector.load %arg2[%c0_3, %c0_4, %c0_5] : memref<9x128x128xbf16, #tpu.memory_space<vmem>>, vector<1x128x128xbf16>
    %5 = vector.shape_cast %4 : vector<1x128x128xbf16> to vector<128x128xbf16>
    %cst_6 = arith.constant dense<0.000000e+00> : vector<256x128xf32>
    %6 = tpu.matmul %3, %5, %cst_6 {dimension_numbers = #tpu.dot_dimension_numbers<[1], [0], [0], [1], [0, 0, 1, 1], [], []>} : vector<256x128xbf16>, vector<128x128xbf16>, vector<256x128xf32> -> vector<256x128xf32>
    %7 = arith.addf %0, %6 : vector<256x128xf32>
    %c0_7 = arith.constant 0 : index
    %c0_8 = arith.constant 0 : index
    %c1 = arith.constant 1 : index
    %c0_9 = arith.constant 0 : index
    %8 = vector.load %arg1[%c0_7, %c0_8, %c1, %c0_9] : memref<1x18x18x128xbf16, #tpu.memory_space<vmem>>, vector<1x16x16x128xbf16>
    %9 = vector.shape_cast %8 : vector<1x16x16x128xbf16> to vector<16x16x128xbf16>
    %10 = vector.shape_cast %9 : vector<16x16x128xbf16> to vector<256x128xbf16>
    %c1_10 = arith.constant 1 : index
    %c0_11 = arith.constant 0 : index
    %c0_12 = arith.constant 0 : index
    %11 = vector.load %arg2[%c1_10, %c0_11, %c0_12] : memref<9x128x128xbf16, #tpu.memory_space<vmem>>, vector<1x128x128xbf16>
    %12 = vector.shape_cast %11 : vector<1x128x128xbf16> to vector<128x128xbf16>
    %cst_13 = arith.constant dense<0.000000e+00> : vector<256x128xf32>
    %13 = tpu.matmul %10, %12, %cst_13 {dimension_numbers = #tpu.dot_dimension_numbers<[1], [0], [0], [1], [0, 0, 1, 1], [], []>} : vector<256x128xbf16>, vector<128x128xbf16>, vector<256x128xf32> -> vector<256x128xf32>
    %14 = arith.addf %7, %13 : vector<256x128xf32>
    %c0_14 = arith.constant 0 : index
    %c0_15 = arith.constant 0 : index
    %c2 = arith.constant 2 : index
    %c0_16 = arith.constant 0 : index
    %15 = vector.load %arg1[%c0_14, %c0_15, %c2, %c0_16] : memref<1x18x18x128xbf16, #tpu.memory_space<vmem>>, vector<1x16x16x128xbf16>
    %16 = vector.shape_cast %15 : vector<1x16x16x128xbf16> to vector<16x16x128xbf16>
    %17 = vector.shape_cast %16 : vector<16x16x128xbf16> to vector<256x128xbf16>
    %c2_17 = arith.constant 2 : index
    %c0_18 = arith.constant 0 : index
    %c0_19 = arith.constant 0 : index
    %18 = vector.load %arg2[%c2_17, %c0_18, %c0_19] : memref<9x128x128xbf16, #tpu.memory_space<vmem>>, vector<1x128x128xbf16>
    %19 = vector.shape_cast %18 : vector<1x128x128xbf16> to vector<128x128xbf16>
    %cst_20 = arith.constant dense<0.000000e+00> : vector<256x128xf32>
    %20 = tpu.matmul %17, %19, %cst_20 {dimension_numbers = #tpu.dot_dimension_numbers<[1], [0], [0], [1], [0, 0, 1, 1], [], []>} : vector<256x128xbf16>, vector<128x128xbf16>, vector<256x128xf32> -> vector<256x128xf32>
    %21 = arith.addf %14, %20 : vector<256x128xf32>
    %c0_21 = arith.constant 0 : index
    %c1_22 = arith.constant 1 : index
    %c0_23 = arith.constant 0 : index
    %c0_24 = arith.constant 0 : index
    %22 = vector.load %arg1[%c0_21, %c1_22, %c0_23, %c0_24] : memref<1x18x18x128xbf16, #tpu.memory_space<vmem>>, vector<1x16x16x128xbf16>
    %23 = vector.shape_cast %22 : vector<1x16x16x128xbf16> to vector<16x16x128xbf16>
    %24 = vector.shape_cast %23 : vector<16x16x128xbf16> to vector<256x128xbf16>
    %c3 = arith.constant 3 : index
    %c0_25 = arith.constant 0 : index
    %c0_26 = arith.constant 0 : index
    %25 = vector.load %arg2[%c3, %c0_25, %c0_26] : memref<9x128x128xbf16, #tpu.memory_space<vmem>>, vector<1x128x128xbf16>
    %26 = vector.shape_cast %25 : vector<1x128x128xbf16> to vector<128x128xbf16>
    %cst_27 = arith.constant dense<0.000000e+00> : vector<256x128xf32>
    %27 = tpu.matmul %24, %26, %cst_27 {dimension_numbers = #tpu.dot_dimension_numbers<[1], [0], [0], [1], [0, 0, 1, 1], [], []>} : vector<256x128xbf16>, vector<128x128xbf16>, vector<256x128xf32> -> vector<256x128xf32>
    %28 = arith.addf %21, %27 : vector<256x128xf32>
    %c0_28 = arith.constant 0 : index
    %c1_29 = arith.constant 1 : index
    %c1_30 = arith.constant 1 : index
    %c0_31 = arith.constant 0 : index
    %29 = vector.load %arg1[%c0_28, %c1_29, %c1_30, %c0_31] : memref<1x18x18x128xbf16, #tpu.memory_space<vmem>>, vector<1x16x16x128xbf16>
    %30 = vector.shape_cast %29 : vector<1x16x16x128xbf16> to vector<16x16x128xbf16>
    %31 = vector.shape_cast %30 : vector<16x16x128xbf16> to vector<256x128xbf16>
    %c4 = arith.constant 4 : index
    %c0_32 = arith.constant 0 : index
    %c0_33 = arith.constant 0 : index
    %32 = vector.load %arg2[%c4, %c0_32, %c0_33] : memref<9x128x128xbf16, #tpu.memory_space<vmem>>, vector<1x128x128xbf16>
    %33 = vector.shape_cast %32 : vector<1x128x128xbf16> to vector<128x128xbf16>
    %cst_34 = arith.constant dense<0.000000e+00> : vector<256x128xf32>
    %34 = tpu.matmul %31, %33, %cst_34 {dimension_numbers = #tpu.dot_dimension_numbers<[1], [0], [0], [1], [0, 0, 1, 1], [], []>} : vector<256x128xbf16>, vector<128x128xbf16>, vector<256x128xf32> -> vector<256x128xf32>
    %35 = arith.addf %28, %34 : vector<256x128xf32>
    %c0_35 = arith.constant 0 : index
    %c1_36 = arith.constant 1 : index
    %c2_37 = arith.constant 2 : index
    %c0_38 = arith.constant 0 : index
    %36 = vector.load %arg1[%c0_35, %c1_36, %c2_37, %c0_38] : memref<1x18x18x128xbf16, #tpu.memory_space<vmem>>, vector<1x16x16x128xbf16>
    %37 = vector.shape_cast %36 : vector<1x16x16x128xbf16> to vector<16x16x128xbf16>
    %38 = vector.shape_cast %37 : vector<16x16x128xbf16> to vector<256x128xbf16>
    %c5 = arith.constant 5 : index
    %c0_39 = arith.constant 0 : index
    %c0_40 = arith.constant 0 : index
    %39 = vector.load %arg2[%c5, %c0_39, %c0_40] : memref<9x128x128xbf16, #tpu.memory_space<vmem>>, vector<1x128x128xbf16>
    %40 = vector.shape_cast %39 : vector<1x128x128xbf16> to vector<128x128xbf16>
    %cst_41 = arith.constant dense<0.000000e+00> : vector<256x128xf32>
    %41 = tpu.matmul %38, %40, %cst_41 {dimension_numbers = #tpu.dot_dimension_numbers<[1], [0], [0], [1], [0, 0, 1, 1], [], []>} : vector<256x128xbf16>, vector<128x128xbf16>, vector<256x128xf32> -> vector<256x128xf32>
    %42 = arith.addf %35, %41 : vector<256x128xf32>
    %c0_42 = arith.constant 0 : index
    %c2_43 = arith.constant 2 : index
    %c0_44 = arith.constant 0 : index
    %c0_45 = arith.constant 0 : index
    %43 = vector.load %arg1[%c0_42, %c2_43, %c0_44, %c0_45] : memref<1x18x18x128xbf16, #tpu.memory_space<vmem>>, vector<1x16x16x128xbf16>
    %44 = vector.shape_cast %43 : vector<1x16x16x128xbf16> to vector<16x16x128xbf16>
    %45 = vector.shape_cast %44 : vector<16x16x128xbf16> to vector<256x128xbf16>
    %c6 = arith.constant 6 : index
    %c0_46 = arith.constant 0 : index
    %c0_47 = arith.constant 0 : index
    %46 = vector.load %arg2[%c6, %c0_46, %c0_47] : memref<9x128x128xbf16, #tpu.memory_space<vmem>>, vector<1x128x128xbf16>
    %47 = vector.shape_cast %46 : vector<1x128x128xbf16> to vector<128x128xbf16>
    %cst_48 = arith.constant dense<0.000000e+00> : vector<256x128xf32>
    %48 = tpu.matmul %45, %47, %cst_48 {dimension_numbers = #tpu.dot_dimension_numbers<[1], [0], [0], [1], [0, 0, 1, 1], [], []>} : vector<256x128xbf16>, vector<128x128xbf16>, vector<256x128xf32> -> vector<256x128xf32>
    %49 = arith.addf %42, %48 : vector<256x128xf32>
    %c0_49 = arith.constant 0 : index
    %c2_50 = arith.constant 2 : index
    %c1_51 = arith.constant 1 : index
    %c0_52 = arith.constant 0 : index
    %50 = vector.load %arg1[%c0_49, %c2_50, %c1_51, %c0_52] : memref<1x18x18x128xbf16, #tpu.memory_space<vmem>>, vector<1x16x16x128xbf16>
    %51 = vector.shape_cast %50 : vector<1x16x16x128xbf16> to vector<16x16x128xbf16>
    %52 = vector.shape_cast %51 : vector<16x16x128xbf16> to vector<256x128xbf16>
    %c7 = arith.constant 7 : index
    %c0_53 = arith.constant 0 : index
    %c0_54 = arith.constant 0 : index
    %53 = vector.load %arg2[%c7, %c0_53, %c0_54] : memref<9x128x128xbf16, #tpu.memory_space<vmem>>, vector<1x128x128xbf16>
    %54 = vector.shape_cast %53 : vector<1x128x128xbf16> to vector<128x128xbf16>
    %cst_55 = arith.constant dense<0.000000e+00> : vector<256x128xf32>
    %55 = tpu.matmul %52, %54, %cst_55 {dimension_numbers = #tpu.dot_dimension_numbers<[1], [0], [0], [1], [0, 0, 1, 1], [], []>} : vector<256x128xbf16>, vector<128x128xbf16>, vector<256x128xf32> -> vector<256x128xf32>
    %56 = arith.addf %49, %55 : vector<256x128xf32>
    %c0_56 = arith.constant 0 : index
    %c2_57 = arith.constant 2 : index
    %c2_58 = arith.constant 2 : index
    %c0_59 = arith.constant 0 : index
    %57 = vector.load %arg1[%c0_56, %c2_57, %c2_58, %c0_59] : memref<1x18x18x128xbf16, #tpu.memory_space<vmem>>, vector<1x16x16x128xbf16>
    %58 = vector.shape_cast %57 : vector<1x16x16x128xbf16> to vector<16x16x128xbf16>
    %59 = vector.shape_cast %58 : vector<16x16x128xbf16> to vector<256x128xbf16>
    %c8 = arith.constant 8 : index
    %c0_60 = arith.constant 0 : index
    %c0_61 = arith.constant 0 : index
    %60 = vector.load %arg2[%c8, %c0_60, %c0_61] : memref<9x128x128xbf16, #tpu.memory_space<vmem>>, vector<1x128x128xbf16>
    %61 = vector.shape_cast %60 : vector<1x128x128xbf16> to vector<128x128xbf16>
    %cst_62 = arith.constant dense<0.000000e+00> : vector<256x128xf32>
    %62 = tpu.matmul %59, %61, %cst_62 {dimension_numbers = #tpu.dot_dimension_numbers<[1], [0], [0], [1], [0, 0, 1, 1], [], []>} : vector<256x128xbf16>, vector<128x128xbf16>, vector<256x128xf32> -> vector<256x128xf32>
    %63 = arith.addf %56, %62 : vector<256x128xf32>
    %c0_63 = arith.constant 0 : index
    %c0_64 = arith.constant 0 : index
    %c0_65 = arith.constant 0 : index
    %64 = vector.load %arg3[%c0_63, %c0_64, %c0_65] : memref<1x256x128xf32, #tpu.memory_space<vmem>>, vector<1x256x128xf32>
    %65 = vector.shape_cast %64 : vector<1x256x128xf32> to vector<256x128xf32>
    %66 = vector.shape_cast %63 : vector<256x128xf32> to vector<1x256x128xf32>
    tpu.vector_store %arg3[%c0_63, %c0_64, %c0_65], %66 {strides = array<i32>} : memref<1x256x128xf32, #tpu.memory_space<vmem>>, vector<1x256x128xf32>,
    return
  }
  func.func @transform_0(%arg0: i32) -> (i32, i32, i32, i32) {
    %c0_i32 = arith.constant 0 : i32
    %c0_i32_0 = arith.constant 0 : i32
    %c0_i32_1 = arith.constant 0 : i32
    %c0_i32_2 = arith.constant 0 : i32
    return %arg0, %c0_i32, %c0_i32_0, %c0_i32_1 : i32, i32, i32, i32
  }
  func.func @transform_1(%arg0: i32) -> (i32, i32, i32) {
    %c0_i32 = arith.constant 0 : i32
    %c0_i32_0 = arith.constant 0 : i32
    %c0_i32_1 = arith.constant 0 : i32
    %c0_i32_2 = arith.constant 0 : i32
    return %c0_i32, %c0_i32_0, %c0_i32_1 : i32, i32, i32
  }
  func.func @transform_2(%arg0: i32) -> (i32, i32, i32) {
    %c0_i32 = arith.constant 0 : i32
    %c0_i32_0 = arith.constant 0 : i32
    %c0_i32_1 = arith.constant 0 : i32
    return %arg0, %c0_i32, %c0_i32_0 : i32, i32, i32
  }
}

</mosaic_0001>

<bundles_post_ra>
// kernel: down_residual_block.4
= control target key start
LH: loop header
LB: loop body
LE: loop exit
PB: predicated region body
PF: predicated region fallthrough
CT: control target
= control target key end

     0   :  { %s694_s6 = smov 0   ;;  %s1127_s0 = inlined_call_operand.vmem [shape: f32[2,256,128], index: 0, kind: input, shape index: {}]   ;;  %s1128_s1 = inlined_call_operand.vmem [shape: bf16[2,256,128], index: 1, kind: output, shape index: {}]  }
   0x1 LB: > { %s554_s7 = sadd.s32 4294967295, %s681_s6   ;;  %p558_p0 = scmp.ge.s32.totalorder %s681_s6, 1  ;;  %s681_s6 = sphi %s694_s6, %s11_s6  }
   0x2   : > { %p87_p1 = scmp.lt.s32.totalorder %s681_s6, 3 }
   0x4   : > { %p88_p2 = pnand %p558_p0, %p87_p1 }
   0x5   : > { %p107_p3 = scmp.lt.s32.totalorder (!%p88_p2), %s554_s7, 1 }
   0x6   : > { %91 = sbr.rel (%p88_p2) target bundleno = 232 (0xe8), region = 24 }
   0xb   : > { %s1130_s7 = smov (!%p107_p3, %s554_s7), 1  ;;  %v683_v56 = vmov 256.0  }
   0xc   : > { %s565_s8 = sshll.u32 %s1130_s7, 8  ;;  %671 = vrcp.f32 %v683_v56  ;;  %s566_s12 = sshll.u32 %s1130_s7, 7 }
   0xd   : > { %s708_s11 = scalar_lea.vmem %s1127_s0, %s565_s8  ;;  %s1058_s15 = scalar_lea.vmem %s1128_s1, %s566_s12 }
   0xe   : > { %v711_v0 = vld [vmem:[%s708_s11] sm:$0xff]  ;;  %v714_v1 = vld [vmem:[%s708_s11 + $0x8] sm:$0xff]  ;;  %v717_v2 = vld [vmem:[%s708_s11 + $0x10] sm:$0xff] }
   0xf   : > { %v149_v3 = vadd.f32 %v714_v1, %v711_v0  ;;  %v722_v4 = vld [vmem:[%s708_s11 + $0x18] sm:$0xff]  ;;  %v726_v6 = vld [vmem:[%s708_s11 + $0x20] sm:$0xff]  ;;  %v730_v8 = vld [vmem:[%s708_s11 + $0x28] sm:$0xff] }
  0x10   : > { %v734_v10 = vld [vmem:[%s708_s11 + $0x30] sm:$0xff]  ;;  %v738_v12 = vld [vmem:[%s708_s11 + $0x38] sm:$0xff]  ;;  %v742_v14 = vld [vmem:[%s708_s11 + $0x40] sm:$0xff] }
  0x11   : > { %v150_v5 = vadd.f32 %v149_v3, %v717_v2  ;;  %v746_v16 = vld [vmem:[%s708_s11 + $0x48] sm:$0xff]  ;;  %v750_v18 = vld [vmem:[%s708_s11 + $0x50] sm:$0xff]  ;;  %v754_v20 = vld [vmem:[%s708_s11 + $0x58] sm:$0xff] }
  0x12   : > { %v758_v22 = vld [vmem:[%s708_s11 + $0x60] sm:$0xff]  ;;  %v762_v24 = vld [vmem:[%s708_s11 + $0x68] sm:$0xff]  ;;  %v766_v26 = vld [vmem:[%s708_s11 + $0x70] sm:$0xff]  ;;  %v672_v62 = vpop.eup %671 }
  0x13   : > { %v151_v7 = vadd.f32 %v150_v5, %v722_v4  ;;  %v770_v28 = vld [vmem:[%s708_s11 + $0x78] sm:$0xff]  ;;  %v774_v30 = vld [vmem:[%s708_s11 + $0x80] sm:$0xff]  ;;  %v778_v32 = vld [vmem:[%s708_s11 + $0x88] sm:$0xff]  ;;  %v187_v5 = vmul.f32 256.0, %v672_v62  ;;  %vm191_vm0 = vweird.f32 %v672_v62 }
  0x14   : > { %v782_v34 = vld [vmem:[%s708_s11 + $0x90] sm:$0xff]  ;;  %v786_v36 = vld [vmem:[%s708_s11 + $0x98] sm:$0xff]  ;;  %v790_v38 = vld [vmem:[%s708_s11 + $0xa0] sm:$0xff] }
  0x15   : > { %v152_v9 = vadd.f32 %v151_v7, %v726_v6  ;;  %v794_v40 = vld [vmem:[%s708_s11 + $0xa8] sm:$0xff]  ;;  %v798_v42 = vld [vmem:[%s708_s11 + $0xb0] sm:$0xff]  ;;  %v802_v44 = vld [vmem:[%s708_s11 + $0xb8] sm:$0xff] }
  0x16   : > { %v806_v46 = vld [vmem:[%s708_s11 + $0xc0] sm:$0xff]  ;;  %v810_v48 = vld [vmem:[%s708_s11 + $0xc8] sm:$0xff]  ;;  %v814_v50 = vld [vmem:[%s708_s11 + $0xd0] sm:$0xff] }
  0x17   : > { %v153_v11 = vadd.f32 %v152_v9, %v730_v8  ;;  %v818_v52 = vld [vmem:[%s708_s11 + $0xd8] sm:$0xff]  ;;  %v822_v54 = vld [vmem:[%s708_s11 + $0xe0] sm:$0xff]  ;;  %v826_v57 = vld [vmem:[%s708_s11 + $0xe8] sm:$0xff] }
  0x18   : > { %v830_v59 = vld [vmem:[%s708_s11 + $0xf0] sm:$0xff]  ;;  %v834_v61 = vld [vmem:[%s708_s11 + $0xf8] sm:$0xff] }
  0x19   : > { %v154_v13 = vadd.f32 %v153_v11, %v734_v10  ;;  %v188_v11 = vsub.f32 1.0, %v187_v5 }
  0x1b   : > { %v155_v15 = vadd.f32 %v154_v13, %v738_v12 }
  0x1d   : > { %v156_v17 = vadd.f32 %v155_v15, %v742_v14 }
  0x1f   : > { %v157_v19 = vadd.f32 %v156_v17, %v746_v16  ;;  %v189_v17 = vmul.f32 %v672_v62, %v188_v11 }
  0x21   : > { %v158_v21 = vadd.f32 %v157_v19, %v750_v18 }
  0x23   : > { %v159_v23 = vadd.f32 %v158_v21, %v754_v20  ;;  %v190_v21 = vadd.f32 %v672_v62, %v189_v17 }
  0x25   : > { %v160_v25 = vadd.f32 %v159_v23, %v758_v22 }
  0x27   : > { %v161_v27 = vadd.f32 %v160_v25, %v762_v24  ;;  %v838_v25 = vsel %vm191_vm0, %v672_v62, %v190_v21 }
  0x29   : > { %v162_v29 = vadd.f32 %v161_v27, %v766_v26 }
  0x2b   : > { %v163_v31 = vadd.f32 %v162_v29, %v770_v28 }
  0x2d   : > { %v164_v33 = vadd.f32 %v163_v31, %v774_v30 }
  0x2f   : > { %v165_v35 = vadd.f32 %v164_v33, %v778_v32 }
  0x31   : > { %v166_v37 = vadd.f32 %v165_v35, %v782_v34 }
  0x33   : > { %v167_v39 = vadd.f32 %v166_v37, %v786_v36 }
  0x35   : > { %v168_v41 = vadd.f32 %v167_v39, %v790_v38 }
  0x37   : > { %v169_v43 = vadd.f32 %v168_v41, %v794_v40 }
  0x39   : > { %v170_v45 = vadd.f32 %v169_v43, %v798_v42 }
  0x3b   : > { %v171_v47 = vadd.f32 %v170_v45, %v802_v44 }
  0x3d   : > { %v172_v49 = vadd.f32 %v171_v47, %v806_v46 }
  0x3f   : > { %v173_v51 = vadd.f32 %v172_v49, %v810_v48 }
  0x41   : > { %v174_v53 = vadd.f32 %v173_v51, %v814_v50 }
  0x43   : > { %v175_v55 = vadd.f32 %v174_v53, %v818_v52 }
  0x45   : > { %v176_v58 = vadd.f32 %v175_v55, %v822_v54 }
  0x47   : > { %v177_v60 = vadd.f32 %v176_v58, %v826_v57 }
  0x49   : > { %v178_v63 = vadd.f32 %v177_v60, %v830_v59 }
  0x4b   : > { %v179_v3 = vadd.f32 %v178_v63, %v834_v61 }
  0x4d   : > { %v180_v7 = vrot.slane %v179_v3, 4 }
  0x4f   : > { %v181_v9 = vadd.f32 %v180_v7, %v179_v3 }
  0x51   : > { %v182_v13 = vrot.slane %v181_v9, 2 }
  0x53   : > { %v183_v15 = vadd.f32 %v182_v13, %v181_v9 }
  0x55   : > { %v184_v19 = vrot.slane %v183_v15, 1 }
  0x57   : > { %v185_v23 = vadd.f32 %v184_v19, %v183_v15 }
  0x59   : > { %v841_v27 = vmul.f32 %v838_v25, %v185_v23 }
  0x5b   : > { %v845_v29 = vsub.f32 %v711_v0, %v841_v27  ;;  %v849_v31 = vsub.f32 %v714_v1, %v841_v27  ;;  %v853_v33 = vsub.f32 %v717_v2, %v841_v27  ;;  %v857_v35 = vsub.f32 %v722_v4, %v841_v27 }
  0x5c   : > { %v865_v0 = vsub.f32 %v726_v6, %v841_v27  ;;  %v871_v2 = vsub.f32 %v730_v8, %v841_v27  ;;  %v877_v43 = vsub.f32 %v734_v10, %v841_v27  ;;  %v883_v47 = vsub.f32 %v738_v12, %v841_v27 }
  0x5d   : > { %v226_v37 = vmul.f32 %v845_v29, %v845_v29  ;;  %v227_v39 = vmul.f32 %v849_v31, %v849_v31  ;;  %v228_v1 = vmul.f32 %v853_v33, %v853_v33  ;;  %v229_v4 = vmul.f32 %v857_v35, %v857_v35 }
  0x5e   : > { %v230_v45 = vmul.f32 %v865_v0, %v865_v0  ;;  %v231_v8 = vmul.f32 %v871_v2, %v871_v2  ;;  %v889_v51 = vsub.f32 %v742_v14, %v841_v27  ;;  %v232_v10 = vmul.f32 %v877_v43, %v877_v43 }
  0x5f   : > { %v258_v41 = vadd.f32 %v227_v39, %v226_v37  ;;  %v895_v55 = vsub.f32 %v746_v16, %v841_v27  ;;  %v233_v12 = vmul.f32 %v883_v47, %v883_v47  ;;  %v901_v58 = vsub.f32 %v750_v18, %v841_v27 }
  0x60   : > { %v234_v14 = vmul.f32 %v889_v51, %v889_v51  ;;  %v907_v62 = vsub.f32 %v754_v20, %v841_v27  ;;  %v913_v3 = vsub.f32 %v758_v22, %v841_v27  ;;  %v919_v7 = vsub.f32 %v762_v24, %v841_v27 }
  0x61   : > { %v259_v6 = vadd.f32 %v258_v41, %v228_v1  ;;  %v235_v16 = vmul.f32 %v895_v55, %v895_v55  ;;  %v236_v18 = vmul.f32 %v901_v58, %v901_v58  ;;  %v925_v11 = vsub.f32 %v766_v26, %v841_v27 }
  0x62   : > { %v237_v20 = vmul.f32 %v907_v62, %v907_v62  ;;  %v238_v22 = vmul.f32 %v913_v3, %v913_v3  ;;  %v931_v15 = vsub.f32 %v770_v28, %v841_v27  ;;  %v239_v24 = vmul.f32 %v919_v7, %v919_v7 }
  0x63   : > { %v260_v49 = vadd.f32 %v259_v6, %v229_v4  ;;  %v937_v19 = vsub.f32 %v774_v30, %v841_v27  ;;  %v240_v26 = vmul.f32 %v925_v11, %v925_v11  ;;  %v943_v23 = vsub.f32 %v778_v32, %v841_v27 }
  0x64   : > { %v241_v28 = vmul.f32 %v931_v15, %v931_v15  ;;  %v949_v39 = vsub.f32 %v782_v34, %v841_v27  ;;  %v955_v4 = vsub.f32 %v786_v36, %v841_v27 }
  0x65   : > { %v261_v53 = vadd.f32 %v260_v49, %v230_v45  ;;  %v242_v30 = vmul.f32 %v937_v19, %v937_v19  ;;  %v243_v32 = vmul.f32 %v943_v23, %v943_v23  ;;  %v961_v45 = vsub.f32 %v790_v38, %v841_v27 }
  0x66   : > { %v244_v34 = vmul.f32 %v949_v39, %v949_v39  ;;  %v245_v36 = vmul.f32 %v955_v4, %v955_v4 }
  0x67   : > { %v262_v56 = vadd.f32 %v261_v53, %v231_v8  ;;  %v967_v8 = vsub.f32 %v794_v40, %v841_v27  ;;  %v246_v38 = vmul.f32 %v961_v45, %v961_v45 }
  0x69   : > { %v263_v60 = vadd.f32 %v262_v56, %v232_v10  ;;  %v973_v10 = vsub.f32 %v798_v42, %v841_v27  ;;  %v247_v40 = vmul.f32 %v967_v8, %v967_v8 }
  0x6b   : > { %v264_v63 = vadd.f32 %v263_v60, %v233_v12  ;;  %v979_v12 = vsub.f32 %v802_v44, %v841_v27  ;;  %v248_v42 = vmul.f32 %v973_v10, %v973_v10 }
  0x6d   : > { %v265_v5 = vadd.f32 %v264_v63, %v234_v14  ;;  %v985_v14 = vsub.f32 %v806_v46, %v841_v27  ;;  %v249_v44 = vmul.f32 %v979_v12, %v979_v12 }
  0x6f   : > { %v266_v9 = vadd.f32 %v265_v5, %v235_v16  ;;  %v991_v16 = vsub.f32 %v810_v48, %v841_v27  ;;  %v250_v46 = vmul.f32 %v985_v14, %v985_v14 }
  0x71   : > { %v267_v13 = vadd.f32 %v266_v9, %v236_v18  ;;  %v997_v18 = vsub.f32 %v814_v50, %v841_v27  ;;  %v251_v48 = vmul.f32 %v991_v16, %v991_v16 }
  0x73   : > { %v268_v17 = vadd.f32 %v267_v13, %v237_v20  ;;  %v1003_v20 = vsub.f32 %v818_v52, %v841_v27  ;;  %v252_v50 = vmul.f32 %v997_v18, %v997_v18 }
  0x75   : > { %v269_v21 = vadd.f32 %v268_v17, %v238_v22  ;;  %v1009_v22 = vsub.f32 %v822_v54, %v841_v27  ;;  %v253_v52 = vmul.f32 %v1003_v20, %v1003_v20 }
  0x77   : > { %v270_v37 = vadd.f32 %v269_v21, %v239_v24  ;;  %v1015_v24 = vsub.f32 %v826_v57, %v841_v27  ;;  %v254_v54 = vmul.f32 %v1009_v22, %v1009_v22 }
  0x79   : > { %v271_v1 = vadd.f32 %v270_v37, %v240_v26  ;;  %v1021_v26 = vsub.f32 %v830_v59, %v841_v27  ;;  %v255_v57 = vmul.f32 %v1015_v24, %v1015_v24 }
  0x7b   : > { %v272_v41 = vadd.f32 %v271_v1, %v241_v28  ;;  %v1027_v28 = vsub.f32 %v834_v61, %v841_v27 }
  0x7d   : > { %v273_v6 = vadd.f32 %v272_v41, %v242_v30  ;;  %v256_v30 = vmul.f32 %v1021_v26, %v1021_v26  ;;  %v257_v59 = vmul.f32 %v1027_v28, %v1027_v28 }
  0x7f   : > { %v274_v49 = vadd.f32 %v273_v6, %v243_v32 }
  0x81   : > { %v275_v53 = vadd.f32 %v274_v49, %v244_v34 }
  0x83   : > { %v276_v56 = vadd.f32 %v275_v53, %v245_v36 }
  0x85   : > { %v277_v60 = vadd.f32 %v276_v56, %v246_v38 }
  0x87   : > { %v278_v63 = vadd.f32 %v277_v60, %v247_v40 }
  0x89   : > { %v279_v5 = vadd.f32 %v278_v63, %v248_v42 }
  0x8b   : > { %v280_v9 = vadd.f32 %v279_v5, %v249_v44 }
  0x8d   : > { %v281_v13 = vadd.f32 %v280_v9, %v250_v46 }
  0x8f   : > { %v282_v17 = vadd.f32 %v281_v13, %v251_v48 }
  0x91   : > { %v283_v21 = vadd.f32 %v282_v17, %v252_v50 }
  0x93   : > { %v284_v37 = vadd.f32 %v283_v21, %v253_v52 }
  0x95   : > { %v285_v1 = vadd.f32 %v284_v37, %v254_v54 }
  0x97   : > { %v286_v32 = vadd.f32 %v285_v1, %v255_v57 }
  0x99   : > { %v287_v41 = vadd.f32 %v286_v32, %v256_v30 }
  0x9b   : > { %v288_v34 = vadd.f32 %v287_v41, %v257_v59 }
  0x9d   : > { %v289_v6 = vrot.slane %v288_v34, 4 }
  0x9f   : > { %v290_v36 = vadd.f32 %v289_v6, %v288_v34 }
  0xa1   : > { %v291_v49 = vrot.slane %v290_v36, 2 }
  0xa3   : > { %v292_v38 = vadd.f32 %v291_v49, %v290_v36 }
  0xa5   : > { %v293_v61 = vrot.slane %v292_v38, 1 }
  0xa7   : > { %v294_v27 = vadd.f32 %v293_v61, %v292_v38 }
  0xa9   : > { %v295_v53 = vmul.f32 %v294_v27, %v838_v25 }
  0xab   : > { %v296_v40 = vadd.f32 1e-05, %v295_v53 }
  0xad   : > { %673 = vrsqrt.f32 %v296_v40  ;;  %vm303_vm1 = vweird.f32 %v296_v40 }
  0xb3   : > { %v674_v56 = vpop.eup %673 }
  0xb4   : > { %v298_v42 = vmul.f32 %v674_v56, %v296_v40  ;;  %vm304_vm2 = vweird.f32 %v674_v56 }
  0xb5   : > { %vm305_vm3 = vmor %vm303_vm1, %vm304_vm2 }
  0xb6   : > { %v299_v60 = vmul.f32 %v674_v56, %v298_v42 }
  0xb8   : > { %v300_v44 = vmul.f32 0.5, %v299_v60 }
  0xba   : > { %v301_v63 = vsub.f32 1.5, %v300_v44 }
  0xbc   : > { %v302_v46 = vmul.f32 %v674_v56, %v301_v63 }
  0xbe   : > { %v1036_v5 = vsel %vm305_vm3, %v674_v56, %v302_v46 }
  0xbf   : > { %v307_v48 = vmul.f32 %v1036_v5, %v845_v29  ;;  %v308_v25 = vmul.f32 %v1036_v5, %v849_v31  ;;  %v309_v9 = vmul.f32 %v1036_v5, %v853_v33  ;;  %v310_v50 = vmul.f32 %v1036_v5, %v857_v35 }
  0xc0   : > { %v311_v13 = vmul.f32 %v1036_v5, %v865_v0  ;;  %v312_v52 = vmul.f32 %v1036_v5, %v871_v2  ;;  %v313_v17 = vmul.f32 %v1036_v5, %v877_v43  ;;  %v314_v29 = vmul.f32 %v1036_v5, %v883_v47 }
  0xc1   : > { %vm339_vm4 = vcmp.ge.f32.partialorder %v307_v48, 0.0  ;;  %vm340_vm5 = vcmp.ge.f32.partialorder %v308_v25, 0.0  ;;  %v371_v31 = vmul.f32 0.2, %v307_v48  ;;  %v372_v33 = vmul.f32 0.2, %v308_v25 }
  0xc2   : > { %vm341_vm6 = vcmp.ge.f32.partialorder %v309_v9, 0.0  ;;  %vm342_vm7 = vcmp.ge.f32.partialorder %v310_v50, 0.0  ;;  %v373_v35 = vmul.f32 0.2, %v309_v9  ;;  %v374_v54 = vmul.f32 0.2, %v310_v50 }
  0xc3   : > { %v403_v0 = vsel %vm339_vm4, %v307_v48, %v371_v31  ;;  %v404_v2 = vsel %vm340_vm5, %v308_v25, %v372_v33  ;;  %vm343_vm8 = vcmp.ge.f32.partialorder %v311_v13, 0.0  ;;  %vm344_vm9 = vcmp.ge.f32.partialorder %v312_v52, 0.0 }
  0xc4   : > { %v570_v43 = vpack.c.bf16 %v404_v2, %v403_v0  ;;  %v405_v47 = vsel %vm341_vm6, %v309_v9, %v373_v35  ;;  %v406_v21 = vsel %vm342_vm7, %v310_v50, %v374_v54  ;;  %v375_v57 = vmul.f32 0.2, %v311_v13 }
  0xc5   : > { %v575_v37 = vpack.c.bf16 %v406_v21, %v405_v47  ;;  %v376_v30 = vmul.f32 0.2, %v312_v52  ;;  %vm345_vm10 = vcmp.ge.f32.partialorder %v313_v17, 0.0  ;;  %vm346_vm11 = vcmp.ge.f32.partialorder %v314_v29, 0.0 }
  0xc6   : > { %571 = vst [vmem:[%s1058_s15] sm:$0xff] %v570_v43   ;;  %v407_v1 = vsel %vm343_vm8, %v311_v13, %v375_v57  ;;  %v377_v59 = vmul.f32 0.2, %v313_v17  ;;  %v378_v32 = vmul.f32 0.2, %v314_v29  ;;  %v315_v41 = vmul.f32 %v1036_v5, %v889_v51 }
  0xc7   : > { %647 = vst [vmem:[%s1058_s15 + $0x8] sm:$0xff] %v575_v37   ;;  %v408_v34 = vsel %vm344_vm9, %v312_v52, %v376_v30  ;;  %v316_v6 = vmul.f32 %v1036_v5, %v895_v55  ;;  %v317_v36 = vmul.f32 %v1036_v5, %v901_v58  ;;  %v318_v49 = vmul.f32 %v1036_v5, %v907_v62 }
  0xc8   : > { %v580_v38 = vpack.c.bf16 %v408_v34, %v407_v1  ;;  %v409_v61 = vsel %vm345_vm10, %v313_v17, %v377_v59  ;;  %v410_v27 = vsel %vm346_vm11, %v314_v29, %v378_v32  ;;  %vm347_vm12 = vcmp.ge.f32.partialorder %v315_v41, 0.0 }
  0xc9   : > { %v585_v53 = vpack.c.bf16 %v410_v27, %v409_v61  ;;  %vm348_vm13 = vcmp.ge.f32.partialorder %v316_v6, 0.0  ;;  %v379_v40 = vmul.f32 0.2, %v315_v41  ;;  %v380_v51 = vmul.f32 0.2, %v316_v6 }
  0xca   : > { %648 = vst [vmem:[%s1058_s15 + $0x10] sm:$0xff] %v580_v38   ;;  %vm349_vm14 = vcmp.ge.f32.partialorder %v317_v36, 0.0  ;;  %vm350_vm15 = vcmp.ge.f32.partialorder %v318_v49, 0.0  ;;  %v381_v55 = vmul.f32 0.2, %v317_v36  ;;  %v319_v56 = vmul.f32 %v1036_v5, %v913_v3 }
  0xcb   : > { %649 = vst [vmem:[%s1058_s15 + $0x18] sm:$0xff] %v585_v53   ;;  %v411_v58 = vsel %vm347_vm12, %v315_v41, %v379_v40  ;;  %v412_v42 = vsel %vm348_vm13, %v316_v6, %v380_v51  ;;  %v382_v62 = vmul.f32 0.2, %v318_v49  ;;  %v320_v60 = vmul.f32 %v1036_v5, %v919_v7 }
  0xcc   : > { %v590_v44 = vpack.c.bf16 %v412_v42, %v411_v58  ;;  %v413_v63 = vsel %vm349_vm14, %v317_v36, %v381_v55  ;;  %vm351_vm0 = vcmp.ge.f32.partialorder %v319_v56, 0.0  ;;  %v383_v46 = vmul.f32 0.2, %v319_v56 }
  0xcd   : > { %v414_v48 = vsel %vm350_vm15, %v318_v49, %v382_v62  ;;  %vm352_vm1 = vcmp.ge.f32.partialorder %v320_v60, 0.0  ;;  %v384_v25 = vmul.f32 0.2, %v320_v60  ;;  %v321_v9 = vmul.f32 %v1036_v5, %v925_v11 }
  0xce   : > { %650 = vst [vmem:[%s1058_s15 + $0x20] sm:$0xff] %v590_v44   ;;  %v595_v3 = vpack.c.bf16 %v414_v48, %v413_v63  ;;  %v415_v50 = vsel %vm351_vm0, %v319_v56, %v383_v46  ;;  %v322_v13 = vmul.f32 %v1036_v5, %v931_v15  ;;  %v323_v7 = vmul.f32 %v1036_v5, %v937_v19 }
  0xcf   : > { %v416_v52 = vsel %vm352_vm1, %v320_v60, %v384_v25  ;;  %vm353_vm2 = vcmp.ge.f32.partialorder %v321_v9, 0.0  ;;  %v385_v17 = vmul.f32 0.2, %v321_v9  ;;  %v324_v29 = vmul.f32 %v1036_v5, %v943_v23 }
  0xd0   : > { %651 = vst [vmem:[%s1058_s15 + $0x28] sm:$0xff] %v595_v3   ;;  %v600_v31 = vpack.c.bf16 %v416_v52, %v415_v50  ;;  %vm354_vm3 = vcmp.ge.f32.partialorder %v322_v13, 0.0  ;;  %v386_v11 = vmul.f32 0.2, %v322_v13  ;;  %vm355_vm4 = vcmp.ge.f32.partialorder %v323_v7, 0.0 }
  0xd1   : > { %v417_v33 = vsel %vm353_vm2, %v321_v9, %v385_v17  ;;  %vm356_vm5 = vcmp.ge.f32.partialorder %v324_v29, 0.0  ;;  %v387_v35 = vmul.f32 0.2, %v323_v7  ;;  %v388_v54 = vmul.f32 0.2, %v324_v29 }
  0xd2   : > { %652 = vst [vmem:[%s1058_s15 + $0x30] sm:$0xff] %v600_v31   ;;  %v418_v15 = vsel %vm354_vm3, %v322_v13, %v386_v11  ;;  %v325_v19 = vmul.f32 %v1036_v5, %v949_v39  ;;  %v326_v0 = vmul.f32 %v1036_v5, %v955_v4  ;;  %v327_v23 = vmul.f32 %v1036_v5, %v961_v45 }
  0xd3   : > { %v605_v2 = vpack.c.bf16 %v418_v15, %v417_v33  ;;  %v419_v43 = vsel %vm355_vm4, %v323_v7, %v387_v35  ;;  %v420_v47 = vsel %vm356_vm5, %v324_v29, %v388_v54  ;;  %v328_v21 = vmul.f32 %v1036_v5, %v967_v8 }
  0xd4   : > { %v610_v57 = vpack.c.bf16 %v420_v47, %v419_v43  ;;  %vm357_vm6 = vcmp.ge.f32.partialorder %v325_v19, 0.0  ;;  %vm358_vm7 = vcmp.ge.f32.partialorder %v326_v0, 0.0  ;;  %v389_v37 = vmul.f32 0.2, %v325_v19 }
  0xd5   : > { %653 = vst [vmem:[%s1058_s15 + $0x38] sm:$0xff] %v605_v2   ;;  %v390_v30 = vmul.f32 0.2, %v326_v0  ;;  %vm359_vm8 = vcmp.ge.f32.partialorder %v327_v23, 0.0  ;;  %vm360_vm9 = vcmp.ge.f32.partialorder %v328_v21, 0.0  ;;  %v329_v39 = vmul.f32 %v1036_v5, %v973_v10 }
  0xd6   : > { %654 = vst [vmem:[%s1058_s15 + $0x40] sm:$0xff] %v610_v57   ;;  %v421_v4 = vsel %vm357_vm6, %v325_v19, %v389_v37  ;;  %v391_v45 = vmul.f32 0.2, %v327_v23  ;;  %v392_v1 = vmul.f32 0.2, %v328_v21  ;;  %v330_v59 = vmul.f32 %v1036_v5, %v979_v12 }
  0xd7   : > { %v422_v8 = vsel %vm358_vm7, %v326_v0, %v390_v30  ;;  %vm361_vm10 = vcmp.ge.f32.partialorder %v329_v39, 0.0  ;;  %v393_v32 = vmul.f32 0.2, %v329_v39  ;;  %v331_v41 = vmul.f32 %v1036_v5, %v985_v14 }
  0xd8   : > { %v615_v34 = vpack.c.bf16 %v422_v8, %v421_v4  ;;  %v423_v6 = vsel %vm359_vm8, %v327_v23, %v391_v45  ;;  %v424_v36 = vsel %vm360_vm9, %v328_v21, %v392_v1  ;;  %vm362_vm11 = vcmp.ge.f32.partialorder %v330_v59, 0.0 }
  0xd9   : > { %v620_v10 = vpack.c.bf16 %v424_v36, %v423_v6  ;;  %v394_v49 = vmul.f32 0.2, %v330_v59  ;;  %v425_v38 = vsel %vm361_vm10, %v329_v39, %v393_v32  ;;  %v332_v61 = vmul.f32 %v1036_v5, %v991_v16 }
  0xda   : > { %655 = vst [vmem:[%s1058_s15 + $0x48] sm:$0xff] %v615_v34   ;;  %vm363_vm12 = vcmp.ge.f32.partialorder %v331_v41, 0.0  ;;  %v395_v12 = vmul.f32 0.2, %v331_v41  ;;  %v333_v27 = vmul.f32 %v1036_v5, %v997_v18  ;;  %v334_v14 = vmul.f32 %v1036_v5, %v1003_v20 }
  0xdb   : > { %656 = vst [vmem:[%s1058_s15 + $0x50] sm:$0xff] %v620_v10   ;;  %v426_v53 = vsel %vm362_vm11, %v330_v59, %v394_v49  ;;  %vm364_vm13 = vcmp.ge.f32.partialorder %v332_v61, 0.0  ;;  %v396_v40 = vmul.f32 0.2, %v332_v61  ;;  %v335_v51 = vmul.f32 %v1036_v5, %v1009_v22 }
  0xdc   : > { %v625_v55 = vpack.c.bf16 %v426_v53, %v425_v38  ;;  %v427_v56 = vsel %vm363_vm12, %v331_v41, %v395_v12  ;;  %vm365_vm14 = vcmp.ge.f32.partialorder %v333_v27, 0.0  ;;  %vm366_vm15 = vcmp.ge.f32.partialorder %v334_v14, 0.0 }
  0xdd   : > { %v428_v16 = vsel %vm364_vm13, %v332_v61, %v396_v40  ;;  %v397_v58 = vmul.f32 0.2, %v333_v27  ;;  %v398_v42 = vmul.f32 0.2, %v334_v14  ;;  %v336_v18 = vmul.f32 %v1036_v5, %v1015_v24 }
  0xde   : > { %657 = vst [vmem:[%s1058_s15 + $0x58] sm:$0xff] %v625_v55   ;;  %v630_v20 = vpack.c.bf16 %v428_v16, %v427_v56  ;;  %vm367_vm0 = vcmp.ge.f32.partialorder %v335_v51, 0.0  ;;  %v399_v62 = vmul.f32 0.2, %v335_v51  ;;  %v337_v60 = vmul.f32 %v1036_v5, %v1021_v26 }
  0xdf   : > { %v429_v22 = vsel %vm365_vm14, %v333_v27, %v397_v58  ;;  %v430_v44 = vsel %vm366_vm15, %v334_v14, %v398_v42  ;;  %vm368_vm1 = vcmp.ge.f32.partialorder %v336_v18, 0.0  ;;  %v400_v63 = vmul.f32 0.2, %v336_v18 }
  0xe0   : > { %658 = vst [vmem:[%s1058_s15 + $0x60] sm:$0xff] %v630_v20   ;;  %v635_v46 = vpack.c.bf16 %v430_v44, %v429_v22  ;;  %v431_v48 = vsel %vm367_vm0, %v335_v51, %v399_v62  ;;  %v338_v24 = vmul.f32 %v1036_v5, %v1027_v28  ;;  %vm369_vm2 = vcmp.ge.f32.partialorder %v337_v60, 0.0 }
  0xe1   : > { %v432_v25 = vsel %vm368_vm1, %v336_v18, %v400_v63  ;;  %v401_v9 = vmul.f32 0.2, %v337_v60 }
  0xe2   : > { %659 = vst [vmem:[%s1058_s15 + $0x68] sm:$0xff] %v635_v46   ;;  %v640_v3 = vpack.c.bf16 %v432_v25, %v431_v48  ;;  %vm370_vm3 = vcmp.ge.f32.partialorder %v338_v24, 0.0  ;;  %v402_v50 = vmul.f32 0.2, %v338_v24 }
  0xe3   : > { %v433_v26 = vsel %vm369_vm2, %v337_v60, %v401_v9 }
  0xe4   : > { %660 = vst [vmem:[%s1058_s15 + $0x70] sm:$0xff] %v640_v3   ;;  %v434_v13 = vsel %vm370_vm3, %v338_v24, %v402_v50 }
  0xe5   : > { %v645_v7 = vpack.c.bf16 %v434_v13, %v433_v26 }
  0xe7   : > { %661 = vst [vmem:[%s1058_s15 + $0x78] sm:$0xff] %v645_v7  }
  0xe8 PF: > { %s11_s6 = sadd.s32 1, %s681_s6  }
  0xe9   : > { %p8_p4 = scmp.ge.s32.totalorder %s11_s6, 4  }
  0xeb   :  { %10 = sbr.rel (!%p8_p4) target bundleno = 1 (0x1), region = 54 }

// kernel: down_residual_block.7
= control target key start
LH: loop header
LB: loop body
LE: loop exit
PB: predicated region body
PF: predicated region fallthrough
CT: control target
= control target key end

     0   :  { %s548_s15 = smov 0   ;;  %s610_s0 = inlined_call_operand.vmem [shape: f32[2,64,128], index: 0, kind: input, shape index: {}, may-alias: {0,4}]   ;;  %s611_s1 = inlined_call_operand.vmem [shape: f32[2,64,128], index: 1, kind: input, shape index: {}]   ;;  %s612_s2 = inlined_call_operand.vmem [shape: bf16[128,128], index: 2, kind: input, shape index: {}]   ;;  %s613_s3 = inlined_call_operand.vmem [shape: f32[1,128], index: 3, kind: input, shape index: {}]   ;;  %s614_s4 = inlined_call_operand.vmem [shape: f32[2,64,128], index: 4, kind: output, shape index: {}, may-alias: {0,4}]  }
   0x1 LB: > { %s426_s16 = sadd.s32 4294967295, %s521_s15   ;;  %p430_p0 = scmp.ge.s32.totalorder %s521_s15, 1  ;;  %s521_s15 = sphi %s548_s15, %s14_s15  }
   0x2   : > { %p172_p1 = scmp.lt.s32.totalorder %s521_s15, 3 }
   0x4   : > { %p173_p2 = pnand %p430_p0, %p172_p1 }
   0x5   : > { %p203_p3 = scmp.lt.s32.totalorder (!%p173_p2), %s426_s16, 1 }
   0x6   : > { %176 = sbr.rel (%p173_p2) target bundleno = 190 (0xbe), region = 36 }
   0xb   : > { %v481_v0 = vld [vmem:[%s612_s2 + $0x38] sm:$0xff]  ;;  %v480_v1 = vld [vmem:[%s612_s2 + $0x30] sm:$0xff]  ;;  %v479_v2 = vld [vmem:[%s612_s2 + $0x28] sm:$0xff]  ;;  %s616_s16 = smov (!%p203_p3, %s426_s16), 1 }
   0xc   : > { %294 = vmatpush.bf16.msra.mxu0 %v481_v0  ;;  %482 = vmatpush.bf16.msra.mxu1 %v481_v0  ;;  %v478_v3 = vld [vmem:[%s612_s2 + $0x20] sm:$0xff]  ;;  %v477_v4 = vld [vmem:[%s612_s2 + $0x18] sm:$0xff]  ;;  %v476_v5 = vld [vmem:[%s612_s2 + $0x10] sm:$0xff]  ;;  %s574_s29 = sshll.u32 %s616_s16, 6 }
   0xd   : > { %483 = vmatpush.bf16.msra.mxu2 %v481_v0  ;;  %484 = vmatpush.bf16.msra.mxu3 %v481_v0  ;;  %v475_v6 = vld [vmem:[%s612_s2 + $0x8] sm:$0xff]  ;;  %s212_s8 = scalar_lea.vmem %s611_s1, %s574_s29  ;;  %v474_v7 = vld [vmem:[%s612_s2] sm:$0xff]  ;;  %s207_s13 = scalar_lea.vmem %s610_s0, %s574_s29 }
   0xe   : > { %v218_v8 = vld [vmem:[%s212_s8] sm:$0xff]  ;;  %v219_v9 = vld [vmem:[%s212_s8 + $0x8] sm:$0xff]  ;;  %v220_v10 = vld [vmem:[%s212_s8 + $0x10] sm:$0xff]  ;;  %s597_s19 = scalar_lea.vmem %s614_s4, %s574_s29 }
   0xf   : > { %v221_v11 = vld [vmem:[%s212_s8 + $0x18] sm:$0xff]  ;;  %v222_v12 = vld [vmem:[%s212_s8 + $0x20] sm:$0xff]  ;;  %v223_v13 = vld [vmem:[%s212_s8 + $0x28] sm:$0xff]  ;;  %v226_v16 = vpack.c.bf16 %v219_v9, %v218_v8 }
  0x10   : > { %295 = vmatpush.bf16.msra.mxu0 %v480_v1  ;;  %485 = vmatpush.bf16.msra.mxu1 %v480_v1  ;;  %v224_v14 = vld [vmem:[%s212_s8 + $0x30] sm:$0xff]  ;;  %v225_v15 = vld [vmem:[%s212_s8 + $0x38] sm:$0xff]  ;;  %v227_v17 = vpack.c.bf16 %v221_v11, %v220_v10  ;;  %v228_v18 = vpack.c.bf16 %v223_v13, %v222_v12  ;;  %v323_v20 = vld [vmem:[%s207_s13] sm:$0xff] }
  0x11   : > { %486 = vmatpush.bf16.msra.mxu2 %v480_v1  ;;  %487 = vmatpush.bf16.msra.mxu3 %v480_v1  ;;  %v229_v19 = vpack.c.bf16 %v225_v15, %v224_v14  ;;  %v325_v21 = vld [vmem:[%s207_s13 + $0x10] sm:$0xff]  ;;  %v514_v22 = vld [vmem:[%s613_s3] ss:$0 sm:$0xff]  ;;  %v328_v27 = vld [vmem:[%s207_s13 + $0x28] sm:$0xff] }
  0x12   : > { %v330_v28 = vld [vmem:[%s207_s13 + $0x38] sm:$0xff]  ;;  %v327_v31 = vld [vmem:[%s207_s13 + $0x20] sm:$0xff]  ;;  %v329_v32 = vld [vmem:[%s207_s13 + $0x30] sm:$0xff] }
  0x13   : > { %v324_v33 = vld [vmem:[%s207_s13 + $0x8] sm:$0xff]  ;;  %v326_v34 = vld [vmem:[%s207_s13 + $0x18] sm:$0xff] }
  0x14   : > { %296 = vmatpush.bf16.msra.mxu0 %v479_v2  ;;  %488 = vmatpush.bf16.msra.mxu1 %v479_v2 }
  0x15   : > { %489 = vmatpush.bf16.msra.mxu2 %v479_v2  ;;  %490 = vmatpush.bf16.msra.mxu3 %v479_v2 }
  0x18   : > { %297 = vmatpush.bf16.msra.mxu0 %v478_v3  ;;  %491 = vmatpush.bf16.msra.mxu1 %v478_v3 }
  0x19   : > { %492 = vmatpush.bf16.msra.mxu2 %v478_v3  ;;  %493 = vmatpush.bf16.msra.mxu3 %v478_v3 }
  0x1c   : > { %298 = vmatpush.bf16.msra.mxu0 %v477_v4  ;;  %494 = vmatpush.bf16.msra.mxu1 %v477_v4 }
  0x1d   : > { %495 = vmatpush.bf16.msra.mxu2 %v477_v4  ;;  %496 = vmatpush.bf16.msra.mxu3 %v477_v4 }
  0x20   : > { %299 = vmatpush.bf16.msra.mxu0 %v476_v5  ;;  %497 = vmatpush.bf16.msra.mxu1 %v476_v5 }
  0x21   : > { %498 = vmatpush.bf16.msra.mxu2 %v476_v5  ;;  %499 = vmatpush.bf16.msra.mxu3 %v476_v5 }
  0x24   : > { %300 = vmatpush.bf16.msra.mxu0 %v475_v6  ;;  %500 = vmatpush.bf16.msra.mxu1 %v475_v6 }
  0x25   : > { %501 = vmatpush.bf16.msra.mxu2 %v475_v6  ;;  %502 = vmatpush.bf16.msra.mxu3 %v475_v6 }
  0x28   : > { %301 = vmatpush.bf16.msra.mxu0 %v474_v7  ;;  %503 = vmatpush.bf16.msra.mxu1 %v474_v7 }
  0x29   : > { %504 = vmatpush.bf16.msra.mxu2 %v474_v7  ;;  %505 = vmatpush.bf16.msra.mxu3 %v474_v7 }
  0x2b   : > { %302 = vmatmul.bf16.vlgmr.msra.gmra.mxu0 %v226_v16  ;;  %307 = vmatmul.bf16.vlgmr.msra.gmra.mxu1 %v227_v17 }
  0x2c   : > { %312 = vmatmul.bf16.vlgmr.msra.gmra.mxu2 %v228_v18  ;;  %317 = vmatmul.bf16.vlgmr.msra.gmra.mxu3 %v229_v19 }
  0xa8   : > { %v303_v23 = vpop.f32.mrf.mxu0  ;;  %v308_v24 = vpop.f32.mrf.mxu1 }
  0xa9   : > { %v331_v25 = vadd.f32 %v323_v20, %v303_v23  ;;  %v333_v26 = vadd.f32 %v325_v21, %v308_v24 }
  0xab   : > { %v343_v29 = vadd.f32 %v514_v22, %v331_v25  ;;  %v345_v30 = vadd.f32 %v514_v22, %v333_v26 }
  0xad   : > { %351 = vst [vmem:[%s597_s19] sm:$0xff] %v343_v29 }
  0xae   : > { %353 = vst [vmem:[%s597_s19 + $0x10] sm:$0xff] %v345_v30 }
  0xaf   : > { %v313_v35 = vpop.f32.mrf.mxu2  ;;  %v318_v36 = vpop.f32.mrf.mxu3 }
  0xb0   : > { %v335_v37 = vadd.f32 %v327_v31, %v313_v35  ;;  %v337_v38 = vadd.f32 %v329_v32, %v318_v36  ;;  %v305_v39 = vpop.f32.mrf.mxu0  ;;  %v310_v40 = vpop.f32.mrf.mxu1 }
  0xb1   : > { %v332_v41 = vadd.f32 %v324_v33, %v305_v39  ;;  %v334_v42 = vadd.f32 %v326_v34, %v310_v40 }
  0xb2   : > { %v347_v43 = vadd.f32 %v514_v22, %v335_v37  ;;  %v349_v44 = vadd.f32 %v514_v22, %v337_v38 }
  0xb3   : > { %v344_v45 = vadd.f32 %v514_v22, %v332_v41  ;;  %v346_v46 = vadd.f32 %v514_v22, %v334_v42 }
  0xb4   : > { %355 = vst [vmem:[%s597_s19 + $0x20] sm:$0xff] %v347_v43 }
  0xb5   : > { %352 = vst [vmem:[%s597_s19 + $0x8] sm:$0xff] %v344_v45 }
  0xb6   : > { %354 = vst [vmem:[%s597_s19 + $0x18] sm:$0xff] %v346_v46 }
  0xb7   : > { %v315_v47 = vpop.f32.mrf.mxu2  ;;  %v320_v48 = vpop.f32.mrf.mxu3  ;;  %357 = vst [vmem:[%s597_s19 + $0x30] sm:$0xff] %v349_v44 }
  0xb8   : > { %v336_v49 = vadd.f32 %v328_v27, %v315_v47  ;;  %v338_v50 = vadd.f32 %v330_v28, %v320_v48 }
  0xba   : > { %v348_v51 = vadd.f32 %v514_v22, %v336_v49  ;;  %v350_v52 = vadd.f32 %v514_v22, %v338_v50 }
  0xbc   : > { %356 = vst [vmem:[%s597_s19 + $0x28] sm:$0xff] %v348_v51 }
  0xbd   : > { %358 = vst [vmem:[%s597_s19 + $0x38] sm:$0xff] %v350_v52 }
  0xbe PF: > { %s14_s15 = sadd.s32 1, %s521_s15  }
  0xbf   : > { %p11_p4 = scmp.ge.s32.totalorder %s14_s15, 4  }
  0xc1   :  { %13 = sbr.rel (!%p11_p4) target bundleno = 1 (0x1), region = 69 }

// kernel: down_residual_block.5
= control target key start
LH: loop header
LB: loop body
LE: loop exit
PB: predicated region body
PF: predicated region fallthrough
CT: control target
= control target key end

     0   :  { %s5899_s9 = smov 0   ;;  %s7815_s0 = inlined_call_operand.vmem [shape: bf16[2,18,18,128], index: 0, kind: input, shape index: {}]   ;;  %s7816_s1 = inlined_call_operand.vmem [shape: bf16[9,128,128], index: 1, kind: input, shape index: {}]   ;;  %s7817_s2 = inlined_call_operand.vmem [shape: bf16[2,256,128], index: 2, kind: output, shape index: {}]  }
   0x1 LB: > { %s4710_s10 = sadd.s32 4294967295, %s5881_s9   ;;  %p4714_p0 = scmp.ge.s32.totalorder %s5881_s9, 1  ;;  %s5881_s9 = sphi %s5899_s9, %s12_s9  }
   0x2   : > { %p112_p1 = scmp.lt.s32.totalorder %s5881_s9, 3 }
   0x4   : > { %p113_p2 = pnand %p4714_p0, %p112_p1 }
   0x6   : > { %116 = sbr.rel (%p113_p2) target bundleno = 916 (0x394), region = 28 }
   0xb   : > { %v5600_v0 = vld [vmem:[%s7816_s1 + $0x78] sm:$0xff]  ;;  %p134_p3 = scmp.lt.s32.totalorder %s4710_s10, 1  ;;  %v5599_v1 = vld [vmem:[%s7816_s1 + $0x70] sm:$0xff]  ;;  %v5598_v2 = vld [vmem:[%s7816_s1 + $0x68] sm:$0xff]  ;;  %vm208_vm0 = vsmask.f32 3328 }
   0xc   : > { %5784 = vmatpush.bf16.msra.mxu1 %v5600_v0  ;;  %5785 = vmatpush.bf16.msra.mxu2 %v5600_v0  ;;  %vm209_vm1 = vsmask.f32 7440  ;;  %v5597_v6 = vld [vmem:[%s7816_s1 + $0x60] sm:$0xff]  ;;  %v5596_v35 = vld [vmem:[%s7816_s1 + $0x58] sm:$0xff]  ;;  %v5595_v54 = vld [vmem:[%s7816_s1 + $0x50] sm:$0xff]  ;;  %vm1094_vm3 = vcmask 1042432  }
   0xd   : > { %s7843_s10 = smov (!%p134_p3, %s4710_s10), 1  ;;  %5786 = vmatpush.bf16.msra.mxu3 %v5600_v0  ;;  %724 = vmatpush.bf16.msra.mxu0 %v5600_v0  ;;  %vm5937_vm2 = vmor %vm208_vm0, %vm209_vm1  ;;  %vm1095_vm4 = vcmask 1046532  }
   0xe   : > { %s5808_s15 = smul.u32 216, %s7843_s10  ;;  %vm6237_vm5 = vmor %vm1094_vm3, %vm1095_vm4 }
  0x10   : > { %5787 = vmatpush.bf16.msra.mxu1 %v5599_v1  ;;  %5788 = vmatpush.bf16.msra.mxu2 %v5599_v1  ;;  %s5922_s20 = scalar_lea.vmem %s7815_s0, %s5808_s15 }
  0x11   : > { %5789 = vmatpush.bf16.msra.mxu3 %v5599_v1  ;;  %725 = vmatpush.bf16.msra.mxu0 %v5599_v1  ;;  %v152_v3 = vld [vmem:[%s5922_s20 + $0x30] sm:$0xf]  ;;  %v153_v4 = vld [vmem:[%s5922_s20 + $0x34] sm:$0xf]  ;;  %v196_v5 = vld [vmem:[%s5922_s20 + $0x38] sm:$0x1] }
  0x12   : > { %v308_v7 = vshrl.u32 %v152_v3, 16  ;;  %v311_v8 = vshll.u32 %v152_v3, 16  ;;  %v317_v9 = vshll.u32 %v153_v4, 16  ;;  %v321_v10 = vshrl.u32 %v153_v4, 16  ;;  %v160_v11 = vld [vmem:[%s5922_s20 + $0x60] sm:$0xf] }
  0x13   : > { %v327_v12 = vshll.u32 %v196_v5, 16  ;;  %v161_v13 = vld [vmem:[%s5922_s20 + $0x64] sm:$0xf]  ;;  %v200_v14 = vld [vmem:[%s5922_s20 + $0x68] sm:$0x1]  ;;  %v404_v15 = vshrl.u32 %v160_v11, 16 }
  0x14   : > { %5790 = vmatpush.bf16.msra.mxu1 %v5598_v2  ;;  %5791 = vmatpush.bf16.msra.mxu2 %v5598_v2  ;;  %v310_v16 = vrot.slane %v308_v7, 4  ;;  %v313_v17 = vrot.slane %v311_v8, 5  ;;  %v319_v18 = vrot.slane %v317_v9, 5  ;;  %v323_v19 = vrot.slane %v321_v10, 4  ;;  %v168_v20 = vld [vmem:[%s5922_s20 + $0x90] sm:$0xf] }
  0x15   : > { %5792 = vmatpush.bf16.msra.mxu3 %v5598_v2  ;;  %726 = vmatpush.bf16.msra.mxu0 %v5598_v2  ;;  %v329_v21 = vrot.slane %v327_v12, 5  ;;  %v406_v22 = vrot.slane %v404_v15, 4  ;;  %v407_v23 = vshll.u32 %v160_v11, 16  ;;  %v413_v24 = vshll.u32 %v161_v13, 16  ;;  %v169_v29 = vld [vmem:[%s5922_s20 + $0x94] sm:$0xf] }
  0x16   : > { %v314_v25 = vor.u32 %v313_v17, %v310_v16  ;;  %v324_v26 = vor.u32 %v323_v19, %v319_v18  ;;  %v417_v27 = vshrl.u32 %v161_v13, 16  ;;  %v423_v28 = vshll.u32 %v200_v14, 16  ;;  %v204_v41 = vld [vmem:[%s5922_s20 + $0x98] sm:$0x1]  ;;  %v144_v49 = vld [vmem:[%s5922_s20] sm:$0xf] }
  0x17   : > { %v409_v31 = vrot.slane %v407_v23, 5  ;;  %v415_v32 = vrot.slane %v413_v24, 5  ;;  %v500_v33 = vshrl.u32 %v168_v20, 16  ;;  %v503_v34 = vshll.u32 %v168_v20, 16  ;;  %v5962_v62 = vld [vmem:[%s5922_s20 + $0x4] sm:$0xf] }
  0x18   : > { %5793 = vmatpush.bf16.msra.mxu1 %v5597_v6  ;;  %5794 = vmatpush.bf16.msra.mxu2 %v5597_v6  ;;  %v315_v36 = vrot.slane %v314_v25, 4  ;;  %v325_v37 = vrot.slane %v324_v26, 4  ;;  %v419_v38 = vrot.slane %v417_v27, 4  ;;  %v425_v39 = vrot.slane %v423_v28, 5  ;;  %v5969_v4 = vld [vmem:[%s5922_s20 + $0x8] sm:$0x1] }
  0x19   : > { %5795 = vmatpush.bf16.msra.mxu3 %v5597_v6  ;;  %727 = vmatpush.bf16.msra.mxu0 %v5597_v6  ;;  %v410_v40 = vor.u32 %v409_v31, %v406_v22  ;;  %v502_v42 = vrot.slane %v500_v33, 4  ;;  %v505_v43 = vrot.slane %v503_v34, 5  ;;  %v509_v44 = vshll.u32 %v169_v29, 16  ;;  %v154_v5 = vld [vmem:[%s5922_s20 + $0x3c] sm:$0xf]  ;;  %v5594_v10 = vld [vmem:[%s7816_s1 + $0x48] sm:$0xff] }
  0x1a   : > { %v320_v45 = vsel %vm5937_vm2, %v315_v36, %v319_v18  ;;  %v330_v46 = vsel %vm5937_vm2, %v325_v37, %v329_v21  ;;  %v420_v47 = vor.u32 %v419_v38, %v415_v32  ;;  %v513_v48 = vshrl.u32 %v169_v29, 16  ;;  %v155_v15 = vld [vmem:[%s5922_s20 + $0x40] sm:$0xf]  ;;  %v197_v19 = vld [vmem:[%s5922_s20 + $0x44] sm:$0x1]  ;;  %v5608_v37 = vld [vmem:[%s7816_s1 + $0xb8] sm:$0xff] }
  0x1b   : > { %v5950_v50 = vunpack.c.l.b16 %v320_v45  ;;  %v5952_v51 = vunpack.c.l.b16 %v330_v46  ;;  %v411_v52 = vrot.slane %v410_v40, 4  ;;  %v506_v53 = vor.u32 %v505_v43, %v502_v42  ;;  %v162_v25 = vld [vmem:[%s5922_s20 + $0x6c] sm:$0xf]  ;;  %v5593_v31 = vld [vmem:[%s7816_s1 + $0x40] sm:$0xff]  ;;  %v163_v40 = vld [vmem:[%s5922_s20 + $0x70] sm:$0xf] }
  0x1c   : > { %5796 = vmatpush.bf16.msra.mxu1 %v5596_v35  ;;  %5797 = vmatpush.bf16.msra.mxu2 %v5596_v35  ;;  %v421_v55 = vrot.slane %v420_v47, 4  ;;  %v511_v56 = vrot.slane %v509_v44, 5  ;;  %v515_v57 = vrot.slane %v513_v48, 4  ;;  %v519_v58 = vshll.u32 %v204_v41, 16  ;;  %v5632_v43 = vld [vmem:[%s7816_s1 + $0xf8] sm:$0xff] }
  0x1d   : > { %5798 = vmatpush.bf16.msra.mxu3 %v5596_v35  ;;  %728 = vmatpush.bf16.msra.mxu0 %v5596_v35  ;;  %v648_v59 = vpack.c.b16 %v5952_v51, %v5950_v50  ;;  %v416_v60 = vsel %vm5937_vm2, %v411_v52, %v415_v32  ;;  %v507_v61 = vrot.slane %v506_v53, 4  ;;  %v212_v63 = vshrl.u32 %v144_v49, 16  ;;  %v201_v47 = vld [vmem:[%s5922_s20 + $0x74] sm:$0x1] }
  0x1e   : > { %v426_v0 = vsel %vm5937_vm2, %v421_v55, %v425_v39  ;;  %v5966_v1 = vunpack.c.l.b16 %v416_v60  ;;  %v516_v2 = vor.u32 %v515_v57, %v511_v56  ;;  %v521_v3 = vrot.slane %v519_v58, 5  ;;  %v5592_v57 = vld [vmem:[%s7816_s1 + $0x38] sm:$0xff] }
  0x1f   : > { %v5972_v6 = vunpack.c.l.b16 %v426_v0  ;;  %v512_v7 = vsel %vm5937_vm2, %v507_v61, %v511_v56  ;;  %v214_v8 = vrot.slane %v212_v63, 4  ;;  %v215_v9 = vshll.u32 %v144_v49, 16  ;;  %v5607_v63 = vld [vmem:[%s7816_s1 + $0xb0] sm:$0xff] }
  0x20   : > { %5799 = vmatpush.bf16.msra.mxu1 %v5595_v54  ;;  %5800 = vmatpush.bf16.msra.mxu2 %v5595_v54  ;;  %v517_v11 = vrot.slane %v516_v2, 4  ;;  %v5979_v12 = vunpack.c.l.b16 %v512_v7  ;;  %v221_v13 = vshll.u32 %v5962_v62, 16  ;;  %v225_v14 = vshrl.u32 %v5962_v62, 16 }
  0x21   : > { %5801 = vmatpush.bf16.msra.mxu3 %v5595_v54  ;;  %729 = vmatpush.bf16.msra.mxu0 %v5595_v54  ;;  %v652_v16 = vpack.c.b16 %v5972_v6, %v5966_v1  ;;  %v217_v17 = vrot.slane %v215_v9, 5  ;;  %v231_v18 = vshll.u32 %v5969_v4, 16  ;;  %v332_v20 = vshrl.u32 %v154_v5, 16  ;;  %v170_v54 = vld [vmem:[%s5922_s20 + $0x9c] sm:$0xf] }
  0x22   : > { %v522_v21 = vsel %vm5937_vm2, %v517_v11, %v521_v3  ;;  %v223_v22 = vrot.slane %v221_v13, 5  ;;  %v227_v23 = vrot.slane %v225_v14, 4  ;;  %v335_v24 = vshll.u32 %v154_v5, 16  ;;  %v5631_v3 = vld [vmem:[%s7816_s1 + $0xf0] sm:$0xff]  ;;  %v5640_v11 = vld [vmem:[%s7816_s1 + $0x138] sm:$0xff] }
  0x23   : > { %v637_v26 = vunpack.c.l.b16 %v522_v21  ;;  %v218_v27 = vor.u32 %v217_v17, %v214_v8  ;;  %v233_v28 = vrot.slane %v231_v18, 5  ;;  %v334_v29 = vrot.slane %v332_v20, 4  ;;  %v171_v8 = vld [vmem:[%s5922_s20 + $0xa0] sm:$0xf]  ;;  %v146_v17 = vld [vmem:[%s5922_s20 + $0xc] sm:$0xf] }
  0x24   : > { %5802 = vmatpush.bf16.msra.mxu1 %v5594_v10  ;;  %5803 = vmatpush.bf16.msra.mxu2 %v5594_v10  ;;  %v228_v32 = vor.u32 %v227_v23, %v223_v22  ;;  %v337_v33 = vrot.slane %v335_v24, 5  ;;  %v341_v34 = vshll.u32 %v155_v15, 16  ;;  %v345_v35 = vshrl.u32 %v155_v15, 16  ;;  %v205_v15 = vld [vmem:[%s5922_s20 + $0xa4] sm:$0x1]  ;;  %v5591_v18 = vld [vmem:[%s7816_s1 + $0x30] sm:$0xff] }
  0x25   : > { %5804 = vmatpush.bf16.msra.mxu3 %v5594_v10  ;;  %730 = vmatpush.bf16.msra.mxu0 %v5594_v10  ;;  %v656_v36 = vpack.c.b16 %v637_v26, %v5979_v12  ;;  %v219_v38 = vrot.slane %v218_v27, 4  ;;  %v351_v39 = vshll.u32 %v197_v19, 16  ;;  %v428_v41 = vshrl.u32 %v162_v25, 16  ;;  %v5606_v23 = vld [vmem:[%s7816_s1 + $0xa8] sm:$0xff]  ;;  %v6041_v27 = vld [vmem:[%s5922_s20 + $0x10] sm:$0xf] }
  0x26   : > { %v229_v42 = vrot.slane %v228_v32, 4  ;;  %v338_v44 = vor.u32 %v337_v33, %v334_v29  ;;  %v343_v45 = vrot.slane %v341_v34, 5  ;;  %v347_v46 = vrot.slane %v345_v35, 4  ;;  %v5630_v29 = vld [vmem:[%s7816_s1 + $0xe8] sm:$0xff]  ;;  %v6051_v35 = vld [vmem:[%s5922_s20 + $0x14] sm:$0x1] }
  0x27   : > { %v224_v48 = vsel %vm5937_vm2, %v219_v38, %v223_v22  ;;  %v353_v49 = vrot.slane %v351_v39, 5  ;;  %v430_v52 = vrot.slane %v428_v41, 4  ;;  %v431_v53 = vshll.u32 %v162_v25, 16  ;;  %v5590_v41 = vld [vmem:[%s7816_s1 + $0x28] sm:$0xff] }
  0x28   : > { %5805 = vmatpush.bf16.msra.mxu1 %v5593_v31  ;;  %5806 = vmatpush.bf16.msra.mxu2 %v5593_v31  ;;  %v234_v55 = vsel %vm5937_vm2, %v229_v42, %v233_v28  ;;  %v612_v56 = vunpack.c.l.b16 %v224_v48  ;;  %v339_v58 = vrot.slane %v338_v44, 4  ;;  %v348_v60 = vor.u32 %v347_v46, %v343_v45  ;;  %v156_v46 = vld [vmem:[%s5922_s20 + $0x48] sm:$0xf] }
  0x29   : > { %5807 = vmatpush.bf16.msra.mxu3 %v5593_v31  ;;  %731 = vmatpush.bf16.msra.mxu0 %v5593_v31  ;;  %v613_v61 = vunpack.c.l.b16 %v234_v55  ;;  %v433_v0 = vrot.slane %v431_v53, 5  ;;  %v437_v1 = vshll.u32 %v163_v40, 16  ;;  %v441_v2 = vshrl.u32 %v163_v40, 16  ;;  %v5605_v53 = vld [vmem:[%s7816_s1 + $0xa0] sm:$0xff] }
  0x2a   : > { %v344_v5 = vsel %vm5937_vm2, %v339_v58, %v343_v45  ;;  %v349_v6 = vrot.slane %v348_v60, 4  ;;  %v447_v7 = vshll.u32 %v201_v47, 16  ;;  %v524_v9 = vshrl.u32 %v170_v54, 16  ;;  %v5638_v60 = vld [vmem:[%s7816_s1 + $0x128] sm:$0xff] }
  0x2b   : > { %752 = vmatmul.bf16.vlgmr.msra.gmra.mxu1 %v648_v59  ;;  %772 = vmatmul.bf16.vlgmr.msra.gmra.mxu2 %v652_v16  ;;  %v644_v10 = vpack.c.b16 %v613_v61, %v612_v56  ;;  %v6026_v12 = vunpack.c.l.b16 %v344_v5  ;;  %v434_v13 = vor.u32 %v433_v0, %v430_v52  ;;  %v439_v14 = vrot.slane %v437_v1, 5  ;;  %v5589_v61 = vld [vmem:[%s7816_s1 + $0x20] sm:$0xff] }
  0x2c   : > { %1338 = vmatpush.bf16.msrb.mxu2 %v5608_v37  ;;  %792 = vmatmul.bf16.vlgmr.msra.gmra.mxu3 %v656_v36  ;;  %v354_v50 = vsel %vm5937_vm2, %v349_v6, %v353_v49  ;;  %v443_v51 = vrot.slane %v441_v2, 4  ;;  %v449_v59 = vrot.slane %v447_v7, 5  ;;  %v526_v16 = vrot.slane %v524_v9, 4  ;;  %v5639_v36 = vld [vmem:[%s7816_s1 + $0x130] sm:$0xff]  ;;  %v6080_v2 = vld [vmem:[%s5922_s20 + $0x4c] sm:$0xf] }
  0x2d   : > { %1653 = vmatpush.bf16.msrb.mxu3 %v5632_v43  ;;  %957 = vmatpush.bf16.msrb.mxu1 %v5592_v57  ;;  %v6035_v19 = vunpack.c.l.b16 %v354_v50  ;;  %v435_v20 = vrot.slane %v434_v13, 4  ;;  %v527_v21 = vshll.u32 %v170_v54, 16  ;;  %v533_v22 = vshll.u32 %v171_v8, 16  ;;  %v5629_v54 = vld [vmem:[%s7816_s1 + $0xe0] sm:$0xff] }
  0x2e   : > { %732 = vmatmul.bf16.vlgmr.msra.gmra.mxu0 %v644_v10  ;;  %v444_v24 = vor.u32 %v443_v51, %v439_v14  ;;  %v537_v25 = vshrl.u32 %v171_v8, 16  ;;  %v543_v26 = vshll.u32 %v205_v15, 16  ;;  %v236_v28 = vshrl.u32 %v146_v17, 16  ;;  %v198_v8 = vld [vmem:[%s5922_s20 + $0x50] sm:$0x1] }
  0x2f   : > { %2335 = vmatpush.bf16.msrb.mxu0 %v5640_v11  ;;  %v649_v31 = vpack.c.b16 %v6035_v19, %v6026_v12  ;;  %v440_v32 = vsel %vm5937_vm2, %v435_v20, %v439_v14  ;;  %v529_v33 = vrot.slane %v527_v21, 5  ;;  %v535_v34 = vrot.slane %v533_v22, 5  ;;  %v164_v10 = vld [vmem:[%s5922_s20 + $0x78] sm:$0xf] }
  0x30   : > { %1339 = vmatpush.bf16.msrb.mxu2 %v5607_v63  ;;  %v445_v37 = vrot.slane %v444_v24, 4  ;;  %v6056_v38 = vunpack.c.l.b16 %v440_v32  ;;  %v539_v39 = vrot.slane %v537_v25, 4  ;;  %v545_v40 = vrot.slane %v543_v26, 5  ;;  %v5637_v24 = vld [vmem:[%s7816_s1 + $0x120] sm:$0xff]  ;;  %v165_v32 = vld [vmem:[%s5922_s20 + $0x7c] sm:$0xf] }
  0x31   : > { %1654 = vmatpush.bf16.msrb.mxu3 %v5631_v3  ;;  %958 = vmatpush.bf16.msrb.mxu1 %v5591_v18  ;;  %v530_v42 = vor.u32 %v529_v33, %v526_v16  ;;  %v238_v43 = vrot.slane %v236_v28, 4  ;;  %v239_v44 = vshll.u32 %v146_v17, 16  ;;  %v245_v45 = vshll.u32 %v6041_v27, 16  ;;  %v5604_v17 = vld [vmem:[%s7816_s1 + $0x98] sm:$0xff]  ;;  %v202_v33 = vld [vmem:[%s5922_s20 + $0x80] sm:$0x1] }
  0x32   : > { %v450_v47 = vsel %vm5937_vm2, %v445_v37, %v449_v59  ;;  %v540_v48 = vor.u32 %v539_v39, %v535_v34  ;;  %v249_v49 = vshrl.u32 %v6041_v27, 16  ;;  %v255_v52 = vshll.u32 %v6051_v35, 16  ;;  %v5628_v18 = vld [vmem:[%s7816_s1 + $0xd8] sm:$0xff] }
  0x33   : > { %v631_v55 = vunpack.c.l.b16 %v450_v47  ;;  %v531_v56 = vrot.slane %v530_v42, 4  ;;  %v241_v57 = vrot.slane %v239_v44, 5  ;;  %v247_v58 = vrot.slane %v245_v45, 5  ;;  %2336 = vmatpush.bf16.msrb.mxu0 %v5639_v36  ;;  %v5627_v42 = vld [vmem:[%s7816_s1 + $0xd0] sm:$0xff] }
  0x34   : > { %1340 = vmatpush.bf16.msrb.mxu2 %v5606_v23  ;;  %v541_v63 = vrot.slane %v540_v48, 4  ;;  %v251_v0 = vrot.slane %v249_v49, 4  ;;  %v257_v1 = vrot.slane %v255_v52, 5  ;;  %v356_v3 = vshrl.u32 %v156_v46, 16 }
  0x35   : > { %1655 = vmatpush.bf16.msrb.mxu3 %v5630_v29  ;;  %959 = vmatpush.bf16.msrb.mxu1 %v5590_v41  ;;  %v653_v5 = vpack.c.b16 %v631_v55, %v6056_v38  ;;  %v536_v6 = vsel %vm5937_vm2, %v531_v56, %v535_v34  ;;  %v242_v7 = vor.u32 %v241_v57, %v238_v43  ;;  %v359_v9 = vshll.u32 %v156_v46, 16  ;;  %v5588_v34 = vld [vmem:[%s7816_s1 + $0x18] sm:$0xff]  ;;  %v5603_v41 = vld [vmem:[%s7816_s1 + $0x90] sm:$0xff] }
  0x36   : > { %v546_v11 = vsel %vm5937_vm2, %v541_v63, %v545_v40  ;;  %v638_v13 = vunpack.c.l.b16 %v536_v6  ;;  %v252_v14 = vor.u32 %v251_v0, %v247_v58  ;;  %v358_v15 = vrot.slane %v356_v3, 4  ;;  %v172_v40 = vld [vmem:[%s5922_s20 + $0xa8] sm:$0xf]  ;;  %v5587_v56 = vld [vmem:[%s7816_s1 + $0x10] sm:$0xff]  ;;  %v148_v6 = vld [vmem:[%s5922_s20 + $0x18] sm:$0xf] }
  0x37   : > { %v639_v50 = vunpack.c.l.b16 %v546_v11  ;;  %v243_v51 = vrot.slane %v242_v7, 4  ;;  %2337 = vmatpush.bf16.msrb.mxu0 %v5638_v60  ;;  %v361_v59 = vrot.slane %v359_v9, 5  ;;  %v365_v16 = vshll.u32 %v6080_v2, 16  ;;  %v206_v63 = vld [vmem:[%s5922_s20 + $0xb0] sm:$0x1] }
  0x38   : > { %1341 = vmatpush.bf16.msrb.mxu2 %v5605_v53  ;;  %v253_v20 = vrot.slane %v252_v14, 4  ;;  %v369_v21 = vshrl.u32 %v6080_v2, 16  ;;  %v375_v22 = vshll.u32 %v198_v8, 16  ;;  %v452_v23 = vshrl.u32 %v164_v10, 16  ;;  %v5636_v53 = vld [vmem:[%s7816_s1 + $0x118] sm:$0xff] }
  0x39   : > { %1656 = vmatpush.bf16.msrb.mxu3 %v5629_v54  ;;  %960 = vmatpush.bf16.msrb.mxu1 %v5589_v61  ;;  %v657_v25 = vpack.c.b16 %v639_v50, %v638_v13  ;;  %v248_v26 = vsel %vm5937_vm2, %v243_v51, %v247_v58  ;;  %v362_v28 = vor.u32 %v361_v59, %v358_v15  ;;  %v367_v29 = vrot.slane %v365_v16, 5  ;;  %v6138_v59 = vld [vmem:[%s5922_s20 + $0x1c] sm:$0xf] }
  0x3a   : > { %v258_v36 = vsel %vm5937_vm2, %v253_v20, %v257_v1  ;;  %v614_v37 = vunpack.c.l.b16 %v248_v26  ;;  %v371_v38 = vrot.slane %v369_v21, 4  ;;  %v377_v39 = vrot.slane %v375_v22, 5 }
  0x3b   : > { %757 = vmatmul.bf16.gmra.mxu1 %v649_v31  ;;  %777 = vmatmul.bf16.gmra.mxu2 %v653_v5  ;;  %v615_v43 = vunpack.c.l.b16 %v258_v36  ;;  %v363_v44 = vrot.slane %v362_v28, 4  ;;  %v454_v45 = vrot.slane %v452_v23, 4  ;;  %v455_v46 = vshll.u32 %v164_v10, 16  ;;  %v173_v31 = vld [vmem:[%s5922_s20 + $0xac] sm:$0xf] }
  0x3c   : > { %1342 = vmatpush.bf16.msrb.mxu2 %v5604_v17  ;;  %797 = vmatmul.bf16.gmra.mxu3 %v657_v25  ;;  %v372_v47 = vor.u32 %v371_v38, %v367_v29  ;;  %v461_v48 = vshll.u32 %v165_v32, 16  ;;  %v465_v49 = vshrl.u32 %v165_v32, 16  ;;  %v471_v52 = vshll.u32 %v202_v33, 16  ;;  %v5602_v17 = vld [vmem:[%s7816_s1 + $0x88] sm:$0xff]  ;;  %v158_v25 = vld [vmem:[%s5922_s20 + $0x54] sm:$0xf] }
  0x3d   : > { %1657 = vmatpush.bf16.msrb.mxu3 %v5628_v18  ;;  %2338 = vmatpush.bf16.msrb.mxu0 %v5637_v24  ;;  %v645_v54 = vpack.c.b16 %v615_v43, %v614_v37  ;;  %v368_v12 = vsel %vm5937_vm2, %v363_v44, %v367_v29  ;;  %v457_v19 = vrot.slane %v455_v46, 5  ;;  %v548_v55 = vshrl.u32 %v172_v40, 16  ;;  %v6144_v24 = vld [vmem:[%s5922_s20 + $0x20] sm:$0x1]  ;;  %v5626_v38 = vld [vmem:[%s7816_s1 + $0xc8] sm:$0xff] }
  0x3e   : > { %961 = vmatpush.bf16.msrb.mxu1 %v5588_v34  ;;  %v373_v57 = vrot.slane %v372_v47, 4  ;;  %v6128_v58 = vunpack.c.l.b16 %v368_v12  ;;  %v463_v60 = vrot.slane %v461_v48, 5  ;;  %v467_v61 = vrot.slane %v465_v49, 4 }
  0x3f   : > { %737 = vmatmul.bf16.gmra.mxu0 %v645_v54  ;;  %v458_v0 = vor.u32 %v457_v19, %v454_v45  ;;  %v473_v1 = vrot.slane %v471_v52, 5  ;;  %v550_v3 = vrot.slane %v548_v55, 4  ;;  %v551_v5 = vshll.u32 %v172_v40, 16  ;;  %v5586_v40 = vld [vmem:[%s7816_s1 + $0x8] sm:$0xff]  ;;  %v5601_v45 = vld [vmem:[%s7816_s1 + $0x80] sm:$0xff] }
  0x40   : > { %1343 = vmatpush.bf16.msrb.mxu2 %v5603_v41  ;;  %v378_v7 = vsel %vm5937_vm2, %v373_v57, %v377_v39  ;;  %v468_v8 = vor.u32 %v467_v61, %v463_v60  ;;  %v557_v9 = vshll.u32 %v173_v31, 16  ;;  %v561_v10 = vshrl.u32 %v173_v31, 16  ;;  %v5635_v39 = vld [vmem:[%s7816_s1 + $0x110] sm:$0xff]  ;;  %v6167_v52 = vld [vmem:[%s5922_s20 + $0x58] sm:$0xf]  ;;  %v5634_v57 = vld [vmem:[%s7816_s1 + $0x108] sm:$0xff] }
  0x41   : > { %1658 = vmatpush.bf16.msrb.mxu3 %v5627_v42  ;;  %2339 = vmatpush.bf16.msrb.mxu0 %v5636_v53  ;;  %v625_v11 = vunpack.c.l.b16 %v378_v7  ;;  %v459_v13 = vrot.slane %v458_v0, 4  ;;  %v553_v14 = vrot.slane %v551_v5, 5  ;;  %v567_v15 = vshll.u32 %v206_v63, 16  ;;  %v6170_v53 = vld [vmem:[%s5922_s20 + $0x5c] sm:$0x1]  ;;  %v5585_v0 = vld [vmem:[%s7816_s1] sm:$0xff] }
  0x42   : > { %962 = vmatpush.bf16.msrb.mxu1 %v5587_v56  ;;  %v469_v18 = vrot.slane %v468_v8, 4  ;;  %v559_v50 = vrot.slane %v557_v9, 5  ;;  %v563_v51 = vrot.slane %v561_v10, 4  ;;  %v260_v16 = vshrl.u32 %v148_v6, 16  ;;  %v166_v55 = vld [vmem:[%s5922_s20 + $0x84] sm:$0xf] }
  0x43   : > { %v650_v20 = vpack.c.b16 %v625_v11, %v6128_v58  ;;  %v464_v21 = vsel %vm5937_vm2, %v459_v13, %v463_v60  ;;  %v554_v22 = vor.u32 %v553_v14, %v550_v3  ;;  %v569_v23 = vrot.slane %v567_v15, 5  ;;  %v5625_v56 = vld [vmem:[%s7816_s1 + $0xc0] sm:$0xff]  ;;  %v167_v10 = vld [vmem:[%s5922_s20 + $0x88] sm:$0xf] }
  0x44   : > { %1344 = vmatpush.bf16.msrb.mxu2 %v5602_v17  ;;  %v474_v26 = vsel %vm5937_vm2, %v469_v18, %v473_v1  ;;  %v632_v28 = vunpack.c.l.b16 %v464_v21  ;;  %v564_v29 = vor.u32 %v563_v51, %v559_v50  ;;  %v262_v32 = vrot.slane %v260_v16, 4  ;;  %v5633_v18 = vld [vmem:[%s7816_s1 + $0x100] sm:$0xff]  ;;  %v203_v16 = vld [vmem:[%s5922_s20 + $0x8c] sm:$0x1] }
  0x45   : > { %v633_v33 = vunpack.c.l.b16 %v474_v26  ;;  %v555_v34 = vrot.slane %v554_v22, 4  ;;  %v263_v36 = vshll.u32 %v148_v6, 16  ;;  %v269_v37 = vshll.u32 %v6138_v59, 16  ;;  %1659 = vmatpush.bf16.msrb.mxu3 %v5626_v38  ;;  %2340 = vmatpush.bf16.msrb.mxu0 %v5635_v39  ;;  %v174_v22 = vld [vmem:[%s5922_s20 + $0xb4] sm:$0xf] }
  0x46   : > { %v565_v41 = vrot.slane %v564_v29, 4  ;;  %v273_v42 = vshrl.u32 %v6138_v59, 16  ;;  %v279_v43 = vshll.u32 %v6144_v24, 16  ;;  %v380_v44 = vshrl.u32 %v158_v25, 16  ;;  %963 = vmatpush.bf16.msrb.mxu1 %v5586_v40  ;;  %v175_v39 = vld [vmem:[%s5922_s20 + $0xb8] sm:$0xf] }
  0x47   : > { %v654_v46 = vpack.c.b16 %v633_v33, %v632_v28  ;;  %v560_v47 = vsel %vm5937_vm2, %v555_v34, %v559_v50  ;;  %v265_v48 = vrot.slane %v263_v36, 5  ;;  %v271_v49 = vrot.slane %v269_v37, 5 }
  0x48   : > { %v570_v54 = vsel %vm5937_vm2, %v565_v41, %v569_v23  ;;  %v640_v12 = vunpack.c.l.b16 %v560_v47  ;;  %v275_v19 = vrot.slane %v273_v42, 4  ;;  %v281_v31 = vrot.slane %v279_v43, 5  ;;  %1345 = vmatpush.bf16.msrb.mxu2 %v5601_v45  ;;  %v207_v45 = vld [vmem:[%s5922_s20 + $0xbc] sm:$0x1] }
  0x49   : > { %v641_v58 = vunpack.c.l.b16 %v570_v54  ;;  %v266_v60 = vor.u32 %v265_v48, %v262_v32  ;;  %v382_v61 = vrot.slane %v380_v44, 4  ;;  %v383_v63 = vshll.u32 %v158_v25, 16  ;;  %1660 = vmatpush.bf16.msrb.mxu3 %v5625_v56  ;;  %2341 = vmatpush.bf16.msrb.mxu0 %v5634_v57  ;;  %v5672_v47 = vld [vmem:[%s7816_s1 + $0x1b8] sm:$0xff] }
  0x4a   : > { %v276_v1 = vor.u32 %v275_v19, %v271_v49  ;;  %v389_v3 = vshll.u32 %v6167_v52, 16  ;;  %v393_v5 = vshrl.u32 %v6167_v52, 16  ;;  %v399_v6 = vshll.u32 %v6170_v53, 16  ;;  %964 = vmatpush.bf16.msrb.mxu1 %v5585_v0 }
  0x4b   : > { %762 = vmatmul.bf16.gmra.mxu1 %v650_v20  ;;  %782 = vmatmul.bf16.gmra.mxu2 %v654_v46  ;;  %v658_v7 = vpack.c.b16 %v641_v58, %v640_v12  ;;  %v267_v8 = vrot.slane %v266_v60, 4  ;;  %v385_v9 = vrot.slane %v383_v63, 5  ;;  %v476_v11 = vshrl.u32 %v166_v55, 16  ;;  %v150_v46 = vld [vmem:[%s5922_s20 + $0x24] sm:$0xf] }
  0x4c   : > { %v277_v13 = vrot.slane %v276_v1, 4  ;;  %v391_v14 = vrot.slane %v389_v3, 5  ;;  %v395_v15 = vrot.slane %v393_v5, 4  ;;  %v401_v17 = vrot.slane %v399_v6, 5  ;;  %3076 = vmatpush.bf16.msra.mxu2 %v5672_v47  ;;  %v5680_v6 = vld [vmem:[%s7816_s1 + $0x1f8] sm:$0xff] }
  0x4d   : > { %802 = vmatmul.bf16.gmra.mxu3 %v658_v7  ;;  %v272_v50 = vsel %vm5937_vm2, %v267_v8, %v271_v49  ;;  %v386_v51 = vor.u32 %v385_v9, %v382_v61  ;;  %v478_v20 = vrot.slane %v476_v11, 4  ;;  %v479_v21 = vshll.u32 %v166_v55, 16  ;;  %2342 = vmatpush.bf16.msrb.mxu0 %v5633_v18  ;;  %v6208_v61 = vld [vmem:[%s5922_s20 + $0x28] sm:$0xf]  ;;  %v5648_v7 = vld [vmem:[%s7816_s1 + $0x178] sm:$0xff] }
  0x4e   : > { %v282_v23 = vsel %vm5937_vm2, %v277_v13, %v281_v31  ;;  %v616_v25 = vunpack.c.l.b16 %v272_v50  ;;  %v396_v26 = vor.u32 %v395_v15, %v391_v14  ;;  %v485_v28 = vshll.u32 %v167_v10, 16  ;;  %v5688_v8 = vld [vmem:[%s7816_s1 + $0x238] sm:$0xff]  ;;  %3758 = vmatpush.bf16.msra.mxu3 %v5680_v6  ;;  %2761 = vmatpush.bf16.msra.mxu1 %v5648_v7 }
  0x4f   : > { %v617_v29 = vunpack.c.l.b16 %v282_v23  ;;  %v387_v32 = vrot.slane %v386_v51, 4  ;;  %v481_v33 = vrot.slane %v479_v21, 5  ;;  %v489_v34 = vshrl.u32 %v167_v10, 16 }
  0x50   : > { %v397_v36 = vrot.slane %v396_v26, 4  ;;  %v487_v37 = vrot.slane %v485_v28, 5  ;;  %v495_v38 = vshll.u32 %v203_v16, 16  ;;  %v572_v40 = vshrl.u32 %v174_v22, 16  ;;  %v1046_v26 = vld [vmem:[%s5922_s20] sm:$0xe] }
  0x51   : > { %v646_v41 = vpack.c.b16 %v617_v29, %v616_v25  ;;  %v392_v42 = vsel %vm5937_vm2, %v387_v32, %v391_v14  ;;  %v482_v43 = vor.u32 %v481_v33, %v478_v20  ;;  %v491_v44 = vrot.slane %v489_v34, 4  ;;  %v6222_v14 = vld [vmem:[%s5922_s20 + $0x2c] sm:$0x1]  ;;  %4184 = vmatpush.bf16.msra.mxu0 %v5688_v8 }
  0x52   : > { %v402_v48 = vsel %vm5937_vm2, %v397_v36, %v401_v17  ;;  %v626_v49 = vunpack.c.l.b16 %v392_v42  ;;  %v497_v54 = vrot.slane %v495_v38, 5  ;;  %v574_v12 = vrot.slane %v572_v40, 4  ;;  %v5070_v38 = vld [vmem:[%s5922_s20 + $0xc] sm:$0xf] }
  0x53   : > { %742 = vmatmul.bf16.gmra.mxu0 %v646_v41  ;;  %v627_v19 = vunpack.c.l.b16 %v402_v48  ;;  %v483_v31 = vrot.slane %v482_v43, 4  ;;  %v492_v55 = vor.u32 %v491_v44, %v487_v37  ;;  %v575_v56 = vshll.u32 %v174_v22, 16 }
  0x54   : > { %v581_v57 = vshll.u32 %v175_v39, 16  ;;  %v585_v58 = vshrl.u32 %v175_v39, 16  ;;  %v591_v60 = vshll.u32 %v207_v45, 16  ;;  %v284_v63 = vshrl.u32 %v150_v46, 16  ;;  %v5071_v39 = vld [vmem:[%s5922_s20 + $0x10] sm:$0xf] }
  0x55   : > { %v651_v0 = vpack.c.b16 %v627_v19, %v626_v49  ;;  %v488_v1 = vsel %vm5937_vm2, %v483_v31, %v487_v37  ;;  %v493_v3 = vrot.slane %v492_v55, 4  ;;  %v577_v5 = vrot.slane %v575_v56, 5 }
  0x56   : > { %v634_v9 = vunpack.c.l.b16 %v488_v1  ;;  %v583_v10 = vrot.slane %v581_v57, 5  ;;  %v587_v11 = vrot.slane %v585_v58, 4  ;;  %v593_v13 = vrot.slane %v591_v60, 5  ;;  %v5072_v58 = vld [vmem:[%s5922_s20 + $0x14] sm:$0x1] }
  0x57   : > { %v498_v15 = vsel %vm5937_vm2, %v493_v3, %v497_v54  ;;  %v578_v17 = vor.u32 %v577_v5, %v574_v12  ;;  %v286_v18 = vrot.slane %v284_v63, 4  ;;  %v287_v50 = vshll.u32 %v150_v46, 16 }
  0x58   : > { %v635_v51 = vunpack.c.l.b16 %v498_v15  ;;  %v588_v16 = vor.u32 %v587_v11, %v583_v10  ;;  %v293_v20 = vshll.u32 %v6208_v61, 16  ;;  %v297_v21 = vshrl.u32 %v6208_v61, 16 }
  0x59   : > { %v579_v22 = vrot.slane %v578_v17, 4  ;;  %v289_v23 = vrot.slane %v287_v50, 5  ;;  %v303_v25 = vshll.u32 %v6222_v14, 16  ;;  %v4862_v44 = vrot.slane %v1046_v26, 9  ;;  %v5073_v50 = vld [vmem:[%s5922_s20 + $0x18] sm:$0xf] }
  0x5a   : > { %v655_v28 = vpack.c.b16 %v635_v51, %v634_v9  ;;  %v589_v29 = vrot.slane %v588_v16, 4  ;;  %v295_v32 = vrot.slane %v293_v20, 5  ;;  %v299_v33 = vrot.slane %v297_v21, 4  ;;  %v5569_v51 = vld [vmem:[%s5922_s20] sm:$0xff]  ;;  %v5074_v16 = vld [vmem:[%s5922_s20 + $0x1c] sm:$0xf] }
  0x5b   : > { %767 = vmatmul.bf16.gmra.mxu1 %v651_v0  ;;  %v584_v34 = vsel %vm5937_vm2, %v579_v22, %v583_v10  ;;  %v290_v36 = vor.u32 %v289_v23, %v286_v18  ;;  %v305_v37 = vrot.slane %v303_v25, 5  ;;  %v1099_v47 = vrot.slane %v5962_v62, 5  ;;  %v1047_v21 = vld [vmem:[%s5922_s20 + $0xc] sm:$0xe] }
  0x5c   : > { %787 = vmatmul.bf16.gmra.mxu2 %v655_v28  ;;  %v594_v40 = vsel %vm5937_vm2, %v589_v29, %v593_v13  ;;  %v642_v41 = vunpack.c.l.b16 %v584_v34  ;;  %v300_v42 = vor.u32 %v299_v33, %v295_v32  ;;  %v1102_v48 = vrot.slane %v5969_v4, 5  ;;  %v5609_v34 = vld [vmem:[%s5922_s20 + $0xc] sm:$0xff] }
  0x5d   : > { %v643_v45 = vunpack.c.l.b16 %v594_v40  ;;  %v291_v46 = vrot.slane %v290_v36, 4  ;;  %v1823_v54 = vshrl.u32 %v5070_v38, 16  ;;  %v1826_v12 = vshll.u32 %v5070_v38, 16 }
  0x5e   : > { %v301_v49 = vrot.slane %v300_v42, 4  ;;  %v1832_v19 = vshll.u32 %v5071_v39, 16  ;;  %v1100_v56 = vsel %vm6237_vm5, %v4862_v44, %v1099_v47  ;;  %v1101_v57 = vrot.slane %v1099_v47, 4  ;;  %v5075_v44 = vld [vmem:[%s5922_s20 + $0x20] sm:$0x1] }
  0x5f   : > { %v659_v31 = vpack.c.b16 %v643_v45, %v642_v41  ;;  %v296_v55 = vsel %vm5937_vm2, %v291_v46, %v295_v32  ;;  %v1226_v62 = vunpack.c.l.b16 %v1100_v56  ;;  %v1825_v0 = vrot.slane %v1823_v54, 4  ;;  %v5647_v56 = vld [vmem:[%s7816_s1 + $0x170] sm:$0xff] }
  0x60   : > { %v306_v60 = vsel %vm5937_vm2, %v301_v49, %v305_v37  ;;  %v618_v63 = vunpack.c.l.b16 %v296_v55  ;;  %v1103_v1 = vsel %vm6237_vm5, %v1101_v57, %v1102_v48  ;;  %v1828_v3 = vrot.slane %v1826_v12, 5  ;;  %v5671_v48 = vld [vmem:[%s7816_s1 + $0x1b0] sm:$0xff]  ;;  %2762 = vmatpush.bf16.msra.mxu1 %v5647_v56 }
  0x61   : > { %807 = vmatmul.bf16.gmra.mxu3 %v659_v31  ;;  %v619_v4 = vunpack.c.l.b16 %v306_v60  ;;  %v1227_v5 = vunpack.c.l.b16 %v1103_v1  ;;  %v1834_v6 = vrot.slane %v1832_v19, 5  ;;  %v1836_v7 = vshrl.u32 %v5071_v39, 16  ;;  %3077 = vmatpush.bf16.msra.mxu2 %v5671_v48  ;;  %v5076_v31 = vld [vmem:[%s5922_s20 + $0x24] sm:$0xf]  ;;  %v5679_v55 = vld [vmem:[%s7816_s1 + $0x1f0] sm:$0xff] }
  0x62   : > { %v1842_v8 = vshll.u32 %v5072_v58, 16  ;;  %v1829_v10 = vor.u32 %v1828_v3, %v1825_v0  ;;  %v1106_v22 = vrot.slane %v6041_v27, 5  ;;  %v1847_v23 = vshrl.u32 %v5073_v50, 16  ;;  %v5687_v57 = vld [vmem:[%s7816_s1 + $0x230] sm:$0xff]  ;;  %3759 = vmatpush.bf16.msra.mxu3 %v5679_v55  ;;  %v1049_v48 = vld [vmem:[%s5922_s20 + $0x24] sm:$0xe] }
  0x63   : > { %v647_v9 = vpack.c.b16 %v619_v4, %v618_v63  ;;  %v1258_v11 = vpack.c.b16 %v1227_v5, %v1226_v62  ;;  %v1838_v13 = vrot.slane %v1836_v7, 4  ;;  %v1850_v25 = vshll.u32 %v5073_v50, 16  ;;  %v5077_v62 = vld [vmem:[%s5922_s20 + $0x28] sm:$0xf]  ;;  %v5570_v0 = vld [vmem:[%s5922_s20 + $0xc] sm:$0xff]  ;;  %4185 = vmatpush.bf16.msra.mxu0 %v5687_v57 }
  0x64   : > { %v1830_v15 = vrot.slane %v1829_v10, 4  ;;  %v1844_v18 = vrot.slane %v1842_v8, 5  ;;  %v1856_v29 = vshll.u32 %v5074_v16, 16  ;;  %v1860_v32 = vshrl.u32 %v5074_v16, 16 }
  0x65   : > { %747 = vmatmul.bf16.gmra.mxu0 %v647_v9  ;;  %v1839_v17 = vor.u32 %v1838_v13, %v1834_v6  ;;  %v4863_v33 = vrot.slane %v1047_v21, 9  ;;  %v1108_v38 = vrot.slane %v1106_v22, 4  ;;  %v1109_v27 = vrot.slane %v6051_v35, 5  ;;  %v5078_v21 = vld [vmem:[%s5922_s20 + $0x2c] sm:$0x1] }
  0x66   : > { %v1835_v26 = vsel %vm5937_vm2, %v1830_v15, %v1834_v6  ;;  %v1849_v39 = vrot.slane %v1847_v23, 4  ;;  %v1852_v40 = vrot.slane %v1850_v25, 5  ;;  %v1858_v41 = vrot.slane %v1856_v29, 5  ;;  %v1048_v6 = vld [vmem:[%s5922_s20 + $0x18] sm:$0xe] }
  0x67   : > { %v1840_v20 = vrot.slane %v1839_v17, 4  ;;  %v2223_v36 = vunpack.c.l.b16 %v1835_v26  ;;  %v1862_v42 = vrot.slane %v1860_v32, 4  ;;  %v1107_v46 = vsel %vm6237_vm5, %v4863_v33, %v1106_v22 }
  0x68   : > { %v1110_v47 = vsel %vm6237_vm5, %v1108_v38, %v1109_v27  ;;  %v1853_v35 = vor.u32 %v1852_v40, %v1849_v39  ;;  %v1866_v54 = vshll.u32 %v5075_v44, 16  ;;  %v1228_v12 = vunpack.c.l.b16 %v1107_v46  ;;  %v5080_v38 = vld [vmem:[%s5922_s20 + $0x34] sm:$0xf]  ;;  %v5571_v27 = vld [vmem:[%s5922_s20 + $0x18] sm:$0xff] }
  0x69   : > { %v1845_v28 = vsel %vm5937_vm2, %v1840_v20, %v1844_v18  ;;  %v1863_v49 = vor.u32 %v1862_v42, %v1858_v41  ;;  %v1229_v19 = vunpack.c.l.b16 %v1110_v47  ;;  %v1113_v1 = vrot.slane %v6138_v59, 5  ;;  %v5610_v18 = vld [vmem:[%s5922_s20 + $0x18] sm:$0xff] }
  0x6a   : > { %v2224_v37 = vunpack.c.l.b16 %v1845_v28  ;;  %v1854_v58 = vrot.slane %v1853_v35, 4  ;;  %v1868_v63 = vrot.slane %v1866_v54, 5  ;;  %v1871_v3 = vshrl.u32 %v5076_v31, 16 }
  0x6b   : > { %965 = vmatmul.bf16.vlgmr.msrb.gmra.mxu1 %v5569_v51  ;;  %v1864_v60 = vrot.slane %v1863_v49, 4  ;;  %v1259_v4 = vpack.c.b16 %v1229_v19, %v1228_v12  ;;  %v1874_v5 = vshll.u32 %v5076_v31, 16  ;;  %v1880_v7 = vshll.u32 %v5077_v62, 16  ;;  %v5611_v31 = vld [vmem:[%s5922_s20 + $0x24] sm:$0xff] }
  0x6c   : > { %1346 = vmatmul.bf16.vlgmr.msrb.gmra.mxu2 %v1258_v11  ;;  %v2255_v45 = vpack.c.b16 %v2224_v37, %v2223_v36  ;;  %v1884_v8 = vshrl.u32 %v5077_v62, 16  ;;  %v1859_v9 = vsel %vm5937_vm2, %v1854_v58, %v1858_v41  ;;  %v1116_v11 = vrot.slane %v6144_v24, 5  ;;  %v5079_v37 = vld [vmem:[%s5922_s20 + $0x30] sm:$0xf] }
  0x6d   : > { %v1869_v10 = vsel %vm5937_vm2, %v1864_v60, %v1868_v63  ;;  %v4864_v13 = vrot.slane %v1048_v6, 9  ;;  %v1115_v59 = vrot.slane %v1113_v1, 4  ;;  %v1873_v15 = vrot.slane %v1871_v3, 4  ;;  %v5082_v6 = vld [vmem:[%s5922_s20 + $0x3c] sm:$0xf] }
  0x6e   : > { %v1876_v17 = vrot.slane %v1874_v5, 5  ;;  %v2225_v50 = vunpack.c.l.b16 %v1859_v9  ;;  %v2226_v51 = vunpack.c.l.b16 %v1869_v10  ;;  %v1882_v16 = vrot.slane %v1880_v7, 5  ;;  %v5083_v7 = vld [vmem:[%s5922_s20 + $0x40] sm:$0xf] }
  0x6f   : > { %v1886_v20 = vrot.slane %v1884_v8, 4  ;;  %v1114_v22 = vsel %vm6237_vm5, %v4864_v13, %v1113_v1  ;;  %v1117_v25 = vsel %vm6237_vm5, %v1115_v59, %v1116_v11  ;;  %v1890_v28 = vshll.u32 %v5078_v21, 16  ;;  %v5670_v1 = vld [vmem:[%s7816_s1 + $0x1a8] sm:$0xff]  ;;  %v5822_v21 = vld [vmem:[%s5922_s20 + $0x34] sm:$0xf] }
  0x70   : > { %v1877_v23 = vor.u32 %v1876_v17, %v1873_v15  ;;  %v2256_v24 = vpack.c.b16 %v2226_v51, %v2225_v50  ;;  %v1230_v29 = vunpack.c.l.b16 %v1114_v22  ;;  %v1231_v32 = vunpack.c.l.b16 %v1117_v25  ;;  %3078 = vmatpush.bf16.msra.mxu2 %v5670_v1  ;;  %v5678_v11 = vld [vmem:[%s7816_s1 + $0x1e8] sm:$0xff]  ;;  %v1051_v1 = vld [vmem:[%s5922_s20 + $0x3c] sm:$0xe] }
  0x71   : > { %1661 = vmatmul.bf16.vlgmr.msrb.gmra.mxu3 %v5609_v34  ;;  %v1887_v26 = vor.u32 %v1886_v20, %v1882_v16  ;;  %v1892_v36 = vrot.slane %v1890_v28, 5  ;;  %v1895_v41 = vshrl.u32 %v5079_v37, 16  ;;  %v1898_v42 = vshll.u32 %v5079_v37, 16  ;;  %v5646_v13 = vld [vmem:[%s7816_s1 + $0x168] sm:$0xff]  ;;  %v5823_v37 = vld [vmem:[%s5922_s20 + $0x38] sm:$0x1] }
  0x72   : > { %v1878_v33 = vrot.slane %v1877_v23, 4  ;;  %v1260_v39 = vpack.c.b16 %v1231_v32, %v1230_v29  ;;  %v1904_v46 = vshll.u32 %v5080_v38, 16  ;;  %v1908_v47 = vshrl.u32 %v5080_v38, 16  ;;  %v5686_v59 = vld [vmem:[%s7816_s1 + $0x228] sm:$0xff]  ;;  %3760 = vmatpush.bf16.msra.mxu3 %v5678_v11  ;;  %2763 = vmatpush.bf16.msra.mxu1 %v5646_v13  ;;  %v5825_v13 = vld [vmem:[%s5922_s20 + $0x44] sm:$0x1] }
  0x73   : > { %v1888_v34 = vrot.slane %v1887_v26, 4  ;;  %v1123_v54 = vrot.slane %v6222_v14, 5  ;;  %v1897_v12 = vrot.slane %v1895_v41, 4  ;;  %v1900_v19 = vrot.slane %v1898_v42, 5  ;;  %v5572_v15 = vld [vmem:[%s5922_s20 + $0x24] sm:$0xff]  ;;  %4186 = vmatpush.bf16.msra.mxu0 %v5686_v59 }
  0x74   : > { %v1883_v40 = vsel %vm5937_vm2, %v1878_v33, %v1882_v16  ;;  %v4865_v55 = vrot.slane %v1049_v48, 9  ;;  %v1906_v57 = vrot.slane %v1904_v46, 5  ;;  %v1910_v58 = vrot.slane %v1908_v47, 4  ;;  %v5612_v33 = vld [vmem:[%s5922_s20 + $0x30] sm:$0xff] }
  0x75   : > { %2343 = vmatmul.bf16.vlgmr.msrb.gmra.mxu0 %v2255_v45  ;;  %v1893_v44 = vsel %vm5937_vm2, %v1888_v34, %v1892_v36  ;;  %v1120_v45 = vrot.slane %v6208_v61, 5  ;;  %v2227_v35 = vunpack.c.l.b16 %v1883_v40  ;;  %v5081_v61 = vld [vmem:[%s5922_s20 + $0x38] sm:$0x1]  ;;  %v1901_v63 = vor.u32 %v1900_v19, %v1897_v12  ;;  %v5085_v12 = vld [vmem:[%s5922_s20 + $0x48] sm:$0xf] }
  0x76   : > { %v2228_v49 = vunpack.c.l.b16 %v1893_v44  ;;  %v1911_v14 = vor.u32 %v1910_v58, %v1906_v57  ;;  %v1919_v17 = vshrl.u32 %v5082_v6, 16  ;;  %v1928_v51 = vshll.u32 %v5083_v7, 16  ;;  %v5086_v19 = vld [vmem:[%s5922_s20 + $0x4c] sm:$0xf] }
  0x77   : > { %v1122_v56 = vrot.slane %v1120_v45, 4  ;;  %v1121_v62 = vsel %vm6237_vm5, %v4865_v55, %v1120_v45  ;;  %v1902_v8 = vrot.slane %v1901_v63, 4  ;;  %v1127_v22 = vrot.slane %v5822_v21, 5 }
  0x78   : > { %v2257_v60 = vpack.c.b16 %v2228_v49, %v2227_v35  ;;  %v1232_v3 = vunpack.c.l.b16 %v1121_v62  ;;  %v1912_v9 = vrot.slane %v1911_v14, 4  ;;  %v1932_v23 = vshrl.u32 %v5083_v7, 16  ;;  %v5824_v62 = vld [vmem:[%s5922_s20 + $0x40] sm:$0xf] }
  0x79   : > { %v1907_v16 = vsel %vm5937_vm2, %v1902_v8, %v1906_v57  ;;  %v1921_v25 = vrot.slane %v1919_v17, 4  ;;  %v1930_v32 = vrot.slane %v1928_v51, 5  ;;  %v1129_v36 = vrot.slane %v1127_v22, 4 }
  0x7a   : > { %v2229_v28 = vunpack.c.l.b16 %v1907_v16  ;;  %v1130_v38 = vrot.slane %v5823_v37, 5  ;;  %v1943_v58 = vshrl.u32 %v5085_v12, 16  ;;  %v1956_v14 = vshrl.u32 %v5086_v19, 16  ;;  %v5089_v37 = vld [vmem:[%s5922_s20 + $0x58] sm:$0xf] }
  0x7b   : > { %970 = vmatmul.bf16.gmra.mxu1 %v5570_v0  ;;  %v1124_v0 = vsel %vm6237_vm5, %v1122_v56, %v1123_v54  ;;  %v1137_v59 = vrot.slane %v5825_v13, 5 }
  0x7c   : > { %1351 = vmatmul.bf16.gmra.mxu2 %v1259_v4  ;;  %v1914_v4 = vshll.u32 %v5081_v61, 16  ;;  %v1233_v5 = vunpack.c.l.b16 %v1124_v0  ;;  %v1131_v44 = vsel %vm6237_vm5, %v1129_v36, %v1130_v38  ;;  %v1946_v61 = vshll.u32 %v5085_v12, 16  ;;  %v5677_v38 = vld [vmem:[%s7816_s1 + $0x1e0] sm:$0xff] }
  0x7d   : > { %v1235_v35 = vunpack.c.l.b16 %v1131_v44  ;;  %v1134_v0 = vrot.slane %v5824_v62, 5  ;;  %3761 = vmatpush.bf16.msra.mxu3 %v5677_v38  ;;  %v1980_v12 = vshrl.u32 %v5089_v37, 16 }
  0x7e   : > { %v1916_v10 = vrot.slane %v1914_v4, 5  ;;  %v1261_v50 = vpack.c.b16 %v1233_v5, %v1232_v3  ;;  %v1948_v7 = vrot.slane %v1946_v61, 5 }
  0x7f   : > { %v1136_v11 = vrot.slane %v1134_v0, 4 }
  0x80   : > { %v1917_v20 = vsel %vm5937_vm2, %v1912_v9, %v1916_v10  ;;  %v5613_v9 = vld [vmem:[%s5922_s20 + $0x3c] sm:$0xff]  ;;  %v4867_v10 = vrot.slane %v1051_v1, 9 }
  0x81   : > { %1666 = vmatmul.bf16.gmra.mxu3 %v5610_v18  ;;  %v1922_v18 = vshll.u32 %v5082_v6, 16  ;;  %v2230_v29 = vunpack.c.l.b16 %v1917_v20  ;;  %v1945_v6 = vrot.slane %v1943_v58, 4 }
  0x82   : > { %v1135_v21 = vsel %vm6237_vm5, %v4867_v10, %v1134_v0 }
  0x83   : > { %v1924_v26 = vrot.slane %v1922_v18, 5  ;;  %v2258_v41 = vpack.c.b16 %v2230_v29, %v2229_v28  ;;  %v5087_v18 = vld [vmem:[%s5922_s20 + $0x50] sm:$0x1]  ;;  %v1949_v20 = vor.u32 %v1948_v7, %v1945_v6  ;;  %v1236_v28 = vunpack.c.l.b16 %v1135_v21 }
  0x85   : > { %2348 = vmatmul.bf16.gmra.mxu0 %v2256_v24  ;;  %v1050_v24 = vld [vmem:[%s5922_s20 + $0x30] sm:$0xe]  ;;  %v1925_v40 = vor.u32 %v1924_v26, %v1921_v25  ;;  %v5669_v25 = vld [vmem:[%s7816_s1 + $0x1a0] sm:$0xff] }
  0x86   : > { %v4866_v34 = vrot.slane %v1050_v24, 9  ;;  %v1962_v24 = vshll.u32 %v5087_v18, 16  ;;  %3079 = vmatpush.bf16.msra.mxu2 %v5669_v25 }
  0x87   : > { %v1926_v47 = vrot.slane %v1925_v40, 4 }
  0x88   : > { %v1128_v42 = vsel %vm6237_vm5, %v4866_v34, %v1127_v22  ;;  %v1138_v22 = vsel %vm6237_vm5, %v1136_v11, %v1137_v59  ;;  %v1964_v36 = vrot.slane %v1962_v24, 5 }
  0x89   : > { %v1234_v48 = vunpack.c.l.b16 %v1128_v42  ;;  %v1931_v55 = vsel %vm5937_vm2, %v1926_v47, %v1930_v32  ;;  %v1237_v29 = vunpack.c.l.b16 %v1138_v22  ;;  %v1976_v47 = vshll.u32 %v5089_v37, 16  ;;  %v5091_v22 = vld [vmem:[%s5922_s20 + $0x60] sm:$0xf] }
  0x8a   : > { %v2231_v3 = vunpack.c.l.b16 %v1931_v55  ;;  %v1994_v37 = vshll.u32 %v5091_v22, 16 }
  0x8b   : > { %975 = vmatmul.bf16.gmra.mxu1 %v5571_v27  ;;  %v1934_v27 = vrot.slane %v1932_v23, 4  ;;  %v1262_v57 = vpack.c.b16 %v1235_v35, %v1234_v48  ;;  %v5685_v48 = vld [vmem:[%s7816_s1 + $0x220] sm:$0xff] }
  0x8c   : > { %1356 = vmatmul.bf16.gmra.mxu2 %v1260_v39  ;;  %v5084_v39 = vld [vmem:[%s5922_s20 + $0x44] sm:$0x1]  ;;  %4187 = vmatpush.bf16.msra.mxu0 %v5685_v48 }
  0x8d   : > { %v1935_v45 = vor.u32 %v1934_v27, %v1930_v32  ;;  %v1938_v46 = vshll.u32 %v5084_v39, 16  ;;  %v1950_v32 = vrot.slane %v1949_v20, 4  ;;  %v5645_v27 = vld [vmem:[%s7816_s1 + $0x160] sm:$0xff] }
  0x8e   : > { %2764 = vmatpush.bf16.msra.mxu1 %v5645_v27 }
  0x8f   : > { %v1936_v49 = vrot.slane %v1935_v45, 4  ;;  %v1940_v54 = vrot.slane %v1938_v46, 5  ;;  %v1263_v46 = vpack.c.b16 %v1237_v29, %v1236_v28  ;;  %v5575_v29 = vld [vmem:[%s5922_s20 + $0x48] sm:$0xff] }
  0x91   : > { %1671 = vmatmul.bf16.gmra.mxu3 %v5611_v31  ;;  %v5573_v31 = vld [vmem:[%s5922_s20 + $0x30] sm:$0xff]  ;;  %v1941_v63 = vsel %vm5937_vm2, %v1936_v49, %v1940_v54  ;;  %v1141_v54 = vrot.slane %v6080_v2, 5 }
  0x92   : > { %v2232_v5 = vunpack.c.l.b16 %v1941_v63  ;;  %v5614_v63 = vld [vmem:[%s5922_s20 + $0x48] sm:$0xff] }
  0x93   : > { %v1143_v0 = vrot.slane %v1141_v54, 4 }
  0x94   : > { %v2259_v51 = vpack.c.b16 %v2232_v5, %v2231_v3  ;;  %v1982_v3 = vrot.slane %v1980_v12, 4  ;;  %v5090_v5 = vld [vmem:[%s5922_s20 + $0x5c] sm:$0x1] }
  0x95   : > { %2353 = vmatmul.bf16.gmra.mxu0 %v2257_v60  ;;  %v1952_v60 = vshll.u32 %v5086_v19, 16  ;;  %v1052_v19 = vld [vmem:[%s5922_s20 + $0x48] sm:$0xe]  ;;  %v1986_v59 = vshll.u32 %v5090_v5, 16  ;;  %v5668_v5 = vld [vmem:[%s7816_s1 + $0x198] sm:$0xff] }
  0x96   : > { %v4868_v62 = vrot.slane %v1052_v19, 9  ;;  %3080 = vmatpush.bf16.msra.mxu2 %v5668_v5 }
  0x97   : > { %v1954_v8 = vrot.slane %v1952_v60, 5  ;;  %v1978_v60 = vrot.slane %v1976_v47, 5  ;;  %v1988_v21 = vrot.slane %v1986_v59, 5  ;;  %v5094_v59 = vld [vmem:[%s5922_s20 + $0x6c] sm:$0xf] }
  0x98   : > { %v1142_v10 = vsel %vm6237_vm5, %v4868_v62, %v1141_v54  ;;  %v5615_v54 = vld [vmem:[%s5922_s20 + $0x54] sm:$0xff] }
  0x99   : > { %v1955_v35 = vsel %vm5937_vm2, %v1950_v32, %v1954_v8  ;;  %v1983_v13 = vor.u32 %v1982_v3, %v1978_v60  ;;  %v1238_v18 = vunpack.c.l.b16 %v1142_v10 }
  0x9a   : > { %v2233_v58 = vunpack.c.l.b16 %v1955_v35  ;;  %v1996_v35 = vrot.slane %v1994_v37, 5  ;;  %v5827_v37 = vld [vmem:[%s5922_s20 + $0x64] sm:$0xf] }
  0x9b   : > { %980 = vmatmul.bf16.gmra.mxu1 %v5572_v15  ;;  %v1958_v15 = vrot.slane %v1956_v14, 4  ;;  %v5826_v14 = vld [vmem:[%s5922_s20 + $0x50] sm:$0x1]  ;;  %v1984_v20 = vrot.slane %v1983_v13, 4 }
  0x9c   : > { %1361 = vmatmul.bf16.gmra.mxu2 %v1261_v50  ;;  %v1144_v1 = vrot.slane %v5826_v14, 5 }
  0x9d   : > { %v1959_v23 = vor.u32 %v1958_v15, %v1954_v8  ;;  %v1989_v27 = vsel %vm5937_vm2, %v1984_v20, %v1988_v21  ;;  %v5576_v20 = vld [vmem:[%s5922_s20 + $0x54] sm:$0xff]  ;;  %v5095_v21 = vld [vmem:[%s5922_s20 + $0x70] sm:$0xf] }
  0x9e   : > { %v1145_v11 = vsel %vm6237_vm5, %v1143_v0, %v1144_v1  ;;  %v2236_v47 = vunpack.c.l.b16 %v1989_v27  ;;  %v2018_v27 = vshll.u32 %v5094_v59, 16 }
  0x9f   : > { %v1960_v34 = vrot.slane %v1959_v23, 4  ;;  %v5092_v23 = vld [vmem:[%s5922_s20 + $0x64] sm:$0xf] }
  0xa0   : > { %v2000_v38 = vshll.u32 %v5092_v23, 16 }
  0xa1   : > { %1676 = vmatmul.bf16.gmra.mxu3 %v5612_v33  ;;  %v5088_v33 = vld [vmem:[%s5922_s20 + $0x54] sm:$0xf]  ;;  %v1965_v49 = vsel %vm5937_vm2, %v1960_v34, %v1964_v36  ;;  %v1991_v36 = vshrl.u32 %v5091_v22, 16 }
  0xa2   : > { %v1967_v42 = vshrl.u32 %v5088_v33, 16  ;;  %v1970_v44 = vshll.u32 %v5088_v33, 16  ;;  %v2234_v61 = vunpack.c.l.b16 %v1965_v49  ;;  %v2002_v49 = vrot.slane %v2000_v38, 5 }
  0xa3   : > { %v1993_v48 = vrot.slane %v1991_v36, 4  ;;  %v1155_v38 = vrot.slane %v5827_v37, 5 }
  0xa4   : > { %v1972_v55 = vrot.slane %v1970_v44, 5  ;;  %v2260_v8 = vpack.c.b16 %v2234_v61, %v2233_v58  ;;  %v1053_v44 = vld [vmem:[%s5922_s20 + $0x54] sm:$0xe]  ;;  %v5093_v61 = vld [vmem:[%s5922_s20 + $0x68] sm:$0x1] }
  0xa5   : > { %2358 = vmatmul.bf16.gmra.mxu0 %v2258_v41  ;;  %v5574_v41 = vld [vmem:[%s5922_s20 + $0x3c] sm:$0xff]  ;;  %v4869_v12 = vrot.slane %v1053_v44, 9  ;;  %v1997_v62 = vor.u32 %v1996_v35, %v1993_v48  ;;  %v2010_v3 = vshll.u32 %v5093_v61, 16  ;;  %v2024_v44 = vshll.u32 %v5095_v21, 16 }
  0xa6   : > { %v2020_v61 = vrot.slane %v2018_v27, 5  ;;  %v5577_v27 = vld [vmem:[%s5922_s20 + $0x60] sm:$0xff] }
  0xa7   : > { %v1998_v10 = vrot.slane %v1997_v62, 4  ;;  %v2012_v13 = vrot.slane %v2010_v3, 5 }
  0xa8   : > { %v6345_v56 = vpop.f32.mrf.mxu1 }
  0xab   : > { %v6350_v4 = vpop.f32.mrf.mxu0  ;;  %985 = vmatmul.bf16.gmra.mxu1 %v5573_v31  ;;  %v1969_v31 = vrot.slane %v1967_v42, 4  ;;  %v2004_v42 = vshrl.u32 %v5092_v23, 16 }
  0xac   : > { %1366 = vmatmul.bf16.gmra.mxu2 %v1262_v57 }
  0xad   : > { %v1973_v7 = vor.u32 %v1972_v55, %v1969_v31  ;;  %v1151_v31 = vrot.slane %v6170_v53, 5  ;;  %v2006_v55 = vrot.slane %v2004_v42, 4  ;;  %v1054_v42 = vld [vmem:[%s5922_s20 + $0x60] sm:$0xe] }
  0xae   : > { %v6355_v17 = vpop.f32.mrf.mxu2 }
  0xaf   : > { %v6358_v50 = vpop.f32.mrf.mxu3  ;;  %v1974_v15 = vrot.slane %v1973_v7, 4  ;;  %v2007_v1 = vor.u32 %v2006_v55, %v2002_v49 }
  0xb0   : > { %v6360_v16 = vpop.f32.mrf.mxu1 }
  0xb1   : > { %1681 = vmatmul.bf16.gmra.mxu3 %v5613_v9  ;;  %v1979_v32 = vsel %vm5937_vm2, %v1974_v15, %v1978_v60  ;;  %v5676_v15 = vld [vmem:[%s7816_s1 + $0x1d8] sm:$0xff] }
  0xb2   : > { %3762 = vmatpush.bf16.msra.mxu3 %v5676_v15 }
  0xb3   : > { %v6369_v26 = vpop.f32.mrf.mxu0 }
  0xb5   : > { %2363 = vmatmul.bf16.gmra.mxu0 %v2259_v51  ;;  %v1239_v51 = vunpack.c.l.b16 %v1145_v11  ;;  %v2008_v11 = vrot.slane %v2007_v1, 4 }
  0xb6   : > { %v6379_v39 = vpop.f32.mrf.mxu2 }
  0xb7   : > { %v6381_v40 = vpop.f32.mrf.mxu3  ;;  %v1264_v34 = vpack.c.b16 %v1239_v51, %v1238_v18  ;;  %v5644_v18 = vld [vmem:[%s7816_s1 + $0x158] sm:$0xff]  ;;  %v2013_v36 = vsel %vm5937_vm2, %v2008_v11, %v2012_v13 }
  0xb8   : > { %v6384_v45 = vpop.f32.mrf.mxu1  ;;  %2765 = vmatpush.bf16.msra.mxu1 %v5644_v18  ;;  %v2238_v35 = vunpack.c.l.b16 %v2013_v36 }
  0xbb   : > { %990 = vmatmul.bf16.gmra.mxu1 %v5574_v41  ;;  %v1148_v41 = vrot.slane %v6167_v52, 5 }
  0xbc   : > { %v6395_v57 = vpop.f32.mrf.mxu0  ;;  %1371 = vmatmul.bf16.gmra.mxu2 %v1263_v46  ;;  %v2235_v46 = vunpack.c.l.b16 %v1979_v32 }
  0xbd   : > { %v1150_v19 = vrot.slane %v1148_v41, 4  ;;  %v1149_v14 = vsel %vm6237_vm5, %v4869_v12, %v1148_v41  ;;  %v4870_v12 = vrot.slane %v1054_v42, 9 }
  0xbe   : > { %v6399_v2 = vpop.f32.mrf.mxu2  ;;  %v2261_v60 = vpack.c.b16 %v2236_v47, %v2235_v46  ;;  %v1240_v7 = vunpack.c.l.b16 %v1149_v14  ;;  %v2028_v46 = vshrl.u32 %v5095_v21, 16  ;;  %v5684_v47 = vld [vmem:[%s7816_s1 + $0x218] sm:$0xff] }
  0xbf   : > { %v6402_v6 = vpop.f32.mrf.mxu3  ;;  %v1152_v53 = vsel %vm6237_vm5, %v1150_v19, %v1151_v31  ;;  %4188 = vmatpush.bf16.msra.mxu0 %v5684_v47  ;;  %v1157_v19 = vrot.slane %v1155_v38, 4  ;;  %v5828_v31 = vld [vmem:[%s5922_s20 + $0x68] sm:$0x1]  ;;  %v1156_v5 = vsel %vm6237_vm5, %v4870_v12, %v1155_v38  ;;  %v5098_v21 = vld [vmem:[%s5922_s20 + $0x7c] sm:$0xf] }
  0xc0   : > { %v6404_v9 = vpop.f32.mrf.mxu1  ;;  %v1158_v55 = vrot.slane %v5828_v31, 5  ;;  %v2030_v62 = vrot.slane %v2028_v46, 4  ;;  %v1242_v18 = vunpack.c.l.b16 %v1156_v5  ;;  %v2048_v42 = vshll.u32 %v5098_v21, 16  ;;  %v5829_v47 = vld [vmem:[%s5922_s20 + $0x70] sm:$0xf] }
  0xc1   : > { %1686 = vmatmul.bf16.gmra.mxu3 %v5614_v63 }
  0xc4   : > { %v6412_v24 = vpop.f32.mrf.mxu0 }
  0xc5   : > { %2368 = vmatmul.bf16.gmra.mxu0 %v2260_v8  ;;  %v1241_v8 = vunpack.c.l.b16 %v1152_v53  ;;  %v5096_v53 = vld [vmem:[%s5922_s20 + $0x74] sm:$0x1] }
  0xc6   : > { %v6414_v25 = vpop.f32.mrf.mxu2  ;;  %v2034_v13 = vshll.u32 %v5096_v53, 16 }
  0xc7   : > { %v6416_v28 = vpop.f32.mrf.mxu3  ;;  %v1265_v23 = vpack.c.b16 %v1241_v8, %v1240_v7  ;;  %v1159_v7 = vsel %vm6237_vm5, %v1157_v19, %v1158_v55 }
  0xc8   : > { %v6421_v33 = vpop.f32.mrf.mxu1 }
  0xcb   : > { %995 = vmatmul.bf16.gmra.mxu1 %v5575_v29  ;;  %v2015_v29 = vshrl.u32 %v5094_v59, 16  ;;  %v5097_v59 = vld [vmem:[%s5922_s20 + $0x78] sm:$0xf] }
  0xcc   : > { %1376 = vmatmul.bf16.gmra.mxu2 %v1264_v34  ;;  %v2003_v34 = vsel %vm5937_vm2, %v1998_v10, %v2002_v49  ;;  %v2039_v36 = vshrl.u32 %v5097_v59, 16  ;;  %v2042_v37 = vshll.u32 %v5097_v59, 16 }
  0xcd   : > { %v2237_v48 = vunpack.c.l.b16 %v2003_v34  ;;  %v2017_v49 = vrot.slane %v2015_v29, 4  ;;  %v2036_v34 = vrot.slane %v2034_v13, 5  ;;  %v5617_v13 = vld [vmem:[%s5922_s20 + $0x6c] sm:$0xff] }
  0xce   : > { %v6429_v58 = vpop.f32.mrf.mxu2  ;;  %v2041_v55 = vrot.slane %v2039_v36, 4 }
  0xcf   : > { %v2262_v1 = vpack.c.b16 %v2238_v35, %v2237_v48  ;;  %v2021_v8 = vor.u32 %v2020_v61, %v2017_v49  ;;  %v1162_v48 = vrot.slane %v5829_v47, 5  ;;  %v2044_v61 = vrot.slane %v2042_v37, 5  ;;  %v5667_v47 = vld [vmem:[%s7816_s1 + $0x190] sm:$0xff] }
  0xd0   : > { %v6432_v52 = vpop.f32.mrf.mxu0  ;;  %v6434_v63 = vpop.f32.mrf.mxu3  ;;  %3081 = vmatpush.bf16.msra.mxu2 %v5667_v47 }
  0xd1   : > { %1691 = vmatmul.bf16.gmra.mxu3 %v5615_v54  ;;  %v6436_v0 = vpop.f32.mrf.mxu1  ;;  %v5616_v54 = vld [vmem:[%s5922_s20 + $0x60] sm:$0xff] }
  0xd5   : > { %2373 = vmatmul.bf16.gmra.mxu0 %v2261_v60  ;;  %v2026_v60 = vrot.slane %v2024_v44, 5  ;;  %v2052_v44 = vshrl.u32 %v5098_v21, 16 }
  0xd6   : > { %v6452_v51 = vpop.f32.mrf.mxu2 }
  0xd7   : > { %v2031_v11 = vor.u32 %v2030_v62, %v2026_v60  ;;  %v2050_v62 = vrot.slane %v2048_v42, 5  ;;  %v2054_v53 = vrot.slane %v2052_v44, 4 }
  0xd8   : > { %v6456_v22 = vpop.f32.mrf.mxu0  ;;  %v6465_v41 = vpop.f32.mrf.mxu3 }
  0xd9   : > { %v6458_v32 = vpop.f32.mrf.mxu1  ;;  %v2032_v29 = vrot.slane %v2031_v11, 4  ;;  %v5099_v11 = vld [vmem:[%s5922_s20 + $0x80] sm:$0x1]  ;;  %v2055_v21 = vor.u32 %v2054_v53, %v2050_v62  ;;  %v5643_v53 = vld [vmem:[%s7816_s1 + $0x150] sm:$0xff] }
  0xda   : > { %2766 = vmatpush.bf16.msra.mxu1 %v5643_v53 }
  0xdb   : > { %1000 = vmatmul.bf16.gmra.mxu1 %v5576_v20  ;;  %v1243_v20 = vunpack.c.l.b16 %v1159_v7  ;;  %v2037_v31 = vsel %vm5937_vm2, %v2032_v29, %v2036_v34  ;;  %v5830_v7 = vld [vmem:[%s5922_s20 + $0x74] sm:$0x1] }
  0xdc   : > { %1381 = vmatmul.bf16.gmra.mxu2 %v1265_v23  ;;  %v2022_v23 = vrot.slane %v2021_v8, 4  ;;  %v1165_v8 = vrot.slane %v5830_v7, 5  ;;  %v5578_v7 = vld [vmem:[%s5922_s20 + $0x6c] sm:$0xff] }
  0xdd   : > { %v1266_v46 = vpack.c.b16 %v1243_v20, %v1242_v18  ;;  %v2240_v18 = vunpack.c.l.b16 %v2037_v31  ;;  %v5100_v31 = vld [vmem:[%s5922_s20 + $0x84] sm:$0xf] }
  0xde   : > { %v2027_v49 = vsel %vm5937_vm2, %v2022_v23, %v2026_v60  ;;  %v1164_v60 = vrot.slane %v1162_v48, 4  ;;  %v2058_v23 = vshll.u32 %v5099_v11, 16 }
  0xdf   : > { %v6473_v14 = vpop.f32.mrf.mxu2  ;;  %v2239_v59 = vunpack.c.l.b16 %v2027_v49 }
  0xe0   : > { %v1166_v36 = vsel %vm6237_vm5, %v1164_v60, %v1165_v8 }
  0xe1   : > { %1696 = vmatmul.bf16.gmra.mxu3 %v5616_v54  ;;  %v6476_v3 = vpop.f32.mrf.mxu1  ;;  %v1055_v54 = vld [vmem:[%s5922_s20 + $0x6c] sm:$0xe]  ;;  %v2263_v37 = vpack.c.b16 %v2240_v18, %v2239_v59  ;;  %v1245_v49 = vunpack.c.l.b16 %v1166_v36 }
  0xe2   : > { %v6482_v10 = vpop.f32.mrf.mxu0  ;;  %v4871_v5 = vrot.slane %v1055_v54, 9  ;;  %v2056_v54 = vrot.slane %v2055_v21, 4 }
  0xe4   : > { %v6485_v15 = vpop.f32.mrf.mxu3  ;;  %v1163_v34 = vsel %vm6237_vm5, %v4871_v5, %v1162_v48  ;;  %v2060_v48 = vrot.slane %v2058_v23, 5 }
  0xe5   : > { %2378 = vmatmul.bf16.gmra.mxu0 %v2262_v1 }
  0xe6   : > { %v2061_v11 = vsel %vm5937_vm2, %v2056_v54, %v2060_v48 }
  0xe7   : > { %v6488_v38 = vpop.f32.mrf.mxu2 }
  0xe9   : > { %v966_v35 = vpop.f32.mrf.mxu1 }
  0xea   : > { %v6495_v12 = vpop.f32.mrf.mxu0  ;;  %v967_v19 = vadd.f32 %v966_v35, %v6350_v4  ;;  %v2045_v4 = vor.u32 %v2044_v61, %v2041_v55  ;;  %v1244_v35 = vunpack.c.l.b16 %v1163_v34  ;;  %v5101_v61 = vld [vmem:[%s5922_s20 + $0x88] sm:$0xf] }
  0xeb   : > { %1005 = vmatmul.bf16.gmra.mxu1 %v5577_v27  ;;  %v2076_v21 = vshrl.u32 %v5101_v61, 16 }
  0xec   : > { %v6500_v1 = vpop.f32.mrf.mxu3  ;;  %1386 = vmatmul.bf16.gmra.mxu2 %v1266_v46  ;;  %v2046_v46 = vrot.slane %v2045_v4, 4  ;;  %v1267_v8 = vpack.c.b16 %v1245_v49, %v1244_v35  ;;  %v2066_v4 = vshll.u32 %v5100_v31, 16 }
  0xed   : > { %v2078_v54 = vrot.slane %v2076_v21, 4 }
  0xee   : > { %v2051_v5 = vsel %vm5937_vm2, %v2046_v46, %v2050_v62  ;;  %v2068_v35 = vrot.slane %v2066_v4, 5 }
  0xef   : > { %v1347_v20 = vpop.f32.mrf.mxu2 }
  0xf0   : > { %v1427_v29 = vadd.f32 %v1347_v20, %v967_v19  ;;  %v2072_v20 = vshll.u32 %v5101_v61, 16 }
  0xf1   : > { %1701 = vmatmul.bf16.gmra.mxu3 %v5617_v13  ;;  %v968_v27 = vpop.f32.mrf.mxu1  ;;  %v2063_v13 = vshrl.u32 %v5100_v31, 16 }
  0xf2   : > { %v2344_v42 = vpop.f32.mrf.mxu0  ;;  %v969_v44 = vadd.f32 %v968_v27, %v6369_v26  ;;  %v5675_v26 = vld [vmem:[%s7816_s1 + $0x1d0] sm:$0xff]  ;;  %v2074_v49 = vrot.slane %v2072_v20, 5 }
  0xf3   : > { %3763 = vmatpush.bf16.msra.mxu3 %v5675_v26  ;;  %v5683_v27 = vld [vmem:[%s7816_s1 + $0x210] sm:$0xff]  ;;  %v2065_v47 = vrot.slane %v2063_v13, 4  ;;  %v5102_v26 = vld [vmem:[%s5922_s20 + $0x8c] sm:$0x1] }
  0xf4   : > { %v1662_v19 = vpop.f32.mrf.mxu3  ;;  %4189 = vmatpush.bf16.msra.mxu0 %v5683_v27  ;;  %v2082_v4 = vshll.u32 %v5102_v26, 16  ;;  %v5833_v26 = vld [vmem:[%s5922_s20 + $0x88] sm:$0xf] }
  0xf5   : > { %2383 = vmatmul.bf16.gmra.mxu0 %v2263_v37  ;;  %v1742_v55 = vadd.f32 %v1662_v19, %v1427_v29  ;;  %v5831_v29 = vld [vmem:[%s5922_s20 + $0x7c] sm:$0xf]  ;;  %v1056_v37 = vld [vmem:[%s5922_s20 + $0x78] sm:$0xe] }
  0xf6   : > { %v1169_v34 = vrot.slane %v5831_v29, 5  ;;  %v5618_v19 = vld [vmem:[%s5922_s20 + $0x78] sm:$0xff] }
  0xf7   : > { %v1349_v60 = vpop.f32.mrf.mxu2  ;;  %v6526_v59 = vadd.f32 %v2344_v42, %v1742_v55  ;;  %v2241_v42 = vunpack.c.l.b16 %v2051_v5  ;;  %v5832_v55 = vld [vmem:[%s5922_s20 + $0x80] sm:$0x1] }
  0xf8   : > { %v1428_v18 = vadd.f32 %v1349_v60, %v969_v44  ;;  %v2242_v44 = vunpack.c.l.b16 %v2061_v11  ;;  %v1171_v31 = vrot.slane %v1169_v34, 4  ;;  %v1172_v61 = vrot.slane %v5832_v55, 5 }
  0xf9   : > { %v971_v23 = vpop.f32.mrf.mxu1 }
  0xfa   : > { %v2346_v62 = vpop.f32.mrf.mxu0  ;;  %v972_v36 = vadd.f32 %v971_v23, %v6395_v57  ;;  %v4872_v57 = vrot.slane %v1056_v37, 9  ;;  %v2264_v60 = vpack.c.b16 %v2242_v44, %v2241_v42  ;;  %v2069_v23 = vor.u32 %v2068_v35, %v2065_v47  ;;  %v5579_v47 = vld [vmem:[%s5922_s20 + $0x78] sm:$0xff]  ;;  %v5104_v35 = vld [vmem:[%s5922_s20 + $0x94] sm:$0xf] }
  0xfb   : > { %1010 = vmatmul.bf16.gmra.mxu1 %v5578_v7  ;;  %v1173_v13 = vsel %vm6237_vm5, %v1171_v31, %v1172_v61  ;;  %v2084_v44 = vrot.slane %v2082_v4, 5 }
  0xfc   : > { %v1664_v46 = vpop.f32.mrf.mxu3  ;;  %1391 = vmatmul.bf16.gmra.mxu2 %v1267_v8  ;;  %v1170_v11 = vsel %vm6237_vm5, %v4872_v57, %v1169_v34  ;;  %v2070_v27 = vrot.slane %v2069_v23, 4  ;;  %v5103_v34 = vld [vmem:[%s5922_s20 + $0x90] sm:$0xf]  ;;  %v1057_v23 = vld [vmem:[%s5922_s20 + $0x84] sm:$0xe] }
  0xfd   : > { %v1743_v48 = vadd.f32 %v1664_v46, %v1428_v18  ;;  %v2079_v18 = vor.u32 %v2078_v54, %v2074_v49  ;;  %v2087_v57 = vshrl.u32 %v5103_v34, 16 }
  0xfe   : > { %v2075_v55 = vsel %vm5937_vm2, %v2070_v27, %v2074_v49 }
  0xff   : > { %v1352_v53 = vpop.f32.mrf.mxu2  ;;  %v6537_v5 = vadd.f32 %v2346_v62, %v1743_v48  ;;  %v1247_v62 = vunpack.c.l.b16 %v1173_v13  ;;  %v2080_v42 = vrot.slane %v2079_v18, 4  ;;  %v2243_v18 = vunpack.c.l.b16 %v2075_v55 }
 0x100   : > { %v1429_v7 = vadd.f32 %v1352_v53, %v972_v36  ;;  %v1246_v36 = vunpack.c.l.b16 %v1170_v11  ;;  %v1176_v53 = vrot.slane %v5833_v26, 5  ;;  %v2100_v11 = vshrl.u32 %v5104_v35, 16 }
 0x101   : > { %1706 = vmatmul.bf16.gmra.mxu3 %v5618_v19  ;;  %v973_v8 = vpop.f32.mrf.mxu1  ;;  %v2085_v61 = vsel %vm5937_vm2, %v2080_v42, %v2084_v44  ;;  %v2089_v49 = vrot.slane %v2087_v57, 4 }
 0x102   : > { %v2349_v20 = vpop.f32.mrf.mxu0  ;;  %v974_v21 = vadd.f32 %v973_v8, %v6412_v24  ;;  %v1268_v19 = vpack.c.b16 %v1247_v62, %v1246_v36  ;;  %v2090_v24 = vshll.u32 %v5103_v34, 16  ;;  %v2096_v8 = vshll.u32 %v5104_v35, 16  ;;  %v5105_v34 = vld [vmem:[%s5922_s20 + $0x98] sm:$0x1] }
 0x103   : > { %v2244_v4 = vunpack.c.l.b16 %v2085_v61  ;;  %v4873_v36 = vrot.slane %v1057_v23, 9  ;;  %v1178_v62 = vrot.slane %v1176_v53, 4  ;;  %v2106_v26 = vshll.u32 %v5105_v34, 16 }
 0x104   : > { %v1667_v29 = vpop.f32.mrf.mxu3  ;;  %v6558_v42 = vrot.slane %v2096_v8, 5 }
 0x105   : > { %2388 = vmatmul.bf16.gmra.mxu0 %v2264_v60  ;;  %v1744_v37 = vadd.f32 %v1667_v29, %v1429_v7  ;;  %v5619_v29 = vld [vmem:[%s5922_s20 + $0x84] sm:$0xff]  ;;  %v2265_v35 = vpack.c.b16 %v2244_v4, %v2243_v18 }
 0x106   : > { %v5642_v4 = vld [vmem:[%s7816_s1 + $0x148] sm:$0xff] }
 0x107   : > { %v1354_v46 = vpop.f32.mrf.mxu2  ;;  %v6547_v48 = vadd.f32 %v2349_v20, %v1744_v37  ;;  %v2092_v20 = vrot.slane %v2090_v24, 5  ;;  %v5834_v37 = vld [vmem:[%s5922_s20 + $0x8c] sm:$0x1]  ;;  %2767 = vmatpush.bf16.msra.mxu1 %v5642_v4 }
 0x108   : > { %v1430_v54 = vadd.f32 %v1354_v46, %v974_v21  ;;  %v1179_v27 = vrot.slane %v5834_v37, 5 }
 0x109   : > { %v976_v31 = vpop.f32.mrf.mxu1  ;;  %v2093_v24 = vor.u32 %v2092_v20, %v2089_v49  ;;  %v2108_v20 = vrot.slane %v2106_v26, 5 }
 0x10a   : > { %v2351_v60 = vpop.f32.mrf.mxu0  ;;  %v977_v7 = vadd.f32 %v976_v31, %v6432_v52  ;;  %v2102_v52 = vrot.slane %v2100_v11, 4  ;;  %v1180_v57 = vsel %vm6237_vm5, %v1178_v62, %v1179_v27  ;;  %v5580_v62 = vld [vmem:[%s5922_s20 + $0x84] sm:$0xff] }
 0x10b   : > { %1015 = vmatmul.bf16.gmra.mxu1 %v5579_v47  ;;  %v1249_v11 = vunpack.c.l.b16 %v1180_v57  ;;  %v2094_v18 = vrot.slane %v2093_v24, 4  ;;  %v1058_v57 = vld [vmem:[%s5922_s20 + $0x90] sm:$0xe] }
 0x10c   : > { %v1669_v13 = vpop.f32.mrf.mxu3  ;;  %1396 = vmatmul.bf16.gmra.mxu2 %v1268_v19  ;;  %v2103_v61 = vor.u32 %v2102_v52, %v6558_v42 }
 0x10d   : > { %v1745_v21 = vadd.f32 %v1669_v13, %v1430_v54  ;;  %v1177_v54 = vsel %vm6237_vm5, %v4873_v36, %v1176_v53  ;;  %v5107_v53 = vld [vmem:[%s5922_s20 + $0xa0] sm:$0xf] }
 0x10e   : > { %v1248_v8 = vunpack.c.l.b16 %v1177_v54  ;;  %v2104_v49 = vrot.slane %v2103_v61, 4  ;;  %v2120_v37 = vshll.u32 %v5107_v53, 16  ;;  %v2124_v27 = vshrl.u32 %v5107_v53, 16  ;;  %v5836_v53 = vld [vmem:[%s5922_s20 + $0x98] sm:$0x1] }
 0x10f   : > { %v1357_v44 = vpop.f32.mrf.mxu2  ;;  %v6561_v47 = vadd.f32 %v2351_v60, %v1745_v21  ;;  %v5666_v60 = vld [vmem:[%s7816_s1 + $0x188] sm:$0xff]  ;;  %v2099_v54 = vsel %vm5937_vm2, %v2094_v18, %v6558_v42  ;;  %v4874_v42 = vrot.slane %v1058_v57, 9 }
 0x110   : > { %v1431_v46 = vadd.f32 %v1357_v44, %v977_v7  ;;  %v5106_v7 = vld [vmem:[%s5922_s20 + $0x9c] sm:$0xf]  ;;  %3082 = vmatpush.bf16.msra.mxu2 %v5666_v60  ;;  %v1269_v34 = vpack.c.b16 %v1249_v11, %v1248_v8  ;;  %v2109_v26 = vsel %vm5937_vm2, %v2104_v49, %v2108_v20  ;;  %v5682_v60 = vld [vmem:[%s7816_s1 + $0x208] sm:$0xff]  ;;  %v2245_v4 = vunpack.c.l.b16 %v2099_v54 }
 0x111   : > { %1711 = vmatmul.bf16.gmra.mxu3 %v5619_v29  ;;  %v978_v19 = vpop.f32.mrf.mxu1  ;;  %v2111_v21 = vshrl.u32 %v5106_v7, 16  ;;  %v2114_v29 = vshll.u32 %v5106_v7, 16  ;;  %v2122_v7 = vrot.slane %v2120_v37, 5  ;;  %4190 = vmatpush.bf16.msra.mxu0 %v5682_v60  ;;  %v2246_v49 = vunpack.c.l.b16 %v2109_v26 }
 0x112   : > { %v2354_v31 = vpop.f32.mrf.mxu0  ;;  %v979_v55 = vadd.f32 %v978_v19, %v6456_v22  ;;  %v5674_v22 = vld [vmem:[%s7816_s1 + $0x1c8] sm:$0xff] }
 0x113   : > { %3764 = vmatpush.bf16.msra.mxu3 %v5674_v22  ;;  %v5620_v22 = vld [vmem:[%s5922_s20 + $0x90] sm:$0xff] }
 0x114   : > { %v1672_v23 = vpop.f32.mrf.mxu3 }
 0x115   : > { %2393 = vmatmul.bf16.gmra.mxu0 %v2265_v35  ;;  %v1746_v13 = vadd.f32 %v1672_v23, %v1431_v46  ;;  %v5835_v46 = vld [vmem:[%s5922_s20 + $0x94] sm:$0xf]  ;;  %v2126_v23 = vrot.slane %v2124_v27, 4 }
 0x116   : > { %v1183_v35 = vrot.slane %v5835_v46, 5 }
 0x117   : > { %v1359_v36 = vpop.f32.mrf.mxu2  ;;  %v6581_v52 = vadd.f32 %v2354_v31, %v1746_v13  ;;  %v2113_v31 = vrot.slane %v2111_v21, 4  ;;  %v1186_v13 = vrot.slane %v5836_v53, 5 }
 0x118   : > { %v1432_v44 = vadd.f32 %v1359_v36, %v979_v55  ;;  %v2116_v55 = vrot.slane %v2114_v29, 5  ;;  %v1185_v11 = vrot.slane %v1183_v35, 4  ;;  %v2127_v29 = vor.u32 %v2126_v23, %v2122_v7 }
 0x119   : > { %v981_v19 = vpop.f32.mrf.mxu1  ;;  %v1184_v37 = vsel %vm6237_vm5, %v4874_v42, %v1183_v35  ;;  %v5109_v35 = vld [vmem:[%s5922_s20 + $0xa8] sm:$0xf] }
 0x11a   : > { %v2356_v24 = vpop.f32.mrf.mxu0  ;;  %v982_v61 = vadd.f32 %v981_v19, %v6482_v10  ;;  %v5108_v10 = vld [vmem:[%s5922_s20 + $0xa4] sm:$0x1]  ;;  %v2117_v20 = vor.u32 %v2116_v55, %v2113_v31  ;;  %v1187_v27 = vsel %vm6237_vm5, %v1185_v11, %v1186_v13  ;;  %v1250_v26 = vunpack.c.l.b16 %v1184_v37  ;;  %v5581_v11 = vld [vmem:[%s5922_s20 + $0x90] sm:$0xff] }
 0x11b   : > { %1020 = vmatmul.bf16.gmra.mxu1 %v5580_v62  ;;  %v2130_v36 = vshll.u32 %v5108_v10, 16  ;;  %v1251_v31 = vunpack.c.l.b16 %v1187_v27  ;;  %v2135_v13 = vshrl.u32 %v5109_v35, 16 }
 0x11c   : > { %v1674_v8 = vpop.f32.mrf.mxu3  ;;  %1401 = vmatmul.bf16.gmra.mxu2 %v1269_v34  ;;  %v2118_v57 = vrot.slane %v2117_v20, 4 }
 0x11d   : > { %v1747_v18 = vadd.f32 %v1674_v8, %v1432_v44  ;;  %v2266_v44 = vpack.c.b16 %v2246_v49, %v2245_v4  ;;  %v2132_v55 = vrot.slane %v2130_v36, 5  ;;  %v5110_v8 = vld [vmem:[%s5922_s20 + $0xac] sm:$0xf]  ;;  %v1270_v53 = vpack.c.b16 %v1251_v31, %v1250_v26  ;;  %v5621_v26 = vld [vmem:[%s5922_s20 + $0x9c] sm:$0xff] }
 0x11e   : > { %v2144_v4 = vshll.u32 %v5110_v8, 16  ;;  %v2148_v49 = vshrl.u32 %v5110_v8, 16 }
 0x11f   : > { %v1362_v21 = vpop.f32.mrf.mxu2  ;;  %v6601_v34 = vadd.f32 %v2356_v24, %v1747_v18  ;;  %v2123_v24 = vsel %vm5937_vm2, %v2118_v57, %v2122_v7  ;;  %v1059_v7 = vld [vmem:[%s5922_s20 + $0x9c] sm:$0xe] }
 0x120   : > { %v1433_v62 = vadd.f32 %v1362_v21, %v982_v61  ;;  %v2128_v61 = vrot.slane %v2127_v29, 4  ;;  %v5837_v21 = vld [vmem:[%s5922_s20 + $0xa0] sm:$0xf]  ;;  %v4875_v31 = vrot.slane %v1059_v7, 9  ;;  %v5112_v7 = vld [vmem:[%s5922_s20 + $0xb4] sm:$0xf] }
 0x121   : > { %1716 = vmatmul.bf16.gmra.mxu3 %v5620_v22  ;;  %v983_v46 = vpop.f32.mrf.mxu1  ;;  %v2138_v22 = vshll.u32 %v5109_v35, 16  ;;  %v1190_v29 = vrot.slane %v5837_v21, 5 }
 0x122   : > { %v2359_v19 = vpop.f32.mrf.mxu0  ;;  %v984_v54 = vadd.f32 %v983_v46, %v6495_v12  ;;  %v2133_v12 = vsel %vm5937_vm2, %v2128_v61, %v2132_v55  ;;  %v5838_v55 = vld [vmem:[%s5922_s20 + $0xa4] sm:$0x1] }
 0x123   : > { %v2248_v37 = vunpack.c.l.b16 %v2133_v12  ;;  %v2140_v46 = vrot.slane %v2138_v22, 5  ;;  %v1192_v61 = vrot.slane %v1190_v29, 4 }
 0x124   : > { %v1677_v60 = vpop.f32.mrf.mxu3 }
 0x125   : > { %2398 = vmatmul.bf16.gmra.mxu0 %v2266_v44  ;;  %v1748_v23 = vadd.f32 %v1677_v60, %v1433_v62  ;;  %v2247_v62 = vunpack.c.l.b16 %v2123_v24  ;;  %v2137_v44 = vrot.slane %v2135_v13, 4  ;;  %v1193_v60 = vrot.slane %v5838_v55, 5 }
 0x126   : > { %v1191_v13 = vsel %vm6237_vm5, %v4875_v31, %v1190_v29  ;;  %v5113_v31 = vld [vmem:[%s5922_s20 + $0xb8] sm:$0xf]  ;;  %v2162_v55 = vshll.u32 %v5112_v7, 16 }
 0x127   : > { %v1364_v42 = vpop.f32.mrf.mxu2  ;;  %v6611_v10 = vadd.f32 %v2359_v19, %v1748_v23  ;;  %v2146_v19 = vrot.slane %v2144_v4, 5  ;;  %v5111_v23 = vld [vmem:[%s5922_s20 + $0xb0] sm:$0x1]  ;;  %v1252_v21 = vunpack.c.l.b16 %v1191_v13  ;;  %v1060_v13 = vld [vmem:[%s5922_s20 + $0xa8] sm:$0xe] }
 0x128   : > { %v1434_v18 = vadd.f32 %v1364_v42, %v984_v54  ;;  %v2150_v54 = vrot.slane %v2148_v49, 4  ;;  %v2267_v42 = vpack.c.b16 %v2248_v37, %v2247_v62  ;;  %v2154_v4 = vshll.u32 %v5111_v23, 16 }
 0x129   : > { %v986_v20 = vpop.f32.mrf.mxu1 }
 0x12a   : > { %v2361_v36 = vpop.f32.mrf.mxu0  ;;  %v987_v35 = vadd.f32 %v986_v20, %v6345_v56  ;;  %v2151_v22 = vor.u32 %v2150_v54, %v2146_v19  ;;  %v5665_v56 = vld [vmem:[%s7816_s1 + $0x180] sm:$0xff] }
 0x12b   : > { %1025 = vmatmul.bf16.gmra.mxu1 %v5581_v11  ;;  %v2141_v11 = vor.u32 %v2140_v46, %v2137_v44  ;;  %3083 = vmatpush.bf16.msra.mxu2 %v5665_v56  ;;  %v5673_v44 = vld [vmem:[%s7816_s1 + $0x1c0] sm:$0xff]  ;;  %v2164_v56 = vrot.slane %v2162_v55, 5 }
 0x12c   : > { %v1679_v27 = vpop.f32.mrf.mxu3  ;;  %1406 = vmatmul.bf16.gmra.mxu2 %v1270_v53  ;;  %v2152_v37 = vrot.slane %v2151_v22, 4  ;;  %v5641_v46 = vld [vmem:[%s7816_s1 + $0x140] sm:$0xff]  ;;  %3765 = vmatpush.bf16.msra.mxu3 %v5673_v44  ;;  %v2172_v22 = vshrl.u32 %v5113_v31, 16 }
 0x12d   : > { %v1749_v57 = vadd.f32 %v1679_v27, %v1434_v18  ;;  %v1194_v18 = vsel %vm6237_vm5, %v1192_v61, %v1193_v60  ;;  %v2142_v29 = vrot.slane %v2141_v11, 4  ;;  %v2156_v27 = vrot.slane %v2154_v4, 5  ;;  %2768 = vmatpush.bf16.msra.mxu1 %v5641_v46  ;;  %v5681_v4 = vld [vmem:[%s7816_s1 + $0x200] sm:$0xff] }
 0x12e   : > { %v2159_v61 = vshrl.u32 %v5112_v7, 16  ;;  %4191 = vmatpush.bf16.msra.mxu0 %v5681_v4  ;;  %v5622_v7 = vld [vmem:[%s5922_s20 + $0xa8] sm:$0xff]  ;;  %v5115_v4 = vld [vmem:[%s5922_s20 + $0xc0] sm:$0xf] }
 0x12f   : > { %v1367_v8 = vpop.f32.mrf.mxu2  ;;  %v6619_v12 = vadd.f32 %v2361_v36, %v1749_v57  ;;  %v1253_v36 = vunpack.c.l.b16 %v1194_v18  ;;  %v2168_v18 = vshll.u32 %v5113_v31, 16 }
 0x130   : > { %v1435_v24 = vadd.f32 %v1367_v8, %v987_v35 }
 0x131   : > { %1721 = vmatmul.bf16.gmra.mxu3 %v5621_v26  ;;  %v988_v53 = vpop.f32.mrf.mxu1  ;;  %v5582_v26 = vld [vmem:[%s5922_s20 + $0x9c] sm:$0xff]  ;;  %v1271_v23 = vpack.c.b16 %v1253_v36, %v1252_v21  ;;  %v2170_v46 = vrot.slane %v2168_v18, 5 }
 0x132   : > { %v2364_v49 = vpop.f32.mrf.mxu0  ;;  %v989_v54 = vadd.f32 %v988_v53, %v6360_v16  ;;  %v5839_v16 = vld [vmem:[%s5922_s20 + $0xac] sm:$0xf] }
 0x133   : > { %v1197_v11 = vrot.slane %v5839_v16, 5 }
 0x134   : > { %v1682_v20 = vpop.f32.mrf.mxu3 }
 0x135   : > { %2403 = vmatmul.bf16.gmra.mxu0 %v2267_v42  ;;  %v1750_v62 = vadd.f32 %v1682_v20, %v1435_v24  ;;  %v2147_v42 = vsel %vm5937_vm2, %v2142_v29, %v2146_v19  ;;  %v2157_v24 = vsel %vm5937_vm2, %v2152_v37, %v2156_v27  ;;  %v1199_v29 = vrot.slane %v1197_v11, 4  ;;  %v5840_v37 = vld [vmem:[%s5922_s20 + $0xb0] sm:$0x1] }
 0x136   : > { %v2249_v20 = vunpack.c.l.b16 %v2147_v42  ;;  %v2250_v21 = vunpack.c.l.b16 %v2157_v24  ;;  %v1200_v27 = vrot.slane %v5840_v37, 5  ;;  %v2183_v37 = vshrl.u32 %v5115_v4, 16 }
 0x137   : > { %v1369_v57 = vpop.f32.mrf.mxu2  ;;  %v6638_v60 = vadd.f32 %v2364_v49, %v1750_v62  ;;  %v2161_v49 = vrot.slane %v2159_v61, 4  ;;  %v4876_v62 = vrot.slane %v1060_v13, 9 }
 0x138   : > { %v1436_v35 = vadd.f32 %v1369_v57, %v989_v54  ;;  %v2174_v54 = vrot.slane %v2172_v22, 4 }
 0x139   : > { %v991_v8 = vpop.f32.mrf.mxu1  ;;  %v2165_v31 = vor.u32 %v2164_v56, %v2161_v49  ;;  %v1198_v42 = vsel %vm6237_vm5, %v4876_v62, %v1197_v11  ;;  %v5116_v56 = vld [vmem:[%s5922_s20 + $0xc4] sm:$0xf]  ;;  %v5583_v62 = vld [vmem:[%s5922_s20 + $0xa8] sm:$0xff] }
 0x13a   : > { %v2366_v53 = vpop.f32.mrf.mxu0  ;;  %v992_v44 = vadd.f32 %v991_v8, %v6384_v45  ;;  %v1201_v45 = vsel %vm6237_vm5, %v1199_v29, %v1200_v27  ;;  %v2175_v24 = vor.u32 %v2174_v54, %v2170_v46  ;;  %v1254_v22 = vunpack.c.l.b16 %v1198_v42 }
 0x13b   : > { %1030 = vmatmul.bf16.gmra.mxu1 %v5582_v26  ;;  %v5114_v26 = vld [vmem:[%s5922_s20 + $0xbc] sm:$0x1]  ;;  %v2166_v13 = vrot.slane %v2165_v31, 4  ;;  %v2186_v27 = vshll.u32 %v5115_v4, 16  ;;  %v2196_v31 = vshrl.u32 %v5116_v56, 16 }
 0x13c   : > { %v1684_v19 = vpop.f32.mrf.mxu3  ;;  %1411 = vmatmul.bf16.gmra.mxu2 %v1271_v23  ;;  %v2178_v16 = vshll.u32 %v5114_v26, 16  ;;  %v2192_v26 = vshll.u32 %v5116_v56, 16 }
 0x13d   : > { %v1751_v36 = vadd.f32 %v1684_v19, %v1436_v35  ;;  %v2268_v35 = vpack.c.b16 %v2250_v21, %v2249_v20  ;;  %v5841_v19 = vld [vmem:[%s5922_s20 + $0x10] sm:$0xf]  ;;  %v2176_v21 = vrot.slane %v2175_v24, 4  ;;  %v2171_v29 = vsel %vm5937_vm2, %v2166_v13, %v2170_v46 }
 0x13e   : > { %v2522_v20 = vrot.slane %v5841_v19, 5  ;;  %v2185_v13 = vrot.slane %v2183_v37, 4  ;;  %v2198_v56 = vrot.slane %v2196_v31, 4 }
 0x13f   : > { %v1372_v57 = vpop.f32.mrf.mxu2  ;;  %v6653_v55 = vadd.f32 %v2366_v53, %v1751_v36  ;;  %v1255_v53 = vunpack.c.l.b16 %v1201_v45  ;;  %v2180_v36 = vrot.slane %v2178_v16, 5  ;;  %v5843_v45 = vld [vmem:[%s5922_s20 + $0x14] sm:$0x1] }
 0x140   : > { %v1437_v61 = vadd.f32 %v1372_v57, %v992_v44  ;;  %v2524_v42 = vrot.slane %v2522_v20, 4  ;;  %v2525_v24 = vrot.slane %v5843_v45, 5 }
 0x141   : > { %7822 = vst [vmem:[#allocation2_spill] sm:$0xff] %v6653_v55  ;;  %1726 = vmatmul.bf16.gmra.mxu3 %v5622_v7  ;;  %v993_v23 = vpop.f32.mrf.mxu1  ;;  %v1272_v57 = vpack.c.b16 %v1255_v53, %v1254_v22  ;;  %v2181_v46 = vsel %vm5937_vm2, %v2176_v21, %v2180_v36  ;;  %v5166_v22 = vld [vmem:[%s5922_s20 + $0xc] sm:$0xe]  ;;  %v5117_v21 = vld [vmem:[%s5922_s20 + $0xc8] sm:$0x1] }
 0x142   : > { %v2369_v8 = vpop.f32.mrf.mxu0  ;;  %v994_v11 = vadd.f32 %v993_v23, %v6404_v9  ;;  %v5842_v9 = vld [vmem:[%s5922_s20 + $0xb8] sm:$0xf]  ;;  %v5182_v19 = vrot.slane %v5166_v22, 9 }
 0x143   : > { %v1204_v23 = vrot.slane %v5842_v9, 5  ;;  %v2252_v9 = vunpack.c.l.b16 %v2181_v46 }
 0x144   : > { %v1687_v18 = vpop.f32.mrf.mxu3 }
 0x145   : > { %2408 = vmatmul.bf16.gmra.mxu0 %v2268_v35  ;;  %v1752_v49 = vadd.f32 %v1687_v18, %v1437_v61  ;;  %v1061_v35 = vld [vmem:[%s5922_s20 + $0xb4] sm:$0xe]  ;;  %v2188_v18 = vrot.slane %v2186_v27, 5  ;;  %v1206_v45 = vrot.slane %v1204_v23, 4 }
 0x146   : > { %v4877_v4 = vrot.slane %v1061_v35, 9  ;;  %v2202_v35 = vshll.u32 %v5117_v21, 16  ;;  %v5584_v21 = vld [vmem:[%s5922_s20 + $0xb4] sm:$0xff] }
 0x147   : > { %v1374_v7 = vpop.f32.mrf.mxu2  ;;  %v6666_v44 = vadd.f32 %v2369_v8, %v1752_v49  ;;  %v2251_v8 = vunpack.c.l.b16 %v2171_v29  ;;  %v2194_v49 = vrot.slane %v2192_v26, 5  ;;  %v2526_v29 = vsel %vm6237_vm5, %v2524_v42, %v2525_v24  ;;  %v5390_v42 = vld [vmem:[%s5922_s20 + $0x18] sm:$0xf] }
 0x148   : > { %v1438_v54 = vadd.f32 %v1374_v7, %v994_v11  ;;  %v5623_v7 = vld [vmem:[%s5922_s20 + $0xb4] sm:$0xff]  ;;  %v2189_v27 = vor.u32 %v2188_v18, %v2185_v13  ;;  %v1205_v31 = vsel %vm6237_vm5, %v4877_v4, %v1204_v23  ;;  %v6692_v18 = vld [vmem:[%s5922_s20 + $0x1c] sm:$0xf] }
 0x149   : > { %7823 = vst [vmem:[#allocation3_spill] sm:$0xff] %v6666_v44  ;;  %v996_v61 = vpop.f32.mrf.mxu1  ;;  %v5844_v44 = vld [vmem:[%s5922_s20 + $0xbc] sm:$0x1]  ;;  %v1256_v22 = vunpack.c.l.b16 %v1205_v31 }
 0x14a   : > { %v2371_v16 = vpop.f32.mrf.mxu0  ;;  %v1207_v55 = vrot.slane %v5844_v44, 5  ;;  %v997_v36 = vadd.f32 %v996_v61, %v6421_v33  ;;  %v2199_v44 = vor.u32 %v2198_v56, %v2194_v49  ;;  %v2269_v33 = vpack.c.b16 %v2252_v9, %v2251_v8 }
 0x14b   : > { %1035 = vmatmul.bf16.gmra.mxu1 %v5583_v62  ;;  %v2523_v62 = vsel %vm6237_vm5, %v5182_v19, %v2522_v20  ;;  %v2204_v19 = vrot.slane %v2202_v35, 5  ;;  %v3246_v8 = vshrl.u32 %v5390_v42, 16  ;;  %v3249_v9 = vshll.u32 %v5390_v42, 16  ;;  %v5392_v35 = vld [vmem:[%s5922_s20 + $0x20] sm:$0x1] }
 0x14c   : > { %v1689_v53 = vpop.f32.mrf.mxu3  ;;  %1416 = vmatmul.bf16.gmra.mxu2 %v1272_v57  ;;  %v2649_v57 = vunpack.c.l.b16 %v2523_v62  ;;  %v1208_v20 = vsel %vm6237_vm5, %v1206_v45, %v1207_v55  ;;  %v2200_v56 = vrot.slane %v2199_v44, 4  ;;  %v3255_v55 = vshll.u32 %v6692_v18, 16 }
 0x14d   : > { %v1753_v11 = vadd.f32 %v1689_v53, %v1438_v54  ;;  %v2650_v54 = vunpack.c.l.b16 %v2526_v29  ;;  %v2190_v53 = vrot.slane %v2189_v27, 4  ;;  %v1257_v4 = vunpack.c.l.b16 %v1208_v20 }
 0x14e   : > { %v2205_v27 = vsel %vm5937_vm2, %v2200_v56, %v2204_v19  ;;  %v3257_v31 = vrot.slane %v3255_v55, 5  ;;  %v5393_v56 = vld [vmem:[%s5922_s20 + $0x24] sm:$0xf] }
 0x14f   : > { %v1377_v37 = vpop.f32.mrf.mxu2  ;;  %v6686_v46 = vpack.c.b16 %v2650_v54, %v2649_v57  ;;  %v6689_v24 = vadd.f32 %v2371_v16, %v1753_v11  ;;  %v3259_v16 = vshrl.u32 %v6692_v18, 16  ;;  %v1273_v29 = vpack.c.b16 %v1257_v4, %v1256_v22 }
 0x150   : > { %v1439_v26 = vadd.f32 %v1377_v37, %v997_v36  ;;  %v2195_v37 = vsel %vm5937_vm2, %v2190_v53, %v2194_v49  ;;  %v3248_v54 = vrot.slane %v3246_v8, 4  ;;  %v2254_v20 = vunpack.c.l.b16 %v2205_v27 }
 0x151   : > { %1731 = vmatmul.bf16.gmra.mxu3 %v5623_v7  ;;  %v998_v61 = vpop.f32.mrf.mxu1  ;;  %v3261_v44 = vrot.slane %v3259_v16, 4  ;;  %v3265_v53 = vshll.u32 %v5392_v35, 16  ;;  %v3273_v27 = vshll.u32 %v5393_v56, 16 }
 0x152   : > { %v2374_v13 = vpop.f32.mrf.mxu0  ;;  %v999_v11 = vadd.f32 %v998_v61, %v6436_v0  ;;  %v2253_v61 = vunpack.c.l.b16 %v2195_v37  ;;  %v3270_v37 = vshrl.u32 %v5393_v56, 16  ;;  %v5845_v56 = vld [vmem:[%s5922_s20 + $0x1c] sm:$0xf] }
 0x153   : > { %v3262_v22 = vor.u32 %v3261_v44, %v3257_v31 }
 0x154   : > { %v1692_v23 = vpop.f32.mrf.mxu3  ;;  %v2270_v19 = vpack.c.b16 %v2254_v20, %v2253_v61  ;;  %v3948_v20 = vrot.slane %v5392_v35, 5 }
 0x155   : > { %2413 = vmatmul.bf16.gmra.mxu0 %v2269_v33  ;;  %v1754_v7 = vadd.f32 %v1692_v23, %v1439_v26  ;;  %v3251_v26 = vrot.slane %v3249_v9, 5  ;;  %v3263_v16 = vrot.slane %v3262_v22, 4 }
 0x157   : > { %v1379_v45 = vpop.f32.mrf.mxu2  ;;  %v6698_v36 = vadd.f32 %v2374_v13, %v1754_v7  ;;  %v5624_v13 = vld [vmem:[%s5922_s20 + $0xc0] sm:$0xff]  ;;  %v3252_v49 = vor.u32 %v3251_v26, %v3248_v54  ;;  %v6709_v7 = vld [vmem:[%s5922_s20 + $0x28] sm:$0xf] }
 0x158   : > { %v1440_v62 = vadd.f32 %v1379_v45, %v999_v11  ;;  %v3267_v11 = vrot.slane %v3265_v53, 5 }
 0x159   : > { %v1001_v57 = vpop.f32.mrf.mxu1  ;;  %v3253_v55 = vrot.slane %v3252_v49, 4  ;;  %v3275_v49 = vrot.slane %v3273_v27, 5 }
 0x15a   : > { %v2376_v0 = vpop.f32.mrf.mxu0  ;;  %v1002_v23 = vadd.f32 %v1001_v57, %v6458_v32  ;;  %v3279_v32 = vshll.u32 %v6709_v7, 16  ;;  %v3283_v57 = vshrl.u32 %v6709_v7, 16 }
 0x15b   : > { %1040 = vmatmul.bf16.gmra.mxu1 %v5584_v21  ;;  %v3258_v44 = vsel %vm5937_vm2, %v3253_v55, %v3257_v31  ;;  %v5649_v31 = vld [vmem:[%s5922_s20 + $0x18] sm:$0xff] }
 0x15c   : > { %v1694_v33 = vpop.f32.mrf.mxu3  ;;  %1421 = vmatmul.bf16.gmra.mxu2 %v1273_v29  ;;  %v3945_v29 = vrot.slane %v6692_v18, 5  ;;  %v6722_v22 = vrot.slane %v3279_v32, 5  ;;  %v3285_v53 = vrot.slane %v3283_v57, 4 }
 0x15d   : > { %v1755_v42 = vadd.f32 %v1694_v33, %v1440_v62  ;;  %v5486_v62 = vld [vmem:[%s5922_s20 + $0x18] sm:$0xe] }
 0x15e   : > { %v5502_v33 = vrot.slane %v5486_v62, 9  ;;  %v3947_v61 = vrot.slane %v3945_v29, 4 }
 0x15f   : > { %v1382_v4 = vpop.f32.mrf.mxu2  ;;  %v6711_v45 = vadd.f32 %v2376_v0, %v1755_v42  ;;  %v3268_v0 = vsel %vm5937_vm2, %v3263_v16, %v3267_v11  ;;  %v3272_v42 = vrot.slane %v3270_v37, 4  ;;  %v5167_v16 = vld [vmem:[%s5922_s20 + $0x18] sm:$0xe]  ;;  %v3286_v37 = vor.u32 %v3285_v53, %v6722_v22 }
 0x160   : > { %v1441_v8 = vadd.f32 %v1382_v4, %v1002_v23  ;;  %v3946_v11 = vsel %vm6237_vm5, %v5502_v33, %v3945_v29  ;;  %v3949_v62 = vsel %vm6237_vm5, %v3947_v61, %v3948_v20  ;;  %v5183_v57 = vrot.slane %v5167_v16, 9  ;;  %v5396_v16 = vld [vmem:[%s5922_s20 + $0x30] sm:$0xf] }
 0x161   : > { %1736 = vmatmul.bf16.gmra.mxu3 %v5624_v13  ;;  %v1003_v9 = vpop.f32.mrf.mxu1  ;;  %v4072_v29 = vunpack.c.l.b16 %v3946_v11  ;;  %v4073_v33 = vunpack.c.l.b16 %v3949_v62  ;;  %v6751_v11 = vld [vmem:[%s5922_s20 + $0x34] sm:$0xf] }
 0x162   : > { %v2379_v21 = vpop.f32.mrf.mxu0  ;;  %v1004_v18 = vadd.f32 %v1003_v9, %v6476_v3  ;;  %v3646_v3 = vunpack.c.l.b16 %v3258_v44  ;;  %v3647_v9 = vunpack.c.l.b16 %v3268_v0 }
 0x164   : > { %v1697_v54 = vpop.f32.mrf.mxu3 }
 0x165   : > { %2418 = vmatmul.bf16.gmra.mxu0 %v2270_v19  ;;  %v1756_v26 = vadd.f32 %v1697_v54, %v1441_v8  ;;  %v2529_v19 = vrot.slane %v5845_v56, 5  ;;  %v6729_v8 = vld [vmem:[%s5922_s20 + $0x2c] sm:$0x1]  ;;  %v5487_v56 = vld [vmem:[%s5922_s20 + $0x24] sm:$0xe] }
 0x166   : > { %v3289_v27 = vshll.u32 %v6729_v8, 16 }
 0x167   : > { %v1384_v13 = vpop.f32.mrf.mxu2  ;;  %v6724_v23 = vadd.f32 %v2379_v21, %v1756_v26  ;;  %v3276_v21 = vor.u32 %v3275_v49, %v3272_v42  ;;  %v2531_v54 = vrot.slane %v2529_v19, 4  ;;  %v5846_v26 = vld [vmem:[%s5922_s20 + $0x20] sm:$0x1]  ;;  %v3287_v42 = vrot.slane %v3286_v37, 4 }
 0x168   : > { %v1442_v4 = vadd.f32 %v1384_v13, %v1004_v18  ;;  %v2532_v44 = vrot.slane %v5846_v26, 5  ;;  %v3678_v18 = vpack.c.b16 %v3647_v9, %v3646_v3  ;;  %v3291_v13 = vrot.slane %v3289_v27, 5 }
 0x169   : > { %v1006_v55 = vpop.f32.mrf.mxu1  ;;  %v3277_v20 = vrot.slane %v3276_v21, 4  ;;  %v2530_v53 = vsel %vm6237_vm5, %v5183_v57, %v2529_v19  ;;  %v4104_v3 = vpack.c.b16 %v4073_v33, %v4072_v29  ;;  %v5503_v37 = vrot.slane %v5487_v56, 9 }
 0x16a   : > { %v2381_v35 = vpop.f32.mrf.mxu0  ;;  %v1007_v61 = vadd.f32 %v1006_v55, %v6355_v17  ;;  %v2651_v62 = vunpack.c.l.b16 %v2530_v53  ;;  %v3294_v57 = vshrl.u32 %v5396_v16, 16  ;;  %v3955_v26 = vrot.slane %v6729_v8, 5  ;;  %v5168_v53 = vld [vmem:[%s5922_s20 + $0x24] sm:$0xe] }
 0x16b   : > { %2769 = vmatmul.bf16.vlgmr.msra.gmra.mxu1 %v6686_v46  ;;  %v3282_v19 = vsel %vm5937_vm2, %v3277_v20, %v6722_v22 }
 0x16c   : > { %v1699_v32 = vpop.f32.mrf.mxu3  ;;  %3084 = vmatmul.bf16.vlgmr.msra.gmra.mxu2 %v5649_v31  ;;  %v2533_v31 = vsel %vm6237_vm5, %v2531_v54, %v2532_v44  ;;  %v3303_v44 = vshll.u32 %v6751_v11, 16  ;;  %v3648_v33 = vunpack.c.l.b16 %v3282_v19  ;;  %v3296_v8 = vrot.slane %v3294_v57, 4 }
 0x16d   : > { %v1757_v0 = vadd.f32 %v1699_v32, %v1442_v4  ;;  %v3952_v4 = vrot.slane %v6709_v7, 5  ;;  %v2652_v21 = vunpack.c.l.b16 %v2533_v31  ;;  %v3292_v7 = vsel %vm5937_vm2, %v3287_v42, %v3291_v13  ;;  %v5650_v13 = vld [vmem:[%s5922_s20 + $0x24] sm:$0xff] }
 0x16f   : > { %v1387_v46 = vpop.f32.mrf.mxu2  ;;  %v6748_v17 = vadd.f32 %v2381_v35, %v1757_v0  ;;  %v3954_v32 = vrot.slane %v3952_v4, 4  ;;  %v3297_v35 = vshll.u32 %v5396_v16, 16  ;;  %v3307_v0 = vshrl.u32 %v6751_v11, 16 }
 0x170   : > { %v1443_v49 = vadd.f32 %v1387_v46, %v1007_v61  ;;  %v2682_v29 = vpack.c.b16 %v2652_v21, %v2651_v62  ;;  %v5847_v61 = vld [vmem:[%s5922_s20 + $0x28] sm:$0xf]  ;;  %v5184_v21 = vrot.slane %v5168_v53, 9 }
 0x171   : > { %3766 = vmatmul.bf16.vlgmr.msra.gmra.mxu3 %v3678_v18  ;;  %v1008_v9 = vpop.f32.mrf.mxu1  ;;  %v2536_v46 = vrot.slane %v5847_v61, 5  ;;  %v3299_v31 = vrot.slane %v3297_v35, 5  ;;  %v3309_v16 = vrot.slane %v3307_v0, 4  ;;  %v5399_v61 = vld [vmem:[%s5922_s20 + $0x3c] sm:$0xf] }
 0x172   : > { %v2384_v55 = vpop.f32.mrf.mxu0  ;;  %v1009_v22 = vadd.f32 %v1008_v9, %v6379_v39  ;;  %v3956_v39 = vsel %vm6237_vm5, %v3954_v32, %v3955_v26  ;;  %v6771_v9 = vrot.slane %v3303_v44, 5 }
 0x173   : > { %v2538_v19 = vrot.slane %v2536_v46, 4 }
 0x174   : > { %v1702_v27 = vpop.f32.mrf.mxu3  ;;  %v3310_v26 = vor.u32 %v3309_v16, %v6771_v9  ;;  %v5488_v16 = vld [vmem:[%s5922_s20 + $0x30] sm:$0xe] }
 0x175   : > { %4192 = vmatmul.bf16.vlgmr.msra.gmra.mxu0 %v4104_v3  ;;  %v1758_v54 = vadd.f32 %v1702_v27, %v1443_v49  ;;  %v3649_v49 = vunpack.c.l.b16 %v3292_v7  ;;  %v3953_v3 = vsel %vm6237_vm5, %v5503_v37, %v3952_v4  ;;  %v5848_v27 = vld [vmem:[%s5922_s20 + $0x2c] sm:$0x1]  ;;  %v4075_v4 = vunpack.c.l.b16 %v3956_v39 }
 0x176   : > { %v2539_v7 = vrot.slane %v5848_v27, 5  ;;  %v4074_v35 = vunpack.c.l.b16 %v3953_v3  ;;  %v3300_v37 = vor.u32 %v3299_v31, %v3296_v8 }
 0x177   : > { %v1389_v18 = vpop.f32.mrf.mxu2  ;;  %v6763_v20 = vadd.f32 %v2384_v55, %v1758_v54  ;;  %v6774_v55 = vld [vmem:[%s5922_s20 + $0x38] sm:$0x1]  ;;  %v3679_v32 = vpack.c.b16 %v3649_v49, %v3648_v33  ;;  %v3311_v49 = vrot.slane %v3310_v26, 4 }
 0x178   : > { %v1444_v42 = vadd.f32 %v1389_v18, %v1009_v22  ;;  %v3313_v44 = vshll.u32 %v6774_v55, 16  ;;  %v2537_v18 = vsel %vm6237_vm5, %v5184_v21, %v2536_v46  ;;  %v3301_v8 = vrot.slane %v3300_v37, 4 }
 0x179   : > { %v1011_v56 = vpop.f32.mrf.mxu1  ;;  %v2653_v46 = vunpack.c.l.b16 %v2537_v18  ;;  %v3318_v21 = vshrl.u32 %v5399_v61, 16  ;;  %v3962_v26 = vrot.slane %v6774_v55, 5 }
 0x17a   : > { %v2386_v62 = vpop.f32.mrf.mxu0  ;;  %v1012_v0 = vadd.f32 %v1011_v56, %v6399_v2  ;;  %v3315_v31 = vrot.slane %v3313_v44, 5  ;;  %v3959_v2 = vrot.slane %v6751_v11, 5 }
 0x17b   : > { %2774 = vmatmul.bf16.gmra.mxu1 %v2682_v29  ;;  %v2540_v29 = vsel %vm6237_vm5, %v2538_v19, %v2539_v7  ;;  %v3321_v19 = vshll.u32 %v5399_v61, 16  ;;  %v3320_v44 = vrot.slane %v3318_v21, 4 }
 0x17c   : > { %v1704_v57 = vpop.f32.mrf.mxu3  ;;  %3089 = vmatmul.bf16.gmra.mxu2 %v5650_v13  ;;  %v4105_v13 = vpack.c.b16 %v4075_v4, %v4074_v35  ;;  %v2654_v39 = vunpack.c.l.b16 %v2540_v29  ;;  %v3306_v35 = vsel %vm5937_vm2, %v3301_v8, %v6771_v9  ;;  %v5504_v4 = vrot.slane %v5488_v16, 9 }
 0x17d   : > { %v1759_v54 = vadd.f32 %v1704_v57, %v1444_v42  ;;  %v6786_v42 = vld [vmem:[%s5922_s20 + $0x40] sm:$0xf]  ;;  %v3961_v37 = vrot.slane %v3959_v2, 4 }
 0x17e   : > { %v3327_v27 = vshll.u32 %v6786_v42, 16  ;;  %v3331_v7 = vshrl.u32 %v6786_v42, 16 }
 0x17f   : > { %v1392_v22 = vpop.f32.mrf.mxu2  ;;  %v6789_v56 = vadd.f32 %v2386_v62, %v1759_v54  ;;  %v3316_v62 = vsel %vm5937_vm2, %v3311_v49, %v3315_v31  ;;  %v6808_v49 = vld [vmem:[%s5922_s20 + $0x44] sm:$0x1]  ;;  %v3963_v16 = vsel %vm6237_vm5, %v3961_v37, %v3962_v26 }
 0x180   : > { %v1445_v53 = vadd.f32 %v1392_v22, %v1012_v0  ;;  %v3323_v22 = vrot.slane %v3321_v19, 5  ;;  %v6801_v9 = vrot.slane %v3327_v27, 5  ;;  %v3333_v18 = vrot.slane %v3331_v7, 4 }
 0x181   : > { %3771 = vmatmul.bf16.gmra.mxu3 %v3679_v32  ;;  %v1013_v33 = vpop.f32.mrf.mxu1  ;;  %v2683_v32 = vpack.c.b16 %v2654_v39, %v2653_v46  ;;  %v3651_v31 = vunpack.c.l.b16 %v3316_v62  ;;  %v5169_v46 = vld [vmem:[%s5922_s20 + $0x30] sm:$0xe]  ;;  %v3960_v39 = vsel %vm6237_vm5, %v5504_v4, %v3959_v2  ;;  %v3337_v19 = vshll.u32 %v6808_v49, 16 }
 0x182   : > { %v2389_v3 = vpop.f32.mrf.mxu0  ;;  %v1014_v54 = vadd.f32 %v1013_v33, %v6414_v25  ;;  %v3650_v33 = vunpack.c.l.b16 %v3306_v35  ;;  %v3334_v21 = vor.u32 %v3333_v18, %v6801_v9  ;;  %v5185_v7 = vrot.slane %v5169_v46, 9  ;;  %v5850_v35 = vld [vmem:[%s5922_s20 + $0x38] sm:$0x1]  ;;  %v5402_v46 = vld [vmem:[%s5922_s20 + $0x48] sm:$0xf] }
 0x183   : > { %v4076_v2 = vunpack.c.l.b16 %v3960_v39  ;;  %v4077_v4 = vunpack.c.l.b16 %v3963_v16  ;;  %v6829_v39 = vld [vmem:[%s5922_s20 + $0x4c] sm:$0xf] }
 0x184   : > { %v1707_v57 = vpop.f32.mrf.mxu3 }
 0x185   : > { %4197 = vmatmul.bf16.gmra.mxu0 %v4105_v13  ;;  %v1760_v11 = vadd.f32 %v1707_v57, %v1445_v53  ;;  %v5651_v13 = vld [vmem:[%s5922_s20 + $0x30] sm:$0xff] }
 0x186   : > { %v5849_v53 = vld [vmem:[%s5922_s20 + $0x34] sm:$0xf] }
 0x187   : > { %v1394_v0 = vpop.f32.mrf.mxu2  ;;  %v6803_v29 = vadd.f32 %v2389_v3, %v1760_v11  ;;  %v2543_v8 = vrot.slane %v5849_v53, 5  ;;  %v3324_v3 = vor.u32 %v3323_v22, %v3320_v44  ;;  %v2546_v11 = vrot.slane %v5850_v35, 5  ;;  %v5489_v53 = vld [vmem:[%s5922_s20 + $0x3c] sm:$0xe] }
 0x188   : > { %v1446_v61 = vadd.f32 %v1394_v0, %v1014_v54  ;;  %v3680_v54 = vpack.c.b16 %v3651_v31, %v3650_v33  ;;  %v3335_v44 = vrot.slane %v3334_v21, 4  ;;  %v3339_v0 = vrot.slane %v3337_v19, 5 }
 0x189   : > { %v1016_v25 = vpop.f32.mrf.mxu1  ;;  %v2545_v57 = vrot.slane %v2543_v8, 4  ;;  %v3325_v26 = vrot.slane %v3324_v3, 4  ;;  %v2544_v18 = vsel %vm6237_vm5, %v5185_v7, %v2543_v8  ;;  %v4106_v33 = vpack.c.b16 %v4077_v4, %v4076_v2 }
 0x18a   : > { %v2391_v55 = vpop.f32.mrf.mxu0  ;;  %v1017_v37 = vadd.f32 %v1016_v25, %v6429_v58  ;;  %v2655_v16 = vunpack.c.l.b16 %v2544_v18  ;;  %v5505_v21 = vrot.slane %v5489_v53, 9  ;;  %v3342_v7 = vshrl.u32 %v5402_v46, 16  ;;  %v5170_v18 = vld [vmem:[%s5922_s20 + $0x3c] sm:$0xe] }
 0x18b   : > { %2779 = vmatmul.bf16.gmra.mxu1 %v2683_v32  ;;  %v3330_v8 = vsel %vm5937_vm2, %v3325_v26, %v6801_v9  ;;  %v3969_v35 = vrot.slane %v6808_v49, 5 }
 0x18c   : > { %v1709_v27 = vpop.f32.mrf.mxu3  ;;  %3094 = vmatmul.bf16.gmra.mxu2 %v5651_v13  ;;  %v2547_v13 = vsel %vm6237_vm5, %v2545_v57, %v2546_v11  ;;  %v3351_v11 = vshll.u32 %v6829_v39, 16  ;;  %v3652_v4 = vunpack.c.l.b16 %v3330_v8  ;;  %v3344_v49 = vrot.slane %v3342_v7, 4 }
 0x18d   : > { %v1761_v62 = vadd.f32 %v1709_v27, %v1446_v61  ;;  %v3966_v61 = vrot.slane %v6786_v42, 5  ;;  %v2656_v3 = vunpack.c.l.b16 %v2547_v13  ;;  %v3340_v42 = vsel %vm5937_vm2, %v3335_v44, %v3339_v0  ;;  %v5652_v0 = vld [vmem:[%s5922_s20 + $0x3c] sm:$0xff] }
 0x18f   : > { %v1397_v32 = vpop.f32.mrf.mxu2  ;;  %v6826_v58 = vadd.f32 %v2391_v55, %v1761_v62  ;;  %v3968_v27 = vrot.slane %v3966_v61, 4  ;;  %v3345_v55 = vshll.u32 %v5402_v46, 16  ;;  %v3355_v62 = vshrl.u32 %v6829_v39, 16 }
 0x190   : > { %v1447_v22 = vadd.f32 %v1397_v32, %v1017_v37  ;;  %v2684_v2 = vpack.c.b16 %v2656_v3, %v2655_v16  ;;  %v5851_v37 = vld [vmem:[%s5922_s20 + $0x40] sm:$0xf]  ;;  %v5186_v3 = vrot.slane %v5170_v18, 9 }
 0x191   : > { %3776 = vmatmul.bf16.gmra.mxu3 %v3680_v54  ;;  %v1018_v31 = vpop.f32.mrf.mxu1  ;;  %v2550_v32 = vrot.slane %v5851_v37, 5  ;;  %v3347_v13 = vrot.slane %v3345_v55, 5  ;;  %v3357_v46 = vrot.slane %v3355_v62, 4  ;;  %v5405_v37 = vld [vmem:[%s5922_s20 + $0x54] sm:$0xf] }
 0x192   : > { %v2394_v25 = vpop.f32.mrf.mxu0  ;;  %v1019_v9 = vadd.f32 %v1018_v31, %v6452_v51  ;;  %v3970_v51 = vsel %vm6237_vm5, %v3968_v27, %v3969_v35  ;;  %v6849_v31 = vrot.slane %v3351_v11, 5 }
 0x193   : > { %v2552_v8 = vrot.slane %v2550_v32, 4 }
 0x194   : > { %v1712_v19 = vpop.f32.mrf.mxu3  ;;  %v3358_v35 = vor.u32 %v3357_v46, %v6849_v31  ;;  %v5490_v46 = vld [vmem:[%s5922_s20 + $0x48] sm:$0xe] }
 0x195   : > { %4202 = vmatmul.bf16.gmra.mxu0 %v4106_v33  ;;  %v1762_v57 = vadd.f32 %v1712_v19, %v1447_v22  ;;  %v3653_v22 = vunpack.c.l.b16 %v3340_v42  ;;  %v3967_v33 = vsel %vm6237_vm5, %v5505_v21, %v3966_v61  ;;  %v5852_v19 = vld [vmem:[%s5922_s20 + $0x44] sm:$0x1]  ;;  %v4079_v61 = vunpack.c.l.b16 %v3970_v51 }
 0x196   : > { %v2553_v42 = vrot.slane %v5852_v19, 5  ;;  %v4078_v55 = vunpack.c.l.b16 %v3967_v33  ;;  %v3348_v21 = vor.u32 %v3347_v13, %v3344_v49 }
 0x197   : > { %v1399_v54 = vpop.f32.mrf.mxu2  ;;  %v6841_v26 = vadd.f32 %v2394_v25, %v1762_v57  ;;  %v6852_v25 = vld [vmem:[%s5922_s20 + $0x50] sm:$0x1]  ;;  %v3681_v27 = vpack.c.b16 %v3653_v22, %v3652_v4  ;;  %v3359_v22 = vrot.slane %v3358_v35, 4 }
 0x198   : > { %v1448_v44 = vadd.f32 %v1399_v54, %v1019_v9  ;;  %v3361_v11 = vshll.u32 %v6852_v25, 16  ;;  %v2551_v54 = vsel %vm6237_vm5, %v5186_v3, %v2550_v32  ;;  %v3349_v49 = vrot.slane %v3348_v21, 4 }
 0x199   : > { %v1021_v53 = vpop.f32.mrf.mxu1  ;;  %v2657_v32 = vunpack.c.l.b16 %v2551_v54  ;;  %v3366_v3 = vshrl.u32 %v5405_v37, 16  ;;  %v3976_v35 = vrot.slane %v6852_v25, 5 }
 0x19a   : > { %v2396_v16 = vpop.f32.mrf.mxu0  ;;  %v1022_v62 = vadd.f32 %v1021_v53, %v6473_v14  ;;  %v3363_v13 = vrot.slane %v3361_v11, 5  ;;  %v3973_v14 = vrot.slane %v6829_v39, 5 }
 0x19b   : > { %2784 = vmatmul.bf16.gmra.mxu1 %v2684_v2  ;;  %v2554_v2 = vsel %vm6237_vm5, %v2552_v8, %v2553_v42  ;;  %v3369_v8 = vshll.u32 %v5405_v37, 16  ;;  %v3368_v11 = vrot.slane %v3366_v3, 4 }
 0x19c   : > { %v1714_v7 = vpop.f32.mrf.mxu3  ;;  %3099 = vmatmul.bf16.gmra.mxu2 %v5652_v0  ;;  %v4107_v0 = vpack.c.b16 %v4079_v61, %v4078_v55  ;;  %v2658_v51 = vunpack.c.l.b16 %v2554_v2  ;;  %v3354_v55 = vsel %vm5937_vm2, %v3349_v49, %v6849_v31  ;;  %v5506_v61 = vrot.slane %v5490_v46, 9 }
 0x19d   : > { %v1763_v57 = vadd.f32 %v1714_v7, %v1448_v44  ;;  %v6864_v44 = vld [vmem:[%s5922_s20 + $0x58] sm:$0xf]  ;;  %v3975_v21 = vrot.slane %v3973_v14, 4 }
 0x19e   : > { %v3375_v19 = vshll.u32 %v6864_v44, 16  ;;  %v3379_v42 = vshrl.u32 %v6864_v44, 16 }
 0x19f   : > { %v1402_v9 = vpop.f32.mrf.mxu2  ;;  %v6867_v53 = vadd.f32 %v2396_v16, %v1763_v57  ;;  %v3364_v16 = vsel %vm5937_vm2, %v3359_v22, %v3363_v13  ;;  %v6886_v22 = vld [vmem:[%s5922_s20 + $0x5c] sm:$0x1]  ;;  %v3977_v46 = vsel %vm6237_vm5, %v3975_v21, %v3976_v35 }
 0x1a0   : > { %v1449_v18 = vadd.f32 %v1402_v9, %v1022_v62  ;;  %v3371_v9 = vrot.slane %v3369_v8, 5  ;;  %v6879_v31 = vrot.slane %v3375_v19, 5  ;;  %v3381_v54 = vrot.slane %v3379_v42, 4 }
 0x1a1   : > { %3781 = vmatmul.bf16.gmra.mxu3 %v3681_v27  ;;  %v1023_v4 = vpop.f32.mrf.mxu1  ;;  %v2685_v27 = vpack.c.b16 %v2658_v51, %v2657_v32  ;;  %v3655_v13 = vunpack.c.l.b16 %v3364_v16  ;;  %v5171_v32 = vld [vmem:[%s5922_s20 + $0x48] sm:$0xe]  ;;  %v3974_v51 = vsel %vm6237_vm5, %v5506_v61, %v3973_v14  ;;  %v3385_v8 = vshll.u32 %v6886_v22, 16 }
 0x1a2   : > { %v2399_v33 = vpop.f32.mrf.mxu0  ;;  %v1024_v57 = vadd.f32 %v1023_v4, %v6488_v38  ;;  %v3654_v4 = vunpack.c.l.b16 %v3354_v55  ;;  %v3382_v3 = vor.u32 %v3381_v54, %v6879_v31  ;;  %v5187_v42 = vrot.slane %v5171_v32, 9  ;;  %v5854_v55 = vld [vmem:[%s5922_s20 + $0x50] sm:$0x1]  ;;  %v5408_v32 = vld [vmem:[%s5922_s20 + $0x60] sm:$0xf] }
 0x1a3   : > { %v4080_v14 = vunpack.c.l.b16 %v3974_v51  ;;  %v4081_v61 = vunpack.c.l.b16 %v3977_v46  ;;  %v6907_v51 = vld [vmem:[%s5922_s20 + $0x64] sm:$0xf] }
 0x1a4   : > { %v1717_v7 = vpop.f32.mrf.mxu3 }
 0x1a5   : > { %4207 = vmatmul.bf16.gmra.mxu0 %v4107_v0  ;;  %v1764_v39 = vadd.f32 %v1717_v7, %v1449_v18  ;;  %v5653_v0 = vld [vmem:[%s5922_s20 + $0x48] sm:$0xff] }
 0x1a6   : > { %v5853_v18 = vld [vmem:[%s5922_s20 + $0x4c] sm:$0xf] }
 0x1a7   : > { %v1404_v62 = vpop.f32.mrf.mxu2  ;;  %v6881_v2 = vadd.f32 %v2399_v33, %v1764_v39  ;;  %v2557_v49 = vrot.slane %v5853_v18, 5  ;;  %v3372_v33 = vor.u32 %v3371_v9, %v3368_v11  ;;  %v2560_v39 = vrot.slane %v5854_v55, 5  ;;  %v5491_v18 = vld [vmem:[%s5922_s20 + $0x54] sm:$0xe] }
 0x1a8   : > { %v1450_v37 = vadd.f32 %v1404_v62, %v1024_v57  ;;  %v3682_v57 = vpack.c.b16 %v3655_v13, %v3654_v4  ;;  %v3383_v11 = vrot.slane %v3382_v3, 4  ;;  %v3387_v62 = vrot.slane %v3385_v8, 5 }
 0x1a9   : > { %v1026_v38 = vpop.f32.mrf.mxu1  ;;  %v2559_v7 = vrot.slane %v2557_v49, 4  ;;  %v3373_v35 = vrot.slane %v3372_v33, 4  ;;  %v2558_v54 = vsel %vm6237_vm5, %v5187_v42, %v2557_v49  ;;  %v4108_v4 = vpack.c.b16 %v4081_v61, %v4080_v14 }
 0x1aa   : > { %v2401_v25 = vpop.f32.mrf.mxu0  ;;  %v1027_v21 = vadd.f32 %v1026_v38, %v6358_v50  ;;  %v2659_v46 = vunpack.c.l.b16 %v2558_v54  ;;  %v5507_v3 = vrot.slane %v5491_v18, 9  ;;  %v3390_v42 = vshrl.u32 %v5408_v32, 16  ;;  %v5172_v54 = vld [vmem:[%s5922_s20 + $0x54] sm:$0xe] }
 0x1ab   : > { %2789 = vmatmul.bf16.gmra.mxu1 %v2685_v27  ;;  %v3378_v49 = vsel %vm5937_vm2, %v3373_v35, %v6879_v31  ;;  %v3983_v55 = vrot.slane %v6886_v22, 5 }
 0x1ac   : > { %v1719_v19 = vpop.f32.mrf.mxu3  ;;  %3104 = vmatmul.bf16.gmra.mxu2 %v5653_v0  ;;  %v2561_v0 = vsel %vm6237_vm5, %v2559_v7, %v2560_v39  ;;  %v3399_v39 = vshll.u32 %v6907_v51, 16  ;;  %v3656_v61 = vunpack.c.l.b16 %v3378_v49  ;;  %v3392_v22 = vrot.slane %v3390_v42, 4 }
 0x1ad   : > { %v1765_v16 = vadd.f32 %v1719_v19, %v1450_v37  ;;  %v3980_v37 = vrot.slane %v6864_v44, 5  ;;  %v2660_v33 = vunpack.c.l.b16 %v2561_v0  ;;  %v3388_v44 = vsel %vm5937_vm2, %v3383_v11, %v3387_v62  ;;  %v5654_v62 = vld [vmem:[%s5922_s20 + $0x54] sm:$0xff] }
 0x1af   : > { %v1407_v27 = vpop.f32.mrf.mxu2  ;;  %v6904_v50 = vadd.f32 %v2401_v25, %v1765_v16  ;;  %v3982_v19 = vrot.slane %v3980_v37, 4  ;;  %v3393_v25 = vshll.u32 %v5408_v32, 16  ;;  %v3403_v16 = vshrl.u32 %v6907_v51, 16 }
 0x1b0   : > { %v1451_v9 = vadd.f32 %v1407_v27, %v1027_v21  ;;  %v2686_v14 = vpack.c.b16 %v2660_v33, %v2659_v46  ;;  %v5855_v21 = vld [vmem:[%s5922_s20 + $0x58] sm:$0xf]  ;;  %v5188_v33 = vrot.slane %v5172_v54, 9 }
 0x1b1   : > { %3786 = vmatmul.bf16.gmra.mxu3 %v3682_v57  ;;  %v1028_v13 = vpop.f32.mrf.mxu1  ;;  %v2564_v27 = vrot.slane %v5855_v21, 5  ;;  %v3395_v0 = vrot.slane %v3393_v25, 5  ;;  %v3405_v32 = vrot.slane %v3403_v16, 4  ;;  %v5411_v21 = vld [vmem:[%s5922_s20 + $0x6c] sm:$0xf] }
 0x1b2   : > { %v2404_v38 = vpop.f32.mrf.mxu0  ;;  %v1029_v31 = vadd.f32 %v1028_v13, %v6381_v40  ;;  %v3984_v40 = vsel %vm6237_vm5, %v3982_v19, %v3983_v55  ;;  %v6927_v13 = vrot.slane %v3399_v39, 5 }
 0x1b3   : > { %v2566_v49 = vrot.slane %v2564_v27, 4 }
 0x1b4   : > { %v1722_v8 = vpop.f32.mrf.mxu3  ;;  %v3406_v55 = vor.u32 %v3405_v32, %v6927_v13  ;;  %v5492_v32 = vld [vmem:[%s5922_s20 + $0x60] sm:$0xe] }
 0x1b5   : > { %4212 = vmatmul.bf16.gmra.mxu0 %v4108_v4  ;;  %v1766_v7 = vadd.f32 %v1722_v8, %v1451_v9  ;;  %v3657_v9 = vunpack.c.l.b16 %v3388_v44  ;;  %v3981_v4 = vsel %vm6237_vm5, %v5507_v3, %v3980_v37  ;;  %v5856_v8 = vld [vmem:[%s5922_s20 + $0x5c] sm:$0x1]  ;;  %v4083_v37 = vunpack.c.l.b16 %v3984_v40 }
 0x1b6   : > { %v2567_v44 = vrot.slane %v5856_v8, 5  ;;  %v4082_v25 = vunpack.c.l.b16 %v3981_v4  ;;  %v3396_v3 = vor.u32 %v3395_v0, %v3392_v22 }
 0x1b7   : > { %v1409_v57 = vpop.f32.mrf.mxu2  ;;  %v6919_v35 = vadd.f32 %v2404_v38, %v1766_v7  ;;  %v6930_v38 = vld [vmem:[%s5922_s20 + $0x68] sm:$0x1]  ;;  %v3683_v19 = vpack.c.b16 %v3657_v9, %v3656_v61  ;;  %v3407_v9 = vrot.slane %v3406_v55, 4 }
 0x1b8   : > { %v1452_v11 = vadd.f32 %v1409_v57, %v1029_v31  ;;  %v3409_v39 = vshll.u32 %v6930_v38, 16  ;;  %v2565_v57 = vsel %vm6237_vm5, %v5188_v33, %v2564_v27  ;;  %v3397_v22 = vrot.slane %v3396_v3, 4 }
 0x1b9   : > { %v1031_v18 = vpop.f32.mrf.mxu1  ;;  %v2661_v27 = vunpack.c.l.b16 %v2565_v57  ;;  %v3414_v33 = vshrl.u32 %v5411_v21, 16  ;;  %v3990_v55 = vrot.slane %v6930_v38, 5 }
 0x1ba   : > { %v2406_v46 = vpop.f32.mrf.mxu0  ;;  %v1032_v16 = vadd.f32 %v1031_v18, %v6402_v6  ;;  %v3411_v0 = vrot.slane %v3409_v39, 5  ;;  %v3987_v6 = vrot.slane %v6907_v51, 5 }
 0x1bb   : > { %2794 = vmatmul.bf16.gmra.mxu1 %v2686_v14  ;;  %v2568_v14 = vsel %vm6237_vm5, %v2566_v49, %v2567_v44  ;;  %v3417_v49 = vshll.u32 %v5411_v21, 16  ;;  %v3416_v39 = vrot.slane %v3414_v33, 4 }
 0x1bc   : > { %v1724_v42 = vpop.f32.mrf.mxu3  ;;  %3109 = vmatmul.bf16.gmra.mxu2 %v5654_v62  ;;  %v4109_v62 = vpack.c.b16 %v4083_v37, %v4082_v25  ;;  %v2662_v40 = vunpack.c.l.b16 %v2568_v14  ;;  %v3402_v25 = vsel %vm5937_vm2, %v3397_v22, %v6927_v13  ;;  %v5508_v37 = vrot.slane %v5492_v32, 9 }
 0x1bd   : > { %v1767_v7 = vadd.f32 %v1724_v42, %v1452_v11  ;;  %v6942_v11 = vld [vmem:[%s5922_s20 + $0x70] sm:$0xf]  ;;  %v3989_v3 = vrot.slane %v3987_v6, 4 }
 0x1be   : > { %v3423_v8 = vshll.u32 %v6942_v11, 16  ;;  %v3427_v44 = vshrl.u32 %v6942_v11, 16 }
 0x1bf   : > { %v1412_v31 = vpop.f32.mrf.mxu2  ;;  %v6945_v18 = vadd.f32 %v2406_v46, %v1767_v7  ;;  %v3412_v46 = vsel %vm5937_vm2, %v3407_v9, %v3411_v0  ;;  %v6964_v9 = vld [vmem:[%s5922_s20 + $0x74] sm:$0x1]  ;;  %v3991_v32 = vsel %vm6237_vm5, %v3989_v3, %v3990_v55 }
 0x1c0   : > { %v1453_v54 = vadd.f32 %v1412_v31, %v1032_v16  ;;  %v3419_v31 = vrot.slane %v3417_v49, 5  ;;  %v6957_v13 = vrot.slane %v3423_v8, 5  ;;  %v3429_v57 = vrot.slane %v3427_v44, 4 }
 0x1c1   : > { %3791 = vmatmul.bf16.gmra.mxu3 %v3683_v19  ;;  %v1033_v61 = vpop.f32.mrf.mxu1  ;;  %v2687_v19 = vpack.c.b16 %v2662_v40, %v2661_v27  ;;  %v3659_v0 = vunpack.c.l.b16 %v3412_v46  ;;  %v5173_v27 = vld [vmem:[%s5922_s20 + $0x60] sm:$0xe]  ;;  %v3988_v40 = vsel %vm6237_vm5, %v5508_v37, %v3987_v6  ;;  %v3433_v49 = vshll.u32 %v6964_v9, 16 }
 0x1c2   : > { %v2409_v4 = vpop.f32.mrf.mxu0  ;;  %v1034_v7 = vadd.f32 %v1033_v61, %v6416_v28  ;;  %v3658_v61 = vunpack.c.l.b16 %v3402_v25  ;;  %v3430_v33 = vor.u32 %v3429_v57, %v6957_v13  ;;  %v5189_v44 = vrot.slane %v5173_v27, 9  ;;  %v5858_v25 = vld [vmem:[%s5922_s20 + $0x68] sm:$0x1]  ;;  %v5414_v27 = vld [vmem:[%s5922_s20 + $0x78] sm:$0xf] }
 0x1c3   : > { %v4084_v6 = vunpack.c.l.b16 %v3988_v40  ;;  %v4085_v37 = vunpack.c.l.b16 %v3991_v32  ;;  %v6985_v40 = vld [vmem:[%s5922_s20 + $0x7c] sm:$0xf] }
 0x1c4   : > { %v1727_v42 = vpop.f32.mrf.mxu3 }
 0x1c5   : > { %4217 = vmatmul.bf16.gmra.mxu0 %v4109_v62  ;;  %v1768_v51 = vadd.f32 %v1727_v42, %v1453_v54  ;;  %v5655_v62 = vld [vmem:[%s5922_s20 + $0x60] sm:$0xff] }
 0x1c6   : > { %v5857_v54 = vld [vmem:[%s5922_s20 + $0x64] sm:$0xf] }
 0x1c7   : > { %v1414_v16 = vpop.f32.mrf.mxu2  ;;  %v6959_v14 = vadd.f32 %v2409_v4, %v1768_v51  ;;  %v2571_v22 = vrot.slane %v5857_v54, 5  ;;  %v3420_v4 = vor.u32 %v3419_v31, %v3416_v39  ;;  %v2574_v51 = vrot.slane %v5858_v25, 5  ;;  %v5493_v54 = vld [vmem:[%s5922_s20 + $0x6c] sm:$0xe] }
 0x1c8   : > { %v1454_v21 = vadd.f32 %v1414_v16, %v1034_v7  ;;  %v3684_v7 = vpack.c.b16 %v3659_v0, %v3658_v61  ;;  %v3431_v39 = vrot.slane %v3430_v33, 4  ;;  %v3435_v16 = vrot.slane %v3433_v49, 5 }
 0x1c9   : > { %v1036_v28 = vpop.f32.mrf.mxu1  ;;  %v2573_v42 = vrot.slane %v2571_v22, 4  ;;  %v3421_v55 = vrot.slane %v3420_v4, 4  ;;  %v2572_v57 = vsel %vm6237_vm5, %v5189_v44, %v2571_v22  ;;  %v4110_v61 = vpack.c.b16 %v4085_v37, %v4084_v6 }
 0x1ca   : > { %v2411_v38 = vpop.f32.mrf.mxu0  ;;  %v1037_v3 = vadd.f32 %v1036_v28, %v6434_v63  ;;  %v2663_v32 = vunpack.c.l.b16 %v2572_v57  ;;  %v5509_v33 = vrot.slane %v5493_v54, 9  ;;  %v3438_v44 = vshrl.u32 %v5414_v27, 16  ;;  %v5174_v57 = vld [vmem:[%s5922_s20 + $0x6c] sm:$0xe] }
 0x1cb   : > { %2799 = vmatmul.bf16.gmra.mxu1 %v2687_v19  ;;  %v3426_v22 = vsel %vm5937_vm2, %v3421_v55, %v6957_v13  ;;  %v3997_v25 = vrot.slane %v6964_v9, 5 }
 0x1cc   : > { %v1729_v8 = vpop.f32.mrf.mxu3  ;;  %3114 = vmatmul.bf16.gmra.mxu2 %v5655_v62  ;;  %v2575_v62 = vsel %vm6237_vm5, %v2573_v42, %v2574_v51  ;;  %v3447_v51 = vshll.u32 %v6985_v40, 16  ;;  %v3660_v37 = vunpack.c.l.b16 %v3426_v22  ;;  %v3440_v9 = vrot.slane %v3438_v44, 4 }
 0x1cd   : > { %v1769_v46 = vadd.f32 %v1729_v8, %v1454_v21  ;;  %v3994_v21 = vrot.slane %v6942_v11, 5  ;;  %v2664_v4 = vunpack.c.l.b16 %v2575_v62  ;;  %v3436_v11 = vsel %vm5937_vm2, %v3431_v39, %v3435_v16  ;;  %v5656_v16 = vld [vmem:[%s5922_s20 + $0x6c] sm:$0xff] }
 0x1cf   : > { %v1417_v19 = vpop.f32.mrf.mxu2  ;;  %v6982_v63 = vadd.f32 %v2411_v38, %v1769_v46  ;;  %v3996_v8 = vrot.slane %v3994_v21, 4  ;;  %v3441_v38 = vshll.u32 %v5414_v27, 16  ;;  %v3451_v46 = vshrl.u32 %v6985_v40, 16 }
 0x1d0   : > { %v1455_v31 = vadd.f32 %v1417_v19, %v1037_v3  ;;  %v2688_v6 = vpack.c.b16 %v2664_v4, %v2663_v32  ;;  %v5859_v3 = vld [vmem:[%s5922_s20 + $0x70] sm:$0xf]  ;;  %v5190_v4 = vrot.slane %v5174_v57, 9 }
 0x1d1   : > { %3796 = vmatmul.bf16.gmra.mxu3 %v3684_v7  ;;  %v1038_v0 = vpop.f32.mrf.mxu1  ;;  %v2578_v19 = vrot.slane %v5859_v3, 5  ;;  %v3443_v62 = vrot.slane %v3441_v38, 5  ;;  %v3453_v27 = vrot.slane %v3451_v46, 4  ;;  %v5417_v3 = vld [vmem:[%s5922_s20 + $0x84] sm:$0xf] }
 0x1d2   : > { %v2414_v28 = vpop.f32.mrf.mxu0  ;;  %v1039_v13 = vadd.f32 %v1038_v0, %v6465_v41  ;;  %v3998_v41 = vsel %vm6237_vm5, %v3996_v8, %v3997_v25  ;;  %v7005_v0 = vrot.slane %v3447_v51, 5 }
 0x1d3   : > { %v2580_v22 = vrot.slane %v2578_v19, 4 }
 0x1d4   : > { %v1732_v49 = vpop.f32.mrf.mxu3  ;;  %v3454_v25 = vor.u32 %v3453_v27, %v7005_v0  ;;  %v5494_v27 = vld [vmem:[%s5922_s20 + $0x78] sm:$0xe] }
 0x1d5   : > { %4222 = vmatmul.bf16.gmra.mxu0 %v4110_v61  ;;  %v1770_v42 = vadd.f32 %v1732_v49, %v1455_v31  ;;  %v3661_v31 = vunpack.c.l.b16 %v3436_v11  ;;  %v3995_v61 = vsel %vm6237_vm5, %v5509_v33, %v3994_v21  ;;  %v5860_v49 = vld [vmem:[%s5922_s20 + $0x74] sm:$0x1]  ;;  %v4087_v21 = vunpack.c.l.b16 %v3998_v41 }
 0x1d6   : > { %v2581_v11 = vrot.slane %v5860_v49, 5  ;;  %v4086_v38 = vunpack.c.l.b16 %v3995_v61  ;;  %v3444_v33 = vor.u32 %v3443_v62, %v3440_v9 }
 0x1d7   : > { %v1419_v7 = vpop.f32.mrf.mxu2  ;;  %v6997_v55 = vadd.f32 %v2414_v28, %v1770_v42  ;;  %v7008_v28 = vld [vmem:[%s5922_s20 + $0x80] sm:$0x1]  ;;  %v3685_v8 = vpack.c.b16 %v3661_v31, %v3660_v37  ;;  %v3455_v31 = vrot.slane %v3454_v25, 4 }
 0x1d8   : > { %v1456_v39 = vadd.f32 %v1419_v7, %v1039_v13  ;;  %v3457_v51 = vshll.u32 %v7008_v28, 16  ;;  %v2579_v7 = vsel %vm6237_vm5, %v5190_v4, %v2578_v19  ;;  %v3445_v9 = vrot.slane %v3444_v33, 4 }
 0x1d9   : > { %v1041_v54 = vpop.f32.mrf.mxu1  ;;  %v2665_v19 = vunpack.c.l.b16 %v2579_v7  ;;  %v3462_v4 = vshrl.u32 %v5417_v3, 16  ;;  %v4004_v25 = vrot.slane %v7008_v28, 5 }
 0x1da   : > { %v2416_v32 = vpop.f32.mrf.mxu0  ;;  %v1042_v46 = vadd.f32 %v1041_v54, %v6485_v15  ;;  %v3459_v62 = vrot.slane %v3457_v51, 5  ;;  %v4001_v15 = vrot.slane %v6985_v40, 5 }
 0x1db   : > { %2804 = vmatmul.bf16.gmra.mxu1 %v2688_v6  ;;  %v2582_v6 = vsel %vm6237_vm5, %v2580_v22, %v2581_v11  ;;  %v3465_v22 = vshll.u32 %v5417_v3, 16  ;;  %v3464_v51 = vrot.slane %v3462_v4, 4 }
 0x1dc   : > { %v1734_v44 = vpop.f32.mrf.mxu3  ;;  %3119 = vmatmul.bf16.gmra.mxu2 %v5656_v16  ;;  %v4111_v16 = vpack.c.b16 %v4087_v21, %v4086_v38  ;;  %v2666_v41 = vunpack.c.l.b16 %v2582_v6  ;;  %v3450_v38 = vsel %vm5937_vm2, %v3445_v9, %v7005_v0  ;;  %v5510_v21 = vrot.slane %v5494_v27, 9 }
 0x1dd   : > { %v1771_v42 = vadd.f32 %v1734_v44, %v1456_v39  ;;  %v7020_v39 = vld [vmem:[%s5922_s20 + $0x88] sm:$0xf]  ;;  %v4003_v33 = vrot.slane %v4001_v15, 4 }
 0x1de   : > { %v3471_v49 = vshll.u32 %v7020_v39, 16  ;;  %v3475_v11 = vshrl.u32 %v7020_v39, 16  ;;  %v4002_v27 = vsel %vm6237_vm5, %v5510_v21, %v4001_v15 }
 0x1df   : > { %v1422_v13 = vpop.f32.mrf.mxu2  ;;  %v7023_v54 = vadd.f32 %v2416_v32, %v1771_v42  ;;  %v3460_v32 = vsel %vm5937_vm2, %v3455_v31, %v3459_v62  ;;  %v7042_v31 = vld [vmem:[%s5922_s20 + $0x8c] sm:$0x1]  ;;  %v4088_v15 = vunpack.c.l.b16 %v4002_v27 }
 0x1e0   : > { %v1457_v57 = vadd.f32 %v1422_v13, %v1042_v46  ;;  %v3467_v13 = vrot.slane %v3465_v22, 5  ;;  %v7035_v0 = vrot.slane %v3471_v49, 5  ;;  %v3477_v7 = vrot.slane %v3475_v11, 4 }
 0x1e1   : > { %3801 = vmatmul.bf16.gmra.mxu3 %v3685_v8  ;;  %v1043_v37 = vpop.f32.mrf.mxu1  ;;  %v2689_v8 = vpack.c.b16 %v2666_v41, %v2665_v19  ;;  %v5175_v19 = vld [vmem:[%s5922_s20 + $0x78] sm:$0xe]  ;;  %v3481_v49 = vshll.u32 %v7042_v31, 16 }
 0x1e2   : > { %v2419_v61 = vpop.f32.mrf.mxu0  ;;  %v1044_v42 = vadd.f32 %v1043_v37, %v6500_v1  ;;  %v3662_v1 = vunpack.c.l.b16 %v3450_v38  ;;  %v3663_v37 = vunpack.c.l.b16 %v3460_v32  ;;  %v3468_v4 = vor.u32 %v3467_v13, %v3464_v51 }
 0x1e3   : > { %v3478_v22 = vor.u32 %v3477_v7, %v7035_v0 }
 0x1e4   : > { %v1737_v44 = vpop.f32.mrf.mxu3 }
 0x1e5   : > { %4227 = vmatmul.bf16.gmra.mxu0 %v4111_v16  ;;  %v1772_v40 = vadd.f32 %v1737_v44, %v1457_v57  ;;  %v5657_v16 = vld [vmem:[%s5922_s20 + $0x78] sm:$0xff]  ;;  %v5191_v44 = vrot.slane %v5175_v19, 9 }
 0x1e6   : > { %v5861_v57 = vld [vmem:[%s5922_s20 + $0x7c] sm:$0xf] }
 0x1e7   : > { %v1424_v46 = vpop.f32.mrf.mxu2  ;;  %v7037_v6 = vadd.f32 %v2419_v61, %v1772_v40  ;;  %v2585_v9 = vrot.slane %v5861_v57, 5  ;;  %v4005_v61 = vsel %vm6237_vm5, %v4003_v33, %v4004_v25  ;;  %v5862_v40 = vld [vmem:[%s5922_s20 + $0x80] sm:$0x1]  ;;  %v3469_v33 = vrot.slane %v3468_v4, 4 }
 0x1e8   : > { %v1458_v3 = vadd.f32 %v1424_v46, %v1044_v42  ;;  %v2588_v32 = vrot.slane %v5862_v40, 5  ;;  %v3686_v42 = vpack.c.b16 %v3663_v37, %v3662_v1  ;;  %v4089_v21 = vunpack.c.l.b16 %v4005_v61  ;;  %v5420_v1 = vld [vmem:[%s5922_s20 + $0x90] sm:$0xf]  ;;  %v7064_v61 = vld [vmem:[%s5922_s20 + $0x94] sm:$0xf] }
 0x1e9   : > { %7824 = vst [vmem:[#allocation4_spill] sm:$0xff] %v7037_v6  ;;  %v2770_v62 = vpop.f32.mrf.mxu1  ;;  %v2587_v38 = vrot.slane %v2585_v9, 4  ;;  %v3483_v25 = vrot.slane %v3481_v49, 5  ;;  %v2586_v13 = vsel %vm6237_vm5, %v5191_v44, %v2585_v9  ;;  %v4008_v57 = vrot.slane %v7020_v39, 5 }
 0x1ea   : > { %v2421_v28 = vpop.f32.mrf.mxu0  ;;  %v2850_v41 = vadd.f32 %v2770_v62, %v6526_v59  ;;  %v3474_v9 = vsel %vm5937_vm2, %v3469_v33, %v7035_v0  ;;  %v3486_v44 = vshrl.u32 %v5420_v1, 16  ;;  %v3495_v40 = vshll.u32 %v7064_v61, 16 }
 0x1eb   : > { %2809 = vmatmul.bf16.gmra.mxu1 %v2689_v8  ;;  %v3479_v8 = vrot.slane %v3478_v22, 4  ;;  %v2589_v7 = vsel %vm6237_vm5, %v2587_v38, %v2588_v32  ;;  %v3489_v38 = vshll.u32 %v5420_v1, 16  ;;  %v3499_v32 = vshrl.u32 %v7064_v61, 16 }
 0x1ec   : > { %v1739_v11 = vpop.f32.mrf.mxu3  ;;  %3124 = vmatmul.bf16.gmra.mxu2 %v5657_v16  ;;  %v5495_v16 = vld [vmem:[%s5922_s20 + $0x84] sm:$0xe]  ;;  %v2668_v4 = vunpack.c.l.b16 %v2589_v7 }
 0x1ed   : > { %v1773_v59 = vadd.f32 %v1739_v11, %v1458_v3  ;;  %v4112_v3 = vpack.c.b16 %v4089_v21, %v4088_v15  ;;  %v5511_v22 = vrot.slane %v5495_v16, 9  ;;  %v3484_v49 = vsel %vm5937_vm2, %v3479_v8, %v3483_v25  ;;  %v5863_v21 = vld [vmem:[%s5922_s20 + $0x88] sm:$0xf] }
 0x1ee   : > { %v4011_v11 = vrot.slane %v7042_v31, 5  ;;  %v3664_v15 = vunpack.c.l.b16 %v3474_v9  ;;  %v5658_v8 = vld [vmem:[%s5922_s20 + $0x84] sm:$0xff]  ;;  %v3665_v31 = vunpack.c.l.b16 %v3484_v49  ;;  %v3488_v16 = vrot.slane %v3486_v44, 4 }
 0x1ef   : > { %v3085_v46 = vpop.f32.mrf.mxu2  ;;  %v7060_v37 = vadd.f32 %v2421_v28, %v1773_v59  ;;  %v4010_v28 = vrot.slane %v4008_v57, 4  ;;  %v4009_v25 = vsel %vm6237_vm5, %v5511_v22, %v4008_v57  ;;  %v3501_v1 = vrot.slane %v3499_v32, 4  ;;  %v5864_v57 = vld [vmem:[%s5922_s20 + $0x8c] sm:$0x1] }
 0x1f0   : > { %v3165_v51 = vadd.f32 %v3085_v46, %v2850_v41  ;;  %v2667_v41 = vunpack.c.l.b16 %v2586_v13  ;;  %v2592_v46 = vrot.slane %v5863_v21, 5  ;;  %v5176_v13 = vld [vmem:[%s5922_s20 + $0x84] sm:$0xe]  ;;  %v2595_v22 = vrot.slane %v5864_v57, 5  ;;  %v5423_v21 = vld [vmem:[%s5922_s20 + $0x9c] sm:$0xf] }
 0x1f1   : > { %3806 = vmatmul.bf16.gmra.mxu3 %v3686_v42  ;;  %v2772_v62 = vpop.f32.mrf.mxu1  ;;  %7825 = vst [vmem:[#allocation5_spill] sm:$0xff] %v7060_v37  ;;  %v3687_v49 = vpack.c.b16 %v3665_v31, %v3664_v15  ;;  %v7100_v31 = vld [vmem:[%s5922_s20 + $0xa0] sm:$0xf] }
 0x1f2   : > { %v4193_v19 = vpop.f32.mrf.mxu0  ;;  %v2851_v27 = vadd.f32 %v2772_v62, %v6537_v5  ;;  %v2690_v42 = vpack.c.b16 %v2668_v4, %v2667_v41  ;;  %v7083_v62 = vrot.slane %v3495_v40, 5  ;;  %v5192_v4 = vrot.slane %v5176_v13, 9 }
 0x1f3   : > { %v2594_v9 = vrot.slane %v2592_v46, 4  ;;  %v3519_v57 = vshll.u32 %v7100_v31, 16 }
 0x1f4   : > { %v3767_v39 = vpop.f32.mrf.mxu3 }
 0x1f5   : > { %4232 = vmatmul.bf16.gmra.mxu0 %v4112_v3  ;;  %v3847_v5 = vadd.f32 %v3767_v39, %v3165_v51  ;;  %v4012_v51 = vsel %vm6237_vm5, %v4010_v28, %v4011_v11  ;;  %v3491_v3 = vrot.slane %v3489_v38, 5  ;;  %v4090_v28 = vunpack.c.l.b16 %v4009_v25 }
 0x1f6   : > { %v4091_v11 = vunpack.c.l.b16 %v4012_v51  ;;  %v3502_v38 = vor.u32 %v3501_v1, %v7083_v62 }
 0x1f7   : > { %v7074_v0 = vadd.f32 %v4193_v19, %v3847_v5  ;;  %v3087_v59 = vpop.f32.mrf.mxu2  ;;  %v3492_v5 = vor.u32 %v3491_v3, %v3488_v16 }
 0x1f8   : > { %v3166_v33 = vadd.f32 %v3087_v59, %v2851_v27  ;;  %v7087_v27 = vld [vmem:[%s5922_s20 + $0x98] sm:$0x1]  ;;  %v2593_v59 = vsel %vm6237_vm5, %v5192_v4, %v2592_v46  ;;  %v4113_v15 = vpack.c.b16 %v4091_v11, %v4090_v28  ;;  %v3503_v51 = vrot.slane %v3502_v38, 4 }
 0x1f9   : > { %v2775_v7 = vpop.f32.mrf.mxu1  ;;  %v3493_v25 = vrot.slane %v3492_v5, 4  ;;  %v2669_v46 = vunpack.c.l.b16 %v2593_v59  ;;  %v3510_v4 = vshrl.u32 %v5423_v21, 16  ;;  %v7115_v59 = vrot.slane %v3519_v57, 5 }
 0x1fa   : > { %v4195_v19 = vpop.f32.mrf.mxu0  ;;  %v2852_v41 = vadd.f32 %v2775_v7, %v6547_v48  ;;  %v3505_v48 = vshll.u32 %v7087_v27, 16  ;;  %v4015_v7 = vrot.slane %v7064_v61, 5 }
 0x1fb   : > { %2814 = vmatmul.bf16.gmra.mxu1 %v2690_v42  ;;  %v2596_v42 = vsel %vm6237_vm5, %v2594_v9, %v2595_v22  ;;  %v3513_v9 = vshll.u32 %v5423_v21, 16  ;;  %v3498_v61 = vsel %vm5937_vm2, %v3493_v25, %v7083_v62  ;;  %v3512_v5 = vrot.slane %v3510_v4, 4  ;;  %v5659_v62 = vld [vmem:[%s5922_s20 + $0x90] sm:$0xff] }
 0x1fc   : > { %v3769_v39 = vpop.f32.mrf.mxu3  ;;  %3129 = vmatmul.bf16.gmra.mxu2 %v5658_v8  ;;  %v3507_v13 = vrot.slane %v3505_v48, 5  ;;  %v2670_v1 = vunpack.c.l.b16 %v2596_v42  ;;  %v4017_v11 = vrot.slane %v4015_v7, 4 }
 0x1fd   : > { %v3848_v44 = vadd.f32 %v3769_v39, %v3166_v33 }
 0x1fe   : > { %v2691_v28 = vpack.c.b16 %v2670_v1, %v2669_v46  ;;  %v5177_v46 = vld [vmem:[%s5922_s20 + $0x90] sm:$0xe] }
 0x1ff   : > { %v7092_v40 = vadd.f32 %v4195_v19, %v3848_v44  ;;  %v3090_v32 = vpop.f32.mrf.mxu2  ;;  %v5496_v19 = vld [vmem:[%s5922_s20 + $0x90] sm:$0xe]  ;;  %v4018_v44 = vrot.slane %v7087_v27, 5 }
 0x200   : > { %v3167_v8 = vadd.f32 %v3090_v32, %v2852_v41  ;;  %v3523_v41 = vshrl.u32 %v7100_v31, 16  ;;  %v3515_v32 = vrot.slane %v3513_v9, 5 }
 0x201   : > { %3811 = vmatmul.bf16.gmra.mxu3 %v3687_v49  ;;  %v2777_v33 = vpop.f32.mrf.mxu1  ;;  %v5512_v49 = vrot.slane %v5496_v19, 9  ;;  %v4019_v19 = vsel %vm6237_vm5, %v4017_v11, %v4018_v44 }
 0x202   : > { %v4198_v16 = vpop.f32.mrf.mxu0  ;;  %v2853_v3 = vadd.f32 %v2777_v33, %v6561_v47  ;;  %v3508_v47 = vsel %vm5937_vm2, %v3503_v51, %v3507_v13  ;;  %v3525_v42 = vrot.slane %v3523_v41, 4  ;;  %v7120_v33 = vld [vmem:[%s5922_s20 + $0xa4] sm:$0x1]  ;;  %v3666_v51 = vunpack.c.l.b16 %v3498_v61 }
 0x203   : > { %v3667_v13 = vunpack.c.l.b16 %v3508_v47  ;;  %v4016_v1 = vsel %vm6237_vm5, %v5512_v49, %v4015_v7  ;;  %v3529_v9 = vshll.u32 %v7120_v33, 16  ;;  %v5193_v41 = vrot.slane %v5177_v46, 9 }
 0x204   : > { %v3772_v22 = vpop.f32.mrf.mxu3  ;;  %v3526_v4 = vor.u32 %v3525_v42, %v7115_v59  ;;  %v4092_v7 = vunpack.c.l.b16 %v4016_v1  ;;  %v4093_v49 = vunpack.c.l.b16 %v4019_v19  ;;  %v7142_v1 = vld [vmem:[%s5922_s20 + $0xac] sm:$0xf] }
 0x205   : > { %4237 = vmatmul.bf16.gmra.mxu0 %v4113_v15  ;;  %v3849_v39 = vadd.f32 %v3772_v22, %v3167_v8  ;;  %v5865_v15 = vld [vmem:[%s5922_s20 + $0x94] sm:$0xf]  ;;  %v3688_v47 = vpack.c.b16 %v3667_v13, %v3666_v51  ;;  %v5426_v13 = vld [vmem:[%s5922_s20 + $0xa8] sm:$0xf] }
 0x206   : > { %v2599_v8 = vrot.slane %v5865_v15, 5  ;;  %v3527_v44 = vrot.slane %v3526_v4, 4  ;;  %v5497_v15 = vld [vmem:[%s5922_s20 + $0x9c] sm:$0xe] }
 0x207   : > { %v7113_v38 = vadd.f32 %v4198_v16, %v3849_v39  ;;  %v3092_v48 = vpop.f32.mrf.mxu2  ;;  %v5866_v39 = vld [vmem:[%s5922_s20 + $0x98] sm:$0x1] }
 0x208   : > { %v3168_v21 = vadd.f32 %v3092_v48, %v2853_v3  ;;  %v3516_v3 = vor.u32 %v3515_v32, %v3512_v5  ;;  %v2601_v22 = vrot.slane %v2599_v8, 4  ;;  %v2602_v61 = vrot.slane %v5866_v39, 5 }
 0x209   : > { %v2780_v25 = vpop.f32.mrf.mxu1  ;;  %v3531_v5 = vrot.slane %v3529_v9, 5  ;;  %v2600_v42 = vsel %vm6237_vm5, %v5193_v41, %v2599_v8  ;;  %v3534_v41 = vshrl.u32 %v5426_v13, 16  ;;  %v3543_v39 = vshll.u32 %v7142_v1, 16 }
 0x20a   : > { %v4200_v27 = vpop.f32.mrf.mxu0  ;;  %v2854_v16 = vadd.f32 %v2780_v25, %v6581_v52  ;;  %v3517_v11 = vrot.slane %v3516_v3, 4  ;;  %v4114_v25 = vpack.c.b16 %v4093_v49, %v4092_v7  ;;  %v2671_v19 = vunpack.c.l.b16 %v2600_v42  ;;  %v5867_v49 = vld [vmem:[%s5922_s20 + $0xa0] sm:$0xf]  ;;  %v5178_v42 = vld [vmem:[%s5922_s20 + $0x9c] sm:$0xe] }
 0x20b   : > { %2819 = vmatmul.bf16.gmra.mxu1 %v2691_v28  ;;  %v5513_v3 = vrot.slane %v5497_v15, 9  ;;  %v3536_v15 = vrot.slane %v3534_v41, 4 }
 0x20c   : > { %v3774_v57 = vpop.f32.mrf.mxu3  ;;  %3134 = vmatmul.bf16.gmra.mxu2 %v5659_v62  ;;  %v2603_v62 = vsel %vm6237_vm5, %v2601_v22, %v2602_v61  ;;  %v3522_v8 = vsel %vm5937_vm2, %v3517_v11, %v7115_v59  ;;  %v3537_v22 = vshll.u32 %v5426_v13, 16  ;;  %v3547_v61 = vshrl.u32 %v7142_v1, 16 }
 0x20d   : > { %v3850_v52 = vadd.f32 %v3774_v57, %v3168_v21  ;;  %v4022_v21 = vrot.slane %v7100_v31, 5  ;;  %v3532_v31 = vsel %vm5937_vm2, %v3527_v44, %v3531_v5  ;;  %v4025_v57 = vrot.slane %v7120_v33, 5  ;;  %v5660_v44 = vld [vmem:[%s5922_s20 + $0x9c] sm:$0xff] }
 0x20e   : > { %v3668_v7 = vunpack.c.l.b16 %v3522_v8  ;;  %v3669_v33 = vunpack.c.l.b16 %v3532_v31  ;;  %v3549_v13 = vrot.slane %v3547_v61, 4 }
 0x20f   : > { %v7131_v48 = vadd.f32 %v4200_v27, %v3850_v52  ;;  %v3095_v28 = vpop.f32.mrf.mxu2  ;;  %v4024_v9 = vrot.slane %v4022_v21, 4  ;;  %v4023_v5 = vsel %vm6237_vm5, %v5513_v3, %v4022_v21 }
 0x210   : > { %v3169_v32 = vadd.f32 %v3095_v28, %v2854_v16  ;;  %v2672_v16 = vunpack.c.l.b16 %v2603_v62  ;;  %v2606_v28 = vrot.slane %v5867_v49, 5  ;;  %v3689_v31 = vpack.c.b16 %v3669_v33, %v3668_v7  ;;  %v5429_v49 = vld [vmem:[%s5922_s20 + $0xb4] sm:$0xf]  ;;  %v7175_v33 = vld [vmem:[%s5922_s20 + $0xb8] sm:$0xf] }
 0x211   : > { %3816 = vmatmul.bf16.gmra.mxu3 %v3688_v47  ;;  %v2782_v51 = vpop.f32.mrf.mxu1 }
 0x212   : > { %v4203_v46 = vpop.f32.mrf.mxu0  ;;  %v2855_v27 = vadd.f32 %v2782_v51, %v6601_v34  ;;  %v2692_v47 = vpack.c.b16 %v2672_v16, %v2671_v19  ;;  %v3545_v51 = vrot.slane %v3543_v39, 5  ;;  %v7163_v16 = vld [vmem:[%s5922_s20 + $0xb0] sm:$0x1]  ;;  %v2608_v8 = vrot.slane %v2606_v28, 4 }
 0x213   : > { %v3553_v39 = vshll.u32 %v7163_v16, 16 }
 0x214   : > { %v3777_v4 = vpop.f32.mrf.mxu3 }
 0x215   : > { %4242 = vmatmul.bf16.gmra.mxu0 %v4114_v25  ;;  %v3851_v34 = vadd.f32 %v3777_v4, %v3169_v32  ;;  %v4026_v32 = vsel %vm6237_vm5, %v4024_v9, %v4025_v57  ;;  %v3539_v25 = vrot.slane %v3537_v22, 5  ;;  %v5868_v4 = vld [vmem:[%s5922_s20 + $0xa4] sm:$0x1]  ;;  %v4094_v9 = vunpack.c.l.b16 %v4023_v5 }
 0x216   : > { %v2609_v21 = vrot.slane %v5868_v4, 5  ;;  %v4095_v57 = vunpack.c.l.b16 %v4026_v32  ;;  %v3550_v22 = vor.u32 %v3549_v13, %v3545_v51  ;;  %v3567_v4 = vshll.u32 %v7175_v33, 16 }
 0x217   : > { %v7152_v59 = vadd.f32 %v4203_v46, %v3851_v34  ;;  %v3097_v52 = vpop.f32.mrf.mxu2  ;;  %v3540_v34 = vor.u32 %v3539_v25, %v3536_v15 }
 0x218   : > { %v3170_v11 = vadd.f32 %v3097_v52, %v2855_v27  ;;  %v5194_v27 = vrot.slane %v5178_v42, 9  ;;  %v3551_v32 = vrot.slane %v3550_v22, 4  ;;  %v3555_v42 = vrot.slane %v3553_v39, 5 }
 0x219   : > { %v2785_v62 = vpop.f32.mrf.mxu1  ;;  %v3541_v5 = vrot.slane %v3540_v34, 4 }
 0x21a   : > { %v4205_v46 = vpop.f32.mrf.mxu0  ;;  %v2856_v19 = vadd.f32 %v2785_v62, %v6611_v10  ;;  %v2607_v52 = vsel %vm6237_vm5, %v5194_v27, %v2606_v28  ;;  %v4029_v62 = vrot.slane %v7142_v1, 5  ;;  %v3558_v27 = vshrl.u32 %v5429_v49, 16 }
 0x21b   : > { %2824 = vmatmul.bf16.gmra.mxu1 %v2692_v47  ;;  %v2610_v47 = vsel %vm6237_vm5, %v2608_v8, %v2609_v21  ;;  %v2673_v28 = vunpack.c.l.b16 %v2607_v52  ;;  %v3561_v8 = vshll.u32 %v5429_v49, 16  ;;  %v3546_v1 = vsel %vm5937_vm2, %v3541_v5, %v3545_v51  ;;  %v5869_v51 = vld [vmem:[%s5922_s20 + $0xac] sm:$0xf] }
 0x21c   : > { %v3779_v3 = vpop.f32.mrf.mxu3  ;;  %3139 = vmatmul.bf16.gmra.mxu2 %v5660_v44  ;;  %v4115_v44 = vpack.c.b16 %v4095_v57, %v4094_v9  ;;  %v2674_v13 = vunpack.c.l.b16 %v2610_v47  ;;  %v4031_v57 = vrot.slane %v4029_v62, 4  ;;  %v3560_v34 = vrot.slane %v3558_v27, 4 }
 0x21d   : > { %v3852_v41 = vadd.f32 %v3779_v3, %v3170_v11  ;;  %v3569_v52 = vrot.slane %v3567_v4, 5  ;;  %v3670_v5 = vunpack.c.l.b16 %v3546_v1 }
 0x21e   : > { %v2693_v9 = vpack.c.b16 %v2674_v13, %v2673_v28  ;;  %v7193_v28 = vld [vmem:[%s5922_s20 + $0xbc] sm:$0x1] }
 0x21f   : > { %v7167_v10 = vadd.f32 %v4205_v46, %v3852_v41  ;;  %v3100_v61 = vpop.f32.mrf.mxu2  ;;  %v5498_v46 = vld [vmem:[%s5922_s20 + $0xa8] sm:$0xe]  ;;  %v4032_v41 = vrot.slane %v7163_v16, 5  ;;  %v3577_v1 = vshll.u32 %v7193_v28, 16 }
 0x220   : > { %v3171_v7 = vadd.f32 %v3100_v61, %v2856_v19  ;;  %v3571_v19 = vshrl.u32 %v7175_v33, 16  ;;  %v3563_v61 = vrot.slane %v3561_v8, 5 }
 0x221   : > { %3821 = vmatmul.bf16.gmra.mxu3 %v3689_v31  ;;  %v2787_v11 = vpop.f32.mrf.mxu1  ;;  %v5514_v31 = vrot.slane %v5498_v46, 9  ;;  %v4033_v46 = vsel %vm6237_vm5, %v4031_v57, %v4032_v41 }
 0x222   : > { %v4208_v15 = vpop.f32.mrf.mxu0  ;;  %v2857_v25 = vadd.f32 %v2787_v11, %v6619_v12  ;;  %v3556_v12 = vsel %vm5937_vm2, %v3551_v32, %v3555_v42  ;;  %v3573_v47 = vrot.slane %v3571_v19, 4  ;;  %v5179_v42 = vld [vmem:[%s5922_s20 + $0xa8] sm:$0xe] }
 0x223   : > { %v3671_v32 = vunpack.c.l.b16 %v3556_v12  ;;  %v5195_v4 = vrot.slane %v5179_v42, 9  ;;  %v7826_v42 = vld [vmem:[#allocation2_spill] sm:$0xff] }
 0x224   : > { %v3782_v21 = vpop.f32.mrf.mxu3  ;;  %v3574_v27 = vor.u32 %v3573_v47, %v3569_v52 }
 0x225   : > { %4247 = vmatmul.bf16.gmra.mxu0 %v4115_v44  ;;  %v3853_v3 = vadd.f32 %v3782_v21, %v3171_v7  ;;  %v5661_v44 = vld [vmem:[%s5922_s20 + $0xa8] sm:$0xff]  ;;  %v2613_v7 = vrot.slane %v5869_v51, 5  ;;  %v5870_v21 = vld [vmem:[%s5922_s20 + $0xb0] sm:$0x1]  ;;  %v5499_v51 = vld [vmem:[%s5922_s20 + $0xb4] sm:$0xe] }
 0x226   : > { %v3575_v41 = vrot.slane %v3574_v27, 4  ;;  %v5515_v27 = vrot.slane %v5499_v51, 9 }
 0x227   : > { %v7187_v22 = vadd.f32 %v4208_v15, %v3853_v3  ;;  %v3102_v39 = vpop.f32.mrf.mxu2  ;;  %v4030_v15 = vsel %vm6237_vm5, %v5514_v31, %v4029_v62  ;;  %v2615_v19 = vrot.slane %v2613_v7, 4  ;;  %v2616_v3 = vrot.slane %v5870_v21, 5 }
 0x228   : > { %v3172_v49 = vadd.f32 %v3102_v39, %v2857_v25  ;;  %v3564_v25 = vor.u32 %v3563_v61, %v3560_v34  ;;  %v4096_v39 = vunpack.c.l.b16 %v4030_v15  ;;  %v4097_v62 = vunpack.c.l.b16 %v4033_v46  ;;  %v7213_v46 = vld [vmem:[%s5922_s20 + $0xc4] sm:$0xf] }
 0x229   : > { %v2790_v11 = vpop.f32.mrf.mxu1  ;;  %v2614_v61 = vsel %vm6237_vm5, %v5195_v4, %v2613_v7  ;;  %v2617_v47 = vsel %vm6237_vm5, %v2615_v19, %v2616_v3  ;;  %v4036_v15 = vrot.slane %v7175_v33, 5  ;;  %v3591_v33 = vshll.u32 %v7213_v46, 16 }
 0x22a   : > { %v4210_v13 = vpop.f32.mrf.mxu0  ;;  %v2858_v16 = vadd.f32 %v2790_v11, %v6638_v60  ;;  %v3690_v60 = vpack.c.b16 %v3671_v32, %v3670_v5  ;;  %v3565_v57 = vrot.slane %v3564_v25, 4  ;;  %v5432_v5 = vld [vmem:[%s5922_s20 + $0xc0] sm:$0xf]  ;;  %v2676_v25 = vunpack.c.l.b16 %v2617_v47  ;;  %v5871_v47 = vld [vmem:[%s5922_s20 + $0xb8] sm:$0xf] }
 0x22b   : > { %2829 = vmatmul.bf16.gmra.mxu1 %v2693_v9  ;;  %v3582_v19 = vshrl.u32 %v5432_v5, 16  ;;  %v3585_v21 = vshll.u32 %v5432_v5, 16  ;;  %v5180_v5 = vld [vmem:[%s5922_s20 + $0xb4] sm:$0xe] }
 0x22c   : > { %v3784_v8 = vpop.f32.mrf.mxu3  ;;  %3144 = vmatmul.bf16.gmra.mxu2 %v5661_v44  ;;  %v3579_v44 = vrot.slane %v3577_v1, 5  ;;  %v3570_v7 = vsel %vm5937_vm2, %v3565_v57, %v3569_v52  ;;  %v3595_v1 = vshrl.u32 %v7213_v46, 16  ;;  %v4039_v52 = vrot.slane %v7193_v28, 5 }
 0x22d   : > { %v3854_v12 = vadd.f32 %v3784_v8, %v3172_v49  ;;  %v4116_v49 = vpack.c.b16 %v4097_v62, %v4096_v39  ;;  %v3584_v51 = vrot.slane %v3582_v19, 4 }
 0x22e   : > { %v3580_v4 = vsel %vm5937_vm2, %v3575_v41, %v3579_v44  ;;  %v4037_v41 = vsel %vm6237_vm5, %v5515_v27, %v4036_v15  ;;  %v2620_v44 = vrot.slane %v5871_v47, 5  ;;  %v3597_v28 = vrot.slane %v3595_v1, 4 }
 0x22f   : > { %v7202_v31 = vadd.f32 %v4210_v13, %v3854_v12  ;;  %v3105_v9 = vpop.f32.mrf.mxu2  ;;  %v3672_v12 = vunpack.c.l.b16 %v3570_v7  ;;  %v3673_v57 = vunpack.c.l.b16 %v3580_v4  ;;  %v7827_v7 = vld [vmem:[#allocation3_spill] sm:$0xff]  ;;  %v5196_v4 = vrot.slane %v5180_v5, 9  ;;  %v5500_v5 = vld [vmem:[%s5922_s20 + $0xc0] sm:$0xe] }
 0x230   : > { %v3173_v34 = vadd.f32 %v3105_v9, %v2858_v16  ;;  %v2675_v16 = vunpack.c.l.b16 %v2614_v61  ;;  %v2622_v19 = vrot.slane %v2620_v44, 4 }
 0x231   : > { %3826 = vmatmul.bf16.gmra.mxu3 %v3690_v60  ;;  %v2792_v11 = vpop.f32.mrf.mxu1  ;;  %v4038_v60 = vrot.slane %v4036_v15, 4  ;;  %v4098_v15 = vunpack.c.l.b16 %v4037_v41 }
 0x232   : > { %v4213_v32 = vpop.f32.mrf.mxu0  ;;  %v2859_v13 = vadd.f32 %v2792_v11, %v7826_v42  ;;  %v2694_v9 = vpack.c.b16 %v2676_v25, %v2675_v16  ;;  %v3593_v42 = vrot.slane %v3591_v33, 5  ;;  %v7233_v25 = vld [vmem:[%s5922_s20 + $0xc8] sm:$0x1] }
 0x233   : > { %v4040_v16 = vsel %vm6237_vm5, %v4038_v60, %v4039_v52 }
 0x234   : > { %v3787_v8 = vpop.f32.mrf.mxu3  ;;  %v4099_v1 = vunpack.c.l.b16 %v4040_v16  ;;  %v3598_v47 = vor.u32 %v3597_v28, %v3593_v42 }
 0x235   : > { %4252 = vmatmul.bf16.gmra.mxu0 %v4116_v49  ;;  %v3855_v3 = vadd.f32 %v3787_v8, %v3173_v34  ;;  %v5662_v34 = vld [vmem:[%s5922_s20 + $0xb4] sm:$0xff]  ;;  %v3587_v49 = vrot.slane %v3585_v21, 5  ;;  %v5872_v21 = vld [vmem:[%s5922_s20 + $0xbc] sm:$0x1] }
 0x237   : > { %v7222_v39 = vadd.f32 %v4213_v32, %v3855_v3  ;;  %v3107_v62 = vpop.f32.mrf.mxu2  ;;  %v2623_v3 = vrot.slane %v5872_v21, 5  ;;  %v7248_v21 = vld [vmem:[%s5922_s20 + $0xd0] sm:$0xf] }
 0x238   : > { %v3174_v61 = vadd.f32 %v3107_v62, %v2859_v13  ;;  %v3691_v13 = vpack.c.b16 %v3673_v57, %v3672_v12  ;;  %v3588_v62 = vor.u32 %v3587_v49, %v3584_v51  ;;  %v2621_v12 = vsel %vm6237_vm5, %v5196_v4, %v2620_v44 }
 0x239   : > { %v2795_v11 = vpop.f32.mrf.mxu1  ;;  %v2624_v57 = vsel %vm6237_vm5, %v2622_v19, %v2623_v3  ;;  %v3599_v51 = vrot.slane %v3598_v47, 4  ;;  %v2677_v16 = vunpack.c.l.b16 %v2621_v12  ;;  %v5663_v12 = vld [vmem:[%s5922_s20 + $0xc0] sm:$0xff] }
 0x23a   : > { %v4215_v32 = vpop.f32.mrf.mxu0  ;;  %v2860_v8 = vadd.f32 %v2795_v11, %v7827_v7  ;;  %v3601_v11 = vshll.u32 %v7233_v25, 16  ;;  %v3589_v41 = vrot.slane %v3588_v62, 4  ;;  %v4043_v7 = vrot.slane %v7213_v46, 5 }
 0x23b   : > { %2834 = vmatmul.bf16.gmra.mxu1 %v2694_v9  ;;  %v4046_v62 = vrot.slane %v7233_v25, 5  ;;  %v5181_v25 = vld [vmem:[%s5922_s20 + $0xc0] sm:$0xe] }
 0x23c   : > { %v3789_v27 = vpop.f32.mrf.mxu3  ;;  %3149 = vmatmul.bf16.gmra.mxu2 %v5662_v34  ;;  %v4117_v34 = vpack.c.b16 %v4099_v1, %v4098_v15  ;;  %v3603_v49 = vrot.slane %v3601_v11, 5  ;;  %v5516_v15 = vrot.slane %v5500_v5, 9  ;;  %v4045_v46 = vrot.slane %v4043_v7, 4 }
 0x23d   : > { %v3856_v33 = vadd.f32 %v3789_v27, %v3174_v61  ;;  %v2678_v27 = vunpack.c.l.b16 %v2624_v57  ;;  %v3619_v1 = vshrl.u32 %v7248_v21, 16 }
 0x23e   : > { %v3604_v19 = vsel %vm5937_vm2, %v3599_v51, %v3603_v49  ;;  %v4044_v51 = vsel %vm6237_vm5, %v5516_v15, %v4043_v7  ;;  %v5874_v7 = vld [vmem:[%s5922_s20 + $0xc8] sm:$0x1] }
 0x23f   : > { %v7237_v60 = vadd.f32 %v4215_v32, %v3856_v33  ;;  %v3110_v52 = vpop.f32.mrf.mxu2  ;;  %v3615_v33 = vshll.u32 %v7248_v21, 16  ;;  %v2695_v11 = vpack.c.b16 %v2678_v27, %v2677_v16  ;;  %v3675_v57 = vunpack.c.l.b16 %v3604_v19 }
 0x240   : > { %v3175_v9 = vadd.f32 %v3110_v52, %v2860_v8  ;;  %v5435_v8 = vld [vmem:[%s5922_s20 + $0xcc] sm:$0xf]  ;;  %v3621_v27 = vrot.slane %v3619_v1, 4  ;;  %v5197_v19 = vrot.slane %v5181_v25, 9  ;;  %v2630_v15 = vrot.slane %v5874_v7, 5 }
 0x241   : > { %3831 = vmatmul.bf16.gmra.mxu3 %v3691_v13  ;;  %v2797_v61 = vpop.f32.mrf.mxu1  ;;  %v3594_v13 = vsel %vm5937_vm2, %v3589_v41, %v3593_v42  ;;  %v3609_v3 = vshll.u32 %v5435_v8, 16  ;;  %v5873_v41 = vld [vmem:[%s5922_s20 + $0xc4] sm:$0xf]  ;;  %v3617_v16 = vrot.slane %v3615_v33, 5  ;;  %v5664_v7 = vld [vmem:[%s5922_s20 + $0xcc] sm:$0xff] }
 0x242   : > { %v4218_v28 = vpop.f32.mrf.mxu0  ;;  %v2861_v32 = vadd.f32 %v2797_v61, %v6689_v24  ;;  %v3606_v24 = vshrl.u32 %v5435_v8, 16 }
 0x243   : > { %v3611_v5 = vrot.slane %v3609_v3, 5  ;;  %v3622_v6 = vor.u32 %v3621_v27, %v3617_v16 }
 0x244   : > { %v3792_v44 = vpop.f32.mrf.mxu3  ;;  %v3608_v49 = vrot.slane %v3606_v24, 4  ;;  %v4100_v24 = vunpack.c.l.b16 %v4044_v51 }
 0x245   : > { %4257 = vmatmul.bf16.gmra.mxu0 %v4117_v34  ;;  %v3857_v4 = vadd.f32 %v3792_v44, %v3175_v9  ;;  %v3674_v9 = vunpack.c.l.b16 %v3594_v13  ;;  %v2627_v34 = vrot.slane %v5873_v41, 5  ;;  %v5437_v44 = vld [vmem:[%s5922_s20 + $0xd4] sm:$0x1]  ;;  %v3623_v51 = vrot.slane %v3622_v6, 4 }
 0x246   : > { %v3612_v37 = vor.u32 %v3611_v5, %v3608_v49  ;;  %v4050_v49 = vrot.slane %v7248_v21, 5 }
 0x247   : > { %v7257_v47 = vadd.f32 %v4218_v28, %v3857_v4  ;;  %v3112_v42 = vpop.f32.mrf.mxu2  ;;  %v3692_v4 = vpack.c.b16 %v3675_v57, %v3674_v9  ;;  %v2628_v33 = vsel %vm6237_vm5, %v5197_v19, %v2627_v34 }
 0x248   : > { %v3176_v52 = vadd.f32 %v3112_v42, %v2861_v32  ;;  %v4047_v32 = vsel %vm6237_vm5, %v4045_v46, %v4046_v62  ;;  %v2629_v42 = vrot.slane %v2627_v34, 4  ;;  %v2679_v5 = vunpack.c.l.b16 %v2628_v33 }
 0x249   : > { %v2800_v61 = vpop.f32.mrf.mxu1  ;;  %v4101_v3 = vunpack.c.l.b16 %v4047_v32 }
 0x24a   : > { %v4220_v8 = vpop.f32.mrf.mxu0  ;;  %v2862_v28 = vadd.f32 %v2800_v61, %v6698_v36  ;;  %v3625_v36 = vshll.u32 %v5437_v44, 16  ;;  %v2631_v1 = vsel %vm6237_vm5, %v2629_v42, %v2630_v15 }
 0x24b   : > { %2839 = vmatmul.bf16.gmra.mxu1 %v2695_v11  ;;  %v4118_v11 = vpack.c.b16 %v4101_v3, %v4100_v24 }
 0x24c   : > { %v3794_v13 = vpop.f32.mrf.mxu3  ;;  %3154 = vmatmul.bf16.gmra.mxu2 %v5663_v12  ;;  %v3627_v25 = vrot.slane %v3625_v36, 5 }
 0x24d   : > { %v3858_v41 = vadd.f32 %v3794_v13, %v3176_v52  ;;  %v3613_v52 = vrot.slane %v3612_v37, 4 }
 0x24e   : > { %v3628_v37 = vsel %vm5937_vm2, %v3623_v51, %v3627_v25 }
 0x24f   : > { %v7269_v61 = vadd.f32 %v4220_v8, %v3858_v41  ;;  %v3115_v46 = vpop.f32.mrf.mxu2  ;;  %v2680_v8 = vunpack.c.l.b16 %v2631_v1  ;;  %v3618_v27 = vsel %vm5937_vm2, %v3613_v52, %v3617_v16  ;;  %v3677_v24 = vunpack.c.l.b16 %v3628_v37 }
 0x250   : > { %v3177_v62 = vadd.f32 %v3115_v46, %v2862_v28  ;;  %v5501_v28 = vld [vmem:[%s5922_s20 + $0xcc] sm:$0xe]  ;;  %v3676_v41 = vunpack.c.l.b16 %v3618_v27  ;;  %s5568_s20 = sshll.u32 %s7843_s10, 7 }
 0x251   : > { %3836 = vmatmul.bf16.gmra.mxu3 %v3692_v4  ;;  %v2802_v12 = vpop.f32.mrf.mxu1  ;;  %v5517_v13 = vrot.slane %v5501_v28, 9  ;;  %v4052_v4 = vrot.slane %v4050_v49, 4  ;;  %v2696_v21 = vpack.c.b16 %v2680_v8, %v2679_v5  ;;  %s7742_s8 = scalar_lea.vmem %s7817_s2, %s5568_s20 }
 0x252   : > { %v4223_v9 = vpop.f32.mrf.mxu0  ;;  %v2863_v57 = vadd.f32 %v2802_v12, %v6711_v45  ;;  %v4053_v45 = vrot.slane %v5437_v44, 5 }
 0x253   : > { %v4051_v16 = vsel %vm6237_vm5, %v5517_v13, %v4050_v49 }
 0x254   : > { %v3797_v32 = vpop.f32.mrf.mxu3  ;;  %v4054_v30 = vsel %vm6237_vm5, %v4052_v4, %v4053_v45  ;;  %v4102_v33 = vunpack.c.l.b16 %v4051_v16 }
 0x255   : > { %4262 = vmatmul.bf16.gmra.mxu0 %v4118_v11  ;;  %v3859_v34 = vadd.f32 %v3797_v32, %v3177_v62  ;;  %v3693_v62 = vpack.c.b16 %v3677_v24, %v3676_v41  ;;  %v4103_v1 = vunpack.c.l.b16 %v4054_v30 }
 0x257   : > { %v7282_v6 = vadd.f32 %v4223_v9, %v3859_v34  ;;  %v3117_v19 = vpop.f32.mrf.mxu2  ;;  %v4119_v9 = vpack.c.b16 %v4103_v1, %v4102_v33 }
 0x258   : > { %v3178_v42 = vadd.f32 %v3117_v19, %v2863_v57 }
 0x259   : > { %v2805_v15 = vpop.f32.mrf.mxu1 }
 0x25a   : > { %v4225_v3 = vpop.f32.mrf.mxu0  ;;  %v2864_v36 = vadd.f32 %v2805_v15, %v6724_v23 }
 0x25b   : > { %2844 = vmatmul.bf16.gmra.mxu1 %v2696_v21 }
 0x25c   : > { %v3799_v44 = vpop.f32.mrf.mxu3  ;;  %3159 = vmatmul.bf16.gmra.mxu2 %v5664_v7 }
 0x25d   : > { %v3860_v46 = vadd.f32 %v3799_v44, %v3178_v42 }
 0x25f   : > { %v7290_v11 = vadd.f32 %v4225_v3, %v3860_v46  ;;  %v3120_v12 = vpop.f32.mrf.mxu2 }
 0x260   : > { %v3179_v52 = vadd.f32 %v3120_v12, %v2864_v36 }
 0x261   : > { %3841 = vmatmul.bf16.gmra.mxu3 %v3693_v62  ;;  %v2807_v23 = vpop.f32.mrf.mxu1 }
 0x262   : > { %v4228_v57 = vpop.f32.mrf.mxu0  ;;  %v2865_v51 = vadd.f32 %v2807_v23, %v6748_v17 }
 0x264   : > { %v3802_v25 = vpop.f32.mrf.mxu3 }
 0x265   : > { %4267 = vmatmul.bf16.gmra.mxu0 %v4119_v9  ;;  %v3861_v43 = vadd.f32 %v3802_v25, %v3179_v52 }
 0x267   : > { %v7293_v49 = vadd.f32 %v4228_v57, %v3861_v43  ;;  %v3122_v5 = vpop.f32.mrf.mxu2 }
 0x268   : > { %v3180_v8 = vadd.f32 %v3122_v5, %v2865_v51 }
 0x269   : > { %v2810_v28 = vpop.f32.mrf.mxu1 }
 0x26a   : > { %v4230_v32 = vpop.f32.mrf.mxu0  ;;  %v2866_v34 = vadd.f32 %v2810_v28, %v6763_v20 }
 0x26c   : > { %v3804_v27 = vpop.f32.mrf.mxu3 }
 0x26d   : > { %v3862_v37 = vadd.f32 %v3804_v27, %v3180_v8 }
 0x26f   : > { %v7296_v13 = vadd.f32 %v4230_v32, %v3862_v37  ;;  %v3125_v4 = vpop.f32.mrf.mxu2 }
 0x270   : > { %v3181_v45 = vadd.f32 %v3125_v4, %v2866_v34 }
 0x271   : > { %v2812_v19 = vpop.f32.mrf.mxu1 }
 0x272   : > { %v4233_v21 = vpop.f32.mrf.mxu0  ;;  %v2867_v17 = vadd.f32 %v2812_v19, %v6789_v56 }
 0x274   : > { %v3807_v42 = vpop.f32.mrf.mxu3 }
 0x275   : > { %v3863_v7 = vadd.f32 %v3807_v42, %v3181_v45 }
 0x277   : > { %v7299_v15 = vadd.f32 %v4233_v21, %v3863_v7  ;;  %v3127_v41 = vpop.f32.mrf.mxu2 }
 0x278   : > { %v3182_v24 = vadd.f32 %v3127_v41, %v2867_v17  ;;  %v4305_v17 = vadd.f32 %v7092_v40, %v7074_v0 }
 0x279   : > { %v2815_v3 = vpop.f32.mrf.mxu1 }
 0x27a   : > { %v4235_v36 = vpop.f32.mrf.mxu0  ;;  %v2868_v20 = vadd.f32 %v2815_v3, %v6803_v29 }
 0x27c   : > { %v3809_v16 = vpop.f32.mrf.mxu3 }
 0x27d   : > { %v3864_v30 = vadd.f32 %v3809_v16, %v3182_v24 }
 0x27f   : > { %v7302_v44 = vadd.f32 %v4235_v36, %v3864_v30  ;;  %v3130_v46 = vpop.f32.mrf.mxu2 }
 0x280   : > { %v3183_v62 = vadd.f32 %v3130_v46, %v2868_v20 }
 0x281   : > { %v2817_v33 = vpop.f32.mrf.mxu1 }
 0x282   : > { %v4238_v1 = vpop.f32.mrf.mxu0  ;;  %v2869_v56 = vadd.f32 %v2817_v33, %v6826_v58 }
 0x284   : > { %v3812_v12 = vpop.f32.mrf.mxu3 }
 0x285   : > { %v3865_v52 = vadd.f32 %v3812_v12, %v3183_v62 }
 0x287   : > { %v7305_v9 = vadd.f32 %v4238_v1, %v3865_v52  ;;  %v3132_v23 = vpop.f32.mrf.mxu2 }
 0x288   : > { %v3184_v57 = vadd.f32 %v3132_v23, %v2869_v56 }
 0x289   : > { %v2820_v51 = vpop.f32.mrf.mxu1 }
 0x28a   : > { %v4240_v25 = vpop.f32.mrf.mxu0  ;;  %v2870_v29 = vadd.f32 %v2820_v51, %v6841_v26  ;;  %v4306_v26 = vadd.f32 %v4305_v17, %v7113_v38 }
 0x28c   : > { %v3814_v43 = vpop.f32.mrf.mxu3  ;;  %v4307_v41 = vadd.f32 %v4306_v26, %v7131_v48 }
 0x28d   : > { %v3866_v5 = vadd.f32 %v3814_v43, %v3184_v57 }
 0x28e   : > { %v4308_v3 = vadd.f32 %v4307_v41, %v7152_v59 }
 0x28f   : > { %v7308_v8 = vadd.f32 %v4240_v25, %v3866_v5  ;;  %v3135_v28 = vpop.f32.mrf.mxu2 }
 0x290   : > { %v3185_v32 = vadd.f32 %v3135_v28, %v2870_v29  ;;  %v4309_v20 = vadd.f32 %v4308_v3, %v7167_v10 }
 0x291   : > { %v2822_v34 = vpop.f32.mrf.mxu1 }
 0x292   : > { %v4243_v27 = vpop.f32.mrf.mxu0  ;;  %v4310_v30 = vadd.f32 %v4309_v20, %v7187_v22 }
 0x294   : > { %v3817_v37 = vpop.f32.mrf.mxu3  ;;  %v4311_v62 = vadd.f32 %v4310_v30, %v7202_v31 }
 0x295   : > { %v3867_v58 = vadd.f32 %v3817_v37, %v3185_v32 }
 0x296   : > { %v4312_v1 = vadd.f32 %v4311_v62, %v7222_v39 }
 0x297   : > { %v7310_v4 = vadd.f32 %v4243_v27, %v3867_v58  ;;  %v3137_v45 = vpop.f32.mrf.mxu2  ;;  %v2871_v27 = vadd.f32 %v2822_v34, %v6867_v53 }
 0x298   : > { %v4313_v12 = vadd.f32 %v4312_v1, %v7237_v60 }
 0x299   : > { %v2825_v19 = vpop.f32.mrf.mxu1  ;;  %v3186_v17 = vadd.f32 %v3137_v45, %v2871_v27 }
 0x29a   : > { %v4245_v21 = vpop.f32.mrf.mxu0  ;;  %v4314_v23 = vadd.f32 %v4313_v12, %v7257_v47  ;;  %v2872_v26 = vadd.f32 %v2825_v19, %v6881_v2 }
 0x29c   : > { %v3819_v42 = vpop.f32.mrf.mxu3  ;;  %v4315_v51 = vadd.f32 %v4314_v23, %v7269_v61 }
 0x29d   : > { %v3868_v23 = vadd.f32 %v3819_v42, %v3186_v17 }
 0x29e   : > { %v4316_v29 = vadd.f32 %v4315_v51, %v7282_v6 }
 0x29f   : > { %v3140_v7 = vpop.f32.mrf.mxu2 }
 0x2a0   : > { %v4317_v5 = vadd.f32 %v4316_v29, %v7290_v11  ;;  %v3187_v30 = vadd.f32 %v3140_v7, %v2872_v26 }
 0x2a1   : > { %v2827_v24 = vpop.f32.mrf.mxu1 }
 0x2a2   : > { %v4248_v36 = vpop.f32.mrf.mxu0  ;;  %v4318_v32 = vadd.f32 %v4317_v5, %v7293_v49  ;;  %v2873_v62 = vadd.f32 %v2827_v24, %v6904_v50 }
 0x2a4   : > { %v3822_v16 = vpop.f32.mrf.mxu3  ;;  %v4319_v58 = vadd.f32 %v4318_v32, %v7296_v13  ;;  %v7337_v32 = vadd.f32 %v4245_v21, %v3868_v23 }
 0x2a5   : > { %v3869_v29 = vadd.f32 %v3822_v16, %v3187_v30 }
 0x2a6   : > { %v4320_v3 = vadd.f32 %v4319_v58, %v7299_v15 }
 0x2a7   : > { %v3142_v46 = vpop.f32.mrf.mxu2 }
 0x2a8   : > { %v4321_v1 = vadd.f32 %v4320_v3, %v7302_v44  ;;  %v3188_v51 = vadd.f32 %v3142_v46, %v2873_v62 }
 0x2a9   : > { %v2830_v33 = vpop.f32.mrf.mxu1 }
 0x2aa   : > { %v4250_v56 = vpop.f32.mrf.mxu0  ;;  %v2874_v53 = vadd.f32 %v2830_v33, %v6919_v35  ;;  %v4322_v34 = vadd.f32 %v4321_v1, %v7305_v9  ;;  %v7341_v35 = vadd.f32 %v4248_v36, %v3869_v29 }
 0x2ac   : > { %v3824_v52 = vpop.f32.mrf.mxu3  ;;  %v4323_v5 = vadd.f32 %v4322_v34, %v7308_v8 }
 0x2ad   : > { %v3870_v7 = vadd.f32 %v3824_v52, %v3188_v51 }
 0x2ae   : > { %v4324_v46 = vadd.f32 %v4323_v5, %v7310_v4 }
 0x2af   : > { %v3145_v57 = vpop.f32.mrf.mxu2 }
 0x2b0   : > { %v3189_v45 = vadd.f32 %v3145_v57, %v2874_v53 }
 0x2b1   : > { %v2832_v25 = vpop.f32.mrf.mxu1 }
 0x2b2   : > { %v4253_v43 = vpop.f32.mrf.mxu0  ;;  %v2875_v2 = vadd.f32 %v2832_v25, %v6945_v18  ;;  %v4325_v18 = vadd.f32 %v4324_v46, %v7337_v32  ;;  %v7344_v25 = vadd.f32 %v4250_v56, %v3870_v7 }
 0x2b4   : > { %v3827_v28 = vpop.f32.mrf.mxu3  ;;  %v4326_v21 = vadd.f32 %v4325_v18, %v7341_v35 }
 0x2b5   : > { %v3871_v33 = vadd.f32 %v3827_v28, %v3189_v45 }
 0x2b6   : > { %v4327_v26 = vadd.f32 %v4326_v21, %v7344_v25 }
 0x2b7   : > { %v3147_v37 = vpop.f32.mrf.mxu2  ;;  %v7347_v52 = vadd.f32 %v4253_v43, %v3871_v33 }
 0x2b8   : > { %v3190_v50 = vadd.f32 %v3147_v37, %v2875_v2 }
 0x2b9   : > { %v2835_v41 = vpop.f32.mrf.mxu1  ;;  %v4328_v30 = vadd.f32 %v4327_v26, %v7347_v52 }
 0x2ba   : > { %v4255_v20 = vpop.f32.mrf.mxu0  ;;  %v2876_v24 = vadd.f32 %v2835_v41, %v6959_v14 }
 0x2bc   : > { %v3829_v12 = vpop.f32.mrf.mxu3 }
 0x2bd   : > { %v3872_v58 = vadd.f32 %v3829_v12, %v3190_v50 }
 0x2bf   : > { %v3150_v19 = vpop.f32.mrf.mxu2  ;;  %v7351_v36 = vadd.f32 %v4255_v20, %v3872_v58 }
 0x2c0   : > { %v3191_v16 = vadd.f32 %v3150_v19, %v2876_v24 }
 0x2c1   : > { %v2837_v27 = vpop.f32.mrf.mxu1  ;;  %v4329_v1 = vadd.f32 %v4328_v30, %v7351_v36  ;;  %v5883_v30 = vmov 256.0  }
 0x2c2   : > { %v4258_v42 = vpop.f32.mrf.mxu0  ;;  %v2877_v14 = vadd.f32 %v2837_v27, %v6982_v63  ;;  %5818 = vrcp.f32 %v5883_v30 }
 0x2c4   : > { %v3832_v57 = vpop.f32.mrf.mxu3 }
 0x2c5   : > { %v3873_v37 = vadd.f32 %v3832_v57, %v3191_v16  ;;  %v7828_v57 = vld [vmem:[#allocation4_spill] sm:$0xff] }
 0x2c7   : > { %v3152_v17 = vpop.f32.mrf.mxu2  ;;  %v4299_v56 = vadd.f32 %v4258_v42, %v3873_v37 }
 0x2c8   : > { %v3192_v28 = vadd.f32 %v3152_v17, %v2877_v14 }
 0x2c9   : > { %v2840_v41 = vpop.f32.mrf.mxu1  ;;  %v4330_v43 = vadd.f32 %v4329_v1, %v4299_v56 }
 0x2ca   : > { %v4260_v3 = vpop.f32.mrf.mxu0  ;;  %v2878_v51 = vadd.f32 %v2840_v41, %v6997_v55  ;;  %v7829_v41 = vld [vmem:[#allocation5_spill] sm:$0xff] }
 0x2cc   : > { %v3834_v62 = vpop.f32.mrf.mxu3 }
 0x2cd   : > { %v3874_v12 = vadd.f32 %v3834_v62, %v3192_v28 }
 0x2cf   : > { %v4300_v23 = vadd.f32 %v4260_v3, %v3874_v12  ;;  %v3155_v63 = vpop.f32.mrf.mxu2 }
 0x2d0   : > { %v3193_v34 = vadd.f32 %v3155_v63, %v2878_v51 }
 0x2d1   : > { %v4331_v53 = vadd.f32 %v4330_v43, %v4300_v23  ;;  %v2842_v29 = vpop.f32.mrf.mxu1  ;;  %v5819_v43 = vpop.eup %5818 }
 0x2d2   : > { %v4263_v20 = vpop.f32.mrf.mxu0  ;;  %v2879_v5 = vadd.f32 %v2842_v29, %v7023_v54  ;;  %vm4347_vm6 = vweird.f32 %v5819_v43 }
 0x2d4   : > { %v3837_v45 = vpop.f32.mrf.mxu3 }
 0x2d5   : > { %v3875_v2 = vadd.f32 %v3837_v45, %v3193_v34  ;;  %v4343_v34 = vmul.f32 256.0, %v5819_v43 }
 0x2d7   : > { %v4301_v19 = vadd.f32 %v4263_v20, %v3875_v2  ;;  %v3157_v7 = vpop.f32.mrf.mxu2  ;;  %v4344_v45 = vsub.f32 1.0, %v4343_v34 }
 0x2d8   : > { %v3194_v24 = vadd.f32 %v3157_v7, %v2879_v5 }
 0x2d9   : > { %v4332_v50 = vadd.f32 %v4331_v53, %v4301_v19  ;;  %v2845_v27 = vpop.f32.mrf.mxu1  ;;  %v4345_v7 = vmul.f32 %v5819_v43, %v4344_v45 }
 0x2da   : > { %v4265_v42 = vpop.f32.mrf.mxu0  ;;  %v2880_v55 = vadd.f32 %v2845_v27, %v7828_v57 }
 0x2db   : > { %v4346_v27 = vadd.f32 %v5819_v43, %v4345_v7 }
 0x2dc   : > { %v3839_v46 = vpop.f32.mrf.mxu3 }
 0x2dd   : > { %v3876_v33 = vadd.f32 %v3839_v46, %v3194_v24  ;;  %v7359_v46 = vsel %vm4347_vm6, %v5819_v43, %v4346_v27 }
 0x2df   : > { %v4302_v16 = vadd.f32 %v4265_v42, %v3876_v33  ;;  %v3160_v18 = vpop.f32.mrf.mxu2 }
 0x2e0   : > { %v3195_v21 = vadd.f32 %v3160_v18, %v2880_v55 }
 0x2e1   : > { %v4333_v58 = vadd.f32 %v4332_v50, %v4302_v16  ;;  %v2847_v37 = vpop.f32.mrf.mxu1 }
 0x2e2   : > { %v4268_v14 = vpop.f32.mrf.mxu0  ;;  %v2881_v54 = vadd.f32 %v2847_v37, %v7829_v41 }
 0x2e4   : > { %v3842_v17 = vpop.f32.mrf.mxu3 }
 0x2e5   : > { %v3877_v26 = vadd.f32 %v3842_v17, %v3195_v21 }
 0x2e7   : > { %v4303_v28 = vadd.f32 %v4268_v14, %v3877_v26  ;;  %v3162_v3 = vpop.f32.mrf.mxu2 }
 0x2e8   : > { %v3196_v1 = vadd.f32 %v3162_v3, %v2881_v54 }
 0x2e9   : > { %v4334_v62 = vadd.f32 %v4333_v58, %v4303_v28 }
 0x2ea   : > { %v4270_v63 = vpop.f32.mrf.mxu0 }
 0x2ec   : > { %v3844_v12 = vpop.f32.mrf.mxu3 }
 0x2ed   : > { %v3878_v51 = vadd.f32 %v3844_v12, %v3196_v1 }
 0x2ef   : > { %v4304_v53 = vadd.f32 %v4270_v63, %v3878_v51 }
 0x2f1   : > { %v4335_v29 = vadd.f32 %v4334_v62, %v4304_v53 }
 0x2f3   : > { %v4336_v20 = vrot.slane %v4335_v29, 4 }
 0x2f5   : > { %v4337_v2 = vadd.f32 %v4336_v20, %v4335_v29 }
 0x2f7   : > { %v4338_v5 = vrot.slane %v4337_v2, 2 }
 0x2f9   : > { %v4339_v50 = vadd.f32 %v4338_v5, %v4337_v2 }
 0x2fb   : > { %v4340_v24 = vrot.slane %v4339_v50, 1 }
 0x2fd   : > { %v4341_v42 = vadd.f32 %v4340_v24, %v4339_v50 }
 0x2ff   : > { %v7362_v33 = vmul.f32 %v7359_v46, %v4341_v42 }
 0x301   : > { %v7365_v57 = vsub.f32 %v4299_v56, %v7362_v33  ;;  %v7368_v55 = vsub.f32 %v4300_v23, %v7362_v33  ;;  %v7371_v18 = vsub.f32 %v4301_v19, %v7362_v33  ;;  %v7374_v58 = vsub.f32 %v4302_v16, %v7362_v33 }
 0x302   : > { %v7377_v21 = vsub.f32 %v4303_v28, %v7362_v33  ;;  %v7380_v37 = vsub.f32 %v4304_v53, %v7362_v33  ;;  %v7384_v14 = vsub.f32 %v7074_v0, %v7362_v33  ;;  %v7388_v56 = vsub.f32 %v7092_v40, %v7362_v33 }
 0x303   : > { %v7392_v23 = vsub.f32 %v7113_v38, %v7362_v33  ;;  %v7400_v17 = vsub.f32 %v7131_v48, %v7362_v33  ;;  %v7404_v0 = vsub.f32 %v7152_v59, %v7362_v33  ;;  %v7410_v38 = vsub.f32 %v7167_v10, %v7362_v33 }
 0x304   : > { %v4382_v19 = vmul.f32 %v7384_v14, %v7384_v14  ;;  %v4383_v16 = vmul.f32 %v7388_v56, %v7388_v56  ;;  %v7416_v48 = vsub.f32 %v7187_v22, %v7362_v33  ;;  %v7422_v3 = vsub.f32 %v7202_v31, %v7362_v33 }
 0x305   : > { %v4384_v40 = vmul.f32 %v7392_v23, %v7392_v23  ;;  %v4385_v28 = vmul.f32 %v7400_v17, %v7400_v17  ;;  %v4386_v59 = vmul.f32 %v7404_v0, %v7404_v0  ;;  %v4387_v10 = vmul.f32 %v7410_v38, %v7410_v38 }
 0x306   : > { %v4414_v26 = vadd.f32 %v4383_v16, %v4382_v19  ;;  %v7428_v62 = vsub.f32 %v7222_v39, %v7362_v33  ;;  %v4388_v22 = vmul.f32 %v7416_v48, %v7416_v48  ;;  %v7434_v12 = vsub.f32 %v7237_v60, %v7362_v33 }
 0x307   : > { %v4389_v31 = vmul.f32 %v7422_v3, %v7422_v3  ;;  %v7440_v51 = vsub.f32 %v7257_v47, %v7362_v33  ;;  %v7446_v53 = vsub.f32 %v7269_v61, %v7362_v33  ;;  %v7452_v29 = vsub.f32 %v7282_v6, %v7362_v33 }
 0x308   : > { %v4415_v41 = vadd.f32 %v4414_v26, %v4384_v40  ;;  %v4390_v39 = vmul.f32 %v7428_v62, %v7428_v62  ;;  %v4391_v60 = vmul.f32 %v7434_v12, %v7434_v12  ;;  %v7458_v45 = vsub.f32 %v7290_v11, %v7362_v33 }
 0x309   : > { %v4392_v47 = vmul.f32 %v7440_v51, %v7440_v51  ;;  %v4393_v61 = vmul.f32 %v7446_v53, %v7446_v53  ;;  %v7464_v5 = vsub.f32 %v7293_v49, %v7362_v33  ;;  %v4394_v6 = vmul.f32 %v7452_v29, %v7452_v29 }
 0x30a   : > { %v4416_v54 = vadd.f32 %v4415_v41, %v4385_v28  ;;  %v7470_v50 = vsub.f32 %v7296_v13, %v7362_v33  ;;  %v4395_v11 = vmul.f32 %v7458_v45, %v7458_v45  ;;  %v7476_v27 = vsub.f32 %v7299_v15, %v7362_v33 }
 0x30b   : > { %v4396_v49 = vmul.f32 %v7464_v5, %v7464_v5  ;;  %v7482_v19 = vsub.f32 %v7302_v44, %v7362_v33  ;;  %v7488_v40 = vsub.f32 %v7305_v9, %v7362_v33  ;;  %v7494_v28 = vsub.f32 %v7308_v8, %v7362_v33 }
 0x30c   : > { %v4417_v30 = vadd.f32 %v4416_v54, %v4386_v59  ;;  %v4397_v13 = vmul.f32 %v7470_v50, %v7470_v50  ;;  %v4398_v15 = vmul.f32 %v7476_v27, %v7476_v27  ;;  %v7500_v59 = vsub.f32 %v7310_v4, %v7362_v33 }
 0x30d   : > { %v4399_v44 = vmul.f32 %v7482_v19, %v7482_v19  ;;  %v4400_v9 = vmul.f32 %v7488_v40, %v7488_v40  ;;  %v4401_v8 = vmul.f32 %v7494_v28, %v7494_v28 }
 0x30e   : > { %v4418_v1 = vadd.f32 %v4417_v30, %v4387_v10  ;;  %v7506_v10 = vsub.f32 %v7337_v32, %v7362_v33  ;;  %v4402_v4 = vmul.f32 %v7500_v59, %v7500_v59 }
 0x310   : > { %v4419_v43 = vadd.f32 %v4418_v1, %v4388_v22  ;;  %v7512_v22 = vsub.f32 %v7341_v35, %v7362_v33  ;;  %v4403_v32 = vmul.f32 %v7506_v10, %v7506_v10 }
 0x312   : > { %v4420_v63 = vadd.f32 %v4419_v43, %v4389_v31  ;;  %v7518_v31 = vsub.f32 %v7344_v25, %v7362_v33 }
 0x314   : > { %v4421_v34 = vadd.f32 %v4420_v63, %v4390_v39  ;;  %v4374_v39 = vsub.f32 %v7347_v52, %v7362_v33  ;;  %v4404_v63 = vmul.f32 %v7512_v22, %v7512_v22  ;;  %v4409_v52 = vmul.f32 %v7368_v55, %v7368_v55 }
 0x316   : > { %v4422_v20 = vadd.f32 %v4421_v34, %v4391_v60  ;;  %v4375_v60 = vsub.f32 %v7351_v36, %v7362_v33  ;;  %v4405_v34 = vmul.f32 %v7518_v31, %v7518_v31  ;;  %v4406_v25 = vmul.f32 %v4374_v39, %v4374_v39 }
 0x317   : > { %v4411_v33 = vmul.f32 %v7374_v58, %v7374_v58 }
 0x318   : > { %v4423_v2 = vadd.f32 %v4422_v20, %v4392_v47 }
 0x31a   : > { %v4424_v7 = vadd.f32 %v4423_v2, %v4393_v61  ;;  %v4407_v61 = vmul.f32 %v4375_v60, %v4375_v60 }
 0x31c   : > { %v4425_v24 = vadd.f32 %v4424_v7, %v4394_v6  ;;  %v4408_v6 = vmul.f32 %v7365_v57, %v7365_v57 }
 0x31e   : > { %v4426_v42 = vadd.f32 %v4425_v24, %v4395_v11  ;;  %v4410_v24 = vmul.f32 %v7371_v18, %v7371_v18 }
 0x320   : > { %v4427_v16 = vadd.f32 %v4426_v42, %v4396_v49  ;;  %v4412_v42 = vmul.f32 %v7377_v21, %v7377_v21 }
 0x322   : > { %v4428_v26 = vadd.f32 %v4427_v16, %v4397_v13  ;;  %v4413_v16 = vmul.f32 %v7380_v37, %v7380_v37 }
 0x324   : > { %v4429_v41 = vadd.f32 %v4428_v26, %v4398_v15 }
 0x326   : > { %v4430_v54 = vadd.f32 %v4429_v41, %v4399_v44 }
 0x328   : > { %v4431_v30 = vadd.f32 %v4430_v54, %v4400_v9 }
 0x32a   : > { %v4432_v1 = vadd.f32 %v4431_v30, %v4401_v8 }
 0x32c   : > { %v4433_v43 = vadd.f32 %v4432_v1, %v4402_v4 }
 0x32e   : > { %v4434_v35 = vadd.f32 %v4433_v43, %v4403_v32 }
 0x330   : > { %v4435_v47 = vadd.f32 %v4434_v35, %v4404_v63 }
 0x332   : > { %v4436_v20 = vadd.f32 %v4435_v47, %v4405_v34 }
 0x334   : > { %v4437_v2 = vadd.f32 %v4436_v20, %v4406_v25 }
 0x336   : > { %v4438_v7 = vadd.f32 %v4437_v2, %v4407_v61 }
 0x338   : > { %v4439_v11 = vadd.f32 %v4438_v7, %v4408_v6 }
 0x33a   : > { %v4440_v36 = vadd.f32 %v4439_v11, %v4409_v52 }
 0x33c   : > { %v4441_v49 = vadd.f32 %v4440_v36, %v4410_v24 }
 0x33e   : > { %v4442_v13 = vadd.f32 %v4441_v49, %v4411_v33 }
 0x340   : > { %v4443_v15 = vadd.f32 %v4442_v13, %v4412_v42 }
 0x342   : > { %v4444_v26 = vadd.f32 %v4443_v15, %v4413_v16 }
 0x344   : > { %v4445_v44 = vrot.slane %v4444_v26, 4 }
 0x346   : > { %v4446_v41 = vadd.f32 %v4445_v44, %v4444_v26 }
 0x348   : > { %v4447_v9 = vrot.slane %v4446_v41, 2 }
 0x34a   : > { %v4448_v54 = vadd.f32 %v4447_v9, %v4446_v41 }
 0x34c   : > { %v4449_v8 = vrot.slane %v4448_v54, 1 }
 0x34e   : > { %v4450_v30 = vadd.f32 %v4449_v8, %v4448_v54 }
 0x350   : > { %v4451_v4 = vmul.f32 %v4450_v30, %v7359_v46 }
 0x352   : > { %v4452_v1 = vadd.f32 1e-05, %v4451_v4 }
 0x354   : > { %5820 = vrsqrt.f32 %v4452_v1  ;;  %vm4459_vm8 = vweird.f32 %v4452_v1 }
 0x35a   : > { %v5821_v32 = vpop.eup %5820 }
 0x35b   : > { %v4454_v43 = vmul.f32 %v5821_v32, %v4452_v1  ;;  %vm4460_vm7 = vweird.f32 %v5821_v32 }
 0x35c   : > { %vm4461_vm9 = vmor %vm4459_vm8, %vm4460_vm7 }
 0x35d   : > { %v4455_v63 = vmul.f32 %v5821_v32, %v4454_v43 }
 0x35f   : > { %v4456_v35 = vmul.f32 0.5, %v4455_v63 }
 0x361   : > { %v4457_v34 = vsub.f32 1.5, %v4456_v35 }
 0x363   : > { %v4458_v47 = vmul.f32 %v5821_v32, %v4457_v34 }
 0x365   : > { %v4462_v25 = vsel %vm4461_vm9, %v5821_v32, %v4458_v47 }
 0x366   : > { %v7543_v20 = vmul.f32 %v4462_v25, %v4374_v39  ;;  %v7545_v61 = vmul.f32 %v4462_v25, %v4375_v60  ;;  %v7548_v2 = vmul.f32 %v4462_v25, %v7365_v57  ;;  %v7551_v46 = vmul.f32 %v4462_v25, %v7368_v55 }
 0x367   : > { %v7554_v6 = vmul.f32 %v4462_v25, %v7371_v18  ;;  %v7557_v7 = vmul.f32 %v4462_v25, %v7374_v58  ;;  %v7560_v52 = vmul.f32 %v4462_v25, %v7377_v21  ;;  %v7563_v39 = vmul.f32 %v4462_v25, %v7380_v37 }
 0x368   : > { %v4463_v60 = vmul.f32 %v4462_v25, %v7384_v14  ;;  %v4464_v57 = vmul.f32 %v4462_v25, %v7388_v56  ;;  %v7568_v11 = vmul.f32 %v4462_v25, %v7392_v23  ;;  %v7571_v55 = vmul.f32 %v4462_v25, %v7400_v17 }
 0x369   : > { %v7574_v18 = vmul.f32 %v4462_v25, %v7404_v0  ;;  %v7577_v58 = vmul.f32 %v4462_v25, %v7410_v38  ;;  %v7580_v21 = vmul.f32 %v4462_v25, %v7416_v48  ;;  %v7583_v37 = vmul.f32 %v4462_v25, %v7422_v3 }
 0x36a   : > { %v7586_v14 = vmul.f32 %v4462_v25, %v7428_v62  ;;  %v7589_v56 = vmul.f32 %v4462_v25, %v7434_v12  ;;  %v7592_v23 = vmul.f32 %v4462_v25, %v7440_v51  ;;  %v7595_v17 = vmul.f32 %v4462_v25, %v7446_v53 }
 0x36b   : > { %v7598_v0 = vmul.f32 %v4462_v25, %v7452_v29  ;;  %v7601_v38 = vmul.f32 %v4462_v25, %v7458_v45  ;;  %v7604_v48 = vmul.f32 %v4462_v25, %v7464_v5  ;;  %v7607_v3 = vmul.f32 %v4462_v25, %v7470_v50 }
 0x36c   : > { %v7610_v62 = vmul.f32 %v4462_v25, %v7476_v27  ;;  %v7613_v12 = vmul.f32 %v4462_v25, %v7482_v19  ;;  %v7616_v51 = vmul.f32 %v4462_v25, %v7488_v40  ;;  %v7619_v53 = vmul.f32 %v4462_v25, %v7494_v28 }
 0x36d   : > { %v7622_v29 = vmul.f32 %v4462_v25, %v7500_v59  ;;  %v7625_v45 = vmul.f32 %v4462_v25, %v7506_v10  ;;  %v7628_v5 = vmul.f32 %v4462_v25, %v7512_v22  ;;  %vm4495_vm10 = vcmp.ge.f32.partialorder %v4463_v60, 0.0 }
 0x36e   : > { %vm4496_vm11 = vcmp.ge.f32.partialorder %v4464_v57, 0.0  ;;  %vm4497_vm12 = vcmp.ge.f32.partialorder %v7568_v11, 0.0  ;;  %vm4498_vm13 = vcmp.ge.f32.partialorder %v7571_v55, 0.0  ;;  %vm4499_vm14 = vcmp.ge.f32.partialorder %v7574_v18, 0.0 }
 0x36f   : > { %vm4500_vm15 = vcmp.ge.f32.partialorder %v7577_v58, 0.0  ;;  %vm4501_vm0 = vcmp.ge.f32.partialorder %v7580_v21, 0.0  ;;  %vm4502_vm1 = vcmp.ge.f32.partialorder %v7583_v37, 0.0  ;;  %v4527_v50 = vmul.f32 0.2, %v4463_v60 }
 0x370   : > { %vm4503_vm2 = vcmp.ge.f32.partialorder %v7586_v14, 0.0  ;;  %v4528_v27 = vmul.f32 0.2, %v4464_v57  ;;  %vm4507_vm6 = vcmp.ge.f32.partialorder %v7598_v0, 0.0  ;;  %v4529_v19 = vmul.f32 0.2, %v7568_v11 }
 0x371   : > { %v4530_v40 = vmul.f32 0.2, %v7571_v55  ;;  %v7647_v28 = vmul.f32 %v4462_v25, %v7518_v31  ;;  %vm4519_vm9 = vcmp.ge.f32.partialorder %v7543_v20, 0.0  ;;  %v4531_v59 = vmul.f32 0.2, %v7574_v18 }
 0x372   : > { %v4532_v10 = vmul.f32 0.2, %v7577_v58  ;;  %v4533_v22 = vmul.f32 0.2, %v7580_v21  ;;  %v4534_v31 = vmul.f32 0.2, %v7583_v37  ;;  %v7662_v33 = vsel %vm4495_vm10, %v4463_v60, %v4527_v50 }
 0x373   : > { %v4535_v24 = vmul.f32 0.2, %v7586_v14  ;;  %v4536_v36 = vmul.f32 0.2, %v7589_v56  ;;  %vm4525_vm5 = vcmp.ge.f32.partialorder %v7560_v52, 0.0  ;;  %vm4526_vm3 = vcmp.ge.f32.partialorder %v7563_v39, 0.0 }
 0x374   : > { %v4537_v49 = vmul.f32 0.2, %v7592_v23  ;;  %v4538_v42 = vmul.f32 0.2, %v7595_v17  ;;  %v4539_v13 = vmul.f32 0.2, %v7598_v0  ;;  %v4560_v16 = vsel %vm4496_vm11, %v4464_v57, %v4528_v27 }
 0x375   : > { %vm4510_vm7 = vcmp.ge.f32.partialorder %v7607_v3, 0.0  ;;  %vm4511_vm8 = vcmp.ge.f32.partialorder %v7610_v62, 0.0  ;;  %vm4512_vm4 = vcmp.ge.f32.partialorder %v7613_v12, 0.0  ;;  %v4540_v15 = vmul.f32 0.2, %v7601_v38 }
 0x376   : > { %v4541_v26 = vmul.f32 0.2, %v7604_v48  ;;  %v4542_v44 = vmul.f32 0.2, %v7607_v3  ;;  %v4561_v41 = vsel %vm4497_vm12, %v7568_v11, %v4529_v19  ;;  %v4543_v9 = vmul.f32 0.2, %v7610_v62 }
 0x377   : > { %v4544_v54 = vmul.f32 0.2, %v7613_v12  ;;  %v4545_v8 = vmul.f32 0.2, %v7616_v51  ;;  %v4562_v30 = vsel %vm4498_vm13, %v7571_v55, %v4530_v40  ;;  %v4546_v4 = vmul.f32 0.2, %v7619_v53 }
 0x378   : > { %v4547_v1 = vmul.f32 0.2, %v7622_v29  ;;  %v4548_v32 = vmul.f32 0.2, %v7625_v45  ;;  %v4563_v43 = vsel %vm4499_vm14, %v7574_v18, %v4531_v59  ;;  %vm4515_vm12 = vcmp.ge.f32.partialorder %v7622_v29, 0.0 }
 0x379   : > { %vm4516_vm10 = vcmp.ge.f32.partialorder %v7625_v45, 0.0  ;;  %v4549_v63 = vmul.f32 0.2, %v7628_v5  ;;  %v4550_v35 = vmul.f32 0.2, %v7647_v28  ;;  %v4564_v47 = vsel %vm4500_vm15, %v7577_v58, %v4532_v10 }
 0x37a   : > { %v4551_v34 = vmul.f32 0.2, %v7543_v20  ;;  %vm4517_vm13 = vcmp.ge.f32.partialorder %v7628_v5, 0.0  ;;  %vm4518_vm11 = vcmp.ge.f32.partialorder %v7647_v28, 0.0  ;;  %v4552_v25 = vmul.f32 0.2, %v7545_v61 }
 0x37b   : > { %v4553_v60 = vmul.f32 0.2, %v7548_v2  ;;  %v4554_v57 = vmul.f32 0.2, %v7551_v46  ;;  %v4565_v11 = vsel %vm4501_vm0, %v7580_v21, %v4533_v22  ;;  %v4555_v55 = vmul.f32 0.2, %v7554_v6 }
 0x37c   : > { %v4556_v18 = vmul.f32 0.2, %v7557_v7  ;;  %v4557_v58 = vmul.f32 0.2, %v7560_v52  ;;  %v4566_v50 = vsel %vm4502_vm1, %v7583_v37, %v4534_v31  ;;  %v4558_v27 = vmul.f32 0.2, %v7563_v39 }
 0x37d   : > { %v4567_v19 = vsel %vm4503_vm2, %v7586_v14, %v4535_v24  ;;  %vm7830_vm14 = vcmp.ge.f32.partialorder %v7589_v56, 0.0  ;;  %vm7831_vm15 = vcmp.ge.f32.partialorder %v7592_v23, 0.0  ;;  %vm7832_vm0 = vcmp.ge.f32.partialorder %v7595_v17, 0.0 }
 0x37e   : > { %v4568_v21 = vsel %vm7830_vm14, %v7589_v56, %v4536_v36  ;;  %v4569_v40 = vsel %vm7831_vm15, %v7592_v23, %v4537_v49  ;;  %v4570_v59 = vsel %vm7832_vm0, %v7595_v17, %v4538_v42  ;;  %v4571_v37 = vsel %vm4507_vm6, %v7598_v0, %v4539_v13 }
 0x37f   : > { %vm7833_vm1 = vcmp.ge.f32.partialorder %v7601_v38, 0.0  ;;  %vm7834_vm2 = vcmp.ge.f32.partialorder %v7604_v48, 0.0  ;;  %v4583_v23 = vsel %vm4519_vm9, %v7543_v20, %v4551_v34  ;;  %vm7835_vm6 = vcmp.ge.f32.partialorder %v7545_v61, 0.0 }
 0x380   : > { %v4572_v14 = vsel %vm7833_vm1, %v7601_v38, %v4540_v15  ;;  %v4573_v56 = vsel %vm7834_vm2, %v7604_v48, %v4541_v26  ;;  %v4584_v17 = vsel %vm7835_vm6, %v7545_v61, %v4552_v25  ;;  %vm7836_vm14 = vcmp.ge.f32.partialorder %v7548_v2, 0.0 }
 0x381   : > { %v4585_v0 = vsel %vm7836_vm14, %v7548_v2, %v4553_v60  ;;  %vm7837_vm15 = vcmp.ge.f32.partialorder %v7551_v46, 0.0  ;;  %vm7838_vm0 = vcmp.ge.f32.partialorder %v7554_v6, 0.0  ;;  %vm7839_vm9 = vcmp.ge.f32.partialorder %v7557_v7, 0.0 }
 0x382   : > { %v4586_v38 = vsel %vm7837_vm15, %v7551_v46, %v4554_v57  ;;  %v4587_v48 = vsel %vm7838_vm0, %v7554_v6, %v4555_v55  ;;  %v4588_v20 = vsel %vm7839_vm9, %v7557_v7, %v4556_v18  ;;  %v5692_v10 = vpack.c.bf16 %v4560_v16, %v7662_v33 }
 0x383   : > { %v5697_v61 = vpack.c.bf16 %v4562_v30, %v4561_v41  ;;  %v4589_v2 = vsel %vm4525_vm5, %v7560_v52, %v4557_v58  ;;  %v4590_v46 = vsel %vm4526_vm3, %v7563_v39, %v4558_v27  ;;  %v5702_v22 = vpack.c.bf16 %v4564_v47, %v4563_v43 }
 0x384   : > { %v5707_v31 = vpack.c.bf16 %v4566_v50, %v4565_v11  ;;  %v4574_v6 = vsel %vm4510_vm7, %v7607_v3, %v4542_v44  ;;  %v4575_v7 = vsel %vm4511_vm8, %v7610_v62, %v4543_v9  ;;  %v4576_v24 = vsel %vm4512_vm4, %v7613_v12, %v4544_v54  ;;  %5693 = vst [vmem:[%s7742_s8] sm:$0xff] %v5692_v10  }
 0x385   : > { %v5712_v52 = vpack.c.bf16 %v4568_v21, %v4567_v19  ;;  %vm7840_vm3 = vcmp.ge.f32.partialorder %v7616_v51, 0.0  ;;  %5769 = vst [vmem:[%s7742_s8 + $0x8] sm:$0xff] %v5697_v61   ;;  %v5717_v36 = vpack.c.bf16 %v4570_v59, %v4569_v40  ;;  %v5752_v3 = vpack.c.bf16 %v4584_v17, %v4583_v23 }
 0x386   : > { %v4577_v39 = vsel %vm7840_vm3, %v7616_v51, %v4545_v8  ;;  %v5757_v33 = vpack.c.bf16 %v4586_v38, %v4585_v0  ;;  %vm7841_vm5 = vcmp.ge.f32.partialorder %v7619_v53, 0.0  ;;  %5770 = vst [vmem:[%s7742_s8 + $0x10] sm:$0xff] %v5702_v22   ;;  %v5722_v12 = vpack.c.bf16 %v4572_v14, %v4571_v37 }
 0x387   : > { %v4578_v62 = vsel %vm7841_vm5, %v7619_v53, %v4546_v4  ;;  %v5762_v49 = vpack.c.bf16 %v4588_v20, %v4587_v48  ;;  %v5767_v42 = vpack.c.bf16 %v4590_v46, %v4589_v2  ;;  %v4579_v51 = vsel %vm4515_vm12, %v7622_v29, %v4547_v1  ;;  %5771 = vst [vmem:[%s7742_s8 + $0x18] sm:$0xff] %v5707_v31  }
 0x388   : > { %v4580_v13 = vsel %vm4516_vm10, %v7625_v45, %v4548_v32  ;;  %v5727_v53 = vpack.c.bf16 %v4574_v6, %v4573_v56  ;;  %v4581_v16 = vsel %vm4517_vm13, %v7628_v5, %v4549_v63  ;;  %v4582_v15 = vsel %vm4518_vm11, %v7647_v28, %v4550_v35  ;;  %5772 = vst [vmem:[%s7742_s8 + $0x20] sm:$0xff] %v5712_v52  }
 0x389   : > { %v5732_v29 = vpack.c.bf16 %v4576_v24, %v4575_v7  ;;  %5773 = vst [vmem:[%s7742_s8 + $0x28] sm:$0xff] %v5717_v36   ;;  %v5737_v26 = vpack.c.bf16 %v4578_v62, %v4577_v39  ;;  %v5742_v45 = vpack.c.bf16 %v4580_v13, %v4579_v51  ;;  %v5747_v44 = vpack.c.bf16 %v4582_v15, %v4581_v16 }
 0x38a   : > { %5774 = vst [vmem:[%s7742_s8 + $0x30] sm:$0xff] %v5722_v12  }
 0x38b   : > { %5775 = vst [vmem:[%s7742_s8 + $0x38] sm:$0xff] %v5727_v53  }
 0x38c   : > { %5776 = vst [vmem:[%s7742_s8 + $0x40] sm:$0xff] %v5732_v29  }
 0x38d   : > { %5777 = vst [vmem:[%s7742_s8 + $0x48] sm:$0xff] %v5737_v26  }
 0x38e   : > { %5778 = vst [vmem:[%s7742_s8 + $0x50] sm:$0xff] %v5742_v45  }
 0x38f   : > { %5779 = vst [vmem:[%s7742_s8 + $0x58] sm:$0xff] %v5747_v44  }
 0x390   : > { %5780 = vst [vmem:[%s7742_s8 + $0x60] sm:$0xff] %v5752_v3  }
 0x391   : > { %5781 = vst [vmem:[%s7742_s8 + $0x68] sm:$0xff] %v5757_v33  }
 0x392   : > { %5782 = vst [vmem:[%s7742_s8 + $0x70] sm:$0xff] %v5762_v49  }
 0x393   : > { %5783 = vst [vmem:[%s7742_s8 + $0x78] sm:$0xff] %v5767_v42  }
 0x394 PF: > { %s12_s9 = sadd.s32 1, %s5881_s9  }
 0x395   : > { %p9_p4 = scmp.ge.s32.totalorder %s12_s9, 4  }
 0x397   :  { %11 = sbr.rel (!%p9_p4) target bundleno = 1 (0x1), region = 68 }

// kernel: down_residual_block.6
= control target key start
LH: loop header
LB: loop body
LE: loop exit
PB: predicated region body
PF: predicated region fallthrough
CT: control target
= control target key end

     0   :  { %s5480_s9 = smov 0   ;;  %s6899_s0 = inlined_call_operand.vmem [shape: bf16[2,18,18,128], index: 0, kind: input, shape index: {}]   ;;  %s6900_s1 = inlined_call_operand.vmem [shape: bf16[9,128,128], index: 1, kind: input, shape index: {}]   ;;  %s6901_s2 = inlined_call_operand.vmem [shape: f32[2,256,128], index: 2, kind: output, shape index: {}]  }
   0x1 LB: > { %s4392_s10 = sadd.s32 4294967295, %s5463_s9   ;;  %p4396_p0 = scmp.ge.s32.totalorder %s5463_s9, 1  ;;  %s5463_s9 = sphi %s5480_s9, %s12_s9  }
   0x2   : > { %p112_p1 = scmp.lt.s32.totalorder %s5463_s9, 3 }
   0x4   : > { %p113_p2 = pnand %p4396_p0, %p112_p1 }
   0x6   : > { %116 = sbr.rel (%p113_p2) target bundleno = 754 (0x2f2), region = 28 }
   0xb   : > { %v5282_v0 = vld [vmem:[%s6900_s1 + $0x78] sm:$0xff]  ;;  %p134_p3 = scmp.lt.s32.totalorder %s4392_s10, 1  ;;  %v5281_v1 = vld [vmem:[%s6900_s1 + $0x70] sm:$0xff]  ;;  %v5280_v2 = vld [vmem:[%s6900_s1 + $0x68] sm:$0xff]  ;;  %vm208_vm0 = vsmask.f32 3328 }
   0xc   : > { %5371 = vmatpush.bf16.msra.mxu1 %v5282_v0  ;;  %5372 = vmatpush.bf16.msra.mxu2 %v5282_v0  ;;  %vm209_vm1 = vsmask.f32 7440  ;;  %v5279_v6 = vld [vmem:[%s6900_s1 + $0x60] sm:$0xff]  ;;  %v5278_v35 = vld [vmem:[%s6900_s1 + $0x58] sm:$0xff]  ;;  %v5277_v54 = vld [vmem:[%s6900_s1 + $0x50] sm:$0xff]  ;;  %vm1094_vm3 = vcmask 1042432  }
   0xd   : > { %s6911_s10 = smov (!%p134_p3, %s4392_s10), 1  ;;  %5373 = vmatpush.bf16.msra.mxu3 %v5282_v0  ;;  %724 = vmatpush.bf16.msra.mxu0 %v5282_v0  ;;  %vm5518_vm2 = vmor %vm208_vm0, %vm209_vm1  ;;  %vm1095_vm4 = vcmask 1046532  }
   0xe   : > { %s5395_s15 = smul.u32 216, %s6911_s10  ;;  %vm5818_vm5 = vmor %vm1094_vm3, %vm1095_vm4  ;;  %s5250_s6 = sshll.u32 %s6911_s10, 8 }
   0xf   : > { %s6649_s8 = scalar_lea.vmem %s6901_s2, %s5250_s6 }
  0x10   : > { %5374 = vmatpush.bf16.msra.mxu1 %v5281_v1  ;;  %5375 = vmatpush.bf16.msra.mxu2 %v5281_v1  ;;  %s5503_s20 = scalar_lea.vmem %s6899_s0, %s5395_s15 }
  0x11   : > { %5376 = vmatpush.bf16.msra.mxu3 %v5281_v1  ;;  %725 = vmatpush.bf16.msra.mxu0 %v5281_v1  ;;  %v152_v3 = vld [vmem:[%s5503_s20 + $0x30] sm:$0xf]  ;;  %v153_v4 = vld [vmem:[%s5503_s20 + $0x34] sm:$0xf]  ;;  %v196_v5 = vld [vmem:[%s5503_s20 + $0x38] sm:$0x1] }
  0x12   : > { %v308_v7 = vshrl.u32 %v152_v3, 16  ;;  %v311_v8 = vshll.u32 %v152_v3, 16  ;;  %v317_v9 = vshll.u32 %v153_v4, 16  ;;  %v321_v10 = vshrl.u32 %v153_v4, 16  ;;  %v160_v11 = vld [vmem:[%s5503_s20 + $0x60] sm:$0xf] }
  0x13   : > { %v327_v12 = vshll.u32 %v196_v5, 16  ;;  %v161_v13 = vld [vmem:[%s5503_s20 + $0x64] sm:$0xf]  ;;  %v200_v14 = vld [vmem:[%s5503_s20 + $0x68] sm:$0x1]  ;;  %v404_v15 = vshrl.u32 %v160_v11, 16 }
  0x14   : > { %5377 = vmatpush.bf16.msra.mxu1 %v5280_v2  ;;  %5378 = vmatpush.bf16.msra.mxu2 %v5280_v2  ;;  %v310_v16 = vrot.slane %v308_v7, 4  ;;  %v313_v17 = vrot.slane %v311_v8, 5  ;;  %v319_v18 = vrot.slane %v317_v9, 5  ;;  %v323_v19 = vrot.slane %v321_v10, 4  ;;  %v168_v20 = vld [vmem:[%s5503_s20 + $0x90] sm:$0xf] }
  0x15   : > { %5379 = vmatpush.bf16.msra.mxu3 %v5280_v2  ;;  %726 = vmatpush.bf16.msra.mxu0 %v5280_v2  ;;  %v329_v21 = vrot.slane %v327_v12, 5  ;;  %v406_v22 = vrot.slane %v404_v15, 4  ;;  %v407_v23 = vshll.u32 %v160_v11, 16  ;;  %v413_v24 = vshll.u32 %v161_v13, 16  ;;  %v169_v29 = vld [vmem:[%s5503_s20 + $0x94] sm:$0xf] }
  0x16   : > { %v314_v25 = vor.u32 %v313_v17, %v310_v16  ;;  %v324_v26 = vor.u32 %v323_v19, %v319_v18  ;;  %v417_v27 = vshrl.u32 %v161_v13, 16  ;;  %v423_v28 = vshll.u32 %v200_v14, 16  ;;  %v204_v41 = vld [vmem:[%s5503_s20 + $0x98] sm:$0x1]  ;;  %v144_v49 = vld [vmem:[%s5503_s20] sm:$0xf] }
  0x17   : > { %v409_v31 = vrot.slane %v407_v23, 5  ;;  %v415_v32 = vrot.slane %v413_v24, 5  ;;  %v500_v33 = vshrl.u32 %v168_v20, 16  ;;  %v503_v34 = vshll.u32 %v168_v20, 16  ;;  %v5543_v62 = vld [vmem:[%s5503_s20 + $0x4] sm:$0xf] }
  0x18   : > { %5380 = vmatpush.bf16.msra.mxu1 %v5279_v6  ;;  %5381 = vmatpush.bf16.msra.mxu2 %v5279_v6  ;;  %v315_v36 = vrot.slane %v314_v25, 4  ;;  %v325_v37 = vrot.slane %v324_v26, 4  ;;  %v419_v38 = vrot.slane %v417_v27, 4  ;;  %v425_v39 = vrot.slane %v423_v28, 5  ;;  %v5550_v4 = vld [vmem:[%s5503_s20 + $0x8] sm:$0x1] }
  0x19   : > { %5382 = vmatpush.bf16.msra.mxu3 %v5279_v6  ;;  %727 = vmatpush.bf16.msra.mxu0 %v5279_v6  ;;  %v410_v40 = vor.u32 %v409_v31, %v406_v22  ;;  %v502_v42 = vrot.slane %v500_v33, 4  ;;  %v505_v43 = vrot.slane %v503_v34, 5  ;;  %v509_v44 = vshll.u32 %v169_v29, 16  ;;  %v154_v5 = vld [vmem:[%s5503_s20 + $0x3c] sm:$0xf]  ;;  %v5276_v10 = vld [vmem:[%s6900_s1 + $0x48] sm:$0xff] }
  0x1a   : > { %v320_v45 = vsel %vm5518_vm2, %v315_v36, %v319_v18  ;;  %v330_v46 = vsel %vm5518_vm2, %v325_v37, %v329_v21  ;;  %v420_v47 = vor.u32 %v419_v38, %v415_v32  ;;  %v513_v48 = vshrl.u32 %v169_v29, 16  ;;  %v155_v15 = vld [vmem:[%s5503_s20 + $0x40] sm:$0xf]  ;;  %v197_v19 = vld [vmem:[%s5503_s20 + $0x44] sm:$0x1]  ;;  %v5290_v37 = vld [vmem:[%s6900_s1 + $0xb8] sm:$0xff] }
  0x1b   : > { %v5531_v50 = vunpack.c.l.b16 %v320_v45  ;;  %v5533_v51 = vunpack.c.l.b16 %v330_v46  ;;  %v411_v52 = vrot.slane %v410_v40, 4  ;;  %v506_v53 = vor.u32 %v505_v43, %v502_v42  ;;  %v162_v25 = vld [vmem:[%s5503_s20 + $0x6c] sm:$0xf]  ;;  %v5275_v31 = vld [vmem:[%s6900_s1 + $0x40] sm:$0xff]  ;;  %v163_v40 = vld [vmem:[%s5503_s20 + $0x70] sm:$0xf] }
  0x1c   : > { %5383 = vmatpush.bf16.msra.mxu1 %v5278_v35  ;;  %5384 = vmatpush.bf16.msra.mxu2 %v5278_v35  ;;  %v421_v55 = vrot.slane %v420_v47, 4  ;;  %v511_v56 = vrot.slane %v509_v44, 5  ;;  %v515_v57 = vrot.slane %v513_v48, 4  ;;  %v519_v58 = vshll.u32 %v204_v41, 16  ;;  %v5314_v43 = vld [vmem:[%s6900_s1 + $0xf8] sm:$0xff] }
  0x1d   : > { %5385 = vmatpush.bf16.msra.mxu3 %v5278_v35  ;;  %728 = vmatpush.bf16.msra.mxu0 %v5278_v35  ;;  %v648_v59 = vpack.c.b16 %v5533_v51, %v5531_v50  ;;  %v416_v60 = vsel %vm5518_vm2, %v411_v52, %v415_v32  ;;  %v507_v61 = vrot.slane %v506_v53, 4  ;;  %v212_v63 = vshrl.u32 %v144_v49, 16  ;;  %v201_v47 = vld [vmem:[%s5503_s20 + $0x74] sm:$0x1] }
  0x1e   : > { %v426_v0 = vsel %vm5518_vm2, %v421_v55, %v425_v39  ;;  %v5547_v1 = vunpack.c.l.b16 %v416_v60  ;;  %v516_v2 = vor.u32 %v515_v57, %v511_v56  ;;  %v521_v3 = vrot.slane %v519_v58, 5  ;;  %v5274_v57 = vld [vmem:[%s6900_s1 + $0x38] sm:$0xff] }
  0x1f   : > { %v5553_v6 = vunpack.c.l.b16 %v426_v0  ;;  %v512_v7 = vsel %vm5518_vm2, %v507_v61, %v511_v56  ;;  %v214_v8 = vrot.slane %v212_v63, 4  ;;  %v215_v9 = vshll.u32 %v144_v49, 16  ;;  %v5289_v63 = vld [vmem:[%s6900_s1 + $0xb0] sm:$0xff] }
  0x20   : > { %5386 = vmatpush.bf16.msra.mxu1 %v5277_v54  ;;  %5387 = vmatpush.bf16.msra.mxu2 %v5277_v54  ;;  %v517_v11 = vrot.slane %v516_v2, 4  ;;  %v5560_v12 = vunpack.c.l.b16 %v512_v7  ;;  %v221_v13 = vshll.u32 %v5543_v62, 16  ;;  %v225_v14 = vshrl.u32 %v5543_v62, 16 }
  0x21   : > { %5388 = vmatpush.bf16.msra.mxu3 %v5277_v54  ;;  %729 = vmatpush.bf16.msra.mxu0 %v5277_v54  ;;  %v652_v16 = vpack.c.b16 %v5553_v6, %v5547_v1  ;;  %v217_v17 = vrot.slane %v215_v9, 5  ;;  %v231_v18 = vshll.u32 %v5550_v4, 16  ;;  %v332_v20 = vshrl.u32 %v154_v5, 16  ;;  %v170_v54 = vld [vmem:[%s5503_s20 + $0x9c] sm:$0xf] }
  0x22   : > { %v522_v21 = vsel %vm5518_vm2, %v517_v11, %v521_v3  ;;  %v223_v22 = vrot.slane %v221_v13, 5  ;;  %v227_v23 = vrot.slane %v225_v14, 4  ;;  %v335_v24 = vshll.u32 %v154_v5, 16  ;;  %v5313_v3 = vld [vmem:[%s6900_s1 + $0xf0] sm:$0xff]  ;;  %v5322_v11 = vld [vmem:[%s6900_s1 + $0x138] sm:$0xff] }
  0x23   : > { %v637_v26 = vunpack.c.l.b16 %v522_v21  ;;  %v218_v27 = vor.u32 %v217_v17, %v214_v8  ;;  %v233_v28 = vrot.slane %v231_v18, 5  ;;  %v334_v29 = vrot.slane %v332_v20, 4  ;;  %v171_v8 = vld [vmem:[%s5503_s20 + $0xa0] sm:$0xf]  ;;  %v146_v17 = vld [vmem:[%s5503_s20 + $0xc] sm:$0xf] }
  0x24   : > { %5389 = vmatpush.bf16.msra.mxu1 %v5276_v10  ;;  %5390 = vmatpush.bf16.msra.mxu2 %v5276_v10  ;;  %v228_v32 = vor.u32 %v227_v23, %v223_v22  ;;  %v337_v33 = vrot.slane %v335_v24, 5  ;;  %v341_v34 = vshll.u32 %v155_v15, 16  ;;  %v345_v35 = vshrl.u32 %v155_v15, 16  ;;  %v205_v15 = vld [vmem:[%s5503_s20 + $0xa4] sm:$0x1]  ;;  %v5273_v18 = vld [vmem:[%s6900_s1 + $0x30] sm:$0xff] }
  0x25   : > { %5391 = vmatpush.bf16.msra.mxu3 %v5276_v10  ;;  %730 = vmatpush.bf16.msra.mxu0 %v5276_v10  ;;  %v656_v36 = vpack.c.b16 %v637_v26, %v5560_v12  ;;  %v219_v38 = vrot.slane %v218_v27, 4  ;;  %v351_v39 = vshll.u32 %v197_v19, 16  ;;  %v428_v41 = vshrl.u32 %v162_v25, 16  ;;  %v5288_v23 = vld [vmem:[%s6900_s1 + $0xa8] sm:$0xff]  ;;  %v5622_v27 = vld [vmem:[%s5503_s20 + $0x10] sm:$0xf] }
  0x26   : > { %v229_v42 = vrot.slane %v228_v32, 4  ;;  %v338_v44 = vor.u32 %v337_v33, %v334_v29  ;;  %v343_v45 = vrot.slane %v341_v34, 5  ;;  %v347_v46 = vrot.slane %v345_v35, 4  ;;  %v5312_v29 = vld [vmem:[%s6900_s1 + $0xe8] sm:$0xff]  ;;  %v5632_v35 = vld [vmem:[%s5503_s20 + $0x14] sm:$0x1] }
  0x27   : > { %v224_v48 = vsel %vm5518_vm2, %v219_v38, %v223_v22  ;;  %v353_v49 = vrot.slane %v351_v39, 5  ;;  %v430_v52 = vrot.slane %v428_v41, 4  ;;  %v431_v53 = vshll.u32 %v162_v25, 16  ;;  %v5272_v41 = vld [vmem:[%s6900_s1 + $0x28] sm:$0xff] }
  0x28   : > { %5392 = vmatpush.bf16.msra.mxu1 %v5275_v31  ;;  %5393 = vmatpush.bf16.msra.mxu2 %v5275_v31  ;;  %v234_v55 = vsel %vm5518_vm2, %v229_v42, %v233_v28  ;;  %v612_v56 = vunpack.c.l.b16 %v224_v48  ;;  %v339_v58 = vrot.slane %v338_v44, 4  ;;  %v348_v60 = vor.u32 %v347_v46, %v343_v45  ;;  %v156_v46 = vld [vmem:[%s5503_s20 + $0x48] sm:$0xf] }
  0x29   : > { %5394 = vmatpush.bf16.msra.mxu3 %v5275_v31  ;;  %731 = vmatpush.bf16.msra.mxu0 %v5275_v31  ;;  %v613_v61 = vunpack.c.l.b16 %v234_v55  ;;  %v433_v0 = vrot.slane %v431_v53, 5  ;;  %v437_v1 = vshll.u32 %v163_v40, 16  ;;  %v441_v2 = vshrl.u32 %v163_v40, 16  ;;  %v5287_v53 = vld [vmem:[%s6900_s1 + $0xa0] sm:$0xff] }
  0x2a   : > { %v344_v5 = vsel %vm5518_vm2, %v339_v58, %v343_v45  ;;  %v349_v6 = vrot.slane %v348_v60, 4  ;;  %v447_v7 = vshll.u32 %v201_v47, 16  ;;  %v524_v9 = vshrl.u32 %v170_v54, 16  ;;  %v5320_v60 = vld [vmem:[%s6900_s1 + $0x128] sm:$0xff] }
  0x2b   : > { %752 = vmatmul.bf16.vlgmr.msra.gmra.mxu1 %v648_v59  ;;  %772 = vmatmul.bf16.vlgmr.msra.gmra.mxu2 %v652_v16  ;;  %v644_v10 = vpack.c.b16 %v613_v61, %v612_v56  ;;  %v5607_v12 = vunpack.c.l.b16 %v344_v5  ;;  %v434_v13 = vor.u32 %v433_v0, %v430_v52  ;;  %v439_v14 = vrot.slane %v437_v1, 5  ;;  %v5271_v61 = vld [vmem:[%s6900_s1 + $0x20] sm:$0xff] }
  0x2c   : > { %1338 = vmatpush.bf16.msrb.mxu2 %v5290_v37  ;;  %792 = vmatmul.bf16.vlgmr.msra.gmra.mxu3 %v656_v36  ;;  %v354_v50 = vsel %vm5518_vm2, %v349_v6, %v353_v49  ;;  %v443_v51 = vrot.slane %v441_v2, 4  ;;  %v449_v59 = vrot.slane %v447_v7, 5  ;;  %v526_v16 = vrot.slane %v524_v9, 4  ;;  %v5321_v36 = vld [vmem:[%s6900_s1 + $0x130] sm:$0xff]  ;;  %v5661_v2 = vld [vmem:[%s5503_s20 + $0x4c] sm:$0xf] }
  0x2d   : > { %1653 = vmatpush.bf16.msrb.mxu3 %v5314_v43  ;;  %957 = vmatpush.bf16.msrb.mxu1 %v5274_v57  ;;  %v5616_v19 = vunpack.c.l.b16 %v354_v50  ;;  %v435_v20 = vrot.slane %v434_v13, 4  ;;  %v527_v21 = vshll.u32 %v170_v54, 16  ;;  %v533_v22 = vshll.u32 %v171_v8, 16  ;;  %v5311_v54 = vld [vmem:[%s6900_s1 + $0xe0] sm:$0xff] }
  0x2e   : > { %732 = vmatmul.bf16.vlgmr.msra.gmra.mxu0 %v644_v10  ;;  %v444_v24 = vor.u32 %v443_v51, %v439_v14  ;;  %v537_v25 = vshrl.u32 %v171_v8, 16  ;;  %v543_v26 = vshll.u32 %v205_v15, 16  ;;  %v236_v28 = vshrl.u32 %v146_v17, 16  ;;  %v198_v8 = vld [vmem:[%s5503_s20 + $0x50] sm:$0x1] }
  0x2f   : > { %2335 = vmatpush.bf16.msrb.mxu0 %v5322_v11  ;;  %v649_v31 = vpack.c.b16 %v5616_v19, %v5607_v12  ;;  %v440_v32 = vsel %vm5518_vm2, %v435_v20, %v439_v14  ;;  %v529_v33 = vrot.slane %v527_v21, 5  ;;  %v535_v34 = vrot.slane %v533_v22, 5  ;;  %v164_v10 = vld [vmem:[%s5503_s20 + $0x78] sm:$0xf] }
  0x30   : > { %1339 = vmatpush.bf16.msrb.mxu2 %v5289_v63  ;;  %v445_v37 = vrot.slane %v444_v24, 4  ;;  %v5637_v38 = vunpack.c.l.b16 %v440_v32  ;;  %v539_v39 = vrot.slane %v537_v25, 4  ;;  %v545_v40 = vrot.slane %v543_v26, 5  ;;  %v5319_v24 = vld [vmem:[%s6900_s1 + $0x120] sm:$0xff]  ;;  %v165_v32 = vld [vmem:[%s5503_s20 + $0x7c] sm:$0xf] }
  0x31   : > { %1654 = vmatpush.bf16.msrb.mxu3 %v5313_v3  ;;  %958 = vmatpush.bf16.msrb.mxu1 %v5273_v18  ;;  %v530_v42 = vor.u32 %v529_v33, %v526_v16  ;;  %v238_v43 = vrot.slane %v236_v28, 4  ;;  %v239_v44 = vshll.u32 %v146_v17, 16  ;;  %v245_v45 = vshll.u32 %v5622_v27, 16  ;;  %v5286_v17 = vld [vmem:[%s6900_s1 + $0x98] sm:$0xff]  ;;  %v202_v33 = vld [vmem:[%s5503_s20 + $0x80] sm:$0x1] }
  0x32   : > { %v450_v47 = vsel %vm5518_vm2, %v445_v37, %v449_v59  ;;  %v540_v48 = vor.u32 %v539_v39, %v535_v34  ;;  %v249_v49 = vshrl.u32 %v5622_v27, 16  ;;  %v255_v52 = vshll.u32 %v5632_v35, 16  ;;  %v5310_v18 = vld [vmem:[%s6900_s1 + $0xd8] sm:$0xff] }
  0x33   : > { %v631_v55 = vunpack.c.l.b16 %v450_v47  ;;  %v531_v56 = vrot.slane %v530_v42, 4  ;;  %v241_v57 = vrot.slane %v239_v44, 5  ;;  %v247_v58 = vrot.slane %v245_v45, 5  ;;  %2336 = vmatpush.bf16.msrb.mxu0 %v5321_v36  ;;  %v5309_v42 = vld [vmem:[%s6900_s1 + $0xd0] sm:$0xff] }
  0x34   : > { %1340 = vmatpush.bf16.msrb.mxu2 %v5288_v23  ;;  %v541_v63 = vrot.slane %v540_v48, 4  ;;  %v251_v0 = vrot.slane %v249_v49, 4  ;;  %v257_v1 = vrot.slane %v255_v52, 5  ;;  %v356_v3 = vshrl.u32 %v156_v46, 16 }
  0x35   : > { %1655 = vmatpush.bf16.msrb.mxu3 %v5312_v29  ;;  %959 = vmatpush.bf16.msrb.mxu1 %v5272_v41  ;;  %v653_v5 = vpack.c.b16 %v631_v55, %v5637_v38  ;;  %v536_v6 = vsel %vm5518_vm2, %v531_v56, %v535_v34  ;;  %v242_v7 = vor.u32 %v241_v57, %v238_v43  ;;  %v359_v9 = vshll.u32 %v156_v46, 16  ;;  %v5270_v34 = vld [vmem:[%s6900_s1 + $0x18] sm:$0xff]  ;;  %v5285_v41 = vld [vmem:[%s6900_s1 + $0x90] sm:$0xff] }
  0x36   : > { %v546_v11 = vsel %vm5518_vm2, %v541_v63, %v545_v40  ;;  %v638_v13 = vunpack.c.l.b16 %v536_v6  ;;  %v252_v14 = vor.u32 %v251_v0, %v247_v58  ;;  %v358_v15 = vrot.slane %v356_v3, 4  ;;  %v172_v40 = vld [vmem:[%s5503_s20 + $0xa8] sm:$0xf]  ;;  %v5269_v56 = vld [vmem:[%s6900_s1 + $0x10] sm:$0xff]  ;;  %v148_v6 = vld [vmem:[%s5503_s20 + $0x18] sm:$0xf] }
  0x37   : > { %v639_v50 = vunpack.c.l.b16 %v546_v11  ;;  %v243_v51 = vrot.slane %v242_v7, 4  ;;  %2337 = vmatpush.bf16.msrb.mxu0 %v5320_v60  ;;  %v361_v59 = vrot.slane %v359_v9, 5  ;;  %v365_v16 = vshll.u32 %v5661_v2, 16  ;;  %v206_v63 = vld [vmem:[%s5503_s20 + $0xb0] sm:$0x1] }
  0x38   : > { %1341 = vmatpush.bf16.msrb.mxu2 %v5287_v53  ;;  %v253_v20 = vrot.slane %v252_v14, 4  ;;  %v369_v21 = vshrl.u32 %v5661_v2, 16  ;;  %v375_v22 = vshll.u32 %v198_v8, 16  ;;  %v452_v23 = vshrl.u32 %v164_v10, 16  ;;  %v5318_v53 = vld [vmem:[%s6900_s1 + $0x118] sm:$0xff] }
  0x39   : > { %1656 = vmatpush.bf16.msrb.mxu3 %v5311_v54  ;;  %960 = vmatpush.bf16.msrb.mxu1 %v5271_v61  ;;  %v657_v25 = vpack.c.b16 %v639_v50, %v638_v13  ;;  %v248_v26 = vsel %vm5518_vm2, %v243_v51, %v247_v58  ;;  %v362_v28 = vor.u32 %v361_v59, %v358_v15  ;;  %v367_v29 = vrot.slane %v365_v16, 5  ;;  %v5719_v59 = vld [vmem:[%s5503_s20 + $0x1c] sm:$0xf] }
  0x3a   : > { %v258_v36 = vsel %vm5518_vm2, %v253_v20, %v257_v1  ;;  %v614_v37 = vunpack.c.l.b16 %v248_v26  ;;  %v371_v38 = vrot.slane %v369_v21, 4  ;;  %v377_v39 = vrot.slane %v375_v22, 5 }
  0x3b   : > { %757 = vmatmul.bf16.gmra.mxu1 %v649_v31  ;;  %777 = vmatmul.bf16.gmra.mxu2 %v653_v5  ;;  %v615_v43 = vunpack.c.l.b16 %v258_v36  ;;  %v363_v44 = vrot.slane %v362_v28, 4  ;;  %v454_v45 = vrot.slane %v452_v23, 4  ;;  %v455_v46 = vshll.u32 %v164_v10, 16  ;;  %v173_v31 = vld [vmem:[%s5503_s20 + $0xac] sm:$0xf] }
  0x3c   : > { %1342 = vmatpush.bf16.msrb.mxu2 %v5286_v17  ;;  %797 = vmatmul.bf16.gmra.mxu3 %v657_v25  ;;  %v372_v47 = vor.u32 %v371_v38, %v367_v29  ;;  %v461_v48 = vshll.u32 %v165_v32, 16  ;;  %v465_v49 = vshrl.u32 %v165_v32, 16  ;;  %v471_v52 = vshll.u32 %v202_v33, 16  ;;  %v5284_v17 = vld [vmem:[%s6900_s1 + $0x88] sm:$0xff]  ;;  %v158_v25 = vld [vmem:[%s5503_s20 + $0x54] sm:$0xf] }
  0x3d   : > { %1657 = vmatpush.bf16.msrb.mxu3 %v5310_v18  ;;  %2338 = vmatpush.bf16.msrb.mxu0 %v5319_v24  ;;  %v645_v54 = vpack.c.b16 %v615_v43, %v614_v37  ;;  %v368_v12 = vsel %vm5518_vm2, %v363_v44, %v367_v29  ;;  %v457_v19 = vrot.slane %v455_v46, 5  ;;  %v548_v55 = vshrl.u32 %v172_v40, 16  ;;  %v5725_v24 = vld [vmem:[%s5503_s20 + $0x20] sm:$0x1]  ;;  %v5308_v38 = vld [vmem:[%s6900_s1 + $0xc8] sm:$0xff] }
  0x3e   : > { %961 = vmatpush.bf16.msrb.mxu1 %v5270_v34  ;;  %v373_v57 = vrot.slane %v372_v47, 4  ;;  %v5709_v58 = vunpack.c.l.b16 %v368_v12  ;;  %v463_v60 = vrot.slane %v461_v48, 5  ;;  %v467_v61 = vrot.slane %v465_v49, 4 }
  0x3f   : > { %737 = vmatmul.bf16.gmra.mxu0 %v645_v54  ;;  %v458_v0 = vor.u32 %v457_v19, %v454_v45  ;;  %v473_v1 = vrot.slane %v471_v52, 5  ;;  %v550_v3 = vrot.slane %v548_v55, 4  ;;  %v551_v5 = vshll.u32 %v172_v40, 16  ;;  %v5268_v40 = vld [vmem:[%s6900_s1 + $0x8] sm:$0xff]  ;;  %v5283_v45 = vld [vmem:[%s6900_s1 + $0x80] sm:$0xff] }
  0x40   : > { %1343 = vmatpush.bf16.msrb.mxu2 %v5285_v41  ;;  %v378_v7 = vsel %vm5518_vm2, %v373_v57, %v377_v39  ;;  %v468_v8 = vor.u32 %v467_v61, %v463_v60  ;;  %v557_v9 = vshll.u32 %v173_v31, 16  ;;  %v561_v10 = vshrl.u32 %v173_v31, 16  ;;  %v5317_v39 = vld [vmem:[%s6900_s1 + $0x110] sm:$0xff]  ;;  %v5748_v52 = vld [vmem:[%s5503_s20 + $0x58] sm:$0xf]  ;;  %v5316_v57 = vld [vmem:[%s6900_s1 + $0x108] sm:$0xff] }
  0x41   : > { %1658 = vmatpush.bf16.msrb.mxu3 %v5309_v42  ;;  %2339 = vmatpush.bf16.msrb.mxu0 %v5318_v53  ;;  %v625_v11 = vunpack.c.l.b16 %v378_v7  ;;  %v459_v13 = vrot.slane %v458_v0, 4  ;;  %v553_v14 = vrot.slane %v551_v5, 5  ;;  %v567_v15 = vshll.u32 %v206_v63, 16  ;;  %v5751_v53 = vld [vmem:[%s5503_s20 + $0x5c] sm:$0x1]  ;;  %v5267_v0 = vld [vmem:[%s6900_s1] sm:$0xff] }
  0x42   : > { %962 = vmatpush.bf16.msrb.mxu1 %v5269_v56  ;;  %v469_v18 = vrot.slane %v468_v8, 4  ;;  %v559_v50 = vrot.slane %v557_v9, 5  ;;  %v563_v51 = vrot.slane %v561_v10, 4  ;;  %v260_v16 = vshrl.u32 %v148_v6, 16  ;;  %v166_v55 = vld [vmem:[%s5503_s20 + $0x84] sm:$0xf] }
  0x43   : > { %v650_v20 = vpack.c.b16 %v625_v11, %v5709_v58  ;;  %v464_v21 = vsel %vm5518_vm2, %v459_v13, %v463_v60  ;;  %v554_v22 = vor.u32 %v553_v14, %v550_v3  ;;  %v569_v23 = vrot.slane %v567_v15, 5  ;;  %v5307_v56 = vld [vmem:[%s6900_s1 + $0xc0] sm:$0xff]  ;;  %v167_v10 = vld [vmem:[%s5503_s20 + $0x88] sm:$0xf] }
  0x44   : > { %1344 = vmatpush.bf16.msrb.mxu2 %v5284_v17  ;;  %v474_v26 = vsel %vm5518_vm2, %v469_v18, %v473_v1  ;;  %v632_v28 = vunpack.c.l.b16 %v464_v21  ;;  %v564_v29 = vor.u32 %v563_v51, %v559_v50  ;;  %v262_v32 = vrot.slane %v260_v16, 4  ;;  %v5315_v18 = vld [vmem:[%s6900_s1 + $0x100] sm:$0xff]  ;;  %v203_v16 = vld [vmem:[%s5503_s20 + $0x8c] sm:$0x1] }
  0x45   : > { %v633_v33 = vunpack.c.l.b16 %v474_v26  ;;  %v555_v34 = vrot.slane %v554_v22, 4  ;;  %v263_v36 = vshll.u32 %v148_v6, 16  ;;  %v269_v37 = vshll.u32 %v5719_v59, 16  ;;  %1659 = vmatpush.bf16.msrb.mxu3 %v5308_v38  ;;  %2340 = vmatpush.bf16.msrb.mxu0 %v5317_v39  ;;  %v174_v22 = vld [vmem:[%s5503_s20 + $0xb4] sm:$0xf] }
  0x46   : > { %v565_v41 = vrot.slane %v564_v29, 4  ;;  %v273_v42 = vshrl.u32 %v5719_v59, 16  ;;  %v279_v43 = vshll.u32 %v5725_v24, 16  ;;  %v380_v44 = vshrl.u32 %v158_v25, 16  ;;  %963 = vmatpush.bf16.msrb.mxu1 %v5268_v40  ;;  %v175_v39 = vld [vmem:[%s5503_s20 + $0xb8] sm:$0xf] }
  0x47   : > { %v654_v46 = vpack.c.b16 %v633_v33, %v632_v28  ;;  %v560_v47 = vsel %vm5518_vm2, %v555_v34, %v559_v50  ;;  %v265_v48 = vrot.slane %v263_v36, 5  ;;  %v271_v49 = vrot.slane %v269_v37, 5 }
  0x48   : > { %v570_v54 = vsel %vm5518_vm2, %v565_v41, %v569_v23  ;;  %v640_v12 = vunpack.c.l.b16 %v560_v47  ;;  %v275_v19 = vrot.slane %v273_v42, 4  ;;  %v281_v31 = vrot.slane %v279_v43, 5  ;;  %1345 = vmatpush.bf16.msrb.mxu2 %v5283_v45  ;;  %v207_v45 = vld [vmem:[%s5503_s20 + $0xbc] sm:$0x1] }
  0x49   : > { %v641_v58 = vunpack.c.l.b16 %v570_v54  ;;  %v266_v60 = vor.u32 %v265_v48, %v262_v32  ;;  %v382_v61 = vrot.slane %v380_v44, 4  ;;  %v383_v63 = vshll.u32 %v158_v25, 16  ;;  %1660 = vmatpush.bf16.msrb.mxu3 %v5307_v56  ;;  %2341 = vmatpush.bf16.msrb.mxu0 %v5316_v57  ;;  %v5354_v47 = vld [vmem:[%s6900_s1 + $0x1b8] sm:$0xff] }
  0x4a   : > { %v276_v1 = vor.u32 %v275_v19, %v271_v49  ;;  %v389_v3 = vshll.u32 %v5748_v52, 16  ;;  %v393_v5 = vshrl.u32 %v5748_v52, 16  ;;  %v399_v6 = vshll.u32 %v5751_v53, 16  ;;  %964 = vmatpush.bf16.msrb.mxu1 %v5267_v0 }
  0x4b   : > { %762 = vmatmul.bf16.gmra.mxu1 %v650_v20  ;;  %782 = vmatmul.bf16.gmra.mxu2 %v654_v46  ;;  %v658_v7 = vpack.c.b16 %v641_v58, %v640_v12  ;;  %v267_v8 = vrot.slane %v266_v60, 4  ;;  %v385_v9 = vrot.slane %v383_v63, 5  ;;  %v476_v11 = vshrl.u32 %v166_v55, 16  ;;  %v150_v46 = vld [vmem:[%s5503_s20 + $0x24] sm:$0xf] }
  0x4c   : > { %v277_v13 = vrot.slane %v276_v1, 4  ;;  %v391_v14 = vrot.slane %v389_v3, 5  ;;  %v395_v15 = vrot.slane %v393_v5, 4  ;;  %v401_v17 = vrot.slane %v399_v6, 5  ;;  %3076 = vmatpush.bf16.msra.mxu2 %v5354_v47  ;;  %v5362_v6 = vld [vmem:[%s6900_s1 + $0x1f8] sm:$0xff] }
  0x4d   : > { %802 = vmatmul.bf16.gmra.mxu3 %v658_v7  ;;  %v272_v50 = vsel %vm5518_vm2, %v267_v8, %v271_v49  ;;  %v386_v51 = vor.u32 %v385_v9, %v382_v61  ;;  %v478_v20 = vrot.slane %v476_v11, 4  ;;  %v479_v21 = vshll.u32 %v166_v55, 16  ;;  %2342 = vmatpush.bf16.msrb.mxu0 %v5315_v18  ;;  %v5789_v61 = vld [vmem:[%s5503_s20 + $0x28] sm:$0xf]  ;;  %v5330_v7 = vld [vmem:[%s6900_s1 + $0x178] sm:$0xff] }
  0x4e   : > { %v282_v23 = vsel %vm5518_vm2, %v277_v13, %v281_v31  ;;  %v616_v25 = vunpack.c.l.b16 %v272_v50  ;;  %v396_v26 = vor.u32 %v395_v15, %v391_v14  ;;  %v485_v28 = vshll.u32 %v167_v10, 16  ;;  %v5370_v8 = vld [vmem:[%s6900_s1 + $0x238] sm:$0xff]  ;;  %3758 = vmatpush.bf16.msra.mxu3 %v5362_v6  ;;  %2761 = vmatpush.bf16.msra.mxu1 %v5330_v7 }
  0x4f   : > { %v617_v29 = vunpack.c.l.b16 %v282_v23  ;;  %v387_v32 = vrot.slane %v386_v51, 4  ;;  %v481_v33 = vrot.slane %v479_v21, 5  ;;  %v489_v34 = vshrl.u32 %v167_v10, 16 }
  0x50   : > { %v397_v36 = vrot.slane %v396_v26, 4  ;;  %v487_v37 = vrot.slane %v485_v28, 5  ;;  %v495_v38 = vshll.u32 %v203_v16, 16  ;;  %v572_v40 = vshrl.u32 %v174_v22, 16  ;;  %v1046_v26 = vld [vmem:[%s5503_s20] sm:$0xe] }
  0x51   : > { %v646_v41 = vpack.c.b16 %v617_v29, %v616_v25  ;;  %v392_v42 = vsel %vm5518_vm2, %v387_v32, %v391_v14  ;;  %v482_v43 = vor.u32 %v481_v33, %v478_v20  ;;  %v491_v44 = vrot.slane %v489_v34, 4  ;;  %v5803_v14 = vld [vmem:[%s5503_s20 + $0x2c] sm:$0x1]  ;;  %4184 = vmatpush.bf16.msra.mxu0 %v5370_v8 }
  0x52   : > { %v402_v48 = vsel %vm5518_vm2, %v397_v36, %v401_v17  ;;  %v626_v49 = vunpack.c.l.b16 %v392_v42  ;;  %v497_v54 = vrot.slane %v495_v38, 5  ;;  %v574_v12 = vrot.slane %v572_v40, 4  ;;  %v4752_v38 = vld [vmem:[%s5503_s20 + $0xc] sm:$0xf] }
  0x53   : > { %742 = vmatmul.bf16.gmra.mxu0 %v646_v41  ;;  %v627_v19 = vunpack.c.l.b16 %v402_v48  ;;  %v483_v31 = vrot.slane %v482_v43, 4  ;;  %v492_v55 = vor.u32 %v491_v44, %v487_v37  ;;  %v575_v56 = vshll.u32 %v174_v22, 16 }
  0x54   : > { %v581_v57 = vshll.u32 %v175_v39, 16  ;;  %v585_v58 = vshrl.u32 %v175_v39, 16  ;;  %v591_v60 = vshll.u32 %v207_v45, 16  ;;  %v284_v63 = vshrl.u32 %v150_v46, 16  ;;  %v4753_v39 = vld [vmem:[%s5503_s20 + $0x10] sm:$0xf] }
  0x55   : > { %v651_v0 = vpack.c.b16 %v627_v19, %v626_v49  ;;  %v488_v1 = vsel %vm5518_vm2, %v483_v31, %v487_v37  ;;  %v493_v3 = vrot.slane %v492_v55, 4  ;;  %v577_v5 = vrot.slane %v575_v56, 5 }
  0x56   : > { %v634_v9 = vunpack.c.l.b16 %v488_v1  ;;  %v583_v10 = vrot.slane %v581_v57, 5  ;;  %v587_v11 = vrot.slane %v585_v58, 4  ;;  %v593_v13 = vrot.slane %v591_v60, 5  ;;  %v4754_v58 = vld [vmem:[%s5503_s20 + $0x14] sm:$0x1] }
  0x57   : > { %v498_v15 = vsel %vm5518_vm2, %v493_v3, %v497_v54  ;;  %v578_v17 = vor.u32 %v577_v5, %v574_v12  ;;  %v286_v18 = vrot.slane %v284_v63, 4  ;;  %v287_v50 = vshll.u32 %v150_v46, 16 }
  0x58   : > { %v635_v51 = vunpack.c.l.b16 %v498_v15  ;;  %v588_v16 = vor.u32 %v587_v11, %v583_v10  ;;  %v293_v20 = vshll.u32 %v5789_v61, 16  ;;  %v297_v21 = vshrl.u32 %v5789_v61, 16 }
  0x59   : > { %v579_v22 = vrot.slane %v578_v17, 4  ;;  %v289_v23 = vrot.slane %v287_v50, 5  ;;  %v303_v25 = vshll.u32 %v5803_v14, 16  ;;  %v4544_v44 = vrot.slane %v1046_v26, 9  ;;  %v4755_v50 = vld [vmem:[%s5503_s20 + $0x18] sm:$0xf] }
  0x5a   : > { %v655_v28 = vpack.c.b16 %v635_v51, %v634_v9  ;;  %v589_v29 = vrot.slane %v588_v16, 4  ;;  %v295_v32 = vrot.slane %v293_v20, 5  ;;  %v299_v33 = vrot.slane %v297_v21, 4  ;;  %v5251_v51 = vld [vmem:[%s5503_s20] sm:$0xff]  ;;  %v4756_v16 = vld [vmem:[%s5503_s20 + $0x1c] sm:$0xf] }
  0x5b   : > { %767 = vmatmul.bf16.gmra.mxu1 %v651_v0  ;;  %v584_v34 = vsel %vm5518_vm2, %v579_v22, %v583_v10  ;;  %v290_v36 = vor.u32 %v289_v23, %v286_v18  ;;  %v305_v37 = vrot.slane %v303_v25, 5  ;;  %v1099_v47 = vrot.slane %v5543_v62, 5  ;;  %v1047_v21 = vld [vmem:[%s5503_s20 + $0xc] sm:$0xe] }
  0x5c   : > { %787 = vmatmul.bf16.gmra.mxu2 %v655_v28  ;;  %v594_v40 = vsel %vm5518_vm2, %v589_v29, %v593_v13  ;;  %v642_v41 = vunpack.c.l.b16 %v584_v34  ;;  %v300_v42 = vor.u32 %v299_v33, %v295_v32  ;;  %v1102_v48 = vrot.slane %v5550_v4, 5  ;;  %v5291_v34 = vld [vmem:[%s5503_s20 + $0xc] sm:$0xff] }
  0x5d   : > { %v643_v45 = vunpack.c.l.b16 %v594_v40  ;;  %v291_v46 = vrot.slane %v290_v36, 4  ;;  %v1823_v54 = vshrl.u32 %v4752_v38, 16  ;;  %v1826_v12 = vshll.u32 %v4752_v38, 16 }
  0x5e   : > { %v301_v49 = vrot.slane %v300_v42, 4  ;;  %v1832_v19 = vshll.u32 %v4753_v39, 16  ;;  %v1100_v56 = vsel %vm5818_vm5, %v4544_v44, %v1099_v47  ;;  %v1101_v57 = vrot.slane %v1099_v47, 4  ;;  %v4757_v44 = vld [vmem:[%s5503_s20 + $0x20] sm:$0x1] }
  0x5f   : > { %v659_v31 = vpack.c.b16 %v643_v45, %v642_v41  ;;  %v296_v55 = vsel %vm5518_vm2, %v291_v46, %v295_v32  ;;  %v1226_v62 = vunpack.c.l.b16 %v1100_v56  ;;  %v1825_v0 = vrot.slane %v1823_v54, 4  ;;  %v5329_v56 = vld [vmem:[%s6900_s1 + $0x170] sm:$0xff] }
  0x60   : > { %v306_v60 = vsel %vm5518_vm2, %v301_v49, %v305_v37  ;;  %v618_v63 = vunpack.c.l.b16 %v296_v55  ;;  %v1103_v1 = vsel %vm5818_vm5, %v1101_v57, %v1102_v48  ;;  %v1828_v3 = vrot.slane %v1826_v12, 5  ;;  %v5353_v48 = vld [vmem:[%s6900_s1 + $0x1b0] sm:$0xff]  ;;  %2762 = vmatpush.bf16.msra.mxu1 %v5329_v56 }
  0x61   : > { %807 = vmatmul.bf16.gmra.mxu3 %v659_v31  ;;  %v619_v4 = vunpack.c.l.b16 %v306_v60  ;;  %v1227_v5 = vunpack.c.l.b16 %v1103_v1  ;;  %v1834_v6 = vrot.slane %v1832_v19, 5  ;;  %v1836_v7 = vshrl.u32 %v4753_v39, 16  ;;  %3077 = vmatpush.bf16.msra.mxu2 %v5353_v48  ;;  %v4758_v31 = vld [vmem:[%s5503_s20 + $0x24] sm:$0xf]  ;;  %v5361_v55 = vld [vmem:[%s6900_s1 + $0x1f0] sm:$0xff] }
  0x62   : > { %v1842_v8 = vshll.u32 %v4754_v58, 16  ;;  %v1829_v10 = vor.u32 %v1828_v3, %v1825_v0  ;;  %v1106_v22 = vrot.slane %v5622_v27, 5  ;;  %v1847_v23 = vshrl.u32 %v4755_v50, 16  ;;  %v5369_v57 = vld [vmem:[%s6900_s1 + $0x230] sm:$0xff]  ;;  %3759 = vmatpush.bf16.msra.mxu3 %v5361_v55  ;;  %v1049_v48 = vld [vmem:[%s5503_s20 + $0x24] sm:$0xe] }
  0x63   : > { %v647_v9 = vpack.c.b16 %v619_v4, %v618_v63  ;;  %v1258_v11 = vpack.c.b16 %v1227_v5, %v1226_v62  ;;  %v1838_v13 = vrot.slane %v1836_v7, 4  ;;  %v1850_v25 = vshll.u32 %v4755_v50, 16  ;;  %v4759_v62 = vld [vmem:[%s5503_s20 + $0x28] sm:$0xf]  ;;  %v5252_v0 = vld [vmem:[%s5503_s20 + $0xc] sm:$0xff]  ;;  %4185 = vmatpush.bf16.msra.mxu0 %v5369_v57 }
  0x64   : > { %v1830_v15 = vrot.slane %v1829_v10, 4  ;;  %v1844_v18 = vrot.slane %v1842_v8, 5  ;;  %v1856_v29 = vshll.u32 %v4756_v16, 16  ;;  %v1860_v32 = vshrl.u32 %v4756_v16, 16 }
  0x65   : > { %747 = vmatmul.bf16.gmra.mxu0 %v647_v9  ;;  %v1839_v17 = vor.u32 %v1838_v13, %v1834_v6  ;;  %v4545_v33 = vrot.slane %v1047_v21, 9  ;;  %v1108_v38 = vrot.slane %v1106_v22, 4  ;;  %v1109_v27 = vrot.slane %v5632_v35, 5  ;;  %v4760_v21 = vld [vmem:[%s5503_s20 + $0x2c] sm:$0x1] }
  0x66   : > { %v1835_v26 = vsel %vm5518_vm2, %v1830_v15, %v1834_v6  ;;  %v1849_v39 = vrot.slane %v1847_v23, 4  ;;  %v1852_v40 = vrot.slane %v1850_v25, 5  ;;  %v1858_v41 = vrot.slane %v1856_v29, 5  ;;  %v1048_v6 = vld [vmem:[%s5503_s20 + $0x18] sm:$0xe] }
  0x67   : > { %v1840_v20 = vrot.slane %v1839_v17, 4  ;;  %v2223_v36 = vunpack.c.l.b16 %v1835_v26  ;;  %v1862_v42 = vrot.slane %v1860_v32, 4  ;;  %v1107_v46 = vsel %vm5818_vm5, %v4545_v33, %v1106_v22 }
  0x68   : > { %v1110_v47 = vsel %vm5818_vm5, %v1108_v38, %v1109_v27  ;;  %v1853_v35 = vor.u32 %v1852_v40, %v1849_v39  ;;  %v1866_v54 = vshll.u32 %v4757_v44, 16  ;;  %v1228_v12 = vunpack.c.l.b16 %v1107_v46  ;;  %v4762_v38 = vld [vmem:[%s5503_s20 + $0x34] sm:$0xf]  ;;  %v5253_v27 = vld [vmem:[%s5503_s20 + $0x18] sm:$0xff] }
  0x69   : > { %v1845_v28 = vsel %vm5518_vm2, %v1840_v20, %v1844_v18  ;;  %v1863_v49 = vor.u32 %v1862_v42, %v1858_v41  ;;  %v1229_v19 = vunpack.c.l.b16 %v1110_v47  ;;  %v1113_v1 = vrot.slane %v5719_v59, 5  ;;  %v5292_v18 = vld [vmem:[%s5503_s20 + $0x18] sm:$0xff] }
  0x6a   : > { %v2224_v37 = vunpack.c.l.b16 %v1845_v28  ;;  %v1854_v58 = vrot.slane %v1853_v35, 4  ;;  %v1868_v63 = vrot.slane %v1866_v54, 5  ;;  %v1871_v3 = vshrl.u32 %v4758_v31, 16 }
  0x6b   : > { %965 = vmatmul.bf16.vlgmr.msrb.gmra.mxu1 %v5251_v51  ;;  %v1864_v60 = vrot.slane %v1863_v49, 4  ;;  %v1259_v4 = vpack.c.b16 %v1229_v19, %v1228_v12  ;;  %v1874_v5 = vshll.u32 %v4758_v31, 16  ;;  %v1880_v7 = vshll.u32 %v4759_v62, 16  ;;  %v5293_v31 = vld [vmem:[%s5503_s20 + $0x24] sm:$0xff] }
  0x6c   : > { %1346 = vmatmul.bf16.vlgmr.msrb.gmra.mxu2 %v1258_v11  ;;  %v2255_v45 = vpack.c.b16 %v2224_v37, %v2223_v36  ;;  %v1884_v8 = vshrl.u32 %v4759_v62, 16  ;;  %v1859_v9 = vsel %vm5518_vm2, %v1854_v58, %v1858_v41  ;;  %v1116_v11 = vrot.slane %v5725_v24, 5  ;;  %v4761_v37 = vld [vmem:[%s5503_s20 + $0x30] sm:$0xf] }
  0x6d   : > { %v1869_v10 = vsel %vm5518_vm2, %v1864_v60, %v1868_v63  ;;  %v4546_v13 = vrot.slane %v1048_v6, 9  ;;  %v1115_v59 = vrot.slane %v1113_v1, 4  ;;  %v1873_v15 = vrot.slane %v1871_v3, 4  ;;  %v4764_v6 = vld [vmem:[%s5503_s20 + $0x3c] sm:$0xf] }
  0x6e   : > { %v1876_v17 = vrot.slane %v1874_v5, 5  ;;  %v2225_v50 = vunpack.c.l.b16 %v1859_v9  ;;  %v2226_v51 = vunpack.c.l.b16 %v1869_v10  ;;  %v1882_v16 = vrot.slane %v1880_v7, 5  ;;  %v4765_v7 = vld [vmem:[%s5503_s20 + $0x40] sm:$0xf] }
  0x6f   : > { %v1886_v20 = vrot.slane %v1884_v8, 4  ;;  %v1114_v22 = vsel %vm5818_vm5, %v4546_v13, %v1113_v1  ;;  %v1117_v25 = vsel %vm5818_vm5, %v1115_v59, %v1116_v11  ;;  %v1890_v28 = vshll.u32 %v4760_v21, 16  ;;  %v5352_v1 = vld [vmem:[%s6900_s1 + $0x1a8] sm:$0xff]  ;;  %v5404_v21 = vld [vmem:[%s5503_s20 + $0x34] sm:$0xf] }
  0x70   : > { %v1877_v23 = vor.u32 %v1876_v17, %v1873_v15  ;;  %v2256_v24 = vpack.c.b16 %v2226_v51, %v2225_v50  ;;  %v1230_v29 = vunpack.c.l.b16 %v1114_v22  ;;  %v1231_v32 = vunpack.c.l.b16 %v1117_v25  ;;  %3078 = vmatpush.bf16.msra.mxu2 %v5352_v1  ;;  %v5360_v11 = vld [vmem:[%s6900_s1 + $0x1e8] sm:$0xff]  ;;  %v1051_v1 = vld [vmem:[%s5503_s20 + $0x3c] sm:$0xe] }
  0x71   : > { %1661 = vmatmul.bf16.vlgmr.msrb.gmra.mxu3 %v5291_v34  ;;  %v1887_v26 = vor.u32 %v1886_v20, %v1882_v16  ;;  %v1892_v36 = vrot.slane %v1890_v28, 5  ;;  %v1895_v41 = vshrl.u32 %v4761_v37, 16  ;;  %v1898_v42 = vshll.u32 %v4761_v37, 16  ;;  %v5328_v13 = vld [vmem:[%s6900_s1 + $0x168] sm:$0xff]  ;;  %v5405_v37 = vld [vmem:[%s5503_s20 + $0x38] sm:$0x1] }
  0x72   : > { %v1878_v33 = vrot.slane %v1877_v23, 4  ;;  %v1260_v39 = vpack.c.b16 %v1231_v32, %v1230_v29  ;;  %v1904_v46 = vshll.u32 %v4762_v38, 16  ;;  %v1908_v47 = vshrl.u32 %v4762_v38, 16  ;;  %v5368_v59 = vld [vmem:[%s6900_s1 + $0x228] sm:$0xff]  ;;  %3760 = vmatpush.bf16.msra.mxu3 %v5360_v11  ;;  %2763 = vmatpush.bf16.msra.mxu1 %v5328_v13  ;;  %v5407_v13 = vld [vmem:[%s5503_s20 + $0x44] sm:$0x1] }
  0x73   : > { %v1888_v34 = vrot.slane %v1887_v26, 4  ;;  %v1123_v54 = vrot.slane %v5803_v14, 5  ;;  %v1897_v12 = vrot.slane %v1895_v41, 4  ;;  %v1900_v19 = vrot.slane %v1898_v42, 5  ;;  %v5254_v15 = vld [vmem:[%s5503_s20 + $0x24] sm:$0xff]  ;;  %4186 = vmatpush.bf16.msra.mxu0 %v5368_v59 }
  0x74   : > { %v1883_v40 = vsel %vm5518_vm2, %v1878_v33, %v1882_v16  ;;  %v4547_v55 = vrot.slane %v1049_v48, 9  ;;  %v1906_v57 = vrot.slane %v1904_v46, 5  ;;  %v1910_v58 = vrot.slane %v1908_v47, 4  ;;  %v5294_v33 = vld [vmem:[%s5503_s20 + $0x30] sm:$0xff] }
  0x75   : > { %2343 = vmatmul.bf16.vlgmr.msrb.gmra.mxu0 %v2255_v45  ;;  %v1893_v44 = vsel %vm5518_vm2, %v1888_v34, %v1892_v36  ;;  %v1120_v45 = vrot.slane %v5789_v61, 5  ;;  %v2227_v35 = vunpack.c.l.b16 %v1883_v40  ;;  %v4763_v61 = vld [vmem:[%s5503_s20 + $0x38] sm:$0x1]  ;;  %v1901_v63 = vor.u32 %v1900_v19, %v1897_v12  ;;  %v4767_v12 = vld [vmem:[%s5503_s20 + $0x48] sm:$0xf] }
  0x76   : > { %v2228_v49 = vunpack.c.l.b16 %v1893_v44  ;;  %v1911_v14 = vor.u32 %v1910_v58, %v1906_v57  ;;  %v1919_v17 = vshrl.u32 %v4764_v6, 16  ;;  %v1928_v51 = vshll.u32 %v4765_v7, 16  ;;  %v4768_v19 = vld [vmem:[%s5503_s20 + $0x4c] sm:$0xf] }
  0x77   : > { %v1122_v56 = vrot.slane %v1120_v45, 4  ;;  %v1121_v62 = vsel %vm5818_vm5, %v4547_v55, %v1120_v45  ;;  %v1902_v8 = vrot.slane %v1901_v63, 4  ;;  %v1127_v22 = vrot.slane %v5404_v21, 5 }
  0x78   : > { %v2257_v60 = vpack.c.b16 %v2228_v49, %v2227_v35  ;;  %v1232_v3 = vunpack.c.l.b16 %v1121_v62  ;;  %v1912_v9 = vrot.slane %v1911_v14, 4  ;;  %v1932_v23 = vshrl.u32 %v4765_v7, 16  ;;  %v5406_v62 = vld [vmem:[%s5503_s20 + $0x40] sm:$0xf] }
  0x79   : > { %v1907_v16 = vsel %vm5518_vm2, %v1902_v8, %v1906_v57  ;;  %v1921_v25 = vrot.slane %v1919_v17, 4  ;;  %v1930_v32 = vrot.slane %v1928_v51, 5  ;;  %v1129_v36 = vrot.slane %v1127_v22, 4 }
  0x7a   : > { %v2229_v28 = vunpack.c.l.b16 %v1907_v16  ;;  %v1130_v38 = vrot.slane %v5405_v37, 5  ;;  %v1943_v58 = vshrl.u32 %v4767_v12, 16  ;;  %v1956_v14 = vshrl.u32 %v4768_v19, 16  ;;  %v4771_v37 = vld [vmem:[%s5503_s20 + $0x58] sm:$0xf] }
  0x7b   : > { %970 = vmatmul.bf16.gmra.mxu1 %v5252_v0  ;;  %v1124_v0 = vsel %vm5818_vm5, %v1122_v56, %v1123_v54  ;;  %v1137_v59 = vrot.slane %v5407_v13, 5 }
  0x7c   : > { %1351 = vmatmul.bf16.gmra.mxu2 %v1259_v4  ;;  %v1914_v4 = vshll.u32 %v4763_v61, 16  ;;  %v1233_v5 = vunpack.c.l.b16 %v1124_v0  ;;  %v1131_v44 = vsel %vm5818_vm5, %v1129_v36, %v1130_v38  ;;  %v1946_v61 = vshll.u32 %v4767_v12, 16  ;;  %v5359_v38 = vld [vmem:[%s6900_s1 + $0x1e0] sm:$0xff] }
  0x7d   : > { %v1235_v35 = vunpack.c.l.b16 %v1131_v44  ;;  %v1134_v0 = vrot.slane %v5406_v62, 5  ;;  %3761 = vmatpush.bf16.msra.mxu3 %v5359_v38  ;;  %v1980_v12 = vshrl.u32 %v4771_v37, 16 }
  0x7e   : > { %v1916_v10 = vrot.slane %v1914_v4, 5  ;;  %v1261_v50 = vpack.c.b16 %v1233_v5, %v1232_v3  ;;  %v1948_v7 = vrot.slane %v1946_v61, 5 }
  0x7f   : > { %v1136_v11 = vrot.slane %v1134_v0, 4 }
  0x80   : > { %v1917_v20 = vsel %vm5518_vm2, %v1912_v9, %v1916_v10  ;;  %v5295_v9 = vld [vmem:[%s5503_s20 + $0x3c] sm:$0xff]  ;;  %v4549_v10 = vrot.slane %v1051_v1, 9 }
  0x81   : > { %1666 = vmatmul.bf16.gmra.mxu3 %v5292_v18  ;;  %v1922_v18 = vshll.u32 %v4764_v6, 16  ;;  %v2230_v29 = vunpack.c.l.b16 %v1917_v20  ;;  %v1945_v6 = vrot.slane %v1943_v58, 4 }
  0x82   : > { %v1135_v21 = vsel %vm5818_vm5, %v4549_v10, %v1134_v0 }
  0x83   : > { %v1924_v26 = vrot.slane %v1922_v18, 5  ;;  %v2258_v41 = vpack.c.b16 %v2230_v29, %v2229_v28  ;;  %v4769_v18 = vld [vmem:[%s5503_s20 + $0x50] sm:$0x1]  ;;  %v1949_v20 = vor.u32 %v1948_v7, %v1945_v6  ;;  %v1236_v28 = vunpack.c.l.b16 %v1135_v21 }
  0x85   : > { %2348 = vmatmul.bf16.gmra.mxu0 %v2256_v24  ;;  %v1050_v24 = vld [vmem:[%s5503_s20 + $0x30] sm:$0xe]  ;;  %v1925_v40 = vor.u32 %v1924_v26, %v1921_v25  ;;  %v5351_v25 = vld [vmem:[%s6900_s1 + $0x1a0] sm:$0xff] }
  0x86   : > { %v4548_v34 = vrot.slane %v1050_v24, 9  ;;  %v1962_v24 = vshll.u32 %v4769_v18, 16  ;;  %3079 = vmatpush.bf16.msra.mxu2 %v5351_v25 }
  0x87   : > { %v1926_v47 = vrot.slane %v1925_v40, 4 }
  0x88   : > { %v1128_v42 = vsel %vm5818_vm5, %v4548_v34, %v1127_v22  ;;  %v1138_v22 = vsel %vm5818_vm5, %v1136_v11, %v1137_v59  ;;  %v1964_v36 = vrot.slane %v1962_v24, 5 }
  0x89   : > { %v1234_v48 = vunpack.c.l.b16 %v1128_v42  ;;  %v1931_v55 = vsel %vm5518_vm2, %v1926_v47, %v1930_v32  ;;  %v1237_v29 = vunpack.c.l.b16 %v1138_v22  ;;  %v1976_v47 = vshll.u32 %v4771_v37, 16  ;;  %v4773_v22 = vld [vmem:[%s5503_s20 + $0x60] sm:$0xf] }
  0x8a   : > { %v2231_v3 = vunpack.c.l.b16 %v1931_v55  ;;  %v1994_v37 = vshll.u32 %v4773_v22, 16 }
  0x8b   : > { %975 = vmatmul.bf16.gmra.mxu1 %v5253_v27  ;;  %v1934_v27 = vrot.slane %v1932_v23, 4  ;;  %v1262_v57 = vpack.c.b16 %v1235_v35, %v1234_v48  ;;  %v5367_v48 = vld [vmem:[%s6900_s1 + $0x220] sm:$0xff] }
  0x8c   : > { %1356 = vmatmul.bf16.gmra.mxu2 %v1260_v39  ;;  %v4766_v39 = vld [vmem:[%s5503_s20 + $0x44] sm:$0x1]  ;;  %4187 = vmatpush.bf16.msra.mxu0 %v5367_v48 }
  0x8d   : > { %v1935_v45 = vor.u32 %v1934_v27, %v1930_v32  ;;  %v1938_v46 = vshll.u32 %v4766_v39, 16  ;;  %v1950_v32 = vrot.slane %v1949_v20, 4  ;;  %v5327_v27 = vld [vmem:[%s6900_s1 + $0x160] sm:$0xff] }
  0x8e   : > { %2764 = vmatpush.bf16.msra.mxu1 %v5327_v27 }
  0x8f   : > { %v1936_v49 = vrot.slane %v1935_v45, 4  ;;  %v1940_v54 = vrot.slane %v1938_v46, 5  ;;  %v1263_v46 = vpack.c.b16 %v1237_v29, %v1236_v28  ;;  %v5257_v29 = vld [vmem:[%s5503_s20 + $0x48] sm:$0xff] }
  0x91   : > { %1671 = vmatmul.bf16.gmra.mxu3 %v5293_v31  ;;  %v5255_v31 = vld [vmem:[%s5503_s20 + $0x30] sm:$0xff]  ;;  %v1941_v63 = vsel %vm5518_vm2, %v1936_v49, %v1940_v54  ;;  %v1141_v54 = vrot.slane %v5661_v2, 5 }
  0x92   : > { %v2232_v5 = vunpack.c.l.b16 %v1941_v63  ;;  %v5296_v63 = vld [vmem:[%s5503_s20 + $0x48] sm:$0xff] }
  0x93   : > { %v1143_v0 = vrot.slane %v1141_v54, 4 }
  0x94   : > { %v2259_v51 = vpack.c.b16 %v2232_v5, %v2231_v3  ;;  %v1982_v3 = vrot.slane %v1980_v12, 4  ;;  %v4772_v5 = vld [vmem:[%s5503_s20 + $0x5c] sm:$0x1] }
  0x95   : > { %2353 = vmatmul.bf16.gmra.mxu0 %v2257_v60  ;;  %v1952_v60 = vshll.u32 %v4768_v19, 16  ;;  %v1052_v19 = vld [vmem:[%s5503_s20 + $0x48] sm:$0xe]  ;;  %v1986_v59 = vshll.u32 %v4772_v5, 16  ;;  %v5350_v5 = vld [vmem:[%s6900_s1 + $0x198] sm:$0xff] }
  0x96   : > { %v4550_v62 = vrot.slane %v1052_v19, 9  ;;  %3080 = vmatpush.bf16.msra.mxu2 %v5350_v5 }
  0x97   : > { %v1954_v8 = vrot.slane %v1952_v60, 5  ;;  %v1978_v60 = vrot.slane %v1976_v47, 5  ;;  %v1988_v21 = vrot.slane %v1986_v59, 5  ;;  %v4776_v59 = vld [vmem:[%s5503_s20 + $0x6c] sm:$0xf] }
  0x98   : > { %v1142_v10 = vsel %vm5818_vm5, %v4550_v62, %v1141_v54  ;;  %v5297_v54 = vld [vmem:[%s5503_s20 + $0x54] sm:$0xff] }
  0x99   : > { %v1955_v35 = vsel %vm5518_vm2, %v1950_v32, %v1954_v8  ;;  %v1983_v13 = vor.u32 %v1982_v3, %v1978_v60  ;;  %v1238_v18 = vunpack.c.l.b16 %v1142_v10 }
  0x9a   : > { %v2233_v58 = vunpack.c.l.b16 %v1955_v35  ;;  %v1996_v35 = vrot.slane %v1994_v37, 5  ;;  %v5409_v37 = vld [vmem:[%s5503_s20 + $0x64] sm:$0xf] }
  0x9b   : > { %980 = vmatmul.bf16.gmra.mxu1 %v5254_v15  ;;  %v1958_v15 = vrot.slane %v1956_v14, 4  ;;  %v5408_v14 = vld [vmem:[%s5503_s20 + $0x50] sm:$0x1]  ;;  %v1984_v20 = vrot.slane %v1983_v13, 4 }
  0x9c   : > { %1361 = vmatmul.bf16.gmra.mxu2 %v1261_v50  ;;  %v1144_v1 = vrot.slane %v5408_v14, 5 }
  0x9d   : > { %v1959_v23 = vor.u32 %v1958_v15, %v1954_v8  ;;  %v1989_v27 = vsel %vm5518_vm2, %v1984_v20, %v1988_v21  ;;  %v5258_v20 = vld [vmem:[%s5503_s20 + $0x54] sm:$0xff]  ;;  %v4777_v21 = vld [vmem:[%s5503_s20 + $0x70] sm:$0xf] }
  0x9e   : > { %v1145_v11 = vsel %vm5818_vm5, %v1143_v0, %v1144_v1  ;;  %v2236_v47 = vunpack.c.l.b16 %v1989_v27  ;;  %v2018_v27 = vshll.u32 %v4776_v59, 16 }
  0x9f   : > { %v1960_v34 = vrot.slane %v1959_v23, 4  ;;  %v4774_v23 = vld [vmem:[%s5503_s20 + $0x64] sm:$0xf] }
  0xa0   : > { %v2000_v38 = vshll.u32 %v4774_v23, 16 }
  0xa1   : > { %1676 = vmatmul.bf16.gmra.mxu3 %v5294_v33  ;;  %v4770_v33 = vld [vmem:[%s5503_s20 + $0x54] sm:$0xf]  ;;  %v1965_v49 = vsel %vm5518_vm2, %v1960_v34, %v1964_v36  ;;  %v1991_v36 = vshrl.u32 %v4773_v22, 16 }
  0xa2   : > { %v1967_v42 = vshrl.u32 %v4770_v33, 16  ;;  %v1970_v44 = vshll.u32 %v4770_v33, 16  ;;  %v2234_v61 = vunpack.c.l.b16 %v1965_v49  ;;  %v2002_v49 = vrot.slane %v2000_v38, 5 }
  0xa3   : > { %v1993_v48 = vrot.slane %v1991_v36, 4  ;;  %v1155_v38 = vrot.slane %v5409_v37, 5 }
  0xa4   : > { %v1972_v55 = vrot.slane %v1970_v44, 5  ;;  %v2260_v8 = vpack.c.b16 %v2234_v61, %v2233_v58  ;;  %v1053_v44 = vld [vmem:[%s5503_s20 + $0x54] sm:$0xe]  ;;  %v4775_v61 = vld [vmem:[%s5503_s20 + $0x68] sm:$0x1] }
  0xa5   : > { %2358 = vmatmul.bf16.gmra.mxu0 %v2258_v41  ;;  %v5256_v41 = vld [vmem:[%s5503_s20 + $0x3c] sm:$0xff]  ;;  %v4551_v12 = vrot.slane %v1053_v44, 9  ;;  %v1997_v62 = vor.u32 %v1996_v35, %v1993_v48  ;;  %v2010_v3 = vshll.u32 %v4775_v61, 16  ;;  %v2024_v44 = vshll.u32 %v4777_v21, 16 }
  0xa6   : > { %v2020_v61 = vrot.slane %v2018_v27, 5  ;;  %v5259_v27 = vld [vmem:[%s5503_s20 + $0x60] sm:$0xff] }
  0xa7   : > { %v1998_v10 = vrot.slane %v1997_v62, 4  ;;  %v2012_v13 = vrot.slane %v2010_v3, 5 }
  0xa8   : > { %v5926_v56 = vpop.f32.mrf.mxu1 }
  0xab   : > { %v5931_v4 = vpop.f32.mrf.mxu0  ;;  %985 = vmatmul.bf16.gmra.mxu1 %v5255_v31  ;;  %v1969_v31 = vrot.slane %v1967_v42, 4  ;;  %v2004_v42 = vshrl.u32 %v4774_v23, 16 }
  0xac   : > { %1366 = vmatmul.bf16.gmra.mxu2 %v1262_v57 }
  0xad   : > { %v1973_v7 = vor.u32 %v1972_v55, %v1969_v31  ;;  %v1151_v31 = vrot.slane %v5751_v53, 5  ;;  %v2006_v55 = vrot.slane %v2004_v42, 4  ;;  %v1054_v42 = vld [vmem:[%s5503_s20 + $0x60] sm:$0xe] }
  0xae   : > { %v5936_v17 = vpop.f32.mrf.mxu2 }
  0xaf   : > { %v5939_v50 = vpop.f32.mrf.mxu3  ;;  %v1974_v15 = vrot.slane %v1973_v7, 4  ;;  %v2007_v1 = vor.u32 %v2006_v55, %v2002_v49 }
  0xb0   : > { %v5941_v16 = vpop.f32.mrf.mxu1 }
  0xb1   : > { %1681 = vmatmul.bf16.gmra.mxu3 %v5295_v9  ;;  %v1979_v32 = vsel %vm5518_vm2, %v1974_v15, %v1978_v60  ;;  %v5358_v15 = vld [vmem:[%s6900_s1 + $0x1d8] sm:$0xff] }
  0xb2   : > { %3762 = vmatpush.bf16.msra.mxu3 %v5358_v15 }
  0xb3   : > { %v5950_v26 = vpop.f32.mrf.mxu0 }
  0xb5   : > { %2363 = vmatmul.bf16.gmra.mxu0 %v2259_v51  ;;  %v1239_v51 = vunpack.c.l.b16 %v1145_v11  ;;  %v2008_v11 = vrot.slane %v2007_v1, 4 }
  0xb6   : > { %v5960_v39 = vpop.f32.mrf.mxu2 }
  0xb7   : > { %v5962_v40 = vpop.f32.mrf.mxu3  ;;  %v1264_v34 = vpack.c.b16 %v1239_v51, %v1238_v18  ;;  %v5326_v18 = vld [vmem:[%s6900_s1 + $0x158] sm:$0xff]  ;;  %v2013_v36 = vsel %vm5518_vm2, %v2008_v11, %v2012_v13 }
  0xb8   : > { %v5965_v45 = vpop.f32.mrf.mxu1  ;;  %2765 = vmatpush.bf16.msra.mxu1 %v5326_v18  ;;  %v2238_v35 = vunpack.c.l.b16 %v2013_v36 }
  0xbb   : > { %990 = vmatmul.bf16.gmra.mxu1 %v5256_v41  ;;  %v1148_v41 = vrot.slane %v5748_v52, 5 }
  0xbc   : > { %v5976_v57 = vpop.f32.mrf.mxu0  ;;  %1371 = vmatmul.bf16.gmra.mxu2 %v1263_v46  ;;  %v2235_v46 = vunpack.c.l.b16 %v1979_v32 }
  0xbd   : > { %v1150_v19 = vrot.slane %v1148_v41, 4  ;;  %v1149_v14 = vsel %vm5818_vm5, %v4551_v12, %v1148_v41  ;;  %v4552_v12 = vrot.slane %v1054_v42, 9 }
  0xbe   : > { %v5980_v2 = vpop.f32.mrf.mxu2  ;;  %v2261_v60 = vpack.c.b16 %v2236_v47, %v2235_v46  ;;  %v1240_v7 = vunpack.c.l.b16 %v1149_v14  ;;  %v2028_v46 = vshrl.u32 %v4777_v21, 16  ;;  %v5366_v47 = vld [vmem:[%s6900_s1 + $0x218] sm:$0xff] }
  0xbf   : > { %v5983_v6 = vpop.f32.mrf.mxu3  ;;  %v1152_v53 = vsel %vm5818_vm5, %v1150_v19, %v1151_v31  ;;  %4188 = vmatpush.bf16.msra.mxu0 %v5366_v47  ;;  %v1157_v19 = vrot.slane %v1155_v38, 4  ;;  %v5410_v31 = vld [vmem:[%s5503_s20 + $0x68] sm:$0x1]  ;;  %v1156_v5 = vsel %vm5818_vm5, %v4552_v12, %v1155_v38  ;;  %v4780_v21 = vld [vmem:[%s5503_s20 + $0x7c] sm:$0xf] }
  0xc0   : > { %v5985_v9 = vpop.f32.mrf.mxu1  ;;  %v1158_v55 = vrot.slane %v5410_v31, 5  ;;  %v2030_v62 = vrot.slane %v2028_v46, 4  ;;  %v1242_v18 = vunpack.c.l.b16 %v1156_v5  ;;  %v2048_v42 = vshll.u32 %v4780_v21, 16  ;;  %v5411_v47 = vld [vmem:[%s5503_s20 + $0x70] sm:$0xf] }
  0xc1   : > { %1686 = vmatmul.bf16.gmra.mxu3 %v5296_v63 }
  0xc4   : > { %v5993_v24 = vpop.f32.mrf.mxu0 }
  0xc5   : > { %2368 = vmatmul.bf16.gmra.mxu0 %v2260_v8  ;;  %v1241_v8 = vunpack.c.l.b16 %v1152_v53  ;;  %v4778_v53 = vld [vmem:[%s5503_s20 + $0x74] sm:$0x1] }
  0xc6   : > { %v5995_v25 = vpop.f32.mrf.mxu2  ;;  %v2034_v13 = vshll.u32 %v4778_v53, 16 }
  0xc7   : > { %v5997_v28 = vpop.f32.mrf.mxu3  ;;  %v1265_v23 = vpack.c.b16 %v1241_v8, %v1240_v7  ;;  %v1159_v7 = vsel %vm5818_vm5, %v1157_v19, %v1158_v55 }
  0xc8   : > { %v6002_v33 = vpop.f32.mrf.mxu1 }
  0xcb   : > { %995 = vmatmul.bf16.gmra.mxu1 %v5257_v29  ;;  %v2015_v29 = vshrl.u32 %v4776_v59, 16  ;;  %v4779_v59 = vld [vmem:[%s5503_s20 + $0x78] sm:$0xf] }
  0xcc   : > { %1376 = vmatmul.bf16.gmra.mxu2 %v1264_v34  ;;  %v2003_v34 = vsel %vm5518_vm2, %v1998_v10, %v2002_v49  ;;  %v2039_v36 = vshrl.u32 %v4779_v59, 16  ;;  %v2042_v37 = vshll.u32 %v4779_v59, 16 }
  0xcd   : > { %v2237_v48 = vunpack.c.l.b16 %v2003_v34  ;;  %v2017_v49 = vrot.slane %v2015_v29, 4  ;;  %v2036_v34 = vrot.slane %v2034_v13, 5  ;;  %v5299_v13 = vld [vmem:[%s5503_s20 + $0x6c] sm:$0xff] }
  0xce   : > { %v6010_v58 = vpop.f32.mrf.mxu2  ;;  %v2041_v55 = vrot.slane %v2039_v36, 4 }
  0xcf   : > { %v2262_v1 = vpack.c.b16 %v2238_v35, %v2237_v48  ;;  %v2021_v8 = vor.u32 %v2020_v61, %v2017_v49  ;;  %v1162_v48 = vrot.slane %v5411_v47, 5  ;;  %v2044_v61 = vrot.slane %v2042_v37, 5  ;;  %v5349_v47 = vld [vmem:[%s6900_s1 + $0x190] sm:$0xff] }
  0xd0   : > { %v6013_v52 = vpop.f32.mrf.mxu0  ;;  %v6015_v63 = vpop.f32.mrf.mxu3  ;;  %3081 = vmatpush.bf16.msra.mxu2 %v5349_v47 }
  0xd1   : > { %1691 = vmatmul.bf16.gmra.mxu3 %v5297_v54  ;;  %v6017_v0 = vpop.f32.mrf.mxu1  ;;  %v5298_v54 = vld [vmem:[%s5503_s20 + $0x60] sm:$0xff] }
  0xd5   : > { %2373 = vmatmul.bf16.gmra.mxu0 %v2261_v60  ;;  %v2026_v60 = vrot.slane %v2024_v44, 5  ;;  %v2052_v44 = vshrl.u32 %v4780_v21, 16 }
  0xd6   : > { %v6033_v51 = vpop.f32.mrf.mxu2 }
  0xd7   : > { %v2031_v11 = vor.u32 %v2030_v62, %v2026_v60  ;;  %v2050_v62 = vrot.slane %v2048_v42, 5  ;;  %v2054_v53 = vrot.slane %v2052_v44, 4 }
  0xd8   : > { %v6037_v22 = vpop.f32.mrf.mxu0  ;;  %v6046_v41 = vpop.f32.mrf.mxu3 }
  0xd9   : > { %v6039_v32 = vpop.f32.mrf.mxu1  ;;  %v2032_v29 = vrot.slane %v2031_v11, 4  ;;  %v4781_v11 = vld [vmem:[%s5503_s20 + $0x80] sm:$0x1]  ;;  %v2055_v21 = vor.u32 %v2054_v53, %v2050_v62  ;;  %v5325_v53 = vld [vmem:[%s6900_s1 + $0x150] sm:$0xff] }
  0xda   : > { %2766 = vmatpush.bf16.msra.mxu1 %v5325_v53 }
  0xdb   : > { %1000 = vmatmul.bf16.gmra.mxu1 %v5258_v20  ;;  %v1243_v20 = vunpack.c.l.b16 %v1159_v7  ;;  %v2037_v31 = vsel %vm5518_vm2, %v2032_v29, %v2036_v34  ;;  %v5412_v7 = vld [vmem:[%s5503_s20 + $0x74] sm:$0x1] }
  0xdc   : > { %1381 = vmatmul.bf16.gmra.mxu2 %v1265_v23  ;;  %v2022_v23 = vrot.slane %v2021_v8, 4  ;;  %v1165_v8 = vrot.slane %v5412_v7, 5  ;;  %v5260_v7 = vld [vmem:[%s5503_s20 + $0x6c] sm:$0xff] }
  0xdd   : > { %v1266_v46 = vpack.c.b16 %v1243_v20, %v1242_v18  ;;  %v2240_v18 = vunpack.c.l.b16 %v2037_v31  ;;  %v4782_v31 = vld [vmem:[%s5503_s20 + $0x84] sm:$0xf] }
  0xde   : > { %v2027_v49 = vsel %vm5518_vm2, %v2022_v23, %v2026_v60  ;;  %v1164_v60 = vrot.slane %v1162_v48, 4  ;;  %v2058_v23 = vshll.u32 %v4781_v11, 16 }
  0xdf   : > { %v6054_v14 = vpop.f32.mrf.mxu2  ;;  %v2239_v59 = vunpack.c.l.b16 %v2027_v49 }
  0xe0   : > { %v1166_v36 = vsel %vm5818_vm5, %v1164_v60, %v1165_v8 }
  0xe1   : > { %1696 = vmatmul.bf16.gmra.mxu3 %v5298_v54  ;;  %v6057_v3 = vpop.f32.mrf.mxu1  ;;  %v1055_v54 = vld [vmem:[%s5503_s20 + $0x6c] sm:$0xe]  ;;  %v2263_v37 = vpack.c.b16 %v2240_v18, %v2239_v59  ;;  %v1245_v49 = vunpack.c.l.b16 %v1166_v36 }
  0xe2   : > { %v6063_v10 = vpop.f32.mrf.mxu0  ;;  %v4553_v5 = vrot.slane %v1055_v54, 9  ;;  %v2056_v54 = vrot.slane %v2055_v21, 4 }
  0xe4   : > { %v6066_v15 = vpop.f32.mrf.mxu3  ;;  %v1163_v34 = vsel %vm5818_vm5, %v4553_v5, %v1162_v48  ;;  %v2060_v48 = vrot.slane %v2058_v23, 5 }
  0xe5   : > { %2378 = vmatmul.bf16.gmra.mxu0 %v2262_v1 }
  0xe6   : > { %v2061_v11 = vsel %vm5518_vm2, %v2056_v54, %v2060_v48 }
  0xe7   : > { %v6069_v38 = vpop.f32.mrf.mxu2 }
  0xe9   : > { %v966_v35 = vpop.f32.mrf.mxu1 }
  0xea   : > { %v6076_v12 = vpop.f32.mrf.mxu0  ;;  %v967_v19 = vadd.f32 %v966_v35, %v5931_v4  ;;  %v2045_v4 = vor.u32 %v2044_v61, %v2041_v55  ;;  %v1244_v35 = vunpack.c.l.b16 %v1163_v34  ;;  %v4783_v61 = vld [vmem:[%s5503_s20 + $0x88] sm:$0xf] }
  0xeb   : > { %1005 = vmatmul.bf16.gmra.mxu1 %v5259_v27  ;;  %v2076_v21 = vshrl.u32 %v4783_v61, 16 }
  0xec   : > { %v6081_v1 = vpop.f32.mrf.mxu3  ;;  %1386 = vmatmul.bf16.gmra.mxu2 %v1266_v46  ;;  %v2046_v46 = vrot.slane %v2045_v4, 4  ;;  %v1267_v8 = vpack.c.b16 %v1245_v49, %v1244_v35  ;;  %v2066_v4 = vshll.u32 %v4782_v31, 16 }
  0xed   : > { %v2078_v54 = vrot.slane %v2076_v21, 4 }
  0xee   : > { %v2051_v5 = vsel %vm5518_vm2, %v2046_v46, %v2050_v62  ;;  %v2068_v35 = vrot.slane %v2066_v4, 5 }
  0xef   : > { %v1347_v20 = vpop.f32.mrf.mxu2 }
  0xf0   : > { %v1427_v29 = vadd.f32 %v1347_v20, %v967_v19  ;;  %v2072_v20 = vshll.u32 %v4783_v61, 16 }
  0xf1   : > { %1701 = vmatmul.bf16.gmra.mxu3 %v5299_v13  ;;  %v968_v27 = vpop.f32.mrf.mxu1  ;;  %v2063_v13 = vshrl.u32 %v4782_v31, 16 }
  0xf2   : > { %v2344_v42 = vpop.f32.mrf.mxu0  ;;  %v969_v44 = vadd.f32 %v968_v27, %v5950_v26  ;;  %v5357_v26 = vld [vmem:[%s6900_s1 + $0x1d0] sm:$0xff]  ;;  %v2074_v49 = vrot.slane %v2072_v20, 5 }
  0xf3   : > { %3763 = vmatpush.bf16.msra.mxu3 %v5357_v26  ;;  %v5365_v27 = vld [vmem:[%s6900_s1 + $0x210] sm:$0xff]  ;;  %v2065_v47 = vrot.slane %v2063_v13, 4  ;;  %v4784_v26 = vld [vmem:[%s5503_s20 + $0x8c] sm:$0x1] }
  0xf4   : > { %v1662_v19 = vpop.f32.mrf.mxu3  ;;  %4189 = vmatpush.bf16.msra.mxu0 %v5365_v27  ;;  %v2082_v4 = vshll.u32 %v4784_v26, 16  ;;  %v5415_v26 = vld [vmem:[%s5503_s20 + $0x88] sm:$0xf] }
  0xf5   : > { %2383 = vmatmul.bf16.gmra.mxu0 %v2263_v37  ;;  %v1742_v55 = vadd.f32 %v1662_v19, %v1427_v29  ;;  %v5413_v29 = vld [vmem:[%s5503_s20 + $0x7c] sm:$0xf]  ;;  %v1056_v37 = vld [vmem:[%s5503_s20 + $0x78] sm:$0xe] }
  0xf6   : > { %v1169_v34 = vrot.slane %v5413_v29, 5  ;;  %v5300_v19 = vld [vmem:[%s5503_s20 + $0x78] sm:$0xff] }
  0xf7   : > { %v1349_v60 = vpop.f32.mrf.mxu2  ;;  %v6107_v59 = vadd.f32 %v2344_v42, %v1742_v55  ;;  %v2241_v42 = vunpack.c.l.b16 %v2051_v5  ;;  %v5414_v55 = vld [vmem:[%s5503_s20 + $0x80] sm:$0x1] }
  0xf8   : > { %v1428_v18 = vadd.f32 %v1349_v60, %v969_v44  ;;  %v2242_v44 = vunpack.c.l.b16 %v2061_v11  ;;  %v1171_v31 = vrot.slane %v1169_v34, 4  ;;  %v1172_v61 = vrot.slane %v5414_v55, 5 }
  0xf9   : > { %v971_v23 = vpop.f32.mrf.mxu1 }
  0xfa   : > { %v2346_v62 = vpop.f32.mrf.mxu0  ;;  %v972_v36 = vadd.f32 %v971_v23, %v5976_v57  ;;  %v4554_v57 = vrot.slane %v1056_v37, 9  ;;  %v2264_v60 = vpack.c.b16 %v2242_v44, %v2241_v42  ;;  %v2069_v23 = vor.u32 %v2068_v35, %v2065_v47  ;;  %v5261_v47 = vld [vmem:[%s5503_s20 + $0x78] sm:$0xff]  ;;  %v4786_v35 = vld [vmem:[%s5503_s20 + $0x94] sm:$0xf] }
  0xfb   : > { %1010 = vmatmul.bf16.gmra.mxu1 %v5260_v7  ;;  %v1173_v13 = vsel %vm5818_vm5, %v1171_v31, %v1172_v61  ;;  %v2084_v44 = vrot.slane %v2082_v4, 5 }
  0xfc   : > { %v1664_v46 = vpop.f32.mrf.mxu3  ;;  %1391 = vmatmul.bf16.gmra.mxu2 %v1267_v8  ;;  %v1170_v11 = vsel %vm5818_vm5, %v4554_v57, %v1169_v34  ;;  %v2070_v27 = vrot.slane %v2069_v23, 4  ;;  %v4785_v34 = vld [vmem:[%s5503_s20 + $0x90] sm:$0xf]  ;;  %v1057_v23 = vld [vmem:[%s5503_s20 + $0x84] sm:$0xe] }
  0xfd   : > { %v1743_v48 = vadd.f32 %v1664_v46, %v1428_v18  ;;  %v2079_v18 = vor.u32 %v2078_v54, %v2074_v49  ;;  %v2087_v57 = vshrl.u32 %v4785_v34, 16 }
  0xfe   : > { %v2075_v55 = vsel %vm5518_vm2, %v2070_v27, %v2074_v49 }
  0xff   : > { %v1352_v53 = vpop.f32.mrf.mxu2  ;;  %v6118_v5 = vadd.f32 %v2346_v62, %v1743_v48  ;;  %v1247_v62 = vunpack.c.l.b16 %v1173_v13  ;;  %v2080_v42 = vrot.slane %v2079_v18, 4  ;;  %v2243_v18 = vunpack.c.l.b16 %v2075_v55 }
 0x100   : > { %v1429_v7 = vadd.f32 %v1352_v53, %v972_v36  ;;  %v1246_v36 = vunpack.c.l.b16 %v1170_v11  ;;  %v1176_v53 = vrot.slane %v5415_v26, 5  ;;  %v2100_v11 = vshrl.u32 %v4786_v35, 16 }
 0x101   : > { %1706 = vmatmul.bf16.gmra.mxu3 %v5300_v19  ;;  %v973_v8 = vpop.f32.mrf.mxu1  ;;  %v2085_v61 = vsel %vm5518_vm2, %v2080_v42, %v2084_v44  ;;  %v2089_v49 = vrot.slane %v2087_v57, 4 }
 0x102   : > { %v2349_v20 = vpop.f32.mrf.mxu0  ;;  %v974_v21 = vadd.f32 %v973_v8, %v5993_v24  ;;  %v1268_v19 = vpack.c.b16 %v1247_v62, %v1246_v36  ;;  %v2090_v24 = vshll.u32 %v4785_v34, 16  ;;  %v2096_v8 = vshll.u32 %v4786_v35, 16  ;;  %v4787_v34 = vld [vmem:[%s5503_s20 + $0x98] sm:$0x1] }
 0x103   : > { %v2244_v4 = vunpack.c.l.b16 %v2085_v61  ;;  %v4555_v36 = vrot.slane %v1057_v23, 9  ;;  %v1178_v62 = vrot.slane %v1176_v53, 4  ;;  %v2106_v26 = vshll.u32 %v4787_v34, 16 }
 0x104   : > { %v1667_v29 = vpop.f32.mrf.mxu3  ;;  %v6139_v42 = vrot.slane %v2096_v8, 5 }
 0x105   : > { %2388 = vmatmul.bf16.gmra.mxu0 %v2264_v60  ;;  %v1744_v37 = vadd.f32 %v1667_v29, %v1429_v7  ;;  %v5301_v29 = vld [vmem:[%s5503_s20 + $0x84] sm:$0xff]  ;;  %v2265_v35 = vpack.c.b16 %v2244_v4, %v2243_v18 }
 0x106   : > { %v5324_v4 = vld [vmem:[%s6900_s1 + $0x148] sm:$0xff] }
 0x107   : > { %v1354_v46 = vpop.f32.mrf.mxu2  ;;  %v6128_v48 = vadd.f32 %v2349_v20, %v1744_v37  ;;  %v2092_v20 = vrot.slane %v2090_v24, 5  ;;  %v5416_v37 = vld [vmem:[%s5503_s20 + $0x8c] sm:$0x1]  ;;  %2767 = vmatpush.bf16.msra.mxu1 %v5324_v4 }
 0x108   : > { %v1430_v54 = vadd.f32 %v1354_v46, %v974_v21  ;;  %v1179_v27 = vrot.slane %v5416_v37, 5 }
 0x109   : > { %v976_v31 = vpop.f32.mrf.mxu1  ;;  %v2093_v24 = vor.u32 %v2092_v20, %v2089_v49  ;;  %v2108_v20 = vrot.slane %v2106_v26, 5 }
 0x10a   : > { %v2351_v60 = vpop.f32.mrf.mxu0  ;;  %v977_v7 = vadd.f32 %v976_v31, %v6013_v52  ;;  %v2102_v52 = vrot.slane %v2100_v11, 4  ;;  %v1180_v57 = vsel %vm5818_vm5, %v1178_v62, %v1179_v27  ;;  %v5262_v62 = vld [vmem:[%s5503_s20 + $0x84] sm:$0xff] }
 0x10b   : > { %1015 = vmatmul.bf16.gmra.mxu1 %v5261_v47  ;;  %v1249_v11 = vunpack.c.l.b16 %v1180_v57  ;;  %v2094_v18 = vrot.slane %v2093_v24, 4  ;;  %v1058_v57 = vld [vmem:[%s5503_s20 + $0x90] sm:$0xe] }
 0x10c   : > { %v1669_v13 = vpop.f32.mrf.mxu3  ;;  %1396 = vmatmul.bf16.gmra.mxu2 %v1268_v19  ;;  %v2103_v61 = vor.u32 %v2102_v52, %v6139_v42 }
 0x10d   : > { %v1745_v21 = vadd.f32 %v1669_v13, %v1430_v54  ;;  %v1177_v54 = vsel %vm5818_vm5, %v4555_v36, %v1176_v53  ;;  %v4789_v53 = vld [vmem:[%s5503_s20 + $0xa0] sm:$0xf] }
 0x10e   : > { %v1248_v8 = vunpack.c.l.b16 %v1177_v54  ;;  %v2104_v49 = vrot.slane %v2103_v61, 4  ;;  %v2120_v37 = vshll.u32 %v4789_v53, 16  ;;  %v2124_v27 = vshrl.u32 %v4789_v53, 16  ;;  %v5418_v53 = vld [vmem:[%s5503_s20 + $0x98] sm:$0x1] }
 0x10f   : > { %v1357_v44 = vpop.f32.mrf.mxu2  ;;  %v6142_v47 = vadd.f32 %v2351_v60, %v1745_v21  ;;  %v5348_v60 = vld [vmem:[%s6900_s1 + $0x188] sm:$0xff]  ;;  %v2099_v54 = vsel %vm5518_vm2, %v2094_v18, %v6139_v42  ;;  %v4556_v42 = vrot.slane %v1058_v57, 9 }
 0x110   : > { %v1431_v46 = vadd.f32 %v1357_v44, %v977_v7  ;;  %v4788_v7 = vld [vmem:[%s5503_s20 + $0x9c] sm:$0xf]  ;;  %3082 = vmatpush.bf16.msra.mxu2 %v5348_v60  ;;  %v1269_v34 = vpack.c.b16 %v1249_v11, %v1248_v8  ;;  %v2109_v26 = vsel %vm5518_vm2, %v2104_v49, %v2108_v20  ;;  %v5364_v60 = vld [vmem:[%s6900_s1 + $0x208] sm:$0xff]  ;;  %v2245_v4 = vunpack.c.l.b16 %v2099_v54 }
 0x111   : > { %1711 = vmatmul.bf16.gmra.mxu3 %v5301_v29  ;;  %v978_v19 = vpop.f32.mrf.mxu1  ;;  %v2111_v21 = vshrl.u32 %v4788_v7, 16  ;;  %v2114_v29 = vshll.u32 %v4788_v7, 16  ;;  %v2122_v7 = vrot.slane %v2120_v37, 5  ;;  %4190 = vmatpush.bf16.msra.mxu0 %v5364_v60  ;;  %v2246_v49 = vunpack.c.l.b16 %v2109_v26 }
 0x112   : > { %v2354_v31 = vpop.f32.mrf.mxu0  ;;  %v979_v55 = vadd.f32 %v978_v19, %v6037_v22  ;;  %v5356_v22 = vld [vmem:[%s6900_s1 + $0x1c8] sm:$0xff] }
 0x113   : > { %3764 = vmatpush.bf16.msra.mxu3 %v5356_v22  ;;  %v5302_v22 = vld [vmem:[%s5503_s20 + $0x90] sm:$0xff] }
 0x114   : > { %v1672_v23 = vpop.f32.mrf.mxu3 }
 0x115   : > { %2393 = vmatmul.bf16.gmra.mxu0 %v2265_v35  ;;  %v1746_v13 = vadd.f32 %v1672_v23, %v1431_v46  ;;  %v5417_v46 = vld [vmem:[%s5503_s20 + $0x94] sm:$0xf]  ;;  %v2126_v23 = vrot.slane %v2124_v27, 4 }
 0x116   : > { %v1183_v35 = vrot.slane %v5417_v46, 5 }
 0x117   : > { %v1359_v36 = vpop.f32.mrf.mxu2  ;;  %v6162_v52 = vadd.f32 %v2354_v31, %v1746_v13  ;;  %v2113_v31 = vrot.slane %v2111_v21, 4  ;;  %v1186_v13 = vrot.slane %v5418_v53, 5 }
 0x118   : > { %v1432_v44 = vadd.f32 %v1359_v36, %v979_v55  ;;  %v2116_v55 = vrot.slane %v2114_v29, 5  ;;  %v1185_v11 = vrot.slane %v1183_v35, 4  ;;  %v2127_v29 = vor.u32 %v2126_v23, %v2122_v7 }
 0x119   : > { %v981_v19 = vpop.f32.mrf.mxu1  ;;  %v1184_v37 = vsel %vm5818_vm5, %v4556_v42, %v1183_v35  ;;  %v4791_v35 = vld [vmem:[%s5503_s20 + $0xa8] sm:$0xf] }
 0x11a   : > { %v2356_v24 = vpop.f32.mrf.mxu0  ;;  %v982_v61 = vadd.f32 %v981_v19, %v6063_v10  ;;  %v4790_v10 = vld [vmem:[%s5503_s20 + $0xa4] sm:$0x1]  ;;  %v2117_v20 = vor.u32 %v2116_v55, %v2113_v31  ;;  %v1187_v27 = vsel %vm5818_vm5, %v1185_v11, %v1186_v13  ;;  %v1250_v26 = vunpack.c.l.b16 %v1184_v37  ;;  %v5263_v11 = vld [vmem:[%s5503_s20 + $0x90] sm:$0xff] }
 0x11b   : > { %1020 = vmatmul.bf16.gmra.mxu1 %v5262_v62  ;;  %v2130_v36 = vshll.u32 %v4790_v10, 16  ;;  %v1251_v31 = vunpack.c.l.b16 %v1187_v27  ;;  %v2135_v13 = vshrl.u32 %v4791_v35, 16 }
 0x11c   : > { %v1674_v8 = vpop.f32.mrf.mxu3  ;;  %1401 = vmatmul.bf16.gmra.mxu2 %v1269_v34  ;;  %v2118_v57 = vrot.slane %v2117_v20, 4 }
 0x11d   : > { %v1747_v18 = vadd.f32 %v1674_v8, %v1432_v44  ;;  %v2266_v44 = vpack.c.b16 %v2246_v49, %v2245_v4  ;;  %v2132_v55 = vrot.slane %v2130_v36, 5  ;;  %v4792_v8 = vld [vmem:[%s5503_s20 + $0xac] sm:$0xf]  ;;  %v1270_v53 = vpack.c.b16 %v1251_v31, %v1250_v26  ;;  %v5303_v26 = vld [vmem:[%s5503_s20 + $0x9c] sm:$0xff] }
 0x11e   : > { %v2144_v4 = vshll.u32 %v4792_v8, 16  ;;  %v2148_v49 = vshrl.u32 %v4792_v8, 16 }
 0x11f   : > { %v1362_v21 = vpop.f32.mrf.mxu2  ;;  %v6182_v34 = vadd.f32 %v2356_v24, %v1747_v18  ;;  %v2123_v24 = vsel %vm5518_vm2, %v2118_v57, %v2122_v7  ;;  %v1059_v7 = vld [vmem:[%s5503_s20 + $0x9c] sm:$0xe] }
 0x120   : > { %v1433_v62 = vadd.f32 %v1362_v21, %v982_v61  ;;  %v2128_v61 = vrot.slane %v2127_v29, 4  ;;  %v5419_v21 = vld [vmem:[%s5503_s20 + $0xa0] sm:$0xf]  ;;  %v4557_v31 = vrot.slane %v1059_v7, 9  ;;  %v4794_v7 = vld [vmem:[%s5503_s20 + $0xb4] sm:$0xf] }
 0x121   : > { %1716 = vmatmul.bf16.gmra.mxu3 %v5302_v22  ;;  %v983_v46 = vpop.f32.mrf.mxu1  ;;  %v2138_v22 = vshll.u32 %v4791_v35, 16  ;;  %v1190_v29 = vrot.slane %v5419_v21, 5 }
 0x122   : > { %v2359_v19 = vpop.f32.mrf.mxu0  ;;  %v984_v54 = vadd.f32 %v983_v46, %v6076_v12  ;;  %v2133_v12 = vsel %vm5518_vm2, %v2128_v61, %v2132_v55  ;;  %v5420_v55 = vld [vmem:[%s5503_s20 + $0xa4] sm:$0x1] }
 0x123   : > { %v2248_v37 = vunpack.c.l.b16 %v2133_v12  ;;  %v2140_v46 = vrot.slane %v2138_v22, 5  ;;  %v1192_v61 = vrot.slane %v1190_v29, 4 }
 0x124   : > { %v1677_v60 = vpop.f32.mrf.mxu3 }
 0x125   : > { %2398 = vmatmul.bf16.gmra.mxu0 %v2266_v44  ;;  %v1748_v23 = vadd.f32 %v1677_v60, %v1433_v62  ;;  %v2247_v62 = vunpack.c.l.b16 %v2123_v24  ;;  %v2137_v44 = vrot.slane %v2135_v13, 4  ;;  %v1193_v60 = vrot.slane %v5420_v55, 5 }
 0x126   : > { %v1191_v13 = vsel %vm5818_vm5, %v4557_v31, %v1190_v29  ;;  %v4795_v31 = vld [vmem:[%s5503_s20 + $0xb8] sm:$0xf]  ;;  %v2162_v55 = vshll.u32 %v4794_v7, 16 }
 0x127   : > { %v1364_v42 = vpop.f32.mrf.mxu2  ;;  %v6192_v10 = vadd.f32 %v2359_v19, %v1748_v23  ;;  %v2146_v19 = vrot.slane %v2144_v4, 5  ;;  %v4793_v23 = vld [vmem:[%s5503_s20 + $0xb0] sm:$0x1]  ;;  %v1252_v21 = vunpack.c.l.b16 %v1191_v13  ;;  %v1060_v13 = vld [vmem:[%s5503_s20 + $0xa8] sm:$0xe] }
 0x128   : > { %v1434_v18 = vadd.f32 %v1364_v42, %v984_v54  ;;  %v2150_v54 = vrot.slane %v2148_v49, 4  ;;  %v2267_v42 = vpack.c.b16 %v2248_v37, %v2247_v62  ;;  %v2154_v4 = vshll.u32 %v4793_v23, 16 }
 0x129   : > { %v986_v20 = vpop.f32.mrf.mxu1 }
 0x12a   : > { %v2361_v36 = vpop.f32.mrf.mxu0  ;;  %v987_v35 = vadd.f32 %v986_v20, %v5926_v56  ;;  %v2151_v22 = vor.u32 %v2150_v54, %v2146_v19  ;;  %v5347_v56 = vld [vmem:[%s6900_s1 + $0x180] sm:$0xff] }
 0x12b   : > { %1025 = vmatmul.bf16.gmra.mxu1 %v5263_v11  ;;  %v2141_v11 = vor.u32 %v2140_v46, %v2137_v44  ;;  %3083 = vmatpush.bf16.msra.mxu2 %v5347_v56  ;;  %v5355_v44 = vld [vmem:[%s6900_s1 + $0x1c0] sm:$0xff]  ;;  %v2164_v56 = vrot.slane %v2162_v55, 5 }
 0x12c   : > { %v1679_v27 = vpop.f32.mrf.mxu3  ;;  %1406 = vmatmul.bf16.gmra.mxu2 %v1270_v53  ;;  %v2152_v37 = vrot.slane %v2151_v22, 4  ;;  %v5323_v46 = vld [vmem:[%s6900_s1 + $0x140] sm:$0xff]  ;;  %3765 = vmatpush.bf16.msra.mxu3 %v5355_v44  ;;  %v2172_v22 = vshrl.u32 %v4795_v31, 16 }
 0x12d   : > { %v1749_v57 = vadd.f32 %v1679_v27, %v1434_v18  ;;  %v1194_v18 = vsel %vm5818_vm5, %v1192_v61, %v1193_v60  ;;  %v2142_v29 = vrot.slane %v2141_v11, 4  ;;  %v2156_v27 = vrot.slane %v2154_v4, 5  ;;  %2768 = vmatpush.bf16.msra.mxu1 %v5323_v46  ;;  %v5363_v4 = vld [vmem:[%s6900_s1 + $0x200] sm:$0xff] }
 0x12e   : > { %v2159_v61 = vshrl.u32 %v4794_v7, 16  ;;  %4191 = vmatpush.bf16.msra.mxu0 %v5363_v4  ;;  %v5304_v7 = vld [vmem:[%s5503_s20 + $0xa8] sm:$0xff]  ;;  %v4797_v4 = vld [vmem:[%s5503_s20 + $0xc0] sm:$0xf] }
 0x12f   : > { %v1367_v8 = vpop.f32.mrf.mxu2  ;;  %v6200_v12 = vadd.f32 %v2361_v36, %v1749_v57  ;;  %v1253_v36 = vunpack.c.l.b16 %v1194_v18  ;;  %v2168_v18 = vshll.u32 %v4795_v31, 16 }
 0x130   : > { %v1435_v24 = vadd.f32 %v1367_v8, %v987_v35 }
 0x131   : > { %1721 = vmatmul.bf16.gmra.mxu3 %v5303_v26  ;;  %v988_v53 = vpop.f32.mrf.mxu1  ;;  %v5264_v26 = vld [vmem:[%s5503_s20 + $0x9c] sm:$0xff]  ;;  %v1271_v23 = vpack.c.b16 %v1253_v36, %v1252_v21  ;;  %v2170_v46 = vrot.slane %v2168_v18, 5 }
 0x132   : > { %v2364_v49 = vpop.f32.mrf.mxu0  ;;  %v989_v54 = vadd.f32 %v988_v53, %v5941_v16  ;;  %v5421_v16 = vld [vmem:[%s5503_s20 + $0xac] sm:$0xf] }
 0x133   : > { %v1197_v11 = vrot.slane %v5421_v16, 5 }
 0x134   : > { %v1682_v20 = vpop.f32.mrf.mxu3 }
 0x135   : > { %2403 = vmatmul.bf16.gmra.mxu0 %v2267_v42  ;;  %v1750_v62 = vadd.f32 %v1682_v20, %v1435_v24  ;;  %v2147_v42 = vsel %vm5518_vm2, %v2142_v29, %v2146_v19  ;;  %v2157_v24 = vsel %vm5518_vm2, %v2152_v37, %v2156_v27  ;;  %v1199_v29 = vrot.slane %v1197_v11, 4  ;;  %v5422_v37 = vld [vmem:[%s5503_s20 + $0xb0] sm:$0x1] }
 0x136   : > { %v2249_v20 = vunpack.c.l.b16 %v2147_v42  ;;  %v2250_v21 = vunpack.c.l.b16 %v2157_v24  ;;  %v1200_v27 = vrot.slane %v5422_v37, 5  ;;  %v2183_v37 = vshrl.u32 %v4797_v4, 16 }
 0x137   : > { %v1369_v57 = vpop.f32.mrf.mxu2  ;;  %v6219_v60 = vadd.f32 %v2364_v49, %v1750_v62  ;;  %v2161_v49 = vrot.slane %v2159_v61, 4  ;;  %v4558_v62 = vrot.slane %v1060_v13, 9 }
 0x138   : > { %v1436_v35 = vadd.f32 %v1369_v57, %v989_v54  ;;  %v2174_v54 = vrot.slane %v2172_v22, 4 }
 0x139   : > { %v991_v8 = vpop.f32.mrf.mxu1  ;;  %v2165_v31 = vor.u32 %v2164_v56, %v2161_v49  ;;  %v1198_v42 = vsel %vm5818_vm5, %v4558_v62, %v1197_v11  ;;  %v4798_v56 = vld [vmem:[%s5503_s20 + $0xc4] sm:$0xf]  ;;  %v5265_v62 = vld [vmem:[%s5503_s20 + $0xa8] sm:$0xff] }
 0x13a   : > { %v2366_v53 = vpop.f32.mrf.mxu0  ;;  %v992_v44 = vadd.f32 %v991_v8, %v5965_v45  ;;  %v1201_v45 = vsel %vm5818_vm5, %v1199_v29, %v1200_v27  ;;  %v2175_v24 = vor.u32 %v2174_v54, %v2170_v46  ;;  %v1254_v22 = vunpack.c.l.b16 %v1198_v42 }
 0x13b   : > { %1030 = vmatmul.bf16.gmra.mxu1 %v5264_v26  ;;  %v4796_v26 = vld [vmem:[%s5503_s20 + $0xbc] sm:$0x1]  ;;  %v2166_v13 = vrot.slane %v2165_v31, 4  ;;  %v2186_v27 = vshll.u32 %v4797_v4, 16  ;;  %v2196_v31 = vshrl.u32 %v4798_v56, 16 }
 0x13c   : > { %v1684_v19 = vpop.f32.mrf.mxu3  ;;  %1411 = vmatmul.bf16.gmra.mxu2 %v1271_v23  ;;  %v2178_v16 = vshll.u32 %v4796_v26, 16  ;;  %v2192_v26 = vshll.u32 %v4798_v56, 16 }
 0x13d   : > { %v1751_v36 = vadd.f32 %v1684_v19, %v1436_v35  ;;  %v2268_v35 = vpack.c.b16 %v2250_v21, %v2249_v20  ;;  %v5423_v19 = vld [vmem:[%s5503_s20 + $0x10] sm:$0xf]  ;;  %v2176_v21 = vrot.slane %v2175_v24, 4  ;;  %v2171_v29 = vsel %vm5518_vm2, %v2166_v13, %v2170_v46 }
 0x13e   : > { %v2522_v20 = vrot.slane %v5423_v19, 5  ;;  %v2185_v13 = vrot.slane %v2183_v37, 4  ;;  %v2198_v56 = vrot.slane %v2196_v31, 4 }
 0x13f   : > { %v1372_v57 = vpop.f32.mrf.mxu2  ;;  %v6234_v55 = vadd.f32 %v2366_v53, %v1751_v36  ;;  %v1255_v53 = vunpack.c.l.b16 %v1201_v45  ;;  %v2180_v36 = vrot.slane %v2178_v16, 5  ;;  %v5425_v45 = vld [vmem:[%s5503_s20 + $0x14] sm:$0x1] }
 0x140   : > { %v1437_v61 = vadd.f32 %v1372_v57, %v992_v44  ;;  %v2524_v42 = vrot.slane %v2522_v20, 4  ;;  %v2525_v24 = vrot.slane %v5425_v45, 5 }
 0x141   : > { %6906 = vst [vmem:[#allocation2_spill] sm:$0xff] %v6234_v55  ;;  %1726 = vmatmul.bf16.gmra.mxu3 %v5304_v7  ;;  %v993_v23 = vpop.f32.mrf.mxu1  ;;  %v1272_v57 = vpack.c.b16 %v1255_v53, %v1254_v22  ;;  %v2181_v46 = vsel %vm5518_vm2, %v2176_v21, %v2180_v36  ;;  %v4848_v22 = vld [vmem:[%s5503_s20 + $0xc] sm:$0xe]  ;;  %v4799_v21 = vld [vmem:[%s5503_s20 + $0xc8] sm:$0x1] }
 0x142   : > { %v2369_v8 = vpop.f32.mrf.mxu0  ;;  %v994_v11 = vadd.f32 %v993_v23, %v5985_v9  ;;  %v5424_v9 = vld [vmem:[%s5503_s20 + $0xb8] sm:$0xf]  ;;  %v4864_v19 = vrot.slane %v4848_v22, 9 }
 0x143   : > { %v1204_v23 = vrot.slane %v5424_v9, 5  ;;  %v2252_v9 = vunpack.c.l.b16 %v2181_v46 }
 0x144   : > { %v1687_v18 = vpop.f32.mrf.mxu3 }
 0x145   : > { %2408 = vmatmul.bf16.gmra.mxu0 %v2268_v35  ;;  %v1752_v49 = vadd.f32 %v1687_v18, %v1437_v61  ;;  %v1061_v35 = vld [vmem:[%s5503_s20 + $0xb4] sm:$0xe]  ;;  %v2188_v18 = vrot.slane %v2186_v27, 5  ;;  %v1206_v45 = vrot.slane %v1204_v23, 4 }
 0x146   : > { %v4559_v4 = vrot.slane %v1061_v35, 9  ;;  %v2202_v35 = vshll.u32 %v4799_v21, 16  ;;  %v5266_v21 = vld [vmem:[%s5503_s20 + $0xb4] sm:$0xff] }
 0x147   : > { %v1374_v7 = vpop.f32.mrf.mxu2  ;;  %v6247_v44 = vadd.f32 %v2369_v8, %v1752_v49  ;;  %v2251_v8 = vunpack.c.l.b16 %v2171_v29  ;;  %v2194_v49 = vrot.slane %v2192_v26, 5  ;;  %v2526_v29 = vsel %vm5818_vm5, %v2524_v42, %v2525_v24  ;;  %v5072_v42 = vld [vmem:[%s5503_s20 + $0x18] sm:$0xf] }
 0x148   : > { %v1438_v54 = vadd.f32 %v1374_v7, %v994_v11  ;;  %v5305_v7 = vld [vmem:[%s5503_s20 + $0xb4] sm:$0xff]  ;;  %v2189_v27 = vor.u32 %v2188_v18, %v2185_v13  ;;  %v1205_v31 = vsel %vm5818_vm5, %v4559_v4, %v1204_v23  ;;  %v6273_v18 = vld [vmem:[%s5503_s20 + $0x1c] sm:$0xf] }
 0x149   : > { %6907 = vst [vmem:[#allocation3_spill] sm:$0xff] %v6247_v44  ;;  %v996_v61 = vpop.f32.mrf.mxu1  ;;  %v5426_v44 = vld [vmem:[%s5503_s20 + $0xbc] sm:$0x1]  ;;  %v1256_v22 = vunpack.c.l.b16 %v1205_v31 }
 0x14a   : > { %v2371_v16 = vpop.f32.mrf.mxu0  ;;  %v1207_v55 = vrot.slane %v5426_v44, 5  ;;  %v997_v36 = vadd.f32 %v996_v61, %v6002_v33  ;;  %v2199_v44 = vor.u32 %v2198_v56, %v2194_v49  ;;  %v2269_v33 = vpack.c.b16 %v2252_v9, %v2251_v8 }
 0x14b   : > { %1035 = vmatmul.bf16.gmra.mxu1 %v5265_v62  ;;  %v2523_v62 = vsel %vm5818_vm5, %v4864_v19, %v2522_v20  ;;  %v2204_v19 = vrot.slane %v2202_v35, 5  ;;  %v3246_v8 = vshrl.u32 %v5072_v42, 16  ;;  %v3249_v9 = vshll.u32 %v5072_v42, 16  ;;  %v5074_v35 = vld [vmem:[%s5503_s20 + $0x20] sm:$0x1] }
 0x14c   : > { %v1689_v53 = vpop.f32.mrf.mxu3  ;;  %1416 = vmatmul.bf16.gmra.mxu2 %v1272_v57  ;;  %v2649_v57 = vunpack.c.l.b16 %v2523_v62  ;;  %v1208_v20 = vsel %vm5818_vm5, %v1206_v45, %v1207_v55  ;;  %v2200_v56 = vrot.slane %v2199_v44, 4  ;;  %v3255_v55 = vshll.u32 %v6273_v18, 16 }
 0x14d   : > { %v1753_v11 = vadd.f32 %v1689_v53, %v1438_v54  ;;  %v2650_v54 = vunpack.c.l.b16 %v2526_v29  ;;  %v2190_v53 = vrot.slane %v2189_v27, 4  ;;  %v1257_v4 = vunpack.c.l.b16 %v1208_v20 }
 0x14e   : > { %v2205_v27 = vsel %vm5518_vm2, %v2200_v56, %v2204_v19  ;;  %v3257_v31 = vrot.slane %v3255_v55, 5  ;;  %v5075_v56 = vld [vmem:[%s5503_s20 + $0x24] sm:$0xf] }
 0x14f   : > { %v1377_v37 = vpop.f32.mrf.mxu2  ;;  %v6267_v46 = vpack.c.b16 %v2650_v54, %v2649_v57  ;;  %v6270_v24 = vadd.f32 %v2371_v16, %v1753_v11  ;;  %v3259_v16 = vshrl.u32 %v6273_v18, 16  ;;  %v1273_v29 = vpack.c.b16 %v1257_v4, %v1256_v22 }
 0x150   : > { %v1439_v26 = vadd.f32 %v1377_v37, %v997_v36  ;;  %v2195_v37 = vsel %vm5518_vm2, %v2190_v53, %v2194_v49  ;;  %v3248_v54 = vrot.slane %v3246_v8, 4  ;;  %v2254_v20 = vunpack.c.l.b16 %v2205_v27 }
 0x151   : > { %1731 = vmatmul.bf16.gmra.mxu3 %v5305_v7  ;;  %v998_v61 = vpop.f32.mrf.mxu1  ;;  %v3261_v44 = vrot.slane %v3259_v16, 4  ;;  %v3265_v53 = vshll.u32 %v5074_v35, 16  ;;  %v3273_v27 = vshll.u32 %v5075_v56, 16 }
 0x152   : > { %v2374_v13 = vpop.f32.mrf.mxu0  ;;  %v999_v11 = vadd.f32 %v998_v61, %v6017_v0  ;;  %v2253_v61 = vunpack.c.l.b16 %v2195_v37  ;;  %v3270_v37 = vshrl.u32 %v5075_v56, 16  ;;  %v5427_v56 = vld [vmem:[%s5503_s20 + $0x1c] sm:$0xf] }
 0x153   : > { %v3262_v22 = vor.u32 %v3261_v44, %v3257_v31 }
 0x154   : > { %v1692_v23 = vpop.f32.mrf.mxu3  ;;  %v2270_v19 = vpack.c.b16 %v2254_v20, %v2253_v61  ;;  %v3948_v20 = vrot.slane %v5074_v35, 5 }
 0x155   : > { %2413 = vmatmul.bf16.gmra.mxu0 %v2269_v33  ;;  %v1754_v7 = vadd.f32 %v1692_v23, %v1439_v26  ;;  %v3251_v26 = vrot.slane %v3249_v9, 5  ;;  %v3263_v16 = vrot.slane %v3262_v22, 4 }
 0x157   : > { %v1379_v45 = vpop.f32.mrf.mxu2  ;;  %v6279_v36 = vadd.f32 %v2374_v13, %v1754_v7  ;;  %v5306_v13 = vld [vmem:[%s5503_s20 + $0xc0] sm:$0xff]  ;;  %v3252_v49 = vor.u32 %v3251_v26, %v3248_v54  ;;  %v6290_v7 = vld [vmem:[%s5503_s20 + $0x28] sm:$0xf] }
 0x158   : > { %v1440_v62 = vadd.f32 %v1379_v45, %v999_v11  ;;  %v3267_v11 = vrot.slane %v3265_v53, 5 }
 0x159   : > { %v1001_v57 = vpop.f32.mrf.mxu1  ;;  %v3253_v55 = vrot.slane %v3252_v49, 4  ;;  %v3275_v49 = vrot.slane %v3273_v27, 5 }
 0x15a   : > { %v2376_v0 = vpop.f32.mrf.mxu0  ;;  %v1002_v23 = vadd.f32 %v1001_v57, %v6039_v32  ;;  %v3279_v32 = vshll.u32 %v6290_v7, 16  ;;  %v3283_v57 = vshrl.u32 %v6290_v7, 16 }
 0x15b   : > { %1040 = vmatmul.bf16.gmra.mxu1 %v5266_v21  ;;  %v3258_v44 = vsel %vm5518_vm2, %v3253_v55, %v3257_v31  ;;  %v5331_v31 = vld [vmem:[%s5503_s20 + $0x18] sm:$0xff] }
 0x15c   : > { %v1694_v33 = vpop.f32.mrf.mxu3  ;;  %1421 = vmatmul.bf16.gmra.mxu2 %v1273_v29  ;;  %v3945_v29 = vrot.slane %v6273_v18, 5  ;;  %v6303_v22 = vrot.slane %v3279_v32, 5  ;;  %v3285_v53 = vrot.slane %v3283_v57, 4 }
 0x15d   : > { %v1755_v42 = vadd.f32 %v1694_v33, %v1440_v62  ;;  %v5168_v62 = vld [vmem:[%s5503_s20 + $0x18] sm:$0xe] }
 0x15e   : > { %v5184_v33 = vrot.slane %v5168_v62, 9  ;;  %v3947_v61 = vrot.slane %v3945_v29, 4 }
 0x15f   : > { %v1382_v4 = vpop.f32.mrf.mxu2  ;;  %v6292_v45 = vadd.f32 %v2376_v0, %v1755_v42  ;;  %v3268_v0 = vsel %vm5518_vm2, %v3263_v16, %v3267_v11  ;;  %v3272_v42 = vrot.slane %v3270_v37, 4  ;;  %v4849_v16 = vld [vmem:[%s5503_s20 + $0x18] sm:$0xe]  ;;  %v3286_v37 = vor.u32 %v3285_v53, %v6303_v22 }
 0x160   : > { %v1441_v8 = vadd.f32 %v1382_v4, %v1002_v23  ;;  %v3946_v11 = vsel %vm5818_vm5, %v5184_v33, %v3945_v29  ;;  %v3949_v62 = vsel %vm5818_vm5, %v3947_v61, %v3948_v20  ;;  %v4865_v57 = vrot.slane %v4849_v16, 9  ;;  %v5078_v16 = vld [vmem:[%s5503_s20 + $0x30] sm:$0xf] }
 0x161   : > { %1736 = vmatmul.bf16.gmra.mxu3 %v5306_v13  ;;  %v1003_v9 = vpop.f32.mrf.mxu1  ;;  %v4072_v29 = vunpack.c.l.b16 %v3946_v11  ;;  %v4073_v33 = vunpack.c.l.b16 %v3949_v62  ;;  %v6332_v11 = vld [vmem:[%s5503_s20 + $0x34] sm:$0xf] }
 0x162   : > { %v2379_v21 = vpop.f32.mrf.mxu0  ;;  %v1004_v18 = vadd.f32 %v1003_v9, %v6057_v3  ;;  %v3646_v3 = vunpack.c.l.b16 %v3258_v44  ;;  %v3647_v9 = vunpack.c.l.b16 %v3268_v0 }
 0x164   : > { %v1697_v54 = vpop.f32.mrf.mxu3 }
 0x165   : > { %2418 = vmatmul.bf16.gmra.mxu0 %v2270_v19  ;;  %v1756_v26 = vadd.f32 %v1697_v54, %v1441_v8  ;;  %v2529_v19 = vrot.slane %v5427_v56, 5  ;;  %v6310_v8 = vld [vmem:[%s5503_s20 + $0x2c] sm:$0x1]  ;;  %v5169_v56 = vld [vmem:[%s5503_s20 + $0x24] sm:$0xe] }
 0x166   : > { %v3289_v27 = vshll.u32 %v6310_v8, 16 }
 0x167   : > { %v1384_v13 = vpop.f32.mrf.mxu2  ;;  %v6305_v23 = vadd.f32 %v2379_v21, %v1756_v26  ;;  %v3276_v21 = vor.u32 %v3275_v49, %v3272_v42  ;;  %v2531_v54 = vrot.slane %v2529_v19, 4  ;;  %v5428_v26 = vld [vmem:[%s5503_s20 + $0x20] sm:$0x1]  ;;  %v3287_v42 = vrot.slane %v3286_v37, 4 }
 0x168   : > { %v1442_v4 = vadd.f32 %v1384_v13, %v1004_v18  ;;  %v2532_v44 = vrot.slane %v5428_v26, 5  ;;  %v3678_v18 = vpack.c.b16 %v3647_v9, %v3646_v3  ;;  %v3291_v13 = vrot.slane %v3289_v27, 5 }
 0x169   : > { %v1006_v55 = vpop.f32.mrf.mxu1  ;;  %v3277_v20 = vrot.slane %v3276_v21, 4  ;;  %v2530_v53 = vsel %vm5818_vm5, %v4865_v57, %v2529_v19  ;;  %v4104_v3 = vpack.c.b16 %v4073_v33, %v4072_v29  ;;  %v5185_v37 = vrot.slane %v5169_v56, 9 }
 0x16a   : > { %v2381_v35 = vpop.f32.mrf.mxu0  ;;  %v1007_v61 = vadd.f32 %v1006_v55, %v5936_v17  ;;  %v2651_v62 = vunpack.c.l.b16 %v2530_v53  ;;  %v3294_v57 = vshrl.u32 %v5078_v16, 16  ;;  %v3955_v26 = vrot.slane %v6310_v8, 5  ;;  %v4850_v53 = vld [vmem:[%s5503_s20 + $0x24] sm:$0xe] }
 0x16b   : > { %2769 = vmatmul.bf16.vlgmr.msra.gmra.mxu1 %v6267_v46  ;;  %v3282_v19 = vsel %vm5518_vm2, %v3277_v20, %v6303_v22 }
 0x16c   : > { %v1699_v32 = vpop.f32.mrf.mxu3  ;;  %3084 = vmatmul.bf16.vlgmr.msra.gmra.mxu2 %v5331_v31  ;;  %v2533_v31 = vsel %vm5818_vm5, %v2531_v54, %v2532_v44  ;;  %v3303_v44 = vshll.u32 %v6332_v11, 16  ;;  %v3648_v33 = vunpack.c.l.b16 %v3282_v19  ;;  %v3296_v8 = vrot.slane %v3294_v57, 4 }
 0x16d   : > { %v1757_v0 = vadd.f32 %v1699_v32, %v1442_v4  ;;  %v3952_v4 = vrot.slane %v6290_v7, 5  ;;  %v2652_v21 = vunpack.c.l.b16 %v2533_v31  ;;  %v3292_v7 = vsel %vm5518_vm2, %v3287_v42, %v3291_v13  ;;  %v5332_v13 = vld [vmem:[%s5503_s20 + $0x24] sm:$0xff] }
 0x16f   : > { %v1387_v46 = vpop.f32.mrf.mxu2  ;;  %v6329_v17 = vadd.f32 %v2381_v35, %v1757_v0  ;;  %v3954_v32 = vrot.slane %v3952_v4, 4  ;;  %v3297_v35 = vshll.u32 %v5078_v16, 16  ;;  %v3307_v0 = vshrl.u32 %v6332_v11, 16 }
 0x170   : > { %v1443_v49 = vadd.f32 %v1387_v46, %v1007_v61  ;;  %v2682_v29 = vpack.c.b16 %v2652_v21, %v2651_v62  ;;  %v5429_v61 = vld [vmem:[%s5503_s20 + $0x28] sm:$0xf]  ;;  %v4866_v21 = vrot.slane %v4850_v53, 9 }
 0x171   : > { %3766 = vmatmul.bf16.vlgmr.msra.gmra.mxu3 %v3678_v18  ;;  %v1008_v9 = vpop.f32.mrf.mxu1  ;;  %v2536_v46 = vrot.slane %v5429_v61, 5  ;;  %v3299_v31 = vrot.slane %v3297_v35, 5  ;;  %v3309_v16 = vrot.slane %v3307_v0, 4  ;;  %v5081_v61 = vld [vmem:[%s5503_s20 + $0x3c] sm:$0xf] }
 0x172   : > { %v2384_v55 = vpop.f32.mrf.mxu0  ;;  %v1009_v22 = vadd.f32 %v1008_v9, %v5960_v39  ;;  %v3956_v39 = vsel %vm5818_vm5, %v3954_v32, %v3955_v26  ;;  %v6352_v9 = vrot.slane %v3303_v44, 5 }
 0x173   : > { %v2538_v19 = vrot.slane %v2536_v46, 4 }
 0x174   : > { %v1702_v27 = vpop.f32.mrf.mxu3  ;;  %v3310_v26 = vor.u32 %v3309_v16, %v6352_v9  ;;  %v5170_v16 = vld [vmem:[%s5503_s20 + $0x30] sm:$0xe] }
 0x175   : > { %4192 = vmatmul.bf16.vlgmr.msra.gmra.mxu0 %v4104_v3  ;;  %v1758_v54 = vadd.f32 %v1702_v27, %v1443_v49  ;;  %v3649_v49 = vunpack.c.l.b16 %v3292_v7  ;;  %v3953_v3 = vsel %vm5818_vm5, %v5185_v37, %v3952_v4  ;;  %v5430_v27 = vld [vmem:[%s5503_s20 + $0x2c] sm:$0x1]  ;;  %v4075_v4 = vunpack.c.l.b16 %v3956_v39 }
 0x176   : > { %v2539_v7 = vrot.slane %v5430_v27, 5  ;;  %v4074_v35 = vunpack.c.l.b16 %v3953_v3  ;;  %v3300_v37 = vor.u32 %v3299_v31, %v3296_v8 }
 0x177   : > { %v1389_v18 = vpop.f32.mrf.mxu2  ;;  %v6344_v20 = vadd.f32 %v2384_v55, %v1758_v54  ;;  %v6355_v55 = vld [vmem:[%s5503_s20 + $0x38] sm:$0x1]  ;;  %v3679_v32 = vpack.c.b16 %v3649_v49, %v3648_v33  ;;  %v3311_v49 = vrot.slane %v3310_v26, 4 }
 0x178   : > { %v1444_v42 = vadd.f32 %v1389_v18, %v1009_v22  ;;  %v3313_v44 = vshll.u32 %v6355_v55, 16  ;;  %v2537_v18 = vsel %vm5818_vm5, %v4866_v21, %v2536_v46  ;;  %v3301_v8 = vrot.slane %v3300_v37, 4 }
 0x179   : > { %v1011_v56 = vpop.f32.mrf.mxu1  ;;  %v2653_v46 = vunpack.c.l.b16 %v2537_v18  ;;  %v3318_v21 = vshrl.u32 %v5081_v61, 16  ;;  %v3962_v26 = vrot.slane %v6355_v55, 5 }
 0x17a   : > { %v2386_v62 = vpop.f32.mrf.mxu0  ;;  %v1012_v0 = vadd.f32 %v1011_v56, %v5980_v2  ;;  %v3315_v31 = vrot.slane %v3313_v44, 5  ;;  %v3959_v2 = vrot.slane %v6332_v11, 5 }
 0x17b   : > { %2774 = vmatmul.bf16.gmra.mxu1 %v2682_v29  ;;  %v2540_v29 = vsel %vm5818_vm5, %v2538_v19, %v2539_v7  ;;  %v3321_v19 = vshll.u32 %v5081_v61, 16  ;;  %v3320_v44 = vrot.slane %v3318_v21, 4 }
 0x17c   : > { %v1704_v57 = vpop.f32.mrf.mxu3  ;;  %3089 = vmatmul.bf16.gmra.mxu2 %v5332_v13  ;;  %v4105_v13 = vpack.c.b16 %v4075_v4, %v4074_v35  ;;  %v2654_v39 = vunpack.c.l.b16 %v2540_v29  ;;  %v3306_v35 = vsel %vm5518_vm2, %v3301_v8, %v6352_v9  ;;  %v5186_v4 = vrot.slane %v5170_v16, 9 }
 0x17d   : > { %v1759_v54 = vadd.f32 %v1704_v57, %v1444_v42  ;;  %v6367_v42 = vld [vmem:[%s5503_s20 + $0x40] sm:$0xf]  ;;  %v3961_v37 = vrot.slane %v3959_v2, 4 }
 0x17e   : > { %v3327_v27 = vshll.u32 %v6367_v42, 16  ;;  %v3331_v7 = vshrl.u32 %v6367_v42, 16 }
 0x17f   : > { %v1392_v22 = vpop.f32.mrf.mxu2  ;;  %v6370_v56 = vadd.f32 %v2386_v62, %v1759_v54  ;;  %v3316_v62 = vsel %vm5518_vm2, %v3311_v49, %v3315_v31  ;;  %v6389_v49 = vld [vmem:[%s5503_s20 + $0x44] sm:$0x1]  ;;  %v3963_v16 = vsel %vm5818_vm5, %v3961_v37, %v3962_v26 }
 0x180   : > { %v1445_v53 = vadd.f32 %v1392_v22, %v1012_v0  ;;  %v3323_v22 = vrot.slane %v3321_v19, 5  ;;  %v6382_v9 = vrot.slane %v3327_v27, 5  ;;  %v3333_v18 = vrot.slane %v3331_v7, 4 }
 0x181   : > { %3771 = vmatmul.bf16.gmra.mxu3 %v3679_v32  ;;  %v1013_v33 = vpop.f32.mrf.mxu1  ;;  %v2683_v32 = vpack.c.b16 %v2654_v39, %v2653_v46  ;;  %v3651_v31 = vunpack.c.l.b16 %v3316_v62  ;;  %v4851_v46 = vld [vmem:[%s5503_s20 + $0x30] sm:$0xe]  ;;  %v3960_v39 = vsel %vm5818_vm5, %v5186_v4, %v3959_v2  ;;  %v3337_v19 = vshll.u32 %v6389_v49, 16 }
 0x182   : > { %v2389_v3 = vpop.f32.mrf.mxu0  ;;  %v1014_v54 = vadd.f32 %v1013_v33, %v5995_v25  ;;  %v3650_v33 = vunpack.c.l.b16 %v3306_v35  ;;  %v3334_v21 = vor.u32 %v3333_v18, %v6382_v9  ;;  %v4867_v7 = vrot.slane %v4851_v46, 9  ;;  %v5432_v35 = vld [vmem:[%s5503_s20 + $0x38] sm:$0x1]  ;;  %v5084_v46 = vld [vmem:[%s5503_s20 + $0x48] sm:$0xf] }
 0x183   : > { %v4076_v2 = vunpack.c.l.b16 %v3960_v39  ;;  %v4077_v4 = vunpack.c.l.b16 %v3963_v16  ;;  %v6410_v39 = vld [vmem:[%s5503_s20 + $0x4c] sm:$0xf] }
 0x184   : > { %v1707_v57 = vpop.f32.mrf.mxu3 }
 0x185   : > { %4197 = vmatmul.bf16.gmra.mxu0 %v4105_v13  ;;  %v1760_v11 = vadd.f32 %v1707_v57, %v1445_v53  ;;  %v5333_v13 = vld [vmem:[%s5503_s20 + $0x30] sm:$0xff] }
 0x186   : > { %v5431_v53 = vld [vmem:[%s5503_s20 + $0x34] sm:$0xf] }
 0x187   : > { %v1394_v0 = vpop.f32.mrf.mxu2  ;;  %v6384_v29 = vadd.f32 %v2389_v3, %v1760_v11  ;;  %v2543_v8 = vrot.slane %v5431_v53, 5  ;;  %v3324_v3 = vor.u32 %v3323_v22, %v3320_v44  ;;  %v2546_v11 = vrot.slane %v5432_v35, 5  ;;  %v5171_v53 = vld [vmem:[%s5503_s20 + $0x3c] sm:$0xe] }
 0x188   : > { %v1446_v61 = vadd.f32 %v1394_v0, %v1014_v54  ;;  %v3680_v54 = vpack.c.b16 %v3651_v31, %v3650_v33  ;;  %v3335_v44 = vrot.slane %v3334_v21, 4  ;;  %v3339_v0 = vrot.slane %v3337_v19, 5 }
 0x189   : > { %v1016_v25 = vpop.f32.mrf.mxu1  ;;  %v2545_v57 = vrot.slane %v2543_v8, 4  ;;  %v3325_v26 = vrot.slane %v3324_v3, 4  ;;  %v2544_v18 = vsel %vm5818_vm5, %v4867_v7, %v2543_v8  ;;  %v4106_v33 = vpack.c.b16 %v4077_v4, %v4076_v2 }
 0x18a   : > { %v2391_v55 = vpop.f32.mrf.mxu0  ;;  %v1017_v37 = vadd.f32 %v1016_v25, %v6010_v58  ;;  %v2655_v16 = vunpack.c.l.b16 %v2544_v18  ;;  %v5187_v21 = vrot.slane %v5171_v53, 9  ;;  %v3342_v7 = vshrl.u32 %v5084_v46, 16  ;;  %v4852_v18 = vld [vmem:[%s5503_s20 + $0x3c] sm:$0xe] }
 0x18b   : > { %2779 = vmatmul.bf16.gmra.mxu1 %v2683_v32  ;;  %v3330_v8 = vsel %vm5518_vm2, %v3325_v26, %v6382_v9  ;;  %v3969_v35 = vrot.slane %v6389_v49, 5 }
 0x18c   : > { %v1709_v27 = vpop.f32.mrf.mxu3  ;;  %3094 = vmatmul.bf16.gmra.mxu2 %v5333_v13  ;;  %v2547_v13 = vsel %vm5818_vm5, %v2545_v57, %v2546_v11  ;;  %v3351_v11 = vshll.u32 %v6410_v39, 16  ;;  %v3652_v4 = vunpack.c.l.b16 %v3330_v8  ;;  %v3344_v49 = vrot.slane %v3342_v7, 4 }
 0x18d   : > { %v1761_v62 = vadd.f32 %v1709_v27, %v1446_v61  ;;  %v3966_v61 = vrot.slane %v6367_v42, 5  ;;  %v2656_v3 = vunpack.c.l.b16 %v2547_v13  ;;  %v3340_v42 = vsel %vm5518_vm2, %v3335_v44, %v3339_v0  ;;  %v5334_v0 = vld [vmem:[%s5503_s20 + $0x3c] sm:$0xff] }
 0x18f   : > { %v1397_v32 = vpop.f32.mrf.mxu2  ;;  %v6407_v58 = vadd.f32 %v2391_v55, %v1761_v62  ;;  %v3968_v27 = vrot.slane %v3966_v61, 4  ;;  %v3345_v55 = vshll.u32 %v5084_v46, 16  ;;  %v3355_v62 = vshrl.u32 %v6410_v39, 16 }
 0x190   : > { %v1447_v22 = vadd.f32 %v1397_v32, %v1017_v37  ;;  %v2684_v2 = vpack.c.b16 %v2656_v3, %v2655_v16  ;;  %v5433_v37 = vld [vmem:[%s5503_s20 + $0x40] sm:$0xf]  ;;  %v4868_v3 = vrot.slane %v4852_v18, 9 }
 0x191   : > { %3776 = vmatmul.bf16.gmra.mxu3 %v3680_v54  ;;  %v1018_v31 = vpop.f32.mrf.mxu1  ;;  %v2550_v32 = vrot.slane %v5433_v37, 5  ;;  %v3347_v13 = vrot.slane %v3345_v55, 5  ;;  %v3357_v46 = vrot.slane %v3355_v62, 4  ;;  %v5087_v37 = vld [vmem:[%s5503_s20 + $0x54] sm:$0xf] }
 0x192   : > { %v2394_v25 = vpop.f32.mrf.mxu0  ;;  %v1019_v9 = vadd.f32 %v1018_v31, %v6033_v51  ;;  %v3970_v51 = vsel %vm5818_vm5, %v3968_v27, %v3969_v35  ;;  %v6430_v31 = vrot.slane %v3351_v11, 5 }
 0x193   : > { %v2552_v8 = vrot.slane %v2550_v32, 4 }
 0x194   : > { %v1712_v19 = vpop.f32.mrf.mxu3  ;;  %v3358_v35 = vor.u32 %v3357_v46, %v6430_v31  ;;  %v5172_v46 = vld [vmem:[%s5503_s20 + $0x48] sm:$0xe] }
 0x195   : > { %4202 = vmatmul.bf16.gmra.mxu0 %v4106_v33  ;;  %v1762_v57 = vadd.f32 %v1712_v19, %v1447_v22  ;;  %v3653_v22 = vunpack.c.l.b16 %v3340_v42  ;;  %v3967_v33 = vsel %vm5818_vm5, %v5187_v21, %v3966_v61  ;;  %v5434_v19 = vld [vmem:[%s5503_s20 + $0x44] sm:$0x1]  ;;  %v4079_v61 = vunpack.c.l.b16 %v3970_v51 }
 0x196   : > { %v2553_v42 = vrot.slane %v5434_v19, 5  ;;  %v4078_v55 = vunpack.c.l.b16 %v3967_v33  ;;  %v3348_v21 = vor.u32 %v3347_v13, %v3344_v49 }
 0x197   : > { %v1399_v54 = vpop.f32.mrf.mxu2  ;;  %v6422_v26 = vadd.f32 %v2394_v25, %v1762_v57  ;;  %v6433_v25 = vld [vmem:[%s5503_s20 + $0x50] sm:$0x1]  ;;  %v3681_v27 = vpack.c.b16 %v3653_v22, %v3652_v4  ;;  %v3359_v22 = vrot.slane %v3358_v35, 4 }
 0x198   : > { %v1448_v44 = vadd.f32 %v1399_v54, %v1019_v9  ;;  %v3361_v11 = vshll.u32 %v6433_v25, 16  ;;  %v2551_v54 = vsel %vm5818_vm5, %v4868_v3, %v2550_v32  ;;  %v3349_v49 = vrot.slane %v3348_v21, 4 }
 0x199   : > { %v1021_v53 = vpop.f32.mrf.mxu1  ;;  %v2657_v32 = vunpack.c.l.b16 %v2551_v54  ;;  %v3366_v3 = vshrl.u32 %v5087_v37, 16  ;;  %v3976_v35 = vrot.slane %v6433_v25, 5 }
 0x19a   : > { %v2396_v16 = vpop.f32.mrf.mxu0  ;;  %v1022_v62 = vadd.f32 %v1021_v53, %v6054_v14  ;;  %v3363_v13 = vrot.slane %v3361_v11, 5  ;;  %v3973_v14 = vrot.slane %v6410_v39, 5 }
 0x19b   : > { %2784 = vmatmul.bf16.gmra.mxu1 %v2684_v2  ;;  %v2554_v2 = vsel %vm5818_vm5, %v2552_v8, %v2553_v42  ;;  %v3369_v8 = vshll.u32 %v5087_v37, 16  ;;  %v3368_v11 = vrot.slane %v3366_v3, 4 }
 0x19c   : > { %v1714_v7 = vpop.f32.mrf.mxu3  ;;  %3099 = vmatmul.bf16.gmra.mxu2 %v5334_v0  ;;  %v4107_v0 = vpack.c.b16 %v4079_v61, %v4078_v55  ;;  %v2658_v51 = vunpack.c.l.b16 %v2554_v2  ;;  %v3354_v55 = vsel %vm5518_vm2, %v3349_v49, %v6430_v31  ;;  %v5188_v61 = vrot.slane %v5172_v46, 9 }
 0x19d   : > { %v1763_v57 = vadd.f32 %v1714_v7, %v1448_v44  ;;  %v6445_v44 = vld [vmem:[%s5503_s20 + $0x58] sm:$0xf]  ;;  %v3975_v21 = vrot.slane %v3973_v14, 4 }
 0x19e   : > { %v3375_v19 = vshll.u32 %v6445_v44, 16  ;;  %v3379_v42 = vshrl.u32 %v6445_v44, 16 }
 0x19f   : > { %v1402_v9 = vpop.f32.mrf.mxu2  ;;  %v6448_v53 = vadd.f32 %v2396_v16, %v1763_v57  ;;  %v3364_v16 = vsel %vm5518_vm2, %v3359_v22, %v3363_v13  ;;  %v6467_v22 = vld [vmem:[%s5503_s20 + $0x5c] sm:$0x1]  ;;  %v3977_v46 = vsel %vm5818_vm5, %v3975_v21, %v3976_v35 }
 0x1a0   : > { %v1449_v18 = vadd.f32 %v1402_v9, %v1022_v62  ;;  %v3371_v9 = vrot.slane %v3369_v8, 5  ;;  %v6460_v31 = vrot.slane %v3375_v19, 5  ;;  %v3381_v54 = vrot.slane %v3379_v42, 4 }
 0x1a1   : > { %3781 = vmatmul.bf16.gmra.mxu3 %v3681_v27  ;;  %v1023_v4 = vpop.f32.mrf.mxu1  ;;  %v2685_v27 = vpack.c.b16 %v2658_v51, %v2657_v32  ;;  %v3655_v13 = vunpack.c.l.b16 %v3364_v16  ;;  %v4853_v32 = vld [vmem:[%s5503_s20 + $0x48] sm:$0xe]  ;;  %v3974_v51 = vsel %vm5818_vm5, %v5188_v61, %v3973_v14  ;;  %v3385_v8 = vshll.u32 %v6467_v22, 16 }
 0x1a2   : > { %v2399_v33 = vpop.f32.mrf.mxu0  ;;  %v1024_v57 = vadd.f32 %v1023_v4, %v6069_v38  ;;  %v3654_v4 = vunpack.c.l.b16 %v3354_v55  ;;  %v3382_v3 = vor.u32 %v3381_v54, %v6460_v31  ;;  %v4869_v42 = vrot.slane %v4853_v32, 9  ;;  %v5436_v55 = vld [vmem:[%s5503_s20 + $0x50] sm:$0x1]  ;;  %v5090_v32 = vld [vmem:[%s5503_s20 + $0x60] sm:$0xf] }
 0x1a3   : > { %v4080_v14 = vunpack.c.l.b16 %v3974_v51  ;;  %v4081_v61 = vunpack.c.l.b16 %v3977_v46  ;;  %v6488_v51 = vld [vmem:[%s5503_s20 + $0x64] sm:$0xf] }
 0x1a4   : > { %v1717_v7 = vpop.f32.mrf.mxu3 }
 0x1a5   : > { %4207 = vmatmul.bf16.gmra.mxu0 %v4107_v0  ;;  %v1764_v39 = vadd.f32 %v1717_v7, %v1449_v18  ;;  %v5335_v0 = vld [vmem:[%s5503_s20 + $0x48] sm:$0xff] }
 0x1a6   : > { %v5435_v18 = vld [vmem:[%s5503_s20 + $0x4c] sm:$0xf] }
 0x1a7   : > { %v1404_v62 = vpop.f32.mrf.mxu2  ;;  %v6462_v2 = vadd.f32 %v2399_v33, %v1764_v39  ;;  %v2557_v49 = vrot.slane %v5435_v18, 5  ;;  %v3372_v33 = vor.u32 %v3371_v9, %v3368_v11  ;;  %v2560_v39 = vrot.slane %v5436_v55, 5  ;;  %v5173_v18 = vld [vmem:[%s5503_s20 + $0x54] sm:$0xe] }
 0x1a8   : > { %v1450_v37 = vadd.f32 %v1404_v62, %v1024_v57  ;;  %v3682_v57 = vpack.c.b16 %v3655_v13, %v3654_v4  ;;  %v3383_v11 = vrot.slane %v3382_v3, 4  ;;  %v3387_v62 = vrot.slane %v3385_v8, 5 }
 0x1a9   : > { %v1026_v38 = vpop.f32.mrf.mxu1  ;;  %v2559_v7 = vrot.slane %v2557_v49, 4  ;;  %v3373_v35 = vrot.slane %v3372_v33, 4  ;;  %v2558_v54 = vsel %vm5818_vm5, %v4869_v42, %v2557_v49  ;;  %v4108_v4 = vpack.c.b16 %v4081_v61, %v4080_v14 }
 0x1aa   : > { %v2401_v25 = vpop.f32.mrf.mxu0  ;;  %v1027_v21 = vadd.f32 %v1026_v38, %v5939_v50  ;;  %v2659_v46 = vunpack.c.l.b16 %v2558_v54  ;;  %v5189_v3 = vrot.slane %v5173_v18, 9  ;;  %v3390_v42 = vshrl.u32 %v5090_v32, 16  ;;  %v4854_v54 = vld [vmem:[%s5503_s20 + $0x54] sm:$0xe] }
 0x1ab   : > { %2789 = vmatmul.bf16.gmra.mxu1 %v2685_v27  ;;  %v3378_v49 = vsel %vm5518_vm2, %v3373_v35, %v6460_v31  ;;  %v3983_v55 = vrot.slane %v6467_v22, 5 }
 0x1ac   : > { %v1719_v19 = vpop.f32.mrf.mxu3  ;;  %3104 = vmatmul.bf16.gmra.mxu2 %v5335_v0  ;;  %v2561_v0 = vsel %vm5818_vm5, %v2559_v7, %v2560_v39  ;;  %v3399_v39 = vshll.u32 %v6488_v51, 16  ;;  %v3656_v61 = vunpack.c.l.b16 %v3378_v49  ;;  %v3392_v22 = vrot.slane %v3390_v42, 4 }
 0x1ad   : > { %v1765_v16 = vadd.f32 %v1719_v19, %v1450_v37  ;;  %v3980_v37 = vrot.slane %v6445_v44, 5  ;;  %v2660_v33 = vunpack.c.l.b16 %v2561_v0  ;;  %v3388_v44 = vsel %vm5518_vm2, %v3383_v11, %v3387_v62  ;;  %v5336_v62 = vld [vmem:[%s5503_s20 + $0x54] sm:$0xff] }
 0x1af   : > { %v1407_v27 = vpop.f32.mrf.mxu2  ;;  %v6485_v50 = vadd.f32 %v2401_v25, %v1765_v16  ;;  %v3982_v19 = vrot.slane %v3980_v37, 4  ;;  %v3393_v25 = vshll.u32 %v5090_v32, 16  ;;  %v3403_v16 = vshrl.u32 %v6488_v51, 16 }
 0x1b0   : > { %v1451_v9 = vadd.f32 %v1407_v27, %v1027_v21  ;;  %v2686_v14 = vpack.c.b16 %v2660_v33, %v2659_v46  ;;  %v5437_v21 = vld [vmem:[%s5503_s20 + $0x58] sm:$0xf]  ;;  %v6509_v33 = vld [vmem:[%s5503_s20 + $0x68] sm:$0x1] }
 0x1b1   : > { %3786 = vmatmul.bf16.gmra.mxu3 %v3682_v57  ;;  %v1028_v13 = vpop.f32.mrf.mxu1  ;;  %v2564_v27 = vrot.slane %v5437_v21, 5  ;;  %v3395_v0 = vrot.slane %v3393_v25, 5  ;;  %v3405_v32 = vrot.slane %v3403_v16, 4  ;;  %v5093_v21 = vld [vmem:[%s5503_s20 + $0x6c] sm:$0xf] }
 0x1b2   : > { %v2404_v38 = vpop.f32.mrf.mxu0  ;;  %v1029_v31 = vadd.f32 %v1028_v13, %v5962_v40  ;;  %v3984_v40 = vsel %vm5818_vm5, %v3982_v19, %v3983_v55  ;;  %v3401_v13 = vrot.slane %v3399_v39, 5  ;;  %v3409_v55 = vshll.u32 %v6509_v33, 16 }
 0x1b3   : > { %v2566_v49 = vrot.slane %v2564_v27, 4 }
 0x1b4   : > { %v1722_v8 = vpop.f32.mrf.mxu3  ;;  %v3406_v19 = vor.u32 %v3405_v32, %v3401_v13  ;;  %v5174_v32 = vld [vmem:[%s5503_s20 + $0x60] sm:$0xe] }
 0x1b5   : > { %4212 = vmatmul.bf16.gmra.mxu0 %v4108_v4  ;;  %v1766_v7 = vadd.f32 %v1722_v8, %v1451_v9  ;;  %v3657_v9 = vunpack.c.l.b16 %v3388_v44  ;;  %v3981_v4 = vsel %vm5818_vm5, %v5189_v3, %v3980_v37  ;;  %v5438_v8 = vld [vmem:[%s5503_s20 + $0x5c] sm:$0x1]  ;;  %v3396_v37 = vor.u32 %v3395_v0, %v3392_v22  ;;  %v6520_v22 = vld [vmem:[%s5503_s20 + $0x70] sm:$0xf] }
 0x1b6   : > { %v2567_v44 = vrot.slane %v5438_v8, 5  ;;  %v4082_v25 = vunpack.c.l.b16 %v3981_v4  ;;  %v3423_v8 = vshll.u32 %v6520_v22, 16 }
 0x1b7   : > { %v1409_v57 = vpop.f32.mrf.mxu2  ;;  %v6500_v35 = vadd.f32 %v2404_v38, %v1766_v7  ;;  %v4870_v38 = vrot.slane %v4854_v54, 9  ;;  %v4083_v7 = vunpack.c.l.b16 %v3984_v40  ;;  %v3397_v4 = vrot.slane %v3396_v37, 4 }
 0x1b8   : > { %v1452_v11 = vadd.f32 %v1409_v57, %v1029_v31  ;;  %v3683_v31 = vpack.c.b16 %v3657_v9, %v3656_v61  ;;  %v3411_v9 = vrot.slane %v3409_v55, 5 }
 0x1b9   : > { %v1031_v18 = vpop.f32.mrf.mxu1  ;;  %v2565_v57 = vsel %vm5818_vm5, %v4870_v38, %v2564_v27  ;;  %v3414_v38 = vshrl.u32 %v5093_v21, 16 }
 0x1ba   : > { %v2406_v46 = vpop.f32.mrf.mxu0  ;;  %v1032_v39 = vadd.f32 %v1031_v18, %v5983_v6  ;;  %v3987_v6 = vrot.slane %v6488_v51, 5  ;;  %v2661_v27 = vunpack.c.l.b16 %v2565_v57 }
 0x1bb   : > { %2794 = vmatmul.bf16.gmra.mxu1 %v2686_v14  ;;  %v2568_v14 = vsel %vm5818_vm5, %v2566_v49, %v2567_v44  ;;  %v3417_v49 = vshll.u32 %v5093_v21, 16  ;;  %v3427_v44 = vshrl.u32 %v6520_v22, 16  ;;  %v3416_v55 = vrot.slane %v3414_v38, 4 }
 0x1bc   : > { %v1724_v42 = vpop.f32.mrf.mxu3  ;;  %3109 = vmatmul.bf16.gmra.mxu2 %v5336_v62  ;;  %v4109_v62 = vpack.c.b16 %v4083_v7, %v4082_v25  ;;  %v2662_v40 = vunpack.c.l.b16 %v2568_v14  ;;  %v3402_v25 = vsel %vm5518_vm2, %v3397_v4, %v3401_v13  ;;  %v5190_v7 = vrot.slane %v5174_v32, 9 }
 0x1bd   : > { %v1767_v3 = vadd.f32 %v1724_v42, %v1452_v11  ;;  %v3407_v11 = vrot.slane %v3406_v19, 4  ;;  %v3989_v37 = vrot.slane %v3987_v6, 4  ;;  %v3990_v19 = vrot.slane %v6509_v33, 5 }
 0x1be   : > { %v6534_v13 = vrot.slane %v3423_v8, 5  ;;  %v3429_v57 = vrot.slane %v3427_v44, 4 }
 0x1bf   : > { %v1412_v16 = vpop.f32.mrf.mxu2  ;;  %v6523_v0 = vadd.f32 %v2406_v46, %v1767_v3  ;;  %v3412_v46 = vsel %vm5518_vm2, %v3407_v11, %v3411_v9  ;;  %v4855_v9 = vld [vmem:[%s5503_s20 + $0x60] sm:$0xe]  ;;  %v3991_v32 = vsel %vm5818_vm5, %v3989_v37, %v3990_v19 }
 0x1c0   : > { %v1453_v54 = vadd.f32 %v1412_v16, %v1032_v39  ;;  %v3419_v16 = vrot.slane %v3417_v49, 5  ;;  %v3430_v38 = vor.u32 %v3429_v57, %v6534_v13  ;;  %v4871_v8 = vrot.slane %v4855_v9, 9 }
 0x1c1   : > { %3791 = vmatmul.bf16.gmra.mxu3 %v3683_v31  ;;  %v1033_v61 = vpop.f32.mrf.mxu1  ;;  %v2687_v31 = vpack.c.b16 %v2662_v40, %v2661_v27  ;;  %v6542_v27 = vld [vmem:[%s5503_s20 + $0x74] sm:$0x1]  ;;  %v3988_v40 = vsel %vm5818_vm5, %v5190_v7, %v3987_v6  ;;  %v4085_v6 = vunpack.c.l.b16 %v3991_v32 }
 0x1c2   : > { %v2409_v18 = vpop.f32.mrf.mxu0  ;;  %v1034_v3 = vadd.f32 %v1033_v61, %v5997_v28  ;;  %v3658_v28 = vunpack.c.l.b16 %v3402_v25  ;;  %v3659_v61 = vunpack.c.l.b16 %v3412_v46  ;;  %v3431_v19 = vrot.slane %v3430_v38, 4 }
 0x1c4   : > { %v1727_v42 = vpop.f32.mrf.mxu3 }
 0x1c5   : > { %4217 = vmatmul.bf16.gmra.mxu0 %v4109_v62  ;;  %v1768_v51 = vadd.f32 %v1727_v42, %v1453_v54  ;;  %v5337_v62 = vld [vmem:[%s5503_s20 + $0x60] sm:$0xff]  ;;  %v5440_v42 = vld [vmem:[%s5503_s20 + $0x68] sm:$0x1] }
 0x1c6   : > { %v5439_v54 = vld [vmem:[%s5503_s20 + $0x64] sm:$0xf]  ;;  %v2574_v25 = vrot.slane %v5440_v42, 5 }
 0x1c7   : > { %v1414_v39 = vpop.f32.mrf.mxu2  ;;  %v6536_v14 = vadd.f32 %v2409_v18, %v1768_v51  ;;  %v2571_v4 = vrot.slane %v5439_v54, 5  ;;  %v3420_v18 = vor.u32 %v3419_v16, %v3416_v55  ;;  %v3433_v51 = vshll.u32 %v6542_v27, 16 }
 0x1c8   : > { %v1454_v21 = vadd.f32 %v1414_v39, %v1034_v3  ;;  %v3684_v3 = vpack.c.b16 %v3659_v61, %v3658_v28  ;;  %v4084_v39 = vunpack.c.l.b16 %v3988_v40  ;;  %v5175_v28 = vld [vmem:[%s5503_s20 + $0x6c] sm:$0xe]  ;;  %v3994_v61 = vrot.slane %v6520_v22, 5 }
 0x1c9   : > { %v1036_v11 = vpop.f32.mrf.mxu1  ;;  %v2573_v44 = vrot.slane %v2571_v4, 4  ;;  %v2572_v16 = vsel %vm5818_vm5, %v4871_v8, %v2571_v4  ;;  %v5191_v8 = vrot.slane %v5175_v28, 9 }
 0x1ca   : > { %v2411_v33 = vpop.f32.mrf.mxu0  ;;  %v1037_v7 = vadd.f32 %v1036_v11, %v6015_v63  ;;  %v5096_v11 = vld [vmem:[%s5503_s20 + $0x78] sm:$0xf]  ;;  %v2663_v40 = vunpack.c.l.b16 %v2572_v16 }
 0x1cb   : > { %2799 = vmatmul.bf16.gmra.mxu1 %v2687_v31  ;;  %v3421_v31 = vrot.slane %v3420_v18, 4  ;;  %v2575_v57 = vsel %vm5818_vm5, %v2573_v44, %v2574_v25  ;;  %v6562_v18 = vld [vmem:[%s5503_s20 + $0x7c] sm:$0xf]  ;;  %v3438_v44 = vshrl.u32 %v5096_v11, 16  ;;  %v3441_v42 = vshll.u32 %v5096_v11, 16 }
 0x1cc   : > { %v1729_v49 = vpop.f32.mrf.mxu3  ;;  %3114 = vmatmul.bf16.gmra.mxu2 %v5337_v62  ;;  %v3435_v62 = vrot.slane %v3433_v51, 5  ;;  %v2664_v32 = vunpack.c.l.b16 %v2575_v57  ;;  %v3997_v51 = vrot.slane %v6542_v27, 5  ;;  %v4856_v27 = vld [vmem:[%s5503_s20 + $0x6c] sm:$0xe] }
 0x1cd   : > { %v1769_v46 = vadd.f32 %v1729_v49, %v1454_v21  ;;  %v4110_v21 = vpack.c.b16 %v4085_v6, %v4084_v39  ;;  %v3426_v4 = vsel %vm5518_vm2, %v3421_v31, %v6534_v13  ;;  %v3451_v13 = vshrl.u32 %v6562_v18, 16 }
 0x1ce   : > { %v3436_v49 = vsel %vm5518_vm2, %v3431_v19, %v3435_v62  ;;  %v2688_v39 = vpack.c.b16 %v2664_v32, %v2663_v40  ;;  %v3660_v31 = vunpack.c.l.b16 %v3426_v4  ;;  %v5441_v19 = vld [vmem:[%s5503_s20 + $0x70] sm:$0xf]  ;;  %v3440_v62 = vrot.slane %v3438_v44, 4  ;;  %v6583_v40 = vld [vmem:[%s5503_s20 + $0x80] sm:$0x1] }
 0x1cf   : > { %v1417_v37 = vpop.f32.mrf.mxu2  ;;  %v6558_v9 = vadd.f32 %v2411_v33, %v1769_v46  ;;  %v3996_v33 = vrot.slane %v3994_v61, 4  ;;  %v3447_v46 = vshll.u32 %v6562_v18, 16  ;;  %v3661_v57 = vunpack.c.l.b16 %v3436_v49 }
 0x1d0   : > { %v1455_v55 = vadd.f32 %v1417_v37, %v1037_v7  ;;  %v5338_v37 = vld [vmem:[%s5503_s20 + $0x6c] sm:$0xff]  ;;  %v3453_v11 = vrot.slane %v3451_v13, 4  ;;  %v4872_v4 = vrot.slane %v4856_v27, 9 }
 0x1d1   : > { %3796 = vmatmul.bf16.gmra.mxu3 %v3684_v3  ;;  %v1038_v54 = vpop.f32.mrf.mxu1  ;;  %v3998_v28 = vsel %vm5818_vm5, %v3996_v33, %v3997_v51  ;;  %v3685_v44 = vpack.c.b16 %v3661_v57, %v3660_v31 }
 0x1d2   : > { %v2414_v63 = vpop.f32.mrf.mxu0  ;;  %v1039_v25 = vadd.f32 %v1038_v54, %v6046_v41  ;;  %v3995_v41 = vsel %vm5818_vm5, %v5191_v8, %v3994_v61 }
 0x1d4   : > { %v1732_v38 = vpop.f32.mrf.mxu3 }
 0x1d5   : > { %4222 = vmatmul.bf16.gmra.mxu0 %v4110_v21  ;;  %v1770_v22 = vadd.f32 %v1732_v38, %v1455_v55  ;;  %v2578_v55 = vrot.slane %v5441_v19, 5  ;;  %v3443_v21 = vrot.slane %v3441_v42, 5  ;;  %v4086_v38 = vunpack.c.l.b16 %v3995_v41  ;;  %v5099_v19 = vld [vmem:[%s5503_s20 + $0x84] sm:$0xf]  ;;  %v6594_v41 = vld [vmem:[%s5503_s20 + $0x88] sm:$0xf] }
 0x1d6   : > { %v4087_v42 = vunpack.c.l.b16 %v3998_v28  ;;  %v4001_v28 = vrot.slane %v6562_v18, 5 }
 0x1d7   : > { %v1419_v3 = vpop.f32.mrf.mxu2  ;;  %v6573_v6 = vadd.f32 %v2414_v63, %v1770_v22  ;;  %v3449_v63 = vrot.slane %v3447_v46, 5  ;;  %v2580_v49 = vrot.slane %v2578_v55, 4  ;;  %v5442_v22 = vld [vmem:[%s5503_s20 + $0x74] sm:$0x1]  ;;  %v3457_v46 = vshll.u32 %v6583_v40, 16 }
 0x1d8   : > { %v1456_v7 = vadd.f32 %v1419_v3, %v1039_v25  ;;  %v2581_v61 = vrot.slane %v5442_v22, 5  ;;  %v3444_v25 = vor.u32 %v3443_v21, %v3440_v62  ;;  %v5176_v21 = vld [vmem:[%s5503_s20 + $0x78] sm:$0xe]  ;;  %v3471_v22 = vshll.u32 %v6594_v41, 16 }
 0x1d9   : > { %v1041_v16 = vpop.f32.mrf.mxu1  ;;  %v3454_v51 = vor.u32 %v3453_v11, %v3449_v63  ;;  %v3459_v62 = vrot.slane %v3457_v46, 5 }
 0x1da   : > { %v2416_v54 = vpop.f32.mrf.mxu0  ;;  %v1042_v33 = vadd.f32 %v1041_v16, %v6066_v15  ;;  %v3445_v57 = vrot.slane %v3444_v25, 4  ;;  %v4004_v25 = vrot.slane %v6583_v40, 5 }
 0x1db   : > { %2804 = vmatmul.bf16.gmra.mxu1 %v2688_v39  ;;  %v2579_v39 = vsel %vm5818_vm5, %v4872_v4, %v2578_v55  ;;  %v3455_v27 = vrot.slane %v3454_v51, 4  ;;  %v3465_v4 = vshll.u32 %v5099_v19, 16 }
 0x1dc   : > { %v1734_v32 = vpop.f32.mrf.mxu3  ;;  %3119 = vmatmul.bf16.gmra.mxu2 %v5338_v37  ;;  %v2582_v37 = vsel %vm5818_vm5, %v2580_v49, %v2581_v61  ;;  %v2665_v11 = vunpack.c.l.b16 %v2579_v39  ;;  %v3450_v61 = vsel %vm5518_vm2, %v3445_v57, %v3449_v63 }
 0x1dd   : > { %v1771_v8 = vadd.f32 %v1734_v32, %v1456_v7  ;;  %v4111_v7 = vpack.c.b16 %v4087_v42, %v4086_v38  ;;  %v2666_v55 = vunpack.c.l.b16 %v2582_v37  ;;  %v3462_v32 = vshrl.u32 %v5099_v19, 16  ;;  %v5339_v37 = vld [vmem:[%s5503_s20 + $0x78] sm:$0xff] }
 0x1de   : > { %v3475_v38 = vshrl.u32 %v6594_v41, 16  ;;  %v4003_v42 = vrot.slane %v4001_v28, 4  ;;  %v5443_v19 = vld [vmem:[%s5503_s20 + $0x7c] sm:$0xf] }
 0x1df   : > { %v1422_v13 = vpop.f32.mrf.mxu2  ;;  %v6596_v15 = vadd.f32 %v2416_v54, %v1771_v8  ;;  %v5192_v8 = vrot.slane %v5176_v21, 9  ;;  %v2689_v51 = vpack.c.b16 %v2666_v55, %v2665_v11  ;;  %v3464_v46 = vrot.slane %v3462_v32, 4 }
 0x1e0   : > { %v1457_v3 = vadd.f32 %v1422_v13, %v1042_v33  ;;  %v3467_v13 = vrot.slane %v3465_v4, 5  ;;  %v2585_v63 = vrot.slane %v5443_v19, 5 }
 0x1e1   : > { %3801 = vmatmul.bf16.gmra.mxu3 %v3685_v44  ;;  %v1043_v31 = vpop.f32.mrf.mxu1  ;;  %v3460_v44 = vsel %vm5518_vm2, %v3455_v27, %v3459_v62  ;;  %v3662_v27 = vunpack.c.l.b16 %v3450_v61  ;;  %v4857_v62 = vld [vmem:[%s5503_s20 + $0x78] sm:$0xe]  ;;  %v4002_v11 = vsel %vm5818_vm5, %v5192_v8, %v4001_v28 }
 0x1e2   : > { %v2419_v16 = vpop.f32.mrf.mxu0  ;;  %v1044_v18 = vadd.f32 %v1043_v31, %v6081_v1  ;;  %v6615_v1 = vrot.slane %v3471_v22, 5  ;;  %v3477_v31 = vrot.slane %v3475_v38, 4  ;;  %v3663_v40 = vunpack.c.l.b16 %v3460_v44  ;;  %v5444_v38 = vld [vmem:[%s5503_s20 + $0x80] sm:$0x1] }
 0x1e3   : > { %v3468_v55 = vor.u32 %v3467_v13, %v3464_v46  ;;  %v2587_v22 = vrot.slane %v2585_v63, 4  ;;  %v4088_v28 = vunpack.c.l.b16 %v4002_v11  ;;  %v6636_v11 = vld [vmem:[%s5503_s20 + $0x94] sm:$0xf] }
 0x1e4   : > { %v1737_v49 = vpop.f32.mrf.mxu3  ;;  %v3478_v61 = vor.u32 %v3477_v31, %v6615_v1  ;;  %v3686_v44 = vpack.c.b16 %v3663_v40, %v3662_v27  ;;  %v5177_v27 = vld [vmem:[%s5503_s20 + $0x84] sm:$0xe]  ;;  %v5102_v40 = vld [vmem:[%s5503_s20 + $0x90] sm:$0xf] }
 0x1e5   : > { %4227 = vmatmul.bf16.gmra.mxu0 %v4111_v7  ;;  %v1772_v54 = vadd.f32 %v1737_v49, %v1457_v3  ;;  %v6613_v7 = vld [vmem:[%s5503_s20 + $0x8c] sm:$0x1]  ;;  %v4873_v49 = vrot.slane %v4857_v62, 9 }
 0x1e6   : > { %v3481_v32 = vshll.u32 %v6613_v7, 16  ;;  %v3479_v13 = vrot.slane %v3478_v61, 4  ;;  %v4011_v61 = vrot.slane %v6613_v7, 5 }
 0x1e7   : > { %v1424_v33 = vpop.f32.mrf.mxu2  ;;  %v6608_v39 = vadd.f32 %v2419_v16, %v1772_v54  ;;  %v4005_v16 = vsel %vm5818_vm5, %v4003_v42, %v4004_v25  ;;  %v2588_v54 = vrot.slane %v5444_v38, 5  ;;  %v3495_v38 = vshll.u32 %v6636_v11, 16 }
 0x1e8   : > { %v1458_v3 = vadd.f32 %v1424_v33, %v1044_v18  ;;  %v4089_v8 = vunpack.c.l.b16 %v4005_v16  ;;  %v3469_v33 = vrot.slane %v3468_v55, 4 }
 0x1e9   : > { %v2770_v57 = vpop.f32.mrf.mxu1  ;;  %v2589_v46 = vsel %vm5818_vm5, %v2587_v22, %v2588_v54  ;;  %v3499_v54 = vshrl.u32 %v6636_v11, 16 }
 0x1ea   : > { %v2421_v21 = vpop.f32.mrf.mxu0  ;;  %v2850_v42 = vadd.f32 %v2770_v57, %v6107_v59  ;;  %v4008_v57 = vrot.slane %v6594_v41, 5  ;;  %v2668_v16 = vunpack.c.l.b16 %v2589_v46  ;;  %v3489_v41 = vshll.u32 %v5102_v40, 16 }
 0x1eb   : > { %2809 = vmatmul.bf16.gmra.mxu1 %v2689_v51  ;;  %v2586_v51 = vsel %vm5818_vm5, %v4873_v49, %v2585_v63  ;;  %v5193_v49 = vrot.slane %v5177_v27, 9 }
 0x1ec   : > { %v1739_v4 = vpop.f32.mrf.mxu3  ;;  %3124 = vmatmul.bf16.gmra.mxu2 %v5339_v37  ;;  %v3483_v37 = vrot.slane %v3481_v32, 5  ;;  %v2667_v63 = vunpack.c.l.b16 %v2586_v51  ;;  %v3474_v32 = vsel %vm5518_vm2, %v3469_v33, %v6615_v1  ;;  %v4010_v1 = vrot.slane %v4008_v57, 4  ;;  %v5340_v33 = vld [vmem:[%s5503_s20 + $0x84] sm:$0xff] }
 0x1ed   : > { %v1773_v18 = vadd.f32 %v1739_v4, %v1458_v3  ;;  %v4112_v3 = vpack.c.b16 %v4089_v8, %v4088_v28  ;;  %v3664_v51 = vunpack.c.l.b16 %v3474_v32  ;;  %v3491_v27 = vrot.slane %v3489_v41, 5 }
 0x1ee   : > { %v3484_v4 = vsel %vm5518_vm2, %v3479_v13, %v3483_v37  ;;  %v2690_v8 = vpack.c.b16 %v2668_v16, %v2667_v63  ;;  %v4009_v13 = vsel %vm5818_vm5, %v5193_v49, %v4008_v57  ;;  %v4858_v37 = vld [vmem:[%s5503_s20 + $0x84] sm:$0xe]  ;;  %v6665_v57 = vld [vmem:[%s5503_s20 + $0x98] sm:$0x1] }
 0x1ef   : > { %v3085_v25 = vpop.f32.mrf.mxu2  ;;  %v6632_v62 = vadd.f32 %v2421_v21, %v1773_v18  ;;  %v3486_v21 = vshrl.u32 %v5102_v40, 16  ;;  %v3665_v46 = vunpack.c.l.b16 %v3484_v4  ;;  %v6659_v40 = vrot.slane %v3495_v38, 5 }
 0x1f0   : > { %v3165_v19 = vadd.f32 %v3085_v25, %v2850_v42  ;;  %v5445_v42 = vld [vmem:[%s5503_s20 + $0x88] sm:$0xf]  ;;  %v4874_v63 = vrot.slane %v4858_v37, 9 }
 0x1f1   : > { %3806 = vmatmul.bf16.gmra.mxu3 %v3686_v44  ;;  %v2772_v31 = vpop.f32.mrf.mxu1  ;;  %v2592_v25 = vrot.slane %v5445_v42, 5  ;;  %v3687_v49 = vpack.c.b16 %v3665_v46, %v3664_v51  ;;  %v5105_v42 = vld [vmem:[%s5503_s20 + $0x9c] sm:$0xf] }
 0x1f2   : > { %v4193_v59 = vpop.f32.mrf.mxu0  ;;  %v2851_v44 = vadd.f32 %v2772_v31, %v6118_v5  ;;  %v3501_v5 = vrot.slane %v3499_v54, 4 }
 0x1f3   : > { %v2594_v16 = vrot.slane %v2592_v25, 4 }
 0x1f4   : > { %v3767_v55 = vpop.f32.mrf.mxu3  ;;  %v3502_v54 = vor.u32 %v3501_v5, %v6659_v40  ;;  %v5178_v5 = vld [vmem:[%s5503_s20 + $0x90] sm:$0xe] }
 0x1f5   : > { %4232 = vmatmul.bf16.gmra.mxu0 %v4112_v3  ;;  %v3847_v22 = vadd.f32 %v3767_v55, %v3165_v19  ;;  %v3488_v3 = vrot.slane %v3486_v21, 4  ;;  %v5446_v55 = vld [vmem:[%s5503_s20 + $0x8c] sm:$0x1]  ;;  %v4090_v21 = vunpack.c.l.b16 %v4009_v13 }
 0x1f6   : > { %v2595_v32 = vrot.slane %v5446_v55, 5  ;;  %v3503_v37 = vrot.slane %v3502_v54, 4 }
 0x1f7   : > { %v4273_v18 = vadd.f32 %v4193_v59, %v3847_v22  ;;  %v3087_v28 = vpop.f32.mrf.mxu2  ;;  %v4012_v59 = vsel %vm5818_vm5, %v4010_v1, %v4011_v61  ;;  %v3492_v38 = vor.u32 %v3491_v27, %v3488_v3  ;;  %v3505_v1 = vshll.u32 %v6665_v57, 16  ;;  %v6677_v3 = vld [vmem:[%s5503_s20 + $0xa0] sm:$0xf] }
 0x1f8   : > { %v3166_v19 = vadd.f32 %v3087_v28, %v2851_v44  ;;  %v4091_v41 = vunpack.c.l.b16 %v4012_v59  ;;  %v2593_v28 = vsel %vm5818_vm5, %v4874_v63, %v2592_v25  ;;  %v4015_v25 = vrot.slane %v6636_v11, 5 }
 0x1f9   : > { %4305 = vst [vmem:[%s6649_s8] sm:$0xff] %v4273_v18  ;;  %v2775_v7 = vpop.f32.mrf.mxu1  ;;  %v3493_v13 = vrot.slane %v3492_v38, 4  ;;  %v3507_v27 = vrot.slane %v3505_v1, 5  ;;  %v3513_v59 = vshll.u32 %v5105_v42, 16  ;;  %v3523_v55 = vshrl.u32 %v6677_v3, 16 }
 0x1fa   : > { %v4195_v31 = vpop.f32.mrf.mxu0  ;;  %v2852_v18 = vadd.f32 %v2775_v7, %v6128_v48  ;;  %v2669_v48 = vunpack.c.l.b16 %v2593_v28  ;;  %v5447_v28 = vld [vmem:[%s5503_s20 + $0x94] sm:$0xf] }
 0x1fb   : > { %2814 = vmatmul.bf16.gmra.mxu1 %v2690_v8  ;;  %v2596_v8 = vsel %vm5818_vm5, %v2594_v16, %v2595_v32  ;;  %v3519_v16 = vshll.u32 %v6677_v3, 16  ;;  %v3508_v11 = vsel %vm5518_vm2, %v3503_v37, %v3507_v27 }
 0x1fc   : > { %v3769_v4 = vpop.f32.mrf.mxu3  ;;  %3129 = vmatmul.bf16.gmra.mxu2 %v5340_v33  ;;  %v4113_v33 = vpack.c.b16 %v4091_v41, %v4090_v21  ;;  %v2670_v7 = vunpack.c.l.b16 %v2596_v8  ;;  %v4018_v41 = vrot.slane %v6665_v57, 5  ;;  %v2599_v8 = vrot.slane %v5447_v28, 5 }
 0x1fd   : > { %v3848_v22 = vadd.f32 %v3769_v4, %v3166_v19  ;;  %v3498_v4 = vsel %vm5518_vm2, %v3493_v13, %v6659_v40  ;;  %v6693_v40 = vld [vmem:[%s5503_s20 + $0xa4] sm:$0x1]  ;;  %v3667_v37 = vunpack.c.l.b16 %v3508_v11 }
 0x1fe   : > { %v2691_v21 = vpack.c.b16 %v2670_v7, %v2669_v48  ;;  %v3666_v57 = vunpack.c.l.b16 %v3498_v4  ;;  %v3529_v27 = vshll.u32 %v6693_v40, 16 }
 0x1ff   : > { %v4274_v61 = vadd.f32 %v4195_v31, %v3848_v22  ;;  %v3090_v44 = vpop.f32.mrf.mxu2  ;;  %v3510_v31 = vshrl.u32 %v5105_v42, 16  ;;  %v4017_v22 = vrot.slane %v4015_v25, 4  ;;  %v6695_v42 = vrot.slane %v3519_v16, 5 }
 0x200   : > { %v3167_v51 = vadd.f32 %v3090_v44, %v2852_v18  ;;  %v3515_v18 = vrot.slane %v3513_v59, 5  ;;  %v5341_v44 = vld [vmem:[%s5503_s20 + $0x90] sm:$0xff]  ;;  %v2601_v59 = vrot.slane %v2599_v8, 4  ;;  %v3688_v4 = vpack.c.b16 %v3667_v37, %v3666_v57 }
 0x201   : > { %4306 = vst [vmem:[%s6649_s8 + $0x8] sm:$0xff] %v4274_v61  ;;  %3811 = vmatmul.bf16.gmra.mxu3 %v3687_v49  ;;  %v2777_v46 = vpop.f32.mrf.mxu1  ;;  %v5194_v49 = vrot.slane %v5178_v5, 9  ;;  %v3512_v61 = vrot.slane %v3510_v31, 4 }
 0x202   : > { %v4198_v19 = vpop.f32.mrf.mxu0  ;;  %v2853_v54 = vadd.f32 %v2777_v46, %v6142_v47  ;;  %v4019_v46 = vsel %vm5818_vm5, %v4017_v22, %v4018_v41 }
 0x203   : > { %v4016_v47 = vsel %vm5818_vm5, %v5194_v49, %v4015_v25  ;;  %v3516_v7 = vor.u32 %v3515_v18, %v3512_v61  ;;  %v4093_v49 = vunpack.c.l.b16 %v4019_v46  ;;  %v3531_v61 = vrot.slane %v3529_v27, 5 }
 0x204   : > { %v3772_v63 = vpop.f32.mrf.mxu3  ;;  %v4092_v25 = vunpack.c.l.b16 %v4016_v47 }
 0x205   : > { %4237 = vmatmul.bf16.gmra.mxu0 %v4113_v33  ;;  %v3849_v32 = vadd.f32 %v3772_v63, %v3167_v51  ;;  %v3525_v33 = vrot.slane %v3523_v55, 4  ;;  %v5448_v63 = vld [vmem:[%s5503_s20 + $0x98] sm:$0x1]  ;;  %v3517_v41 = vrot.slane %v3516_v7, 4 }
 0x206   : > { %v2602_v16 = vrot.slane %v5448_v63, 5  ;;  %v4114_v18 = vpack.c.b16 %v4093_v49, %v4092_v25  ;;  %v4025_v63 = vrot.slane %v6693_v40, 5  ;;  %v5342_v49 = vld [vmem:[%s5503_s20 + $0x9c] sm:$0xff] }
 0x207   : > { %v4275_v38 = vadd.f32 %v4198_v19, %v3849_v32  ;;  %v3092_v1 = vpop.f32.mrf.mxu2  ;;  %v4859_v19 = vld [vmem:[%s5503_s20 + $0x90] sm:$0xe]  ;;  %v3526_v55 = vor.u32 %v3525_v33, %v6695_v42  ;;  %v5179_v33 = vld [vmem:[%s5503_s20 + $0x9c] sm:$0xe] }
 0x208   : > { %v3168_v51 = vadd.f32 %v3092_v1, %v2853_v54  ;;  %v4875_v31 = vrot.slane %v4859_v19, 9  ;;  %v2603_v54 = vsel %vm5818_vm5, %v2601_v59, %v2602_v16  ;;  %v5195_v46 = vrot.slane %v5179_v33, 9 }
 0x209   : > { %4307 = vst [vmem:[%s6649_s8 + $0x10] sm:$0xff] %v4275_v38  ;;  %v2780_v13 = vpop.f32.mrf.mxu1  ;;  %v3527_v1 = vrot.slane %v3526_v55, 4  ;;  %v2672_v19 = vunpack.c.l.b16 %v2603_v54 }
 0x20a   : > { %v4200_v48 = vpop.f32.mrf.mxu0  ;;  %v2600_v38 = vsel %vm5818_vm5, %v4875_v31, %v2599_v8 }
 0x20b   : > { %2819 = vmatmul.bf16.gmra.mxu1 %v2691_v21  ;;  %v2854_v21 = vadd.f32 %v2780_v13, %v6162_v52  ;;  %v4022_v52 = vrot.slane %v6677_v3, 5  ;;  %v6716_v13 = vld [vmem:[%s5503_s20 + $0xac] sm:$0xf]  ;;  %v2671_v37 = vunpack.c.l.b16 %v2600_v38  ;;  %v3532_v47 = vsel %vm5518_vm2, %v3527_v1, %v3531_v61 }
 0x20c   : > { %v3774_v5 = vpop.f32.mrf.mxu3  ;;  %3134 = vmatmul.bf16.gmra.mxu2 %v5341_v44  ;;  %v3547_v31 = vshrl.u32 %v6716_v13, 16 }
 0x20d   : > { %v3850_v32 = vadd.f32 %v3774_v5, %v3168_v51  ;;  %v5108_v51 = vld [vmem:[%s5503_s20 + $0xa8] sm:$0xf]  ;;  %v3543_v5 = vshll.u32 %v6716_v13, 16  ;;  %v4024_v59 = vrot.slane %v4022_v52, 4 }
 0x20e   : > { %v3534_v7 = vshrl.u32 %v5108_v51, 16  ;;  %v3537_v3 = vshll.u32 %v5108_v51, 16  ;;  %v5450_v51 = vld [vmem:[%s5503_s20 + $0xa4] sm:$0x1] }
 0x20f   : > { %v4276_v11 = vadd.f32 %v4200_v48, %v3850_v32  ;;  %v3095_v22 = vpop.f32.mrf.mxu2  ;;  %v3522_v48 = vsel %vm5518_vm2, %v3517_v41, %v6695_v42  ;;  %v2692_v32 = vpack.c.b16 %v2672_v19, %v2671_v37  ;;  %v4860_v41 = vld [vmem:[%s5503_s20 + $0x9c] sm:$0xe]  ;;  %v6733_v61 = vrot.slane %v3543_v5, 5 }
 0x210   : > { %v3169_v44 = vadd.f32 %v3095_v22, %v2854_v21  ;;  %v3669_v21 = vunpack.c.l.b16 %v3532_v47  ;;  %v4023_v22 = vsel %vm5818_vm5, %v5195_v46, %v4022_v52  ;;  %v3536_v38 = vrot.slane %v3534_v7, 4  ;;  %v6739_v52 = vld [vmem:[%s5503_s20 + $0xb0] sm:$0x1] }
 0x211   : > { %4308 = vst [vmem:[%s6649_s8 + $0x18] sm:$0xff] %v4276_v11  ;;  %3816 = vmatmul.bf16.gmra.mxu3 %v3688_v4  ;;  %v2782_v28 = vpop.f32.mrf.mxu1  ;;  %v5449_v4 = vld [vmem:[%s5503_s20 + $0xa0] sm:$0xf]  ;;  %v3668_v11 = vunpack.c.l.b16 %v3522_v48  ;;  %v3539_v1 = vrot.slane %v3537_v3, 5 }
 0x212   : > { %v4203_v57 = vpop.f32.mrf.mxu0  ;;  %v2855_v42 = vadd.f32 %v2782_v28, %v6182_v34  ;;  %v2606_v25 = vrot.slane %v5449_v4, 5  ;;  %v3549_v34 = vrot.slane %v3547_v31, 4  ;;  %v4876_v28 = vrot.slane %v4860_v41, 9 }
 0x213   : > { %v3689_v19 = vpack.c.b16 %v3669_v21, %v3668_v11  ;;  %v3540_v46 = vor.u32 %v3539_v1, %v3536_v38  ;;  %v6751_v11 = vld [vmem:[%s5503_s20 + $0xb8] sm:$0xf]  ;;  %v5180_v38 = vld [vmem:[%s5503_s20 + $0xa8] sm:$0xe] }
 0x214   : > { %v3777_v8 = vpop.f32.mrf.mxu3  ;;  %v2608_v33 = vrot.slane %v2606_v25, 4  ;;  %v3550_v7 = vor.u32 %v3549_v34, %v6733_v61  ;;  %v3567_v34 = vshll.u32 %v6751_v11, 16 }
 0x215   : > { %4242 = vmatmul.bf16.gmra.mxu0 %v4114_v18  ;;  %v3851_v27 = vadd.f32 %v3777_v8, %v3169_v44  ;;  %v4026_v44 = vsel %vm5818_vm5, %v4024_v59, %v4025_v63  ;;  %v4094_v8 = vunpack.c.l.b16 %v4023_v22  ;;  %v2607_v59 = vsel %vm5818_vm5, %v4876_v28, %v2606_v25 }
 0x216   : > { %v4095_v47 = vunpack.c.l.b16 %v4026_v44  ;;  %v3541_v4 = vrot.slane %v3540_v46, 4  ;;  %v4029_v25 = vrot.slane %v6716_v13, 5 }
 0x217   : > { %v4277_v16 = vadd.f32 %v4203_v57, %v3851_v27  ;;  %v3097_v55 = vpop.f32.mrf.mxu2  ;;  %v2609_v57 = vrot.slane %v5450_v51, 5  ;;  %v3553_v27 = vshll.u32 %v6739_v52, 16 }
 0x218   : > { %v3170_v54 = vadd.f32 %v3097_v55, %v2855_v42  ;;  %v4115_v42 = vpack.c.b16 %v4095_v47, %v4094_v8  ;;  %v3546_v28 = vsel %vm5518_vm2, %v3541_v4, %v6733_v61  ;;  %v6767_v61 = vld [vmem:[%s5503_s20 + $0xbc] sm:$0x1] }
 0x219   : > { %4309 = vst [vmem:[%s6649_s8 + $0x20] sm:$0xff] %v4277_v16  ;;  %v2785_v40 = vpop.f32.mrf.mxu1  ;;  %v2610_v63 = vsel %vm5818_vm5, %v2608_v33, %v2609_v57  ;;  %v5111_v16 = vld [vmem:[%s5503_s20 + $0xb4] sm:$0xf]  ;;  %v3555_v41 = vrot.slane %v3553_v27, 5  ;;  %v5196_v33 = vrot.slane %v5180_v38, 9  ;;  %v4031_v57 = vrot.slane %v4029_v25, 4 }
 0x21a   : > { %v4205_v18 = vpop.f32.mrf.mxu0  ;;  %v2856_v5 = vadd.f32 %v2785_v40, %v6192_v10  ;;  %v2673_v10 = vunpack.c.l.b16 %v2607_v59  ;;  %v2674_v22 = vunpack.c.l.b16 %v2610_v63  ;;  %v3561_v40 = vshll.u32 %v5111_v16, 16  ;;  %v5451_v27 = vld [vmem:[%s5503_s20 + $0xac] sm:$0xf] }
 0x21b   : > { %2824 = vmatmul.bf16.gmra.mxu1 %v2692_v32 }
 0x21c   : > { %v3779_v37 = vpop.f32.mrf.mxu3  ;;  %3139 = vmatmul.bf16.gmra.mxu2 %v5342_v49  ;;  %v3551_v49 = vrot.slane %v3550_v7, 4  ;;  %v2693_v51 = vpack.c.b16 %v2674_v22, %v2673_v10  ;;  %v3563_v46 = vrot.slane %v3561_v40, 5  ;;  %v5343_v7 = vld [vmem:[%s5503_s20 + $0xa8] sm:$0xff] }
 0x21d   : > { %v3852_v48 = vadd.f32 %v3779_v37, %v3170_v54  ;;  %v3558_v54 = vshrl.u32 %v5111_v16, 16  ;;  %v4032_v37 = vrot.slane %v6739_v52, 5  ;;  %v3670_v16 = vunpack.c.l.b16 %v3546_v28 }
 0x21e   : > { %v3556_v13 = vsel %vm5518_vm2, %v3551_v49, %v3555_v41  ;;  %v3577_v49 = vshll.u32 %v6767_v61, 16  ;;  %v5452_v41 = vld [vmem:[%s5503_s20 + $0xb0] sm:$0x1] }
 0x21f   : > { %v4278_v3 = vadd.f32 %v4205_v18, %v3852_v48  ;;  %v3100_v31 = vpop.f32.mrf.mxu2  ;;  %v3571_v18 = vshrl.u32 %v6751_v11, 16  ;;  %v3560_v47 = vrot.slane %v3558_v54, 4  ;;  %v3671_v52 = vunpack.c.l.b16 %v3556_v13 }
 0x220   : > { %v3171_v55 = vadd.f32 %v3100_v31, %v2856_v5  ;;  %v3569_v5 = vrot.slane %v3567_v34, 5  ;;  %v2616_v38 = vrot.slane %v5452_v41, 5 }
 0x221   : > { %4310 = vst [vmem:[%s6649_s8 + $0x28] sm:$0xff] %v4278_v3  ;;  %3821 = vmatmul.bf16.gmra.mxu3 %v3689_v19  ;;  %v2787_v32 = vpop.f32.mrf.mxu1  ;;  %v2613_v3 = vrot.slane %v5451_v27, 5  ;;  %v3573_v31 = vrot.slane %v3571_v18, 4  ;;  %v3564_v4 = vor.u32 %v3563_v46, %v3560_v47  ;;  %v5181_v47 = vld [vmem:[%s5503_s20 + $0xb4] sm:$0xe] }
 0x222   : > { %v4208_v21 = vpop.f32.mrf.mxu0  ;;  %v2857_v8 = vadd.f32 %v2787_v32, %v6200_v12  ;;  %v4030_v12 = vsel %vm5818_vm5, %v5196_v33, %v4029_v25  ;;  %v4033_v32 = vsel %vm5818_vm5, %v4031_v57, %v4032_v37  ;;  %v3579_v37 = vrot.slane %v3577_v49, 5  ;;  %v5114_v46 = vld [vmem:[%s5503_s20 + $0xc0] sm:$0xf]  ;;  %v6787_v27 = vld [vmem:[%s5503_s20 + $0xc4] sm:$0xf] }
 0x223   : > { %v2615_v22 = vrot.slane %v2613_v3, 4  ;;  %v3574_v54 = vor.u32 %v3573_v31, %v3569_v5  ;;  %v4096_v34 = vunpack.c.l.b16 %v4030_v12  ;;  %v4097_v25 = vunpack.c.l.b16 %v4033_v32 }
 0x224   : > { %v3782_v1 = vpop.f32.mrf.mxu3  ;;  %v3565_v33 = vrot.slane %v3564_v4, 4  ;;  %v3595_v32 = vshrl.u32 %v6787_v27, 16 }
 0x225   : > { %4247 = vmatmul.bf16.gmra.mxu0 %v4115_v42  ;;  %v3853_v44 = vadd.f32 %v3782_v1, %v3171_v55  ;;  %v4861_v42 = vld [vmem:[%s5503_s20 + $0xa8] sm:$0xe]  ;;  %v3690_v1 = vpack.c.b16 %v3671_v52, %v3670_v16  ;;  %v2617_v13 = vsel %vm5818_vm5, %v2615_v22, %v2616_v38  ;;  %v3575_v57 = vrot.slane %v3574_v54, 4 }
 0x226   : > { %v4877_v10 = vrot.slane %v4861_v42, 9  ;;  %v5197_v52 = vrot.slane %v5181_v47, 9  ;;  %v3582_v42 = vshrl.u32 %v5114_v46, 16 }
 0x227   : > { %v4279_v19 = vadd.f32 %v4208_v21, %v3853_v44  ;;  %v3102_v48 = vpop.f32.mrf.mxu2  ;;  %v3580_v16 = vsel %vm5518_vm2, %v3575_v57, %v3579_v37 }
 0x228   : > { %v3172_v59 = vadd.f32 %v3102_v48, %v2857_v8  ;;  %v3673_v54 = vunpack.c.l.b16 %v3580_v16 }
 0x229   : > { %4311 = vst [vmem:[%s6649_s8 + $0x30] sm:$0xff] %v4279_v19  ;;  %v2790_v63 = vpop.f32.mrf.mxu1  ;;  %v4116_v19 = vpack.c.b16 %v4097_v25, %v4096_v34  ;;  %v5453_v34 = vld [vmem:[%s5503_s20 + $0xb8] sm:$0xf] }
 0x22a   : > { %v4210_v55 = vpop.f32.mrf.mxu0  ;;  %v2858_v44 = vadd.f32 %v2790_v63, %v6219_v60  ;;  %v4036_v60 = vrot.slane %v6751_v11, 5  ;;  %v3591_v11 = vshll.u32 %v6787_v27, 16  ;;  %v2620_v25 = vrot.slane %v5453_v34, 5 }
 0x22b   : > { %2829 = vmatmul.bf16.gmra.mxu1 %v2693_v51  ;;  %v2614_v51 = vsel %vm5818_vm5, %v4877_v10, %v2613_v3  ;;  %v3570_v3 = vsel %vm5518_vm2, %v3565_v33, %v3569_v5  ;;  %v4039_v5 = vrot.slane %v6767_v61, 5  ;;  %v6908_v10 = vld [vmem:[#allocation2_spill] sm:$0xff]  ;;  %v4862_v61 = vld [vmem:[%s5503_s20 + $0xb4] sm:$0xe] }
 0x22c   : > { %v3784_v21 = vpop.f32.mrf.mxu3  ;;  %3144 = vmatmul.bf16.gmra.mxu2 %v5343_v7  ;;  %v2675_v31 = vunpack.c.l.b16 %v2614_v51  ;;  %v3672_v4 = vunpack.c.l.b16 %v3570_v3  ;;  %v4038_v49 = vrot.slane %v4036_v60, 4  ;;  %v3593_v51 = vrot.slane %v3591_v11, 5 }
 0x22d   : > { %v3854_v40 = vadd.f32 %v3784_v21, %v3172_v59  ;;  %v2676_v59 = vunpack.c.l.b16 %v2617_v13  ;;  %v3597_v13 = vrot.slane %v3595_v32, 4 }
 0x22e   : > { %v4040_v37 = vsel %vm5818_vm5, %v4038_v49, %v4039_v5 }
 0x22f   : > { %v4280_v18 = vadd.f32 %v4210_v55, %v3854_v40  ;;  %v3105_v28 = vpop.f32.mrf.mxu2  ;;  %v3585_v55 = vshll.u32 %v5114_v46, 16  ;;  %v2694_v38 = vpack.c.b16 %v2676_v59, %v2675_v31  ;;  %v5344_v40 = vld [vmem:[%s5503_s20 + $0xb4] sm:$0xff]  ;;  %v4878_v46 = vrot.slane %v4862_v61, 9 }
 0x230   : > { %v3173_v8 = vadd.f32 %v3105_v28, %v2858_v44  ;;  %v3598_v16 = vor.u32 %v3597_v13, %v3593_v51 }
 0x231   : > { %4312 = vst [vmem:[%s6649_s8 + $0x38] sm:$0xff] %v4280_v18  ;;  %3826 = vmatmul.bf16.gmra.mxu3 %v3690_v1  ;;  %v2792_v48 = vpop.f32.mrf.mxu1  ;;  %v4037_v1 = vsel %vm5818_vm5, %v5197_v52, %v4036_v60  ;;  %v3584_v18 = vrot.slane %v3582_v42, 4  ;;  %v3587_v44 = vrot.slane %v3585_v55, 5  ;;  %v5454_v60 = vld [vmem:[%s5503_s20 + $0xbc] sm:$0x1]  ;;  %v6909_v55 = vld [vmem:[#allocation3_spill] sm:$0xff]  ;;  %v2621_v32 = vsel %vm5818_vm5, %v4878_v46, %v2620_v25 }
 0x232   : > { %v4213_v7 = vpop.f32.mrf.mxu0  ;;  %v2859_v22 = vadd.f32 %v2792_v48, %v6908_v10  ;;  %v4098_v48 = vunpack.c.l.b16 %v4037_v1  ;;  %v2623_v31 = vrot.slane %v5454_v60, 5  ;;  %v5117_v1 = vld [vmem:[%s5503_s20 + $0xcc] sm:$0xf]  ;;  %v2677_v34 = vunpack.c.l.b16 %v2621_v32 }
 0x233   : > { %v3588_v59 = vor.u32 %v3587_v44, %v3584_v18 }
 0x234   : > { %v3787_v63 = vpop.f32.mrf.mxu3 }
 0x235   : > { %4252 = vmatmul.bf16.gmra.mxu0 %v4116_v19  ;;  %v3855_v12 = vadd.f32 %v3787_v63, %v3173_v8  ;;  %v6806_v19 = vld [vmem:[%s5503_s20 + $0xc8] sm:$0x1]  ;;  %v3691_v8 = vpack.c.b16 %v3673_v54, %v3672_v4  ;;  %v4099_v63 = vunpack.c.l.b16 %v4040_v37  ;;  %v3589_v49 = vrot.slane %v3588_v59, 4 }
 0x236   : > { %v3601_v52 = vshll.u32 %v6806_v19, 16 }
 0x237   : > { %v4281_v21 = vadd.f32 %v4213_v7, %v3855_v12  ;;  %v3107_v41 = vpop.f32.mrf.mxu2  ;;  %v2622_v7 = vrot.slane %v2620_v25, 4  ;;  %v4117_v5 = vpack.c.b16 %v4099_v63, %v4098_v48  ;;  %v6820_v25 = vld [vmem:[%s5503_s20 + $0xd0] sm:$0xf]  ;;  %v5455_v63 = vld [vmem:[%s5503_s20 + $0xc4] sm:$0xf] }
 0x238   : > { %v3174_v28 = vadd.f32 %v3107_v41, %v2859_v22  ;;  %v3599_v22 = vrot.slane %v3598_v16, 4  ;;  %v3603_v41 = vrot.slane %v3601_v52, 5  ;;  %v3615_v48 = vshll.u32 %v6820_v25, 16 }
 0x239   : > { %4313 = vst [vmem:[%s6649_s8 + $0x40] sm:$0xff] %v4281_v21  ;;  %v2795_v33 = vpop.f32.mrf.mxu1  ;;  %v2624_v4 = vsel %vm5818_vm5, %v2622_v7, %v2623_v31  ;;  %v5345_v31 = vld [vmem:[%s5503_s20 + $0xc0] sm:$0xff]  ;;  %v2627_v16 = vrot.slane %v5455_v63, 5 }
 0x23a   : > { %v4215_v57 = vpop.f32.mrf.mxu0  ;;  %v2860_v12 = vadd.f32 %v2795_v33, %v6909_v55  ;;  %v2678_v18 = vunpack.c.l.b16 %v2624_v4  ;;  %v3604_v13 = vsel %vm5518_vm2, %v3599_v22, %v3603_v41  ;;  %v4863_v55 = vld [vmem:[%s5503_s20 + $0xc0] sm:$0xe]  ;;  %v3617_v4 = vrot.slane %v3615_v48, 5 }
 0x23b   : > { %2834 = vmatmul.bf16.gmra.mxu1 %v2694_v38  ;;  %v5182_v38 = vld [vmem:[%s5503_s20 + $0xc0] sm:$0xe]  ;;  %v4879_v22 = vrot.slane %v4863_v55, 9  ;;  %v2629_v41 = vrot.slane %v2627_v16, 4 }
 0x23c   : > { %v3789_v47 = vpop.f32.mrf.mxu3  ;;  %3149 = vmatmul.bf16.gmra.mxu2 %v5344_v40  ;;  %v4043_v40 = vrot.slane %v6787_v27, 5  ;;  %v5198_v33 = vrot.slane %v5182_v38, 9  ;;  %v3609_v27 = vshll.u32 %v5117_v1, 16  ;;  %v2695_v60 = vpack.c.b16 %v2678_v18, %v2677_v34  ;;  %v5456_v38 = vld [vmem:[%s5503_s20 + $0xc8] sm:$0x1] }
 0x23d   : > { %v3856_v3 = vadd.f32 %v3789_v47, %v3174_v28  ;;  %v3594_v28 = vsel %vm5518_vm2, %v3589_v49, %v3593_v51  ;;  %v3619_v47 = vshrl.u32 %v6820_v25, 16 }
 0x23e   : > { %v4045_v37 = vrot.slane %v4043_v40, 4  ;;  %v3674_v59 = vunpack.c.l.b16 %v3594_v28 }
 0x23f   : > { %v4282_v42 = vadd.f32 %v4215_v57, %v3856_v3  ;;  %v3110_v11 = vpop.f32.mrf.mxu2  ;;  %v3606_v57 = vshrl.u32 %v5117_v1, 16  ;;  %v3675_v3 = vunpack.c.l.b16 %v3604_v13  ;;  %v3621_v49 = vrot.slane %v3619_v47, 4 }
 0x240   : > { %v3175_v21 = vadd.f32 %v3110_v11, %v2860_v12  ;;  %v3611_v11 = vrot.slane %v3609_v27, 5 }
 0x241   : > { %4314 = vst [vmem:[%s6649_s8 + $0x48] sm:$0xff] %v4282_v42  ;;  %3831 = vmatmul.bf16.gmra.mxu3 %v3691_v8  ;;  %v2797_v10 = vpop.f32.mrf.mxu1  ;;  %v4046_v8 = vrot.slane %v6806_v19, 5  ;;  %v4044_v19 = vsel %vm5818_vm5, %v5198_v33, %v4043_v40  ;;  %v3608_v12 = vrot.slane %v3606_v57, 4  ;;  %v3692_v1 = vpack.c.b16 %v3675_v3, %v3674_v59  ;;  %v5183_v59 = vld [vmem:[%s5503_s20 + $0xcc] sm:$0xe] }
 0x242   : > { %v4218_v54 = vpop.f32.mrf.mxu0  ;;  %v2861_v51 = vadd.f32 %v2797_v10, %v6270_v24  ;;  %v4100_v10 = vunpack.c.l.b16 %v4044_v19  ;;  %v2628_v57 = vsel %vm5818_vm5, %v4879_v22, %v2627_v16 }
 0x243   : > { %v4047_v24 = vsel %vm5818_vm5, %v4045_v37, %v4046_v8  ;;  %v3612_v18 = vor.u32 %v3611_v11, %v3608_v12 }
 0x244   : > { %v3792_v44 = vpop.f32.mrf.mxu3  ;;  %v4101_v34 = vunpack.c.l.b16 %v4047_v24  ;;  %v5346_v24 = vld [vmem:[%s5503_s20 + $0xcc] sm:$0xff] }
 0x245   : > { %4257 = vmatmul.bf16.gmra.mxu0 %v4117_v5  ;;  %v3857_v61 = vadd.f32 %v3792_v44, %v3175_v21  ;;  %v5119_v5 = vld [vmem:[%s5503_s20 + $0xd4] sm:$0x1]  ;;  %v3622_v44 = vor.u32 %v3621_v49, %v3617_v4  ;;  %v3613_v47 = vrot.slane %v3612_v18, 4 }
 0x246   : > { %v3625_v28 = vshll.u32 %v5119_v5, 16  ;;  %v4118_v37 = vpack.c.b16 %v4101_v34, %v4100_v10  ;;  %v4053_v55 = vrot.slane %v5119_v5, 5 }
 0x247   : > { %v4283_v46 = vadd.f32 %v4218_v54, %v3857_v61  ;;  %v3112_v7 = vpop.f32.mrf.mxu2  ;;  %v2630_v54 = vrot.slane %v5456_v38, 5  ;;  %v3618_v16 = vsel %vm5518_vm2, %v3613_v47, %v3617_v4 }
 0x248   : > { %v3176_v52 = vadd.f32 %v3112_v7, %v2861_v51  ;;  %v3623_v51 = vrot.slane %v3622_v44, 4  ;;  %v3627_v7 = vrot.slane %v3625_v28, 5  ;;  %v3676_v10 = vunpack.c.l.b16 %v3618_v16 }
 0x249   : > { %4315 = vst [vmem:[%s6649_s8 + $0x50] sm:$0xff] %v4283_v46  ;;  %v2800_v42 = vpop.f32.mrf.mxu1  ;;  %v2631_v27 = vsel %vm5818_vm5, %v2629_v41, %v2630_v54 }
 0x24a   : > { %v4220_v32 = vpop.f32.mrf.mxu0  ;;  %v2862_v61 = vadd.f32 %v2800_v42, %v6279_v36  ;;  %v2679_v36 = vunpack.c.l.b16 %v2628_v57  ;;  %v5199_v42 = vrot.slane %v5183_v59, 9 }
 0x24b   : > { %2839 = vmatmul.bf16.gmra.mxu1 %v2695_v60  ;;  %v4050_v60 = vrot.slane %v6820_v25, 5 }
 0x24c   : > { %v3794_v21 = vpop.f32.mrf.mxu3  ;;  %3154 = vmatmul.bf16.gmra.mxu2 %v5345_v31  ;;  %v2680_v31 = vunpack.c.l.b16 %v2631_v27 }
 0x24d   : > { %v3858_v40 = vadd.f32 %v3794_v21, %v3176_v52  ;;  %v3628_v52 = vsel %vm5518_vm2, %v3623_v51, %v3627_v7  ;;  %v4052_v19 = vrot.slane %v4050_v60, 4  ;;  %v4051_v30 = vsel %vm5818_vm5, %v5199_v42, %v4050_v60 }
 0x24e   : > { %v3677_v22 = vunpack.c.l.b16 %v3628_v52  ;;  %v4102_v54 = vunpack.c.l.b16 %v4051_v30 }
 0x24f   : > { %v4284_v33 = vadd.f32 %v4220_v32, %v3858_v40  ;;  %v3115_v13 = vpop.f32.mrf.mxu2  ;;  %v2696_v32 = vpack.c.b16 %v2680_v31, %v2679_v36  ;;  %v4054_v4 = vsel %vm5818_vm5, %v4052_v19, %v4053_v55 }
 0x250   : > { %v3177_v8 = vadd.f32 %v3115_v13, %v2862_v61  ;;  %v3693_v38 = vpack.c.b16 %v3677_v22, %v3676_v10  ;;  %v4103_v40 = vunpack.c.l.b16 %v4054_v4 }
 0x251   : > { %4316 = vst [vmem:[%s6649_s8 + $0x58] sm:$0xff] %v4284_v33  ;;  %3836 = vmatmul.bf16.gmra.mxu3 %v3692_v1  ;;  %v2802_v48 = vpop.f32.mrf.mxu1 }
 0x252   : > { %v4223_v46 = vpop.f32.mrf.mxu0  ;;  %v2863_v25 = vadd.f32 %v2802_v48, %v6292_v45  ;;  %v4119_v44 = vpack.c.b16 %v4103_v40, %v4102_v54 }
 0x254   : > { %v3797_v3 = vpop.f32.mrf.mxu3 }
 0x255   : > { %4262 = vmatmul.bf16.gmra.mxu0 %v4118_v37  ;;  %v3859_v63 = vadd.f32 %v3797_v3, %v3177_v8 }
 0x257   : > { %v4285_v12 = vadd.f32 %v4223_v46, %v3859_v63  ;;  %v3117_v11 = vpop.f32.mrf.mxu2 }
 0x258   : > { %v3178_v49 = vadd.f32 %v3117_v11, %v2863_v25 }
 0x259   : > { %4317 = vst [vmem:[%s6649_s8 + $0x60] sm:$0xff] %v4285_v12  ;;  %v2805_v21 = vpop.f32.mrf.mxu1 }
 0x25a   : > { %v4225_v41 = vpop.f32.mrf.mxu0  ;;  %v2864_v34 = vadd.f32 %v2805_v21, %v6305_v23 }
 0x25b   : > { %2844 = vmatmul.bf16.gmra.mxu1 %v2696_v32 }
 0x25c   : > { %v3799_v5 = vpop.f32.mrf.mxu3  ;;  %3159 = vmatmul.bf16.gmra.mxu2 %v5346_v24 }
 0x25d   : > { %v3860_v45 = vadd.f32 %v3799_v5, %v3178_v49 }
 0x25f   : > { %v4286_v1 = vadd.f32 %v4225_v41, %v3860_v45  ;;  %v3120_v18 = vpop.f32.mrf.mxu2 }
 0x260   : > { %v3179_v28 = vadd.f32 %v3120_v18, %v2864_v34 }
 0x261   : > { %4318 = vst [vmem:[%s6649_s8 + $0x68] sm:$0xff] %v4286_v1  ;;  %3841 = vmatmul.bf16.gmra.mxu3 %v3693_v38  ;;  %v2807_v33 = vpop.f32.mrf.mxu1 }
 0x262   : > { %v4228_v61 = vpop.f32.mrf.mxu0  ;;  %v2865_v27 = vadd.f32 %v2807_v33, %v6329_v17 }
 0x264   : > { %v3802_v43 = vpop.f32.mrf.mxu3 }
 0x265   : > { %4267 = vmatmul.bf16.gmra.mxu0 %v4119_v44  ;;  %v3861_v13 = vadd.f32 %v3802_v43, %v3179_v28 }
 0x267   : > { %v4287_v57 = vadd.f32 %v4228_v61, %v3861_v13  ;;  %v3122_v37 = vpop.f32.mrf.mxu2 }
 0x268   : > { %v3180_v8 = vadd.f32 %v3122_v37, %v2865_v27 }
 0x269   : > { %4319 = vst [vmem:[%s6649_s8 + $0x70] sm:$0xff] %v4287_v57  ;;  %v2810_v48 = vpop.f32.mrf.mxu1 }
 0x26a   : > { %v4230_v23 = vpop.f32.mrf.mxu0  ;;  %v2866_v7 = vadd.f32 %v2810_v48, %v6344_v20 }
 0x26c   : > { %v3804_v47 = vpop.f32.mrf.mxu3 }
 0x26d   : > { %v3862_v46 = vadd.f32 %v3804_v47, %v3180_v8 }
 0x26f   : > { %v4288_v51 = vadd.f32 %v4230_v23, %v3862_v46  ;;  %v3125_v60 = vpop.f32.mrf.mxu2 }
 0x270   : > { %v3181_v36 = vadd.f32 %v3125_v60, %v2866_v7 }
 0x271   : > { %4320 = vst [vmem:[%s6649_s8 + $0x78] sm:$0xff] %v4288_v51  ;;  %v2812_v31 = vpop.f32.mrf.mxu1 }
 0x272   : > { %v4233_v59 = vpop.f32.mrf.mxu0  ;;  %v2867_v16 = vadd.f32 %v2812_v31, %v6370_v56 }
 0x274   : > { %v3807_v3 = vpop.f32.mrf.mxu3 }
 0x275   : > { %v3863_v63 = vadd.f32 %v3807_v3, %v3181_v36 }
 0x277   : > { %v4289_v17 = vadd.f32 %v4233_v59, %v3863_v63  ;;  %v3127_v52 = vpop.f32.mrf.mxu2 }
 0x278   : > { %v3182_v42 = vadd.f32 %v3127_v52, %v2867_v16 }
 0x279   : > { %4321 = vst [vmem:[%s6649_s8 + $0x80] sm:$0xff] %v4289_v17  ;;  %v2815_v19 = vpop.f32.mrf.mxu1 }
 0x27a   : > { %v4235_v55 = vpop.f32.mrf.mxu0  ;;  %v2868_v11 = vadd.f32 %v2815_v19, %v6384_v29 }
 0x27c   : > { %v3809_v12 = vpop.f32.mrf.mxu3 }
 0x27d   : > { %v3864_v25 = vadd.f32 %v3809_v12, %v3182_v42 }
 0x27f   : > { %v4290_v20 = vadd.f32 %v4235_v55, %v3864_v25  ;;  %v3130_v32 = vpop.f32.mrf.mxu2 }
 0x280   : > { %v3183_v24 = vadd.f32 %v3130_v32, %v2868_v11 }
 0x281   : > { %4322 = vst [vmem:[%s6649_s8 + $0x88] sm:$0xff] %v4290_v20  ;;  %v2817_v49 = vpop.f32.mrf.mxu1 }
 0x282   : > { %v4238_v21 = vpop.f32.mrf.mxu0  ;;  %v2869_v41 = vadd.f32 %v2817_v49, %v6407_v58 }
 0x284   : > { %v3812_v10 = vpop.f32.mrf.mxu3 }
 0x285   : > { %v3865_v22 = vadd.f32 %v3812_v10, %v3183_v24 }
 0x287   : > { %v4291_v56 = vadd.f32 %v4238_v21, %v3865_v22  ;;  %v3132_v30 = vpop.f32.mrf.mxu2 }
 0x288   : > { %v3184_v4 = vadd.f32 %v3132_v30, %v2869_v41 }
 0x289   : > { %4323 = vst [vmem:[%s6649_s8 + $0x90] sm:$0xff] %v4291_v56  ;;  %v2820_v5 = vpop.f32.mrf.mxu1 }
 0x28a   : > { %v4240_v45 = vpop.f32.mrf.mxu0  ;;  %v2870_v40 = vadd.f32 %v2820_v5, %v6422_v26 }
 0x28c   : > { %v3814_v38 = vpop.f32.mrf.mxu3 }
 0x28d   : > { %v3866_v54 = vadd.f32 %v3814_v38, %v3184_v4 }
 0x28f   : > { %v4292_v29 = vadd.f32 %v4240_v45, %v3866_v54  ;;  %v3135_v1 = vpop.f32.mrf.mxu2 }
 0x290   : > { %v3185_v34 = vadd.f32 %v3135_v1, %v2870_v40 }
 0x291   : > { %4324 = vst [vmem:[%s6649_s8 + $0x98] sm:$0xff] %v4292_v29  ;;  %v2822_v18 = vpop.f32.mrf.mxu1 }
 0x292   : > { %v4243_v44 = vpop.f32.mrf.mxu0  ;;  %v2871_v61 = vadd.f32 %v2822_v18, %v6448_v53 }
 0x294   : > { %v3817_v28 = vpop.f32.mrf.mxu3 }
 0x295   : > { %v3867_v33 = vadd.f32 %v3817_v28, %v3185_v34 }
 0x297   : > { %v4293_v58 = vadd.f32 %v4243_v44, %v3867_v33  ;;  %v3137_v43 = vpop.f32.mrf.mxu2 }
 0x298   : > { %v3186_v13 = vadd.f32 %v3137_v43, %v2871_v61 }
 0x299   : > { %4325 = vst [vmem:[%s6649_s8 + $0xa0] sm:$0xff] %v4293_v58  ;;  %v2825_v57 = vpop.f32.mrf.mxu1 }
 0x29a   : > { %v4245_v27 = vpop.f32.mrf.mxu0  ;;  %v2872_v48 = vadd.f32 %v2825_v57, %v6462_v2 }
 0x29c   : > { %v3819_v37 = vpop.f32.mrf.mxu3 }
 0x29d   : > { %v3868_v8 = vadd.f32 %v3819_v37, %v3186_v13 }
 0x29f   : > { %v4294_v26 = vadd.f32 %v4245_v27, %v3868_v8  ;;  %v3140_v23 = vpop.f32.mrf.mxu2 }
 0x2a0   : > { %v3187_v47 = vadd.f32 %v3140_v23, %v2872_v48 }
 0x2a1   : > { %4326 = vst [vmem:[%s6649_s8 + $0xa8] sm:$0xff] %v4294_v26  ;;  %v2827_v46 = vpop.f32.mrf.mxu1 }
 0x2a2   : > { %v4248_v51 = vpop.f32.mrf.mxu0  ;;  %v2873_v36 = vadd.f32 %v2827_v46, %v6485_v50 }
 0x2a4   : > { %v3822_v7 = vpop.f32.mrf.mxu3 }
 0x2a5   : > { %v3869_v60 = vadd.f32 %v3822_v7, %v3187_v47 }
 0x2a7   : > { %v4295_v53 = vadd.f32 %v4248_v51, %v3869_v60  ;;  %v3142_v31 = vpop.f32.mrf.mxu2 }
 0x2a8   : > { %v3188_v59 = vadd.f32 %v3142_v31, %v2873_v36 }
 0x2a9   : > { %4327 = vst [vmem:[%s6649_s8 + $0xb0] sm:$0xff] %v4295_v53  ;;  %v2830_v3 = vpop.f32.mrf.mxu1 }
 0x2aa   : > { %v4250_v63 = vpop.f32.mrf.mxu0  ;;  %v2874_v52 = vadd.f32 %v2830_v3, %v6500_v35 }
 0x2ac   : > { %v3824_v17 = vpop.f32.mrf.mxu3 }
 0x2ad   : > { %v3870_v16 = vadd.f32 %v3824_v17, %v3188_v59 }
 0x2af   : > { %v4296_v2 = vadd.f32 %v4250_v63, %v3870_v16  ;;  %v3145_v42 = vpop.f32.mrf.mxu2 }
 0x2b0   : > { %v3189_v19 = vadd.f32 %v3145_v42, %v2874_v52 }
 0x2b1   : > { %4328 = vst [vmem:[%s6649_s8 + $0xb8] sm:$0xff] %v4296_v2  ;;  %v2832_v55 = vpop.f32.mrf.mxu1 }
 0x2b2   : > { %v4253_v12 = vpop.f32.mrf.mxu0  ;;  %v2875_v11 = vadd.f32 %v2832_v55, %v6523_v0 }
 0x2b4   : > { %v3827_v25 = vpop.f32.mrf.mxu3 }
 0x2b5   : > { %v3871_v20 = vadd.f32 %v3827_v25, %v3189_v19 }
 0x2b7   : > { %v4297_v50 = vadd.f32 %v4253_v12, %v3871_v20  ;;  %v3147_v32 = vpop.f32.mrf.mxu2 }
 0x2b8   : > { %v3190_v24 = vadd.f32 %v3147_v32, %v2875_v11 }
 0x2b9   : > { %4329 = vst [vmem:[%s6649_s8 + $0xc0] sm:$0xff] %v4297_v50  ;;  %v2835_v49 = vpop.f32.mrf.mxu1 }
 0x2ba   : > { %v4255_v21 = vpop.f32.mrf.mxu0  ;;  %v2876_v56 = vadd.f32 %v2835_v49, %v6536_v14 }
 0x2bc   : > { %v3829_v10 = vpop.f32.mrf.mxu3 }
 0x2bd   : > { %v3872_v22 = vadd.f32 %v3829_v10, %v3190_v24 }
 0x2bf   : > { %v4298_v35 = vadd.f32 %v4255_v21, %v3872_v22  ;;  %v3150_v41 = vpop.f32.mrf.mxu2 }
 0x2c0   : > { %v3191_v30 = vadd.f32 %v3150_v41, %v2876_v56 }
 0x2c1   : > { %4330 = vst [vmem:[%s6649_s8 + $0xc8] sm:$0xff] %v4298_v35  ;;  %v2837_v4 = vpop.f32.mrf.mxu1 }
 0x2c2   : > { %v4258_v5 = vpop.f32.mrf.mxu0  ;;  %v2877_v54 = vadd.f32 %v2837_v4, %v6558_v9 }
 0x2c4   : > { %v3832_v45 = vpop.f32.mrf.mxu3 }
 0x2c5   : > { %v3873_v38 = vadd.f32 %v3832_v45, %v3191_v30 }
 0x2c7   : > { %v4299_v0 = vadd.f32 %v4258_v5, %v3873_v38  ;;  %v3152_v29 = vpop.f32.mrf.mxu2 }
 0x2c8   : > { %v3192_v40 = vadd.f32 %v3152_v29, %v2877_v54 }
 0x2c9   : > { %4331 = vst [vmem:[%s6649_s8 + $0xd0] sm:$0xff] %v4299_v0  ;;  %v2840_v1 = vpop.f32.mrf.mxu1 }
 0x2ca   : > { %v4260_v34 = vpop.f32.mrf.mxu0  ;;  %v2878_v28 = vadd.f32 %v2840_v1, %v6573_v6 }
 0x2cc   : > { %v3834_v18 = vpop.f32.mrf.mxu3 }
 0x2cd   : > { %v3874_v44 = vadd.f32 %v3834_v18, %v3192_v40 }
 0x2cf   : > { %v4300_v14 = vadd.f32 %v4260_v34, %v3874_v44  ;;  %v3155_v33 = vpop.f32.mrf.mxu2 }
 0x2d0   : > { %v3193_v58 = vadd.f32 %v3155_v33, %v2878_v28 }
 0x2d1   : > { %4332 = vst [vmem:[%s6649_s8 + $0xd8] sm:$0xff] %v4300_v14  ;;  %v2842_v61 = vpop.f32.mrf.mxu1 }
 0x2d2   : > { %v4263_v43 = vpop.f32.mrf.mxu0  ;;  %v2879_v27 = vadd.f32 %v2842_v61, %v6596_v15 }
 0x2d4   : > { %v3837_v13 = vpop.f32.mrf.mxu3 }
 0x2d5   : > { %v3875_v57 = vadd.f32 %v3837_v13, %v3193_v58 }
 0x2d7   : > { %v4301_v9 = vadd.f32 %v4263_v43, %v3875_v57  ;;  %v3157_v37 = vpop.f32.mrf.mxu2 }
 0x2d8   : > { %v3194_v8 = vadd.f32 %v3157_v37, %v2879_v27 }
 0x2d9   : > { %4333 = vst [vmem:[%s6649_s8 + $0xe0] sm:$0xff] %v4301_v9  ;;  %v2845_v26 = vpop.f32.mrf.mxu1 }
 0x2da   : > { %v4265_v48 = vpop.f32.mrf.mxu0  ;;  %v2880_v46 = vadd.f32 %v2845_v26, %v6608_v39 }
 0x2dc   : > { %v3839_v23 = vpop.f32.mrf.mxu3 }
 0x2dd   : > { %v3876_v47 = vadd.f32 %v3839_v23, %v3194_v8 }
 0x2df   : > { %v4302_v6 = vadd.f32 %v4265_v48, %v3876_v47  ;;  %v3160_v51 = vpop.f32.mrf.mxu2 }
 0x2e0   : > { %v3195_v7 = vadd.f32 %v3160_v51, %v2880_v46 }
 0x2e1   : > { %4334 = vst [vmem:[%s6649_s8 + $0xe8] sm:$0xff] %v4302_v6  ;;  %v2847_v60 = vpop.f32.mrf.mxu1 }
 0x2e2   : > { %v4268_v53 = vpop.f32.mrf.mxu0  ;;  %v2881_v59 = vadd.f32 %v2847_v60, %v6632_v62 }
 0x2e4   : > { %v3842_v36 = vpop.f32.mrf.mxu3 }
 0x2e5   : > { %v3877_v31 = vadd.f32 %v3842_v36, %v3195_v7 }
 0x2e7   : > { %v4303_v15 = vadd.f32 %v4268_v53, %v3877_v31  ;;  %v3162_v3 = vpop.f32.mrf.mxu2 }
 0x2e8   : > { %v3196_v63 = vadd.f32 %v3162_v3, %v2881_v59 }
 0x2e9   : > { %4335 = vst [vmem:[%s6649_s8 + $0xf0] sm:$0xff] %v4303_v15 }
 0x2ea   : > { %v4270_v2 = vpop.f32.mrf.mxu0 }
 0x2ec   : > { %v3844_v17 = vpop.f32.mrf.mxu3 }
 0x2ed   : > { %v3878_v16 = vadd.f32 %v3844_v17, %v3196_v63 }
 0x2ef   : > { %v4304_v52 = vadd.f32 %v4270_v2, %v3878_v16 }
 0x2f1   : > { %4336 = vst [vmem:[%s6649_s8 + $0xf8] sm:$0xff] %v4304_v52 }
 0x2f2 PF: > { %s12_s9 = sadd.s32 1, %s5463_s9  }
 0x2f3   : > { %p9_p4 = scmp.ge.s32.totalorder %s12_s9, 4  }
 0x2f5   :  { %11 = sbr.rel (!%p9_p4) target bundleno = 1 (0x1), region = 68 }

</bundles_post_ra>
